<compile_context>
chip_gen: v5e
topology: v5e:2x2
jax: 0.10.0
libtpu: 0.0.40
codegen_flags: <defaults>
</compile_context>

<pallas_src>
import functools

import numpy as np
import jax
import jax.numpy as jnp
from jax.experimental import pallas as pl
from jax.experimental.pallas import tpu as pltpu


# ------------------------- generation detection ------------------------------

def _tpu_generation():
    """(num_tensorcores_per_device, is_v5e_like). Defaults are safe."""
    try:
        dk = jax.devices()[0].device_kind.lower()
    except Exception:
        return 1, False
    num_tc = 2 if "7" in dk else 1          # v7x has 2 TCs per chip
    is_v5 = "v5" in dk                       # v5e: no bf16 VPU
    return num_tc, is_v5


_NUM_TC, _IS_V5 = _tpu_generation()
_CAST_ACT_BF16 = not _IS_V5


def _gelu(x):
    # tanh-approx GELU (PyTorch nn.GELU uses exact erf; diff ~1e-3)
    c = 0.7978845608028654
    return 0.5 * x * (1.0 + jnp.tanh(c * (x + 0.044715 * x * x * x)))


def _row_tile(m, cap=1024):
    """Row tile (sublane axis). Single full block on 1-TC chips; 2 blocks on
    v7x when m allows it."""
    if _NUM_TC == 1 or m % 8 != 0 or m < 16:
        return m
    half = m // 2
    if half % 8 == 0 and half <= cap:
        return half
    t = min(cap, (m // 8) * 8)
    while t >= 8:
        if m % t == 0:
            return t
        t -= 8
    return m


def _lane_tile(m):
    """Lane-axis tile for the transposed FNO kernel (must stay 128-aligned)."""
    if _NUM_TC == 2 and m % 256 == 0:
        return m // 2
    return m


# --------------------------- Pallas kernels ---------------------------------

def _mlp_kernel(x_ref, *refs, acts, ns, residual_cols, cast_bf16):
    """Fused chain: x -> [dot + bias (+gelu)] * L, all VMEM-resident.
    refs = (w1, ..., wL, bias_stack, o_ref); weights are bf16, biases f32."""
    o_ref = refs[-1]
    b_all = refs[-2][...]                    # [L, n_max] f32
    ws = refs[:-2]
    x = x_ref[...]
    h = x
    for i, act in enumerate(acts):
        lhs = h.astype(jnp.bfloat16) if cast_bf16 else h
        h = jnp.dot(lhs, ws[i][...], preferred_element_type=jnp.float32)
        h = h + b_all[i:i + 1, :ns[i]]
        if act:
            h = _gelu(h)
    if residual_cols:
        h = h + x[:, :residual_cols]
    o_ref[...] = h


def fused_mlp(x, ws_bf16, bias_stack, acts, ns, residual_cols=0):
    """y = chain of (x @ w + b [+gelu]) in one pallas_call.
    x: [M, K] f32; ws_bf16: list of [k, n] bf16; bias_stack: [L, n_max] f32."""
    M, K = x.shape
    TM = _row_tile(M)
    n_out = ns[-1]
    in_specs = [pl.BlockSpec((TM, K), lambda i: (i, 0))]
    args = [x]
    for w in ws_bf16:
        k, n = w.shape
        in_specs.append(pl.BlockSpec((k, n), lambda i: (0, 0)))
        args.append(w)
    L, nmax = bias_stack.shape
    in_specs.append(pl.BlockSpec((L, nmax), lambda i: (0, 0)))
    args.append(bias_stack)
    return pl.pallas_call(
        functools.partial(_mlp_kernel, acts=tuple(acts), ns=tuple(ns),
                          residual_cols=residual_cols,
                          cast_bf16=_CAST_ACT_BF16),
        out_shape=jax.ShapeDtypeStruct((M, n_out), jnp.float32),
        grid=(M // TM,),
        in_specs=in_specs,
        out_specs=pl.BlockSpec((TM, n_out), lambda i: (i, 0)),
        compiler_params=pltpu.CompilerParams(
            dimension_semantics=("parallel",)),
    )(*args)


def _fno_pw_kernel(z_ref, x1_ref, wt_ref, b_ref, o_ref, *, act, cast_bf16):
    """FNO layer (transposed, lane-dense): out = (gelu?)(w^T @ z^T + b + x1^T).
    z_ref/x1_ref/o_ref: [C, TL]; wt_ref: [Cout, Cin] bf16; b_ref: [C, 1]."""
    z = z_ref[...]
    rhs = z.astype(jnp.bfloat16) if cast_bf16 else z
    y = (jnp.dot(wt_ref[...], rhs, preferred_element_type=jnp.float32)
         + b_ref[...] + x1_ref[...])
    if act:
        y = _gelu(y)
    o_ref[...] = y


def fno_pointwise_t(z_t, x1_t, wt_bf16, b_col, act):
    """z_t, x1_t: [C, M] f32 (channel-major). Output [C, M] f32."""
    C, M = z_t.shape
    TL = _lane_tile(M)
    return pl.pallas_call(
        functools.partial(_fno_pw_kernel, act=act, cast_bf16=_CAST_ACT_BF16),
        out_shape=jax.ShapeDtypeStruct((C, M), jnp.float32),
        grid=(M // TL,),
        in_specs=[pl.BlockSpec((C, TL), lambda i: (0, i)),
                  pl.BlockSpec((C, TL), lambda i: (0, i)),
                  pl.BlockSpec((C, C), lambda i: (0, 0)),
                  pl.BlockSpec((C, 1), lambda i: (0, 0))],
        out_specs=pl.BlockSpec((C, TL), lambda i: (0, i)),
        compiler_params=pltpu.CompilerParams(
            dimension_semantics=("parallel",)),
    )(z_t, x1_t, wt_bf16, b_col)


def _conv_decoder_kernel(x_ref, wc_ref, bc_ref, w1_ref, w2_ref, w3_ref,
                         bfc_ref, o_ref, *, cast_bf16):
    """Per-sample: gelu(3x3 conv as one K=9C matmul) -> fc1+gelu -> fc2+gelu
    -> fc3 (padded to 128 output lanes). Intermediates stay in VMEM."""
    n1 = w1_ref.shape[1]
    n2 = w2_ref.shape[1]
    n3 = w3_ref.shape[1]
    bfc = bfc_ref[...]                               # [3, 128] f32
    h = jnp.dot(x_ref[0], wc_ref[0],
                preferred_element_type=jnp.float32) + bc_ref[0]
    h = _gelu(h)

    def _dot(a, w_ref):
        lhs = a.astype(jnp.bfloat16) if cast_bf16 else a
        return jnp.dot(lhs, w_ref[...], preferred_element_type=jnp.float32)

    h = _gelu(_dot(h, w1_ref) + bfc[0:1, :n1])
    h = _gelu(_dot(h, w2_ref) + bfc[1:2, :n2])
    o_ref[0] = _dot(h, w3_ref) + bfc[2:3, :n3]       # 128-lane unmasked store


def conv3x3_decoder(x_nhwc, w_col, bias, p, out_dim):
    """Per-sample 3x3 same-conv (stride 1, pad 1) + GELU fused with the
    decoder MLP. x_nhwc: [B,H,W,C]; w_col: [B,9C,C] bf16; bias: [B,C]."""
    B, H, W, C = x_nhwc.shape
    # TODO(synk): build the 9 im2col taps inside the kernel from a padded
    # VMEM-resident sample (shifted loads) if H, W, or C scale up; at the
    # current sizes the XLA-side im2col slab is only ~150 KiB (bf16).
    xp = jnp.pad(x_nhwc, ((0, 0), (1, 1), (1, 1), (0, 0)))
    taps = [xp[:, dy:dy + H, dx:dx + W, :] for dy in range(3) for dx in range(3)]
    x_col = jnp.concatenate(taps, axis=-1).reshape(B, H * W, 9 * C)
    x_col = x_col.astype(jnp.bfloat16)
    out = pl.pallas_call(
        functools.partial(_conv_decoder_kernel, cast_bf16=_CAST_ACT_BF16),
        out_shape=jax.ShapeDtypeStruct((B, H * W, 128), jnp.float32),
        grid=(B,),
        in_specs=[
            pl.BlockSpec((1, H * W, 9 * C), lambda b: (b, 0, 0)),
            pl.BlockSpec((1, 9 * C, C), lambda b: (b, 0, 0)),
            pl.BlockSpec((1, 1, C), lambda b: (b, 0, 0)),
            pl.BlockSpec((C, 128), lambda b: (0, 0)),
            pl.BlockSpec((128, C), lambda b: (0, 0)),
            pl.BlockSpec((C, 128), lambda b: (0, 0)),
            pl.BlockSpec((3, 128), lambda b: (0, 0)),
        ],
        out_specs=pl.BlockSpec((1, H * W, 128), lambda b: (b, 0, 0)),
        compiler_params=pltpu.CompilerParams(
            dimension_semantics=("parallel",)),
    )(x_col, w_col, bias.reshape(B, 1, C).astype(jnp.float32),
      p['fc1_w'], p['fc2_w'], p['fc3_w'], p['fc_bs'])
    return out[:, :, :out_dim].reshape(B, H, W, out_dim)


# ------------------------ model building blocks ------------------------------

def spectral_conv2d_cbhw(x, w1, w2, m1, m2):
    """FNO SpectralConv2d in channel-major [C, B, H, W] layout.
    w: complex [Cin, Cout, m1, m2]."""
    # TODO(synk): FFT has no Pallas primitive; rfft2/irfft2 run via XLA.
    C, B, H, W = x.shape
    x_ft = jnp.fft.rfft2(x, axes=(2, 3))
    out_ft = jnp.zeros((C, B, H, W // 2 + 1), jnp.complex64)
    # NOTE: assumes 2*m1 <= H (same silent-overlap behavior as the reference).
    out_ft = out_ft.at[:, :, :m1, :m2].set(
        jnp.einsum('ibxy,ioxy->obxy', x_ft[:, :, :m1, :m2], w1))
    out_ft = out_ft.at[:, :, -m1:, :m2].set(
        jnp.einsum('ibxy,ioxy->obxy', x_ft[:, :, -m1:, :m2], w2))
    return jnp.fft.irfft2(out_ft, s=(H, W), axes=(2, 3))


def mp_layer(p, h, pos, variables, edge_index, batch, *, C):
    # TODO(synk): MPLayer source was not provided; re-implemented as an
    # MP-PDE-solver style edge-MLP -> sum-aggregate -> node-MLP with residual.
    # Edge gather / segment_sum stay in XLA (928 edges: overhead only).
    src, dst = edge_index[0], edge_index[1]
    msg_in = jnp.concatenate(
        [h[dst], h[src], pos[dst] - pos[src], variables[dst]], axis=-1)
    m = fused_mlp(msg_in, p['msg_ws'], p['msg_bs'], acts=(True, True),
                  ns=(C, C))
    agg = jax.ops.segment_sum(m, dst, num_segments=h.shape[0])
    upd_in = jnp.concatenate([h, agg], axis=-1)
    # residual (h + MLP(...)) fused into the kernel via residual_cols.
    return fused_mlp(upd_in, p['upd_ws'], p['upd_bs'], acts=(True, False),
                     ns=(C, C), residual_cols=C)


def pino_graph_forward(params, x, x_e, edge_index, batch, *, cfg):
    H, W, C, out_dim = cfg['H'], cfg['W'], cfg['hidden'], cfg['out_dim']
    B = x_e.shape[0]
    pos = x[:, -2:]
    variable = x[:, 2:3]

    # ---- external factor embedding (use_exf=True) ----
    # [B,6] input: too small to amortize a pallas_call -> plain jnp / XLA.
    day = x_e[:, 2].astype(jnp.int32)
    hour = x_e[:, 3].astype(jnp.int32)
    ext_emb = jnp.concatenate(
        [x_e[:, 0:1],
         jnp.take(params['emb_day'], day, axis=0),
         jnp.take(params['emb_hour'], hour, axis=0)], axis=-1)       # [B, 6]
    # Dropout(0.3) is identity in eval mode.
    g = _gelu(ext_emb @ params['ext_w1'] + params['ext_b1'])
    g = _gelu(g @ params['ext_w2'] + params['ext_b2'])               # [B, H*W]
    variable = jnp.concatenate([variable, g.reshape(-1, 1)], axis=-1)  # [N, 2]

    # ---- lifting encoder (transfer2latent + GNN layers) ----
    h = fused_mlp(x, params['t2l_ws'], params['t2l_bs'],
                  acts=(True, True), ns=(C, C))
    for p in params['gnn']:
        h = mp_layer(p, h, pos, variable, edge_index, batch, C=C)

    # ---- integral: FNO blocks in channel-major [C, N] (lane-dense) ----
    N = h.shape[0]
    z_t = h.T                                                # [C, N]
    n_layers = len(params['spec_w1'])
    for i in range(n_layers):
        x1 = spectral_conv2d_cbhw(z_t.reshape(C, B, H, W),
                                  params['spec_w1'][i], params['spec_w2'][i],
                                  cfg['modes1'][i], cfg['modes2'][i])
        z_t = fno_pointwise_t(z_t, x1.reshape(C, N),
                              params['ws_wt'][i], params['ws_bc'][i],
                              act=(i != n_layers - 1))
    z = z_t.reshape(C, B, H, W).transpose(1, 2, 3, 0)        # NHWC

    # ---- decoder_time (per-sample 3x3 conv by hour) fused with decoder ----
    t_idx = jnp.clip(hour - 5, 0, params['time_w_col'].shape[0] - 1)
    tw = params['time_w_col'][t_idx]                         # [B, 9C, C] bf16
    tb = params['time_b'][t_idx]                             # [B, C]
    return conv3x3_decoder(z, tw, tb, params, out_dim)       # [B, H, W, out]


# ----------------------------- parameters ------------------------------------

def _lin(key, fi, fo):
    kw, kb = jax.random.split(key)
    bound = 1.0 / np.sqrt(fi)
    w = jax.random.uniform(kw, (fi, fo), jnp.float32, -bound, bound)
    b = jax.random.uniform(kb, (fo,), jnp.float32, -bound, bound)
    return w, b


def init_params(key, cfg):
    H, W, C = cfg['H'], cfg['W'], cfg['hidden']
    in_dim, out_dim = cfg['in_dim'], cfg['out_dim']
    n_var = 2 if cfg['use_exf'] else 1
    keys = iter(jax.random.split(key, 64))
    p = {}
    p['emb_day'] = jax.random.normal(next(keys), (8, 2), jnp.float32)
    p['emb_hour'] = jax.random.normal(next(keys), (24, 3), jnp.float32)
    p['ext_w1'], p['ext_b1'] = _lin(next(keys), 6, 64)
    p['ext_w2'], p['ext_b2'] = _lin(next(keys), 64, H * W)
    p['t2l_w1'], p['t2l_b1'] = _lin(next(keys), in_dim, C)
    p['t2l_w2'], p['t2l_b2'] = _lin(next(keys), C, C)
    gnn = []
    for _ in range(cfg['gnn_layers']):
        lp = {}
        lp['msg_w1'], lp['msg_b1'] = _lin(next(keys), 2 * C + 2 + n_var, C)
        lp['msg_w2'], lp['msg_b2'] = _lin(next(keys), C, C)
        lp['upd_w1'], lp['upd_b1'] = _lin(next(keys), 2 * C, C)
        lp['upd_w2'], lp['upd_b2'] = _lin(next(keys), C, C)
        gnn.append(lp)
    p['gnn'] = gnn
    spec_w1, spec_w2, ws_w, ws_b = [], [], [], []
    for i in range(cfg['no_layers']):
        m1, m2 = cfg['modes1'][i], cfg['modes2'][i]
        scale = 1.0 / (C * C)
        kr, ki, kr2, ki2 = jax.random.split(next(keys), 4)
        spec_w1.append((scale * (jax.random.uniform(kr, (C, C, m1, m2))
                                 + 1j * jax.random.uniform(ki, (C, C, m1, m2)))
                        ).astype(jnp.complex64))
        spec_w2.append((scale * (jax.random.uniform(kr2, (C, C, m1, m2))
                                 + 1j * jax.random.uniform(ki2, (C, C, m1, m2)))
                        ).astype(jnp.complex64))
        w, b = _lin(next(keys), C, C)        # Conv1d(C, C, 1) == per-pixel linear
        ws_w.append(w)
        ws_b.append(b)
    p['spec_w1'], p['spec_w2'] = spec_w1, spec_w2
    p['ws_w'], p['ws_b'] = ws_w, ws_b
    p['fc1_w'], p['fc1_b'] = _lin(next(keys), C, 128)
    p['fc2_w'], p['fc2_b'] = _lin(next(keys), 128, C)
    p['fc3_w'], p['fc3_b'] = _lin(next(keys), C, out_dim)
    time_span = 14
    bound = 1.0 / np.sqrt(C * 9)
    p['time_w'] = jax.random.uniform(next(keys), (time_span, 9, C, C),
                                     jnp.float32, -bound, bound)
    p['time_b'] = jax.random.uniform(next(keys), (time_span, C),
                                     jnp.float32, -bound, bound)
    return p


def prepare_params(p, cfg):
    """Pre-cast / pre-layout everything ONCE (outside jit): bf16 weights,
    transposed FNO weights, stacked per-chain biases, padded fc3."""
    C, out_dim = cfg['hidden'], cfg['out_dim']
    bf = lambda w: jnp.asarray(w, jnp.bfloat16)
    q = {}
    q['emb_day'], q['emb_hour'] = p['emb_day'], p['emb_hour']
    q['ext_w1'], q['ext_b1'] = p['ext_w1'], p['ext_b1']
    q['ext_w2'], q['ext_b2'] = p['ext_w2'], p['ext_b2']
    q['t2l_ws'] = [bf(p['t2l_w1']), bf(p['t2l_w2'])]
    q['t2l_bs'] = jnp.stack([p['t2l_b1'], p['t2l_b2']], axis=0)      # [2, C]
    gnn = []
    for lp in p['gnn']:
        gl = {}
        gl['msg_ws'] = [bf(lp['msg_w1']), bf(lp['msg_w2'])]
        gl['msg_bs'] = jnp.stack([lp['msg_b1'], lp['msg_b2']], axis=0)
        gl['upd_ws'] = [bf(lp['upd_w1']), bf(lp['upd_w2'])]
        gl['upd_bs'] = jnp.stack([lp['upd_b1'], lp['upd_b2']], axis=0)
        gnn.append(gl)
    q['gnn'] = gnn
    q['spec_w1'], q['spec_w2'] = p['spec_w1'], p['spec_w2']
    q['ws_wt'] = [bf(w.T) for w in p['ws_w']]                        # [Cout,Cin]
    q['ws_bc'] = [jnp.asarray(b, jnp.float32).reshape(C, 1) for b in p['ws_b']]
    q['time_w_col'] = bf(p['time_w'].reshape(p['time_w'].shape[0], 9 * C, C))
    q['time_b'] = p['time_b']
    q['fc1_w'] = bf(p['fc1_w'])
    q['fc2_w'] = bf(p['fc2_w'])
    fc3_pad = jnp.zeros((C, 128), jnp.float32).at[:, :out_dim].set(p['fc3_w'])
    q['fc3_w'] = bf(fc3_pad)                                         # lane-dense
    bfc = jnp.zeros((3, 128), jnp.float32)
    bfc = bfc.at[0, :p['fc1_b'].shape[0]].set(p['fc1_b'])
    bfc = bfc.at[1, :p['fc2_b'].shape[0]].set(p['fc2_b'])
    bfc = bfc.at[2, :out_dim].set(p['fc3_b'])
    q['fc_bs'] = bfc
    return q


def build_grid_edges(B, H, W):
    """4-neighbor grid graph per sample, both directions (COO [2, E])."""
    edges = []
    for b in range(B):
        off = b * H * W
        for y in range(H):
            for x in range(W):
                n = off + y * W + x
                if x + 1 < W:
                    edges.append((n, n + 1)); edges.append((n + 1, n))
                if y + 1 < H:
                    edges.append((n, n + W)); edges.append((n + W, n))
    return jnp.asarray(np.array(edges, dtype=np.int32).T)


# --------------------------------- main ---------------------------------------

if __name__ == "__main__":
    cfg = dict(H=8, W=16, hidden=32, in_dim=4, out_dim=2,
               modes1=[4, 4], modes2=[4, 4], no_layers=2, gnn_layers=2,
               use_exf=True, time=True)
    key = jax.random.PRNGKey(0)
    kp, kx, ke = jax.random.split(key, 3)
    params = prepare_params(init_params(kp, cfg), cfg)

    B = 2
    N = B * cfg['H'] * cfg['W']
    x = jax.random.normal(kx, (N, cfg['in_dim']), jnp.float32)
    # x_e columns: [scalar feature, unused, day idx in [0,8), hour in [5,19)]
    x_e = jnp.stack([
        jax.random.normal(ke, (B,), jnp.float32),
        jnp.zeros((B,), jnp.float32),
        jnp.array([1.0, 3.0], jnp.float32),
        jnp.array([7.0, 12.0], jnp.float32)], axis=1)
    edge_index = build_grid_edges(B, cfg['H'], cfg['W'])
    batch = jnp.repeat(jnp.arange(B, dtype=jnp.int32), cfg['H'] * cfg['W'])

    fwd = jax.jit(functools.partial(pino_graph_forward, cfg=cfg))
    out = fwd(params, x, x_e, edge_index, batch)
    out = jax.block_until_ready(out)
    assert out.shape == (B, cfg['H'], cfg['W'], cfg['out_dim'])
    assert bool(jnp.all(jnp.isfinite(out)))
    print("KERNEL_OK")
</pallas_src>

<mosaic_0001>
module attributes {stable_mosaic.version = 11 : i64} {
  func.func @_mlp_kernel(%arg0: i32, %arg1: memref<256x4xf32, #tpu.memory_space<vmem>>, %arg2: memref<4x32xbf16, #tpu.memory_space<vmem>>, %arg3: memref<32x32xbf16, #tpu.memory_space<vmem>>, %arg4: memref<2x32xf32, #tpu.memory_space<vmem>>, %arg5: memref<256x32xf32, #tpu.memory_space<vmem>>) attributes {dimension_semantics = [#tpu.dimension_semantics<parallel>], iteration_bounds = array<i64: 1>, scalar_prefetch = 0 : i64, scratch_operands = 0 : i64, tpu.core_type = #tpu.core_type<tc>, window_params = [{transform_indices = @transform_0, window_bounds = array<i64: 256, 4>}, {pipeline_mode = #tpu.pipeline_mode<synchronous>, transform_indices = @transform_1, window_bounds = array<i64: 4, 32>}, {pipeline_mode = #tpu.pipeline_mode<synchronous>, transform_indices = @transform_2, window_bounds = array<i64: 32, 32>}, {pipeline_mode = #tpu.pipeline_mode<synchronous>, transform_indices = @transform_3, window_bounds = array<i64: 2, 32>}, {transform_indices = @transform_4, window_bounds = array<i64: 256, 32>}]} {
    %c0 = arith.constant 0 : index
    %c0_0 = arith.constant 0 : index
    %0 = vector.load %arg4[%c0, %c0_0] : memref<2x32xf32, #tpu.memory_space<vmem>>, vector<2x32xf32>
    %c0_1 = arith.constant 0 : index
    %c0_2 = arith.constant 0 : index
    %1 = vector.load %arg1[%c0_1, %c0_2] : memref<256x4xf32, #tpu.memory_space<vmem>>, vector<256x4xf32>
    %2 = arith.truncf %1 : vector<256x4xf32> to vector<256x4xbf16>
    %c0_3 = arith.constant 0 : index
    %c0_4 = arith.constant 0 : index
    %3 = vector.load %arg2[%c0_3, %c0_4] : memref<4x32xbf16, #tpu.memory_space<vmem>>, vector<4x32xbf16>
    %cst = arith.constant dense<0.000000e+00> : vector<256x32xf32>
    %4 = tpu.matmul %2, %3, %cst {dimension_numbers = #tpu.dot_dimension_numbers<[1], [0], [0], [1], [0, 0, 1, 1], [], []>} : vector<256x4xbf16>, vector<4x32xbf16>, vector<256x32xf32> -> vector<256x32xf32>
    %5 = vector.extract_strided_slice %0 {offsets = [0, 0], sizes = [1, 32], strides = [1, 1]} : vector<2x32xf32> to vector<1x32xf32>
    %6 = vector.broadcast %5 : vector<1x32xf32> to vector<256x32xf32>
    %7 = arith.addf %4, %6 : vector<256x32xf32>
    %cst_5 = arith.constant 5.000000e-01 : f32
    %8 = vector.broadcast %cst_5 : f32 to vector<256x32xf32>
    %9 = arith.mulf %8, %7 : vector<256x32xf32>
    %cst_6 = arith.constant 4.471500e-02 : f32
    %10 = vector.broadcast %cst_6 : f32 to vector<256x32xf32>
    %11 = arith.mulf %10, %7 : vector<256x32xf32>
    %12 = arith.mulf %11, %7 : vector<256x32xf32>
    %13 = arith.mulf %12, %7 : vector<256x32xf32>
    %14 = arith.addf %7, %13 : vector<256x32xf32>
    %cst_7 = arith.constant 0.797884583 : f32
    %15 = vector.broadcast %cst_7 : f32 to vector<256x32xf32>
    %16 = arith.mulf %15, %14 : vector<256x32xf32>
    %17 = math.tanh %16 : vector<256x32xf32>
    %cst_8 = arith.constant 1.000000e+00 : f32
    %18 = vector.broadcast %cst_8 : f32 to vector<256x32xf32>
    %19 = arith.addf %18, %17 : vector<256x32xf32>
    %20 = arith.mulf %9, %19 : vector<256x32xf32>
    %21 = arith.truncf %20 : vector<256x32xf32> to vector<256x32xbf16>
    %c0_9 = arith.constant 0 : index
    %c0_10 = arith.constant 0 : index
    %22 = vector.load %arg3[%c0_9, %c0_10] : memref<32x32xbf16, #tpu.memory_space<vmem>>, vector<32x32xbf16>
    %cst_11 = arith.constant dense<0.000000e+00> : vector<256x32xf32>
    %23 = tpu.matmul %21, %22, %cst_11 {dimension_numbers = #tpu.dot_dimension_numbers<[1], [0], [0], [1], [0, 0, 1, 1], [], []>} : vector<256x32xbf16>, vector<32x32xbf16>, vector<256x32xf32> -> vector<256x32xf32>
    %24 = vector.extract_strided_slice %0 {offsets = [1, 0], sizes = [1, 32], strides = [1, 1]} : vector<2x32xf32> to vector<1x32xf32>
    %25 = vector.broadcast %24 : vector<1x32xf32> to vector<256x32xf32>
    %26 = arith.addf %23, %25 : vector<256x32xf32>
    %cst_12 = arith.constant 5.000000e-01 : f32
    %27 = vector.broadcast %cst_12 : f32 to vector<256x32xf32>
    %28 = arith.mulf %27, %26 : vector<256x32xf32>
    %cst_13 = arith.constant 4.471500e-02 : f32
    %29 = vector.broadcast %cst_13 : f32 to vector<256x32xf32>
    %30 = arith.mulf %29, %26 : vector<256x32xf32>
    %31 = arith.mulf %30, %26 : vector<256x32xf32>
    %32 = arith.mulf %31, %26 : vector<256x32xf32>
    %33 = arith.addf %26, %32 : vector<256x32xf32>
    %cst_14 = arith.constant 0.797884583 : f32
    %34 = vector.broadcast %cst_14 : f32 to vector<256x32xf32>
    %35 = arith.mulf %34, %33 : vector<256x32xf32>
    %36 = math.tanh %35 : vector<256x32xf32>
    %cst_15 = arith.constant 1.000000e+00 : f32
    %37 = vector.broadcast %cst_15 : f32 to vector<256x32xf32>
    %38 = arith.addf %37, %36 : vector<256x32xf32>
    %39 = arith.mulf %28, %38 : vector<256x32xf32>
    %c0_16 = arith.constant 0 : index
    %c0_17 = arith.constant 0 : index
    %40 = vector.load %arg5[%c0_16, %c0_17] : memref<256x32xf32, #tpu.memory_space<vmem>>, vector<256x32xf32>
    tpu.vector_store %arg5[%c0_16, %c0_17], %39 {strides = array<i32>} : memref<256x32xf32, #tpu.memory_space<vmem>>, vector<256x32xf32>,
    return
  }
  func.func @transform_0(%arg0: i32) -> (i32, i32) {
    %c0_i32 = arith.constant 0 : i32
    %c0_i32_0 = arith.constant 0 : i32
    return %arg0, %c0_i32 : i32, i32
  }
  func.func @transform_1(%arg0: i32) -> (i32, i32) {
    %c0_i32 = arith.constant 0 : i32
    %c0_i32_0 = arith.constant 0 : i32
    %c0_i32_1 = arith.constant 0 : i32
    return %c0_i32, %c0_i32_0 : i32, i32
  }
  func.func @transform_2(%arg0: i32) -> (i32, i32) {
    %c0_i32 = arith.constant 0 : i32
    %c0_i32_0 = arith.constant 0 : i32
    %c0_i32_1 = arith.constant 0 : i32
    return %c0_i32, %c0_i32_0 : i32, i32
  }
  func.func @transform_3(%arg0: i32) -> (i32, i32) {
    %c0_i32 = arith.constant 0 : i32
    %c0_i32_0 = arith.constant 0 : i32
    %c0_i32_1 = arith.constant 0 : i32
    return %c0_i32, %c0_i32_0 : i32, i32
  }
  func.func @transform_4(%arg0: i32) -> (i32, i32) {
    %c0_i32 = arith.constant 0 : i32
    %c0_i32_0 = arith.constant 0 : i32
    return %arg0, %c0_i32 : i32, i32
  }
}

module attributes {stable_mosaic.version = 11 : i64} {
  func.func @_mlp_kernel(%arg0: i32, %arg1: memref<928x68xf32, #tpu.memory_space<vmem>>, %arg2: memref<68x32xbf16, #tpu.memory_space<vmem>>, %arg3: memref<32x32xbf16, #tpu.memory_space<vmem>>, %arg4: memref<2x32xf32, #tpu.memory_space<vmem>>, %arg5: memref<928x32xf32, #tpu.memory_space<vmem>>) attributes {dimension_semantics = [#tpu.dimension_semantics<parallel>], iteration_bounds = array<i64: 1>, scalar_prefetch = 0 : i64, scratch_operands = 0 : i64, tpu.core_type = #tpu.core_type<tc>, window_params = [{transform_indices = @transform_0, window_bounds = array<i64: 928, 68>}, {pipeline_mode = #tpu.pipeline_mode<synchronous>, transform_indices = @transform_1, window_bounds = array<i64: 68, 32>}, {pipeline_mode = #tpu.pipeline_mode<synchronous>, transform_indices = @transform_2, window_bounds = array<i64: 32, 32>}, {pipeline_mode = #tpu.pipeline_mode<synchronous>, transform_indices = @transform_3, window_bounds = array<i64: 2, 32>}, {transform_indices = @transform_4, window_bounds = array<i64: 928, 32>}]} {
    %c0 = arith.constant 0 : index
    %c0_0 = arith.constant 0 : index
    %0 = vector.load %arg4[%c0, %c0_0] : memref<2x32xf32, #tpu.memory_space<vmem>>, vector<2x32xf32>
    %c0_1 = arith.constant 0 : index
    %c0_2 = arith.constant 0 : index
    %1 = vector.load %arg1[%c0_1, %c0_2] : memref<928x68xf32, #tpu.memory_space<vmem>>, vector<928x68xf32>
    %2 = arith.truncf %1 : vector<928x68xf32> to vector<928x68xbf16>
    %c0_3 = arith.constant 0 : index
    %c0_4 = arith.constant 0 : index
    %3 = vector.load %arg2[%c0_3, %c0_4] : memref<68x32xbf16, #tpu.memory_space<vmem>>, vector<68x32xbf16>
    %cst = arith.constant dense<0.000000e+00> : vector<928x32xf32>
    %4 = tpu.matmul %2, %3, %cst {dimension_numbers = #tpu.dot_dimension_numbers<[1], [0], [0], [1], [0, 0, 1, 1], [], []>} : vector<928x68xbf16>, vector<68x32xbf16>, vector<928x32xf32> -> vector<928x32xf32>
    %5 = vector.extract_strided_slice %0 {offsets = [0, 0], sizes = [1, 32], strides = [1, 1]} : vector<2x32xf32> to vector<1x32xf32>
    %6 = vector.broadcast %5 : vector<1x32xf32> to vector<928x32xf32>
    %7 = arith.addf %4, %6 : vector<928x32xf32>
    %cst_5 = arith.constant 5.000000e-01 : f32
    %8 = vector.broadcast %cst_5 : f32 to vector<928x32xf32>
    %9 = arith.mulf %8, %7 : vector<928x32xf32>
    %cst_6 = arith.constant 4.471500e-02 : f32
    %10 = vector.broadcast %cst_6 : f32 to vector<928x32xf32>
    %11 = arith.mulf %10, %7 : vector<928x32xf32>
    %12 = arith.mulf %11, %7 : vector<928x32xf32>
    %13 = arith.mulf %12, %7 : vector<928x32xf32>
    %14 = arith.addf %7, %13 : vector<928x32xf32>
    %cst_7 = arith.constant 0.797884583 : f32
    %15 = vector.broadcast %cst_7 : f32 to vector<928x32xf32>
    %16 = arith.mulf %15, %14 : vector<928x32xf32>
    %17 = math.tanh %16 : vector<928x32xf32>
    %cst_8 = arith.constant 1.000000e+00 : f32
    %18 = vector.broadcast %cst_8 : f32 to vector<928x32xf32>
    %19 = arith.addf %18, %17 : vector<928x32xf32>
    %20 = arith.mulf %9, %19 : vector<928x32xf32>
    %21 = arith.truncf %20 : vector<928x32xf32> to vector<928x32xbf16>
    %c0_9 = arith.constant 0 : index
    %c0_10 = arith.constant 0 : index
    %22 = vector.load %arg3[%c0_9, %c0_10] : memref<32x32xbf16, #tpu.memory_space<vmem>>, vector<32x32xbf16>
    %cst_11 = arith.constant dense<0.000000e+00> : vector<928x32xf32>
    %23 = tpu.matmul %21, %22, %cst_11 {dimension_numbers = #tpu.dot_dimension_numbers<[1], [0], [0], [1], [0, 0, 1, 1], [], []>} : vector<928x32xbf16>, vector<32x32xbf16>, vector<928x32xf32> -> vector<928x32xf32>
    %24 = vector.extract_strided_slice %0 {offsets = [1, 0], sizes = [1, 32], strides = [1, 1]} : vector<2x32xf32> to vector<1x32xf32>
    %25 = vector.broadcast %24 : vector<1x32xf32> to vector<928x32xf32>
    %26 = arith.addf %23, %25 : vector<928x32xf32>
    %cst_12 = arith.constant 5.000000e-01 : f32
    %27 = vector.broadcast %cst_12 : f32 to vector<928x32xf32>
    %28 = arith.mulf %27, %26 : vector<928x32xf32>
    %cst_13 = arith.constant 4.471500e-02 : f32
    %29 = vector.broadcast %cst_13 : f32 to vector<928x32xf32>
    %30 = arith.mulf %29, %26 : vector<928x32xf32>
    %31 = arith.mulf %30, %26 : vector<928x32xf32>
    %32 = arith.mulf %31, %26 : vector<928x32xf32>
    %33 = arith.addf %26, %32 : vector<928x32xf32>
    %cst_14 = arith.constant 0.797884583 : f32
    %34 = vector.broadcast %cst_14 : f32 to vector<928x32xf32>
    %35 = arith.mulf %34, %33 : vector<928x32xf32>
    %36 = math.tanh %35 : vector<928x32xf32>
    %cst_15 = arith.constant 1.000000e+00 : f32
    %37 = vector.broadcast %cst_15 : f32 to vector<928x32xf32>
    %38 = arith.addf %37, %36 : vector<928x32xf32>
    %39 = arith.mulf %28, %38 : vector<928x32xf32>
    %c0_16 = arith.constant 0 : index
    %c0_17 = arith.constant 0 : index
    %40 = vector.load %arg5[%c0_16, %c0_17] : memref<928x32xf32, #tpu.memory_space<vmem>>, vector<928x32xf32>
    tpu.vector_store %arg5[%c0_16, %c0_17], %39 {strides = array<i32>} : memref<928x32xf32, #tpu.memory_space<vmem>>, vector<928x32xf32>,
    return
  }
  func.func @transform_0(%arg0: i32) -> (i32, i32) {
    %c0_i32 = arith.constant 0 : i32
    %c0_i32_0 = arith.constant 0 : i32
    return %arg0, %c0_i32 : i32, i32
  }
  func.func @transform_1(%arg0: i32) -> (i32, i32) {
    %c0_i32 = arith.constant 0 : i32
    %c0_i32_0 = arith.constant 0 : i32
    %c0_i32_1 = arith.constant 0 : i32
    return %c0_i32, %c0_i32_0 : i32, i32
  }
  func.func @transform_2(%arg0: i32) -> (i32, i32) {
    %c0_i32 = arith.constant 0 : i32
    %c0_i32_0 = arith.constant 0 : i32
    %c0_i32_1 = arith.constant 0 : i32
    return %c0_i32, %c0_i32_0 : i32, i32
  }
  func.func @transform_3(%arg0: i32) -> (i32, i32) {
    %c0_i32 = arith.constant 0 : i32
    %c0_i32_0 = arith.constant 0 : i32
    %c0_i32_1 = arith.constant 0 : i32
    return %c0_i32, %c0_i32_0 : i32, i32
  }
  func.func @transform_4(%arg0: i32) -> (i32, i32) {
    %c0_i32 = arith.constant 0 : i32
    %c0_i32_0 = arith.constant 0 : i32
    return %arg0, %c0_i32 : i32, i32
  }
}

module attributes {stable_mosaic.version = 11 : i64} {
  func.func @_mlp_kernel(%arg0: i32, %arg1: memref<256x64xf32, #tpu.memory_space<vmem>>, %arg2: memref<64x32xbf16, #tpu.memory_space<vmem>>, %arg3: memref<32x32xbf16, #tpu.memory_space<vmem>>, %arg4: memref<2x32xf32, #tpu.memory_space<vmem>>, %arg5: memref<256x32xf32, #tpu.memory_space<vmem>>) attributes {dimension_semantics = [#tpu.dimension_semantics<parallel>], iteration_bounds = array<i64: 1>, scalar_prefetch = 0 : i64, scratch_operands = 0 : i64, tpu.core_type = #tpu.core_type<tc>, window_params = [{transform_indices = @transform_0, window_bounds = array<i64: 256, 64>}, {pipeline_mode = #tpu.pipeline_mode<synchronous>, transform_indices = @transform_1, window_bounds = array<i64: 64, 32>}, {pipeline_mode = #tpu.pipeline_mode<synchronous>, transform_indices = @transform_2, window_bounds = array<i64: 32, 32>}, {pipeline_mode = #tpu.pipeline_mode<synchronous>, transform_indices = @transform_3, window_bounds = array<i64: 2, 32>}, {transform_indices = @transform_4, window_bounds = array<i64: 256, 32>}]} {
    %c0 = arith.constant 0 : index
    %c0_0 = arith.constant 0 : index
    %0 = vector.load %arg4[%c0, %c0_0] : memref<2x32xf32, #tpu.memory_space<vmem>>, vector<2x32xf32>
    %c0_1 = arith.constant 0 : index
    %c0_2 = arith.constant 0 : index
    %1 = vector.load %arg1[%c0_1, %c0_2] : memref<256x64xf32, #tpu.memory_space<vmem>>, vector<256x64xf32>
    %2 = arith.truncf %1 : vector<256x64xf32> to vector<256x64xbf16>
    %c0_3 = arith.constant 0 : index
    %c0_4 = arith.constant 0 : index
    %3 = vector.load %arg2[%c0_3, %c0_4] : memref<64x32xbf16, #tpu.memory_space<vmem>>, vector<64x32xbf16>
    %cst = arith.constant dense<0.000000e+00> : vector<256x32xf32>
    %4 = tpu.matmul %2, %3, %cst {dimension_numbers = #tpu.dot_dimension_numbers<[1], [0], [0], [1], [0, 0, 1, 1], [], []>} : vector<256x64xbf16>, vector<64x32xbf16>, vector<256x32xf32> -> vector<256x32xf32>
    %5 = vector.extract_strided_slice %0 {offsets = [0, 0], sizes = [1, 32], strides = [1, 1]} : vector<2x32xf32> to vector<1x32xf32>
    %6 = vector.broadcast %5 : vector<1x32xf32> to vector<256x32xf32>
    %7 = arith.addf %4, %6 : vector<256x32xf32>
    %cst_5 = arith.constant 5.000000e-01 : f32
    %8 = vector.broadcast %cst_5 : f32 to vector<256x32xf32>
    %9 = arith.mulf %8, %7 : vector<256x32xf32>
    %cst_6 = arith.constant 4.471500e-02 : f32
    %10 = vector.broadcast %cst_6 : f32 to vector<256x32xf32>
    %11 = arith.mulf %10, %7 : vector<256x32xf32>
    %12 = arith.mulf %11, %7 : vector<256x32xf32>
    %13 = arith.mulf %12, %7 : vector<256x32xf32>
    %14 = arith.addf %7, %13 : vector<256x32xf32>
    %cst_7 = arith.constant 0.797884583 : f32
    %15 = vector.broadcast %cst_7 : f32 to vector<256x32xf32>
    %16 = arith.mulf %15, %14 : vector<256x32xf32>
    %17 = math.tanh %16 : vector<256x32xf32>
    %cst_8 = arith.constant 1.000000e+00 : f32
    %18 = vector.broadcast %cst_8 : f32 to vector<256x32xf32>
    %19 = arith.addf %18, %17 : vector<256x32xf32>
    %20 = arith.mulf %9, %19 : vector<256x32xf32>
    %21 = arith.truncf %20 : vector<256x32xf32> to vector<256x32xbf16>
    %c0_9 = arith.constant 0 : index
    %c0_10 = arith.constant 0 : index
    %22 = vector.load %arg3[%c0_9, %c0_10] : memref<32x32xbf16, #tpu.memory_space<vmem>>, vector<32x32xbf16>
    %cst_11 = arith.constant dense<0.000000e+00> : vector<256x32xf32>
    %23 = tpu.matmul %21, %22, %cst_11 {dimension_numbers = #tpu.dot_dimension_numbers<[1], [0], [0], [1], [0, 0, 1, 1], [], []>} : vector<256x32xbf16>, vector<32x32xbf16>, vector<256x32xf32> -> vector<256x32xf32>
    %24 = vector.extract_strided_slice %0 {offsets = [1, 0], sizes = [1, 32], strides = [1, 1]} : vector<2x32xf32> to vector<1x32xf32>
    %25 = vector.broadcast %24 : vector<1x32xf32> to vector<256x32xf32>
    %26 = arith.addf %23, %25 : vector<256x32xf32>
    %27 = vector.extract_strided_slice %1 {offsets = [0, 0], sizes = [256, 32], strides = [1, 1]} : vector<256x64xf32> to vector<256x32xf32>
    %28 = arith.addf %26, %27 : vector<256x32xf32>
    %c0_12 = arith.constant 0 : index
    %c0_13 = arith.constant 0 : index
    %29 = vector.load %arg5[%c0_12, %c0_13] : memref<256x32xf32, #tpu.memory_space<vmem>>, vector<256x32xf32>
    tpu.vector_store %arg5[%c0_12, %c0_13], %28 {strides = array<i32>} : memref<256x32xf32, #tpu.memory_space<vmem>>, vector<256x32xf32>,
    return
  }
  func.func @transform_0(%arg0: i32) -> (i32, i32) {
    %c0_i32 = arith.constant 0 : i32
    %c0_i32_0 = arith.constant 0 : i32
    return %arg0, %c0_i32 : i32, i32
  }
  func.func @transform_1(%arg0: i32) -> (i32, i32) {
    %c0_i32 = arith.constant 0 : i32
    %c0_i32_0 = arith.constant 0 : i32
    %c0_i32_1 = arith.constant 0 : i32
    return %c0_i32, %c0_i32_0 : i32, i32
  }
  func.func @transform_2(%arg0: i32) -> (i32, i32) {
    %c0_i32 = arith.constant 0 : i32
    %c0_i32_0 = arith.constant 0 : i32
    %c0_i32_1 = arith.constant 0 : i32
    return %c0_i32, %c0_i32_0 : i32, i32
  }
  func.func @transform_3(%arg0: i32) -> (i32, i32) {
    %c0_i32 = arith.constant 0 : i32
    %c0_i32_0 = arith.constant 0 : i32
    %c0_i32_1 = arith.constant 0 : i32
    return %c0_i32, %c0_i32_0 : i32, i32
  }
  func.func @transform_4(%arg0: i32) -> (i32, i32) {
    %c0_i32 = arith.constant 0 : i32
    %c0_i32_0 = arith.constant 0 : i32
    return %arg0, %c0_i32 : i32, i32
  }
}

module attributes {stable_mosaic.version = 11 : i64} {
  func.func @_fno_pw_kernel(%arg0: i32, %arg1: memref<32x256xf32, #tpu.memory_space<vmem>>, %arg2: memref<32x256xf32, #tpu.memory_space<vmem>>, %arg3: memref<32x32xbf16, #tpu.memory_space<vmem>>, %arg4: memref<32x1xf32, #tpu.memory_space<vmem>>, %arg5: memref<32x256xf32, #tpu.memory_space<vmem>>) attributes {dimension_semantics = [#tpu.dimension_semantics<parallel>], iteration_bounds = array<i64: 1>, scalar_prefetch = 0 : i64, scratch_operands = 0 : i64, tpu.core_type = #tpu.core_type<tc>, window_params = [{transform_indices = @transform_0, window_bounds = array<i64: 32, 256>}, {transform_indices = @transform_1, window_bounds = array<i64: 32, 256>}, {pipeline_mode = #tpu.pipeline_mode<synchronous>, transform_indices = @transform_2, window_bounds = array<i64: 32, 32>}, {pipeline_mode = #tpu.pipeline_mode<synchronous>, transform_indices = @transform_3, window_bounds = array<i64: 32, 1>}, {transform_indices = @transform_4, window_bounds = array<i64: 32, 256>}]} {
    %c0 = arith.constant 0 : index
    %c0_0 = arith.constant 0 : index
    %0 = vector.load %arg1[%c0, %c0_0] : memref<32x256xf32, #tpu.memory_space<vmem>>, vector<32x256xf32>
    %1 = arith.truncf %0 : vector<32x256xf32> to vector<32x256xbf16>
    %c0_1 = arith.constant 0 : index
    %c0_2 = arith.constant 0 : index
    %2 = vector.load %arg3[%c0_1, %c0_2] : memref<32x32xbf16, #tpu.memory_space<vmem>>, vector<32x32xbf16>
    %cst = arith.constant dense<0.000000e+00> : vector<32x256xf32>
    %3 = tpu.matmul %2, %1, %cst {dimension_numbers = #tpu.dot_dimension_numbers<[1], [0], [0], [1], [0, 0, 1, 1], [], []>} : vector<32x32xbf16>, vector<32x256xbf16>, vector<32x256xf32> -> vector<32x256xf32>
    %c0_3 = arith.constant 0 : index
    %c0_4 = arith.constant 0 : index
    %4 = vector.load %arg4[%c0_3, %c0_4] : memref<32x1xf32, #tpu.memory_space<vmem>>, vector<32x1xf32>
    %5 = vector.broadcast %4 : vector<32x1xf32> to vector<32x256xf32>
    %6 = arith.addf %3, %5 : vector<32x256xf32>
    %c0_5 = arith.constant 0 : index
    %c0_6 = arith.constant 0 : index
    %7 = vector.load %arg2[%c0_5, %c0_6] : memref<32x256xf32, #tpu.memory_space<vmem>>, vector<32x256xf32>
    %8 = arith.addf %6, %7 : vector<32x256xf32>
    %cst_7 = arith.constant 5.000000e-01 : f32
    %9 = vector.broadcast %cst_7 : f32 to vector<32x256xf32>
    %10 = arith.mulf %9, %8 : vector<32x256xf32>
    %cst_8 = arith.constant 4.471500e-02 : f32
    %11 = vector.broadcast %cst_8 : f32 to vector<32x256xf32>
    %12 = arith.mulf %11, %8 : vector<32x256xf32>
    %13 = arith.mulf %12, %8 : vector<32x256xf32>
    %14 = arith.mulf %13, %8 : vector<32x256xf32>
    %15 = arith.addf %8, %14 : vector<32x256xf32>
    %cst_9 = arith.constant 0.797884583 : f32
    %16 = vector.broadcast %cst_9 : f32 to vector<32x256xf32>
    %17 = arith.mulf %16, %15 : vector<32x256xf32>
    %18 = math.tanh %17 : vector<32x256xf32>
    %cst_10 = arith.constant 1.000000e+00 : f32
    %19 = vector.broadcast %cst_10 : f32 to vector<32x256xf32>
    %20 = arith.addf %19, %18 : vector<32x256xf32>
    %21 = arith.mulf %10, %20 : vector<32x256xf32>
    %c0_11 = arith.constant 0 : index
    %c0_12 = arith.constant 0 : index
    %22 = vector.load %arg5[%c0_11, %c0_12] : memref<32x256xf32, #tpu.memory_space<vmem>>, vector<32x256xf32>
    tpu.vector_store %arg5[%c0_11, %c0_12], %21 {strides = array<i32>} : memref<32x256xf32, #tpu.memory_space<vmem>>, vector<32x256xf32>,
    return
  }
  func.func @transform_0(%arg0: i32) -> (i32, i32) {
    %c0_i32 = arith.constant 0 : i32
    %c0_i32_0 = arith.constant 0 : i32
    return %c0_i32, %arg0 : i32, i32
  }
  func.func @transform_1(%arg0: i32) -> (i32, i32) {
    %c0_i32 = arith.constant 0 : i32
    %c0_i32_0 = arith.constant 0 : i32
    return %c0_i32, %arg0 : i32, i32
  }
  func.func @transform_2(%arg0: i32) -> (i32, i32) {
    %c0_i32 = arith.constant 0 : i32
    %c0_i32_0 = arith.constant 0 : i32
    %c0_i32_1 = arith.constant 0 : i32
    return %c0_i32, %c0_i32_0 : i32, i32
  }
  func.func @transform_3(%arg0: i32) -> (i32, i32) {
    %c0_i32 = arith.constant 0 : i32
    %c0_i32_0 = arith.constant 0 : i32
    %c0_i32_1 = arith.constant 0 : i32
    return %c0_i32, %c0_i32_0 : i32, i32
  }
  func.func @transform_4(%arg0: i32) -> (i32, i32) {
    %c0_i32 = arith.constant 0 : i32
    %c0_i32_0 = arith.constant 0 : i32
    return %c0_i32, %arg0 : i32, i32
  }
}

module attributes {stable_mosaic.version = 11 : i64} {
  func.func @_fno_pw_kernel(%arg0: i32, %arg1: memref<32x256xf32, #tpu.memory_space<vmem>>, %arg2: memref<32x256xf32, #tpu.memory_space<vmem>>, %arg3: memref<32x32xbf16, #tpu.memory_space<vmem>>, %arg4: memref<32x1xf32, #tpu.memory_space<vmem>>, %arg5: memref<32x256xf32, #tpu.memory_space<vmem>>) attributes {dimension_semantics = [#tpu.dimension_semantics<parallel>], iteration_bounds = array<i64: 1>, scalar_prefetch = 0 : i64, scratch_operands = 0 : i64, tpu.core_type = #tpu.core_type<tc>, window_params = [{transform_indices = @transform_0, window_bounds = array<i64: 32, 256>}, {transform_indices = @transform_1, window_bounds = array<i64: 32, 256>}, {pipeline_mode = #tpu.pipeline_mode<synchronous>, transform_indices = @transform_2, window_bounds = array<i64: 32, 32>}, {pipeline_mode = #tpu.pipeline_mode<synchronous>, transform_indices = @transform_3, window_bounds = array<i64: 32, 1>}, {transform_indices = @transform_4, window_bounds = array<i64: 32, 256>}]} {
    %c0 = arith.constant 0 : index
    %c0_0 = arith.constant 0 : index
    %0 = vector.load %arg1[%c0, %c0_0] : memref<32x256xf32, #tpu.memory_space<vmem>>, vector<32x256xf32>
    %1 = arith.truncf %0 : vector<32x256xf32> to vector<32x256xbf16>
    %c0_1 = arith.constant 0 : index
    %c0_2 = arith.constant 0 : index
    %2 = vector.load %arg3[%c0_1, %c0_2] : memref<32x32xbf16, #tpu.memory_space<vmem>>, vector<32x32xbf16>
    %cst = arith.constant dense<0.000000e+00> : vector<32x256xf32>
    %3 = tpu.matmul %2, %1, %cst {dimension_numbers = #tpu.dot_dimension_numbers<[1], [0], [0], [1], [0, 0, 1, 1], [], []>} : vector<32x32xbf16>, vector<32x256xbf16>, vector<32x256xf32> -> vector<32x256xf32>
    %c0_3 = arith.constant 0 : index
    %c0_4 = arith.constant 0 : index
    %4 = vector.load %arg4[%c0_3, %c0_4] : memref<32x1xf32, #tpu.memory_space<vmem>>, vector<32x1xf32>
    %5 = vector.broadcast %4 : vector<32x1xf32> to vector<32x256xf32>
    %6 = arith.addf %3, %5 : vector<32x256xf32>
    %c0_5 = arith.constant 0 : index
    %c0_6 = arith.constant 0 : index
    %7 = vector.load %arg2[%c0_5, %c0_6] : memref<32x256xf32, #tpu.memory_space<vmem>>, vector<32x256xf32>
    %8 = arith.addf %6, %7 : vector<32x256xf32>
    %c0_7 = arith.constant 0 : index
    %c0_8 = arith.constant 0 : index
    %9 = vector.load %arg5[%c0_7, %c0_8] : memref<32x256xf32, #tpu.memory_space<vmem>>, vector<32x256xf32>
    tpu.vector_store %arg5[%c0_7, %c0_8], %8 {strides = array<i32>} : memref<32x256xf32, #tpu.memory_space<vmem>>, vector<32x256xf32>,
    return
  }
  func.func @transform_0(%arg0: i32) -> (i32, i32) {
    %c0_i32 = arith.constant 0 : i32
    %c0_i32_0 = arith.constant 0 : i32
    return %c0_i32, %arg0 : i32, i32
  }
  func.func @transform_1(%arg0: i32) -> (i32, i32) {
    %c0_i32 = arith.constant 0 : i32
    %c0_i32_0 = arith.constant 0 : i32
    return %c0_i32, %arg0 : i32, i32
  }
  func.func @transform_2(%arg0: i32) -> (i32, i32) {
    %c0_i32 = arith.constant 0 : i32
    %c0_i32_0 = arith.constant 0 : i32
    %c0_i32_1 = arith.constant 0 : i32
    return %c0_i32, %c0_i32_0 : i32, i32
  }
  func.func @transform_3(%arg0: i32) -> (i32, i32) {
    %c0_i32 = arith.constant 0 : i32
    %c0_i32_0 = arith.constant 0 : i32
    %c0_i32_1 = arith.constant 0 : i32
    return %c0_i32, %c0_i32_0 : i32, i32
  }
  func.func @transform_4(%arg0: i32) -> (i32, i32) {
    %c0_i32 = arith.constant 0 : i32
    %c0_i32_0 = arith.constant 0 : i32
    return %c0_i32, %arg0 : i32, i32
  }
}

module attributes {stable_mosaic.version = 11 : i64} {
  func.func @_conv_decoder_kernel(%arg0: i32, %arg1: memref<1x128x288xbf16, #tpu.memory_space<vmem>>, %arg2: memref<1x288x32xbf16, #tpu.memory_space<vmem>>, %arg3: memref<1x1x32xf32, #tpu.memory_space<vmem>>, %arg4: memref<32x128xbf16, #tpu.memory_space<vmem>>, %arg5: memref<128x32xbf16, #tpu.memory_space<vmem>>, %arg6: memref<32x128xbf16, #tpu.memory_space<vmem>>, %arg7: memref<3x128xf32, #tpu.memory_space<vmem>>, %arg8: memref<1x128x128xf32, #tpu.memory_space<vmem>>) attributes {dimension_semantics = [#tpu.dimension_semantics<parallel>], iteration_bounds = array<i64: 2>, scalar_prefetch = 0 : i64, scratch_operands = 0 : i64, tpu.core_type = #tpu.core_type<tc>, window_params = [{transform_indices = @transform_0, window_bounds = array<i64: 1, 128, 288>}, {transform_indices = @transform_1, window_bounds = array<i64: 1, 288, 32>}, {transform_indices = @transform_2, window_bounds = array<i64: 1, 1, 32>}, {pipeline_mode = #tpu.pipeline_mode<synchronous>, transform_indices = @transform_3, window_bounds = array<i64: 32, 128>}, {pipeline_mode = #tpu.pipeline_mode<synchronous>, transform_indices = @transform_4, window_bounds = array<i64: 128, 32>}, {pipeline_mode = #tpu.pipeline_mode<synchronous>, transform_indices = @transform_5, window_bounds = array<i64: 32, 128>}, {pipeline_mode = #tpu.pipeline_mode<synchronous>, transform_indices = @transform_6, window_bounds = array<i64: 3, 128>}, {transform_indices = @transform_7, window_bounds = array<i64: 1, 128, 128>}]} {
    %c0 = arith.constant 0 : index
    %c0_0 = arith.constant 0 : index
    %0 = vector.load %arg7[%c0, %c0_0] : memref<3x128xf32, #tpu.memory_space<vmem>>, vector<3x128xf32>
    %c0_1 = arith.constant 0 : index
    %c0_2 = arith.constant 0 : index
    %c0_3 = arith.constant 0 : index
    %1 = vector.load %arg1[%c0_1, %c0_2, %c0_3] : memref<1x128x288xbf16, #tpu.memory_space<vmem>>, vector<1x128x288xbf16>
    %2 = vector.shape_cast %1 : vector<1x128x288xbf16> to vector<128x288xbf16>
    %c0_4 = arith.constant 0 : index
    %c0_5 = arith.constant 0 : index
    %c0_6 = arith.constant 0 : index
    %3 = vector.load %arg2[%c0_4, %c0_5, %c0_6] : memref<1x288x32xbf16, #tpu.memory_space<vmem>>, vector<1x288x32xbf16>
    %4 = vector.shape_cast %3 : vector<1x288x32xbf16> to vector<288x32xbf16>
    %cst = arith.constant dense<0.000000e+00> : vector<128x32xf32>
    %5 = tpu.matmul %2, %4, %cst {dimension_numbers = #tpu.dot_dimension_numbers<[1], [0], [0], [1], [0, 0, 1, 1], [], []>} : vector<128x288xbf16>, vector<288x32xbf16>, vector<128x32xf32> -> vector<128x32xf32>
    %c0_7 = arith.constant 0 : index
    %c0_8 = arith.constant 0 : index
    %c0_9 = arith.constant 0 : index
    %6 = vector.load %arg3[%c0_7, %c0_8, %c0_9] : memref<1x1x32xf32, #tpu.memory_space<vmem>>, vector<1x1x32xf32>
    %7 = vector.shape_cast %6 : vector<1x1x32xf32> to vector<1x32xf32>
    %8 = vector.broadcast %7 : vector<1x32xf32> to vector<128x32xf32>
    %9 = arith.addf %5, %8 : vector<128x32xf32>
    %cst_10 = arith.constant 5.000000e-01 : f32
    %10 = vector.broadcast %cst_10 : f32 to vector<128x32xf32>
    %11 = arith.mulf %10, %9 : vector<128x32xf32>
    %cst_11 = arith.constant 4.471500e-02 : f32
    %12 = vector.broadcast %cst_11 : f32 to vector<128x32xf32>
    %13 = arith.mulf %12, %9 : vector<128x32xf32>
    %14 = arith.mulf %13, %9 : vector<128x32xf32>
    %15 = arith.mulf %14, %9 : vector<128x32xf32>
    %16 = arith.addf %9, %15 : vector<128x32xf32>
    %cst_12 = arith.constant 0.797884583 : f32
    %17 = vector.broadcast %cst_12 : f32 to vector<128x32xf32>
    %18 = arith.mulf %17, %16 : vector<128x32xf32>
    %19 = math.tanh %18 : vector<128x32xf32>
    %cst_13 = arith.constant 1.000000e+00 : f32
    %20 = vector.broadcast %cst_13 : f32 to vector<128x32xf32>
    %21 = arith.addf %20, %19 : vector<128x32xf32>
    %22 = arith.mulf %11, %21 : vector<128x32xf32>
    %23 = arith.truncf %22 : vector<128x32xf32> to vector<128x32xbf16>
    %c0_14 = arith.constant 0 : index
    %c0_15 = arith.constant 0 : index
    %24 = vector.load %arg4[%c0_14, %c0_15] : memref<32x128xbf16, #tpu.memory_space<vmem>>, vector<32x128xbf16>
    %cst_16 = arith.constant dense<0.000000e+00> : vector<128x128xf32>
    %25 = tpu.matmul %23, %24, %cst_16 {dimension_numbers = #tpu.dot_dimension_numbers<[1], [0], [0], [1], [0, 0, 1, 1], [], []>} : vector<128x32xbf16>, vector<32x128xbf16>, vector<128x128xf32> -> vector<128x128xf32>
    %26 = vector.extract_strided_slice %0 {offsets = [0, 0], sizes = [1, 128], strides = [1, 1]} : vector<3x128xf32> to vector<1x128xf32>
    %27 = vector.broadcast %26 : vector<1x128xf32> to vector<128x128xf32>
    %28 = arith.addf %25, %27 : vector<128x128xf32>
    %cst_17 = arith.constant 5.000000e-01 : f32
    %29 = vector.broadcast %cst_17 : f32 to vector<128x128xf32>
    %30 = arith.mulf %29, %28 : vector<128x128xf32>
    %cst_18 = arith.constant 4.471500e-02 : f32
    %31 = vector.broadcast %cst_18 : f32 to vector<128x128xf32>
    %32 = arith.mulf %31, %28 : vector<128x128xf32>
    %33 = arith.mulf %32, %28 : vector<128x128xf32>
    %34 = arith.mulf %33, %28 : vector<128x128xf32>
    %35 = arith.addf %28, %34 : vector<128x128xf32>
    %cst_19 = arith.constant 0.797884583 : f32
    %36 = vector.broadcast %cst_19 : f32 to vector<128x128xf32>
    %37 = arith.mulf %36, %35 : vector<128x128xf32>
    %38 = math.tanh %37 : vector<128x128xf32>
    %cst_20 = arith.constant 1.000000e+00 : f32
    %39 = vector.broadcast %cst_20 : f32 to vector<128x128xf32>
    %40 = arith.addf %39, %38 : vector<128x128xf32>
    %41 = arith.mulf %30, %40 : vector<128x128xf32>
    %42 = arith.truncf %41 : vector<128x128xf32> to vector<128x128xbf16>
    %c0_21 = arith.constant 0 : index
    %c0_22 = arith.constant 0 : index
    %43 = vector.load %arg5[%c0_21, %c0_22] : memref<128x32xbf16, #tpu.memory_space<vmem>>, vector<128x32xbf16>
    %cst_23 = arith.constant dense<0.000000e+00> : vector<128x32xf32>
    %44 = tpu.matmul %42, %43, %cst_23 {dimension_numbers = #tpu.dot_dimension_numbers<[1], [0], [0], [1], [0, 0, 1, 1], [], []>} : vector<128x128xbf16>, vector<128x32xbf16>, vector<128x32xf32> -> vector<128x32xf32>
    %45 = vector.extract_strided_slice %0 {offsets = [1, 0], sizes = [1, 32], strides = [1, 1]} : vector<3x128xf32> to vector<1x32xf32>
    %46 = vector.broadcast %45 : vector<1x32xf32> to vector<128x32xf32>
    %47 = arith.addf %44, %46 : vector<128x32xf32>
    %cst_24 = arith.constant 5.000000e-01 : f32
    %48 = vector.broadcast %cst_24 : f32 to vector<128x32xf32>
    %49 = arith.mulf %48, %47 : vector<128x32xf32>
    %cst_25 = arith.constant 4.471500e-02 : f32
    %50 = vector.broadcast %cst_25 : f32 to vector<128x32xf32>
    %51 = arith.mulf %50, %47 : vector<128x32xf32>
    %52 = arith.mulf %51, %47 : vector<128x32xf32>
    %53 = arith.mulf %52, %47 : vector<128x32xf32>
    %54 = arith.addf %47, %53 : vector<128x32xf32>
    %cst_26 = arith.constant 0.797884583 : f32
    %55 = vector.broadcast %cst_26 : f32 to vector<128x32xf32>
    %56 = arith.mulf %55, %54 : vector<128x32xf32>
    %57 = math.tanh %56 : vector<128x32xf32>
    %cst_27 = arith.constant 1.000000e+00 : f32
    %58 = vector.broadcast %cst_27 : f32 to vector<128x32xf32>
    %59 = arith.addf %58, %57 : vector<128x32xf32>
    %60 = arith.mulf %49, %59 : vector<128x32xf32>
    %61 = arith.truncf %60 : vector<128x32xf32> to vector<128x32xbf16>
    %c0_28 = arith.constant 0 : index
    %c0_29 = arith.constant 0 : index
    %62 = vector.load %arg6[%c0_28, %c0_29] : memref<32x128xbf16, #tpu.memory_space<vmem>>, vector<32x128xbf16>
    %cst_30 = arith.constant dense<0.000000e+00> : vector<128x128xf32>
    %63 = tpu.matmul %61, %62, %cst_30 {dimension_numbers = #tpu.dot_dimension_numbers<[1], [0], [0], [1], [0, 0, 1, 1], [], []>} : vector<128x32xbf16>, vector<32x128xbf16>, vector<128x128xf32> -> vector<128x128xf32>
    %64 = vector.extract_strided_slice %0 {offsets = [2, 0], sizes = [1, 128], strides = [1, 1]} : vector<3x128xf32> to vector<1x128xf32>
    %65 = vector.broadcast %64 : vector<1x128xf32> to vector<128x128xf32>
    %66 = arith.addf %63, %65 : vector<128x128xf32>
    %c0_31 = arith.constant 0 : index
    %c0_32 = arith.constant 0 : index
    %c0_33 = arith.constant 0 : index
    %67 = vector.load %arg8[%c0_31, %c0_32, %c0_33] : memref<1x128x128xf32, #tpu.memory_space<vmem>>, vector<1x128x128xf32>
    %68 = vector.shape_cast %67 : vector<1x128x128xf32> to vector<128x128xf32>
    %69 = vector.shape_cast %66 : vector<128x128xf32> to vector<1x128x128xf32>
    tpu.vector_store %arg8[%c0_31, %c0_32, %c0_33], %69 {strides = array<i32>} : memref<1x128x128xf32, #tpu.memory_space<vmem>>, vector<1x128x128xf32>,
    return
  }
  func.func @transform_0(%arg0: i32) -> (i32, i32, i32) {
    %c0_i32 = arith.constant 0 : i32
    %c0_i32_0 = arith.constant 0 : i32
    %c0_i32_1 = arith.constant 0 : i32
    return %arg0, %c0_i32, %c0_i32_0 : i32, i32, i32
  }
  func.func @transform_1(%arg0: i32) -> (i32, i32, i32) {
    %c0_i32 = arith.constant 0 : i32
    %c0_i32_0 = arith.constant 0 : i32
    %c0_i32_1 = arith.constant 0 : i32
    return %arg0, %c0_i32, %c0_i32_0 : i32, i32, i32
  }
  func.func @transform_2(%arg0: i32) -> (i32, i32, i32) {
    %c0_i32 = arith.constant 0 : i32
    %c0_i32_0 = arith.constant 0 : i32
    %c0_i32_1 = arith.constant 0 : i32
    return %arg0, %c0_i32, %c0_i32_0 : i32, i32, i32
  }
  func.func @transform_3(%arg0: i32) -> (i32, i32) {
    %c0_i32 = arith.constant 0 : i32
    %c0_i32_0 = arith.constant 0 : i32
    %c0_i32_1 = arith.constant 0 : i32
    return %c0_i32, %c0_i32_0 : i32, i32
  }
  func.func @transform_4(%arg0: i32) -> (i32, i32) {
    %c0_i32 = arith.constant 0 : i32
    %c0_i32_0 = arith.constant 0 : i32
    %c0_i32_1 = arith.constant 0 : i32
    return %c0_i32, %c0_i32_0 : i32, i32
  }
  func.func @transform_5(%arg0: i32) -> (i32, i32) {
    %c0_i32 = arith.constant 0 : i32
    %c0_i32_0 = arith.constant 0 : i32
    %c0_i32_1 = arith.constant 0 : i32
    return %c0_i32, %c0_i32_0 : i32, i32
  }
  func.func @transform_6(%arg0: i32) -> (i32, i32) {
    %c0_i32 = arith.constant 0 : i32
    %c0_i32_0 = arith.constant 0 : i32
    %c0_i32_1 = arith.constant 0 : i32
    return %c0_i32, %c0_i32_0 : i32, i32
  }
  func.func @transform_7(%arg0: i32) -> (i32, i32, i32) {
    %c0_i32 = arith.constant 0 : i32
    %c0_i32_0 = arith.constant 0 : i32
    %c0_i32_1 = arith.constant 0 : i32
    return %arg0, %c0_i32, %c0_i32_0 : i32, i32, i32
  }
}

</mosaic_0001>

<bundles_post_ra>
// kernel: sub.3
= control target key start
LH: loop header
LB: loop body
LE: loop exit
PB: predicated region body
PF: predicated region fallthrough
CT: control target
= control target key end

     0   :  { %s3275_s0 = inlined_call_operand.vmem [shape: f32[928,2], index: 0, kind: input, shape index: {}]   ;;  %s3276_s1 = inlined_call_operand.vmem [shape: f32[928,2], index: 1, kind: input, shape index: {}]   ;;  %s3277_s2 = inlined_call_operand.vmem [shape: f32[928,2], index: 2, kind: output, shape index: {}]  }
   0x1   :  { %v3_v0 = vld [vmem:[%s3275_s0] sm:$0xff]  ;;  %v1160_v2 = vld [vmem:[%s3275_s0 + $0x8] sm:$0xff]  ;;  %v1163_v5 = vld [vmem:[%s3275_s0 + $0x10] sm:$0xff] }
   0x2   :  { %v4_v1 = vld [vmem:[%s3276_s1] sm:$0xff]  ;;  %v1161_v4 = vld [vmem:[%s3276_s1 + $0x8] sm:$0xff]  ;;  %v1164_v6 = vld [vmem:[%s3276_s1 + $0x10] sm:$0xff] }
   0x3   :  { %v7_v3 = vsub.f32 %v3_v0, %v4_v1  ;;  %v16_v7 = vsub.f32 %v1160_v2, %v1161_v4  ;;  %v26_v8 = vsub.f32 %v1163_v5, %v1164_v6  ;;  %v1166_v9 = vld [vmem:[%s3275_s0 + $0x18] sm:$0xff]  ;;  %v1169_v11 = vld [vmem:[%s3275_s0 + $0x20] sm:$0xff]  ;;  %v1172_v14 = vld [vmem:[%s3275_s0 + $0x28] sm:$0xff] }
   0x4   :  { %v1167_v10 = vld [vmem:[%s3276_s1 + $0x18] sm:$0xff]  ;;  %v1170_v13 = vld [vmem:[%s3276_s1 + $0x20] sm:$0xff]  ;;  %v1173_v15 = vld [vmem:[%s3276_s1 + $0x28] sm:$0xff] }
   0x5   :  { %9 = vst [vmem:[%s3277_s2] sm:$0xff] %v7_v3  ;;  %v36_v12 = vsub.f32 %v1166_v9, %v1167_v10  ;;  %v46_v16 = vsub.f32 %v1169_v11, %v1170_v13  ;;  %v56_v17 = vsub.f32 %v1172_v14, %v1173_v15  ;;  %v1175_v18 = vld [vmem:[%s3275_s0 + $0x30] sm:$0xff]  ;;  %v1178_v20 = vld [vmem:[%s3275_s0 + $0x38] sm:$0xff]  ;;  %v1181_v23 = vld [vmem:[%s3275_s0 + $0x40] sm:$0xff] }
   0x6   :  { %1162 = vst [vmem:[%s3277_s2 + $0x8] sm:$0xff] %v16_v7  ;;  %v1176_v19 = vld [vmem:[%s3276_s1 + $0x30] sm:$0xff]  ;;  %v1179_v22 = vld [vmem:[%s3276_s1 + $0x38] sm:$0xff]  ;;  %v1182_v24 = vld [vmem:[%s3276_s1 + $0x40] sm:$0xff] }
   0x7   :  { %1165 = vst [vmem:[%s3277_s2 + $0x10] sm:$0xff] %v26_v8  ;;  %v66_v21 = vsub.f32 %v1175_v18, %v1176_v19  ;;  %v76_v25 = vsub.f32 %v1178_v20, %v1179_v22  ;;  %v86_v26 = vsub.f32 %v1181_v23, %v1182_v24  ;;  %v1184_v27 = vld [vmem:[%s3275_s0 + $0x48] sm:$0xff]  ;;  %v1187_v29 = vld [vmem:[%s3275_s0 + $0x50] sm:$0xff]  ;;  %v1190_v32 = vld [vmem:[%s3275_s0 + $0x58] sm:$0xff] }
   0x8   :  { %1168 = vst [vmem:[%s3277_s2 + $0x18] sm:$0xff] %v36_v12  ;;  %v1185_v28 = vld [vmem:[%s3276_s1 + $0x48] sm:$0xff]  ;;  %v1188_v31 = vld [vmem:[%s3276_s1 + $0x50] sm:$0xff]  ;;  %v1191_v33 = vld [vmem:[%s3276_s1 + $0x58] sm:$0xff] }
   0x9   :  { %1171 = vst [vmem:[%s3277_s2 + $0x20] sm:$0xff] %v46_v16  ;;  %v96_v30 = vsub.f32 %v1184_v27, %v1185_v28  ;;  %v106_v34 = vsub.f32 %v1187_v29, %v1188_v31  ;;  %v116_v35 = vsub.f32 %v1190_v32, %v1191_v33  ;;  %v1193_v36 = vld [vmem:[%s3275_s0 + $0x60] sm:$0xff]  ;;  %v1196_v38 = vld [vmem:[%s3275_s0 + $0x68] sm:$0xff]  ;;  %v1199_v41 = vld [vmem:[%s3275_s0 + $0x70] sm:$0xff] }
   0xa   :  { %1174 = vst [vmem:[%s3277_s2 + $0x28] sm:$0xff] %v56_v17  ;;  %v1194_v37 = vld [vmem:[%s3276_s1 + $0x60] sm:$0xff]  ;;  %v1197_v40 = vld [vmem:[%s3276_s1 + $0x68] sm:$0xff]  ;;  %v1200_v42 = vld [vmem:[%s3276_s1 + $0x70] sm:$0xff] }
   0xb   :  { %1177 = vst [vmem:[%s3277_s2 + $0x30] sm:$0xff] %v66_v21  ;;  %v126_v39 = vsub.f32 %v1193_v36, %v1194_v37  ;;  %v136_v43 = vsub.f32 %v1196_v38, %v1197_v40  ;;  %v146_v44 = vsub.f32 %v1199_v41, %v1200_v42  ;;  %v1202_v45 = vld [vmem:[%s3275_s0 + $0x78] sm:$0xff]  ;;  %v1205_v47 = vld [vmem:[%s3275_s0 + $0x80] sm:$0xff]  ;;  %v1208_v50 = vld [vmem:[%s3275_s0 + $0x88] sm:$0xff] }
   0xc   :  { %1180 = vst [vmem:[%s3277_s2 + $0x38] sm:$0xff] %v76_v25  ;;  %v1203_v46 = vld [vmem:[%s3276_s1 + $0x78] sm:$0xff]  ;;  %v1206_v49 = vld [vmem:[%s3276_s1 + $0x80] sm:$0xff]  ;;  %v1209_v51 = vld [vmem:[%s3276_s1 + $0x88] sm:$0xff] }
   0xd   :  { %1183 = vst [vmem:[%s3277_s2 + $0x40] sm:$0xff] %v86_v26  ;;  %v156_v48 = vsub.f32 %v1202_v45, %v1203_v46  ;;  %v166_v52 = vsub.f32 %v1205_v47, %v1206_v49  ;;  %v176_v53 = vsub.f32 %v1208_v50, %v1209_v51  ;;  %v1211_v54 = vld [vmem:[%s3275_s0 + $0x90] sm:$0xff]  ;;  %v1214_v56 = vld [vmem:[%s3275_s0 + $0x98] sm:$0xff]  ;;  %v1217_v59 = vld [vmem:[%s3275_s0 + $0xa0] sm:$0xff] }
   0xe   :  { %1186 = vst [vmem:[%s3277_s2 + $0x48] sm:$0xff] %v96_v30  ;;  %v1212_v55 = vld [vmem:[%s3276_s1 + $0x90] sm:$0xff]  ;;  %v1215_v58 = vld [vmem:[%s3276_s1 + $0x98] sm:$0xff]  ;;  %v1218_v60 = vld [vmem:[%s3276_s1 + $0xa0] sm:$0xff] }
   0xf   :  { %1189 = vst [vmem:[%s3277_s2 + $0x50] sm:$0xff] %v106_v34  ;;  %v186_v57 = vsub.f32 %v1211_v54, %v1212_v55  ;;  %v196_v61 = vsub.f32 %v1214_v56, %v1215_v58  ;;  %v206_v62 = vsub.f32 %v1217_v59, %v1218_v60  ;;  %v1220_v63 = vld [vmem:[%s3275_s0 + $0xa8] sm:$0xff]  ;;  %v1223_v1 = vld [vmem:[%s3275_s0 + $0xb0] sm:$0xff]  ;;  %v1226_v4 = vld [vmem:[%s3275_s0 + $0xb8] sm:$0xff] }
  0x10   :  { %1192 = vst [vmem:[%s3277_s2 + $0x58] sm:$0xff] %v116_v35  ;;  %v1221_v0 = vld [vmem:[%s3276_s1 + $0xa8] sm:$0xff]  ;;  %v1224_v3 = vld [vmem:[%s3276_s1 + $0xb0] sm:$0xff]  ;;  %v1227_v5 = vld [vmem:[%s3276_s1 + $0xb8] sm:$0xff] }
  0x11   :  { %1195 = vst [vmem:[%s3277_s2 + $0x60] sm:$0xff] %v126_v39  ;;  %v216_v2 = vsub.f32 %v1220_v63, %v1221_v0  ;;  %v226_v6 = vsub.f32 %v1223_v1, %v1224_v3  ;;  %v236_v7 = vsub.f32 %v1226_v4, %v1227_v5  ;;  %v1229_v8 = vld [vmem:[%s3275_s0 + $0xc0] sm:$0xff]  ;;  %v1232_v10 = vld [vmem:[%s3275_s0 + $0xc8] sm:$0xff]  ;;  %v1724_v13 = vld [vmem:[%s3275_s0 + $0xd0] sm:$0xff] }
  0x12   :  { %1198 = vst [vmem:[%s3277_s2 + $0x68] sm:$0xff] %v136_v43  ;;  %v1230_v9 = vld [vmem:[%s3276_s1 + $0xc0] sm:$0xff]  ;;  %v1233_v12 = vld [vmem:[%s3276_s1 + $0xc8] sm:$0xff]  ;;  %v1236_v14 = vld [vmem:[%s3276_s1 + $0xd0] sm:$0xff] }
  0x13   :  { %1201 = vst [vmem:[%s3277_s2 + $0x70] sm:$0xff] %v146_v44  ;;  %v246_v11 = vsub.f32 %v1229_v8, %v1230_v9  ;;  %v256_v15 = vsub.f32 %v1232_v10, %v1233_v12  ;;  %v266_v16 = vsub.f32 %v1724_v13, %v1236_v14  ;;  %v1736_v17 = vld [vmem:[%s3275_s0 + $0xd8] sm:$0xff]  ;;  %v1744_v19 = vld [vmem:[%s3275_s0 + $0xe0] sm:$0xff]  ;;  %v1758_v22 = vld [vmem:[%s3275_s0 + $0xe8] sm:$0xff] }
  0x14   :  { %1204 = vst [vmem:[%s3277_s2 + $0x78] sm:$0xff] %v156_v48  ;;  %v1239_v18 = vld [vmem:[%s3276_s1 + $0xd8] sm:$0xff]  ;;  %v1753_v21 = vld [vmem:[%s3276_s1 + $0xe0] sm:$0xff]  ;;  %v1763_v23 = vld [vmem:[%s3276_s1 + $0xe8] sm:$0xff] }
  0x15   :  { %1207 = vst [vmem:[%s3277_s2 + $0x80] sm:$0xff] %v166_v52  ;;  %v276_v20 = vsub.f32 %v1736_v17, %v1239_v18  ;;  %v286_v24 = vsub.f32 %v1744_v19, %v1753_v21  ;;  %v296_v25 = vsub.f32 %v1758_v22, %v1763_v23  ;;  %v1775_v26 = vld [vmem:[%s3275_s0 + $0xf0] sm:$0xff]  ;;  %v1785_v28 = vld [vmem:[%s3275_s0 + $0xf8] sm:$0xff]  ;;  %v1800_v31 = vld [vmem:[%s3275_s0 + $0x100] sm:$0xff] }
  0x16   :  { %1210 = vst [vmem:[%s3277_s2 + $0x88] sm:$0xff] %v176_v53  ;;  %v1780_v27 = vld [vmem:[%s3276_s1 + $0xf0] sm:$0xff]  ;;  %v1795_v30 = vld [vmem:[%s3276_s1 + $0xf8] sm:$0xff]  ;;  %v1805_v32 = vld [vmem:[%s3276_s1 + $0x100] sm:$0xff] }
  0x17   :  { %1213 = vst [vmem:[%s3277_s2 + $0x90] sm:$0xff] %v186_v57  ;;  %v306_v29 = vsub.f32 %v1775_v26, %v1780_v27  ;;  %v316_v33 = vsub.f32 %v1785_v28, %v1795_v30  ;;  %v326_v34 = vsub.f32 %v1800_v31, %v1805_v32  ;;  %v1817_v35 = vld [vmem:[%s3275_s0 + $0x108] sm:$0xff]  ;;  %v1827_v37 = vld [vmem:[%s3275_s0 + $0x110] sm:$0xff]  ;;  %v1842_v40 = vld [vmem:[%s3275_s0 + $0x118] sm:$0xff] }
  0x18   :  { %1216 = vst [vmem:[%s3277_s2 + $0x98] sm:$0xff] %v196_v61  ;;  %v1822_v36 = vld [vmem:[%s3276_s1 + $0x108] sm:$0xff]  ;;  %v1837_v39 = vld [vmem:[%s3276_s1 + $0x110] sm:$0xff]  ;;  %v1847_v41 = vld [vmem:[%s3276_s1 + $0x118] sm:$0xff] }
  0x19   :  { %1219 = vst [vmem:[%s3277_s2 + $0xa0] sm:$0xff] %v206_v62  ;;  %v336_v38 = vsub.f32 %v1817_v35, %v1822_v36  ;;  %v346_v42 = vsub.f32 %v1827_v37, %v1837_v39  ;;  %v356_v43 = vsub.f32 %v1842_v40, %v1847_v41  ;;  %v1859_v44 = vld [vmem:[%s3275_s0 + $0x120] sm:$0xff]  ;;  %v1869_v46 = vld [vmem:[%s3275_s0 + $0x128] sm:$0xff]  ;;  %v1884_v49 = vld [vmem:[%s3275_s0 + $0x130] sm:$0xff] }
  0x1a   :  { %1222 = vst [vmem:[%s3277_s2 + $0xa8] sm:$0xff] %v216_v2  ;;  %v1864_v45 = vld [vmem:[%s3276_s1 + $0x120] sm:$0xff]  ;;  %v1879_v48 = vld [vmem:[%s3276_s1 + $0x128] sm:$0xff]  ;;  %v1889_v50 = vld [vmem:[%s3276_s1 + $0x130] sm:$0xff] }
  0x1b   :  { %1225 = vst [vmem:[%s3277_s2 + $0xb0] sm:$0xff] %v226_v6  ;;  %v366_v47 = vsub.f32 %v1859_v44, %v1864_v45  ;;  %v376_v51 = vsub.f32 %v1869_v46, %v1879_v48  ;;  %v386_v52 = vsub.f32 %v1884_v49, %v1889_v50  ;;  %v1901_v53 = vld [vmem:[%s3275_s0 + $0x138] sm:$0xff]  ;;  %v1911_v55 = vld [vmem:[%s3275_s0 + $0x140] sm:$0xff]  ;;  %v1926_v58 = vld [vmem:[%s3275_s0 + $0x148] sm:$0xff] }
  0x1c   :  { %1228 = vst [vmem:[%s3277_s2 + $0xb8] sm:$0xff] %v236_v7  ;;  %v1906_v54 = vld [vmem:[%s3276_s1 + $0x138] sm:$0xff]  ;;  %v1921_v57 = vld [vmem:[%s3276_s1 + $0x140] sm:$0xff]  ;;  %v1931_v59 = vld [vmem:[%s3276_s1 + $0x148] sm:$0xff] }
  0x1d   :  { %1231 = vst [vmem:[%s3277_s2 + $0xc0] sm:$0xff] %v246_v11  ;;  %v396_v56 = vsub.f32 %v1901_v53, %v1906_v54  ;;  %v406_v60 = vsub.f32 %v1911_v55, %v1921_v57  ;;  %v416_v61 = vsub.f32 %v1926_v58, %v1931_v59  ;;  %v1943_v62 = vld [vmem:[%s3275_s0 + $0x150] sm:$0xff]  ;;  %v1953_v0 = vld [vmem:[%s3275_s0 + $0x158] sm:$0xff]  ;;  %v1968_v3 = vld [vmem:[%s3275_s0 + $0x160] sm:$0xff] }
  0x1e   :  { %1234 = vst [vmem:[%s3277_s2 + $0xc8] sm:$0xff] %v256_v15  ;;  %v1948_v63 = vld [vmem:[%s3276_s1 + $0x150] sm:$0xff]  ;;  %v1963_v2 = vld [vmem:[%s3276_s1 + $0x158] sm:$0xff]  ;;  %v1973_v4 = vld [vmem:[%s3276_s1 + $0x160] sm:$0xff] }
  0x1f   :  { %1237 = vst [vmem:[%s3277_s2 + $0xd0] sm:$0xff] %v266_v16  ;;  %v426_v1 = vsub.f32 %v1943_v62, %v1948_v63  ;;  %v436_v5 = vsub.f32 %v1953_v0, %v1963_v2  ;;  %v446_v6 = vsub.f32 %v1968_v3, %v1973_v4  ;;  %v1985_v7 = vld [vmem:[%s3275_s0 + $0x168] sm:$0xff]  ;;  %v1995_v9 = vld [vmem:[%s3275_s0 + $0x170] sm:$0xff]  ;;  %v2010_v12 = vld [vmem:[%s3275_s0 + $0x178] sm:$0xff] }
  0x20   :  { %1240 = vst [vmem:[%s3277_s2 + $0xd8] sm:$0xff] %v276_v20  ;;  %v1990_v8 = vld [vmem:[%s3276_s1 + $0x168] sm:$0xff]  ;;  %v2005_v11 = vld [vmem:[%s3276_s1 + $0x170] sm:$0xff]  ;;  %v2015_v13 = vld [vmem:[%s3276_s1 + $0x178] sm:$0xff] }
  0x21   :  { %1243 = vst [vmem:[%s3277_s2 + $0xe0] sm:$0xff] %v286_v24  ;;  %v456_v10 = vsub.f32 %v1985_v7, %v1990_v8  ;;  %v466_v14 = vsub.f32 %v1995_v9, %v2005_v11  ;;  %v476_v15 = vsub.f32 %v2010_v12, %v2015_v13  ;;  %v2030_v16 = vld [vmem:[%s3275_s0 + $0x180] sm:$0xff]  ;;  %v2040_v18 = vld [vmem:[%s3275_s0 + $0x188] sm:$0xff]  ;;  %v2058_v21 = vld [vmem:[%s3275_s0 + $0x190] sm:$0xff] }
  0x22   :  { %1246 = vst [vmem:[%s3277_s2 + $0xe8] sm:$0xff] %v296_v25  ;;  %v2035_v17 = vld [vmem:[%s3276_s1 + $0x180] sm:$0xff]  ;;  %v2053_v20 = vld [vmem:[%s3276_s1 + $0x188] sm:$0xff]  ;;  %v2063_v22 = vld [vmem:[%s3276_s1 + $0x190] sm:$0xff] }
  0x23   :  { %1249 = vst [vmem:[%s3277_s2 + $0xf0] sm:$0xff] %v306_v29  ;;  %v486_v19 = vsub.f32 %v2030_v16, %v2035_v17  ;;  %v496_v23 = vsub.f32 %v2040_v18, %v2053_v20  ;;  %v506_v24 = vsub.f32 %v2058_v21, %v2063_v22  ;;  %v2078_v25 = vld [vmem:[%s3275_s0 + $0x198] sm:$0xff]  ;;  %v2088_v27 = vld [vmem:[%s3275_s0 + $0x1a0] sm:$0xff]  ;;  %v2106_v30 = vld [vmem:[%s3275_s0 + $0x1a8] sm:$0xff] }
  0x24   :  { %1252 = vst [vmem:[%s3277_s2 + $0xf8] sm:$0xff] %v316_v33  ;;  %v2083_v26 = vld [vmem:[%s3276_s1 + $0x198] sm:$0xff]  ;;  %v2101_v29 = vld [vmem:[%s3276_s1 + $0x1a0] sm:$0xff]  ;;  %v2111_v31 = vld [vmem:[%s3276_s1 + $0x1a8] sm:$0xff] }
  0x25   :  { %1255 = vst [vmem:[%s3277_s2 + $0x100] sm:$0xff] %v326_v34  ;;  %v516_v28 = vsub.f32 %v2078_v25, %v2083_v26  ;;  %v526_v32 = vsub.f32 %v2088_v27, %v2101_v29  ;;  %v536_v33 = vsub.f32 %v2106_v30, %v2111_v31  ;;  %v2126_v34 = vld [vmem:[%s3275_s0 + $0x1b0] sm:$0xff]  ;;  %v2136_v36 = vld [vmem:[%s3275_s0 + $0x1b8] sm:$0xff]  ;;  %v2154_v39 = vld [vmem:[%s3275_s0 + $0x1c0] sm:$0xff] }
  0x26   :  { %1258 = vst [vmem:[%s3277_s2 + $0x108] sm:$0xff] %v336_v38  ;;  %v2131_v35 = vld [vmem:[%s3276_s1 + $0x1b0] sm:$0xff]  ;;  %v2149_v38 = vld [vmem:[%s3276_s1 + $0x1b8] sm:$0xff]  ;;  %v2179_v41 = vld [vmem:[%s3276_s1 + $0x1c8] sm:$0xff] }
  0x27   :  { %1261 = vst [vmem:[%s3277_s2 + $0x110] sm:$0xff] %v346_v42  ;;  %v546_v37 = vsub.f32 %v2126_v34, %v2131_v35  ;;  %v2159_v42 = vld [vmem:[%s3276_s1 + $0x1c0] sm:$0xff]  ;;  %v2184_v40 = vld [vmem:[%s3275_s0 + $0x1d0] sm:$0xff]  ;;  %v2207_v44 = vld [vmem:[%s3276_s1 + $0x1d8] sm:$0xff]  ;;  %v3287_v36 = vsub.f32 %v2136_v36, %v2149_v38 }
  0x28   :  { %1264 = vst [vmem:[%s3277_s2 + $0x118] sm:$0xff] %v356_v43  ;;  %v2174_v43 = vld [vmem:[%s3275_s0 + $0x1c8] sm:$0xff]  ;;  %v2197_v45 = vld [vmem:[%s3276_s1 + $0x1d0] sm:$0xff]  ;;  %v2227_v48 = vld [vmem:[%s3276_s1 + $0x1e0] sm:$0xff]  ;;  %v3289_v39 = vsub.f32 %v2154_v39, %v2159_v42 }
  0x29   :  { %1267 = vst [vmem:[%s3277_s2 + $0x120] sm:$0xff] %v366_v47  ;;  %v2202_v47 = vld [vmem:[%s3275_s0 + $0x1d8] sm:$0xff]  ;;  %v2232_v46 = vld [vmem:[%s3275_s0 + $0x1e8] sm:$0xff]  ;;  %v2255_v49 = vld [vmem:[%s3276_s1 + $0x1f0] sm:$0xff]  ;;  %v3291_v41 = vsub.f32 %v2174_v43, %v2179_v41  ;;  %v3293_v40 = vsub.f32 %v2184_v40, %v2197_v45 }
  0x2a   :  { %1270 = vst [vmem:[%s3277_s2 + $0x128] sm:$0xff] %v376_v51  ;;  %v2222_v51 = vld [vmem:[%s3275_s0 + $0x1e0] sm:$0xff]  ;;  %v2245_v50 = vld [vmem:[%s3276_s1 + $0x1e8] sm:$0xff]  ;;  %v2275_v54 = vld [vmem:[%s3276_s1 + $0x1f8] sm:$0xff]  ;;  %v3295_v44 = vsub.f32 %v2202_v47, %v2207_v44 }
  0x2b   :  { %1273 = vst [vmem:[%s3277_s2 + $0x130] sm:$0xff] %v386_v52  ;;  %v2250_v52 = vld [vmem:[%s3275_s0 + $0x1f0] sm:$0xff]  ;;  %v2280_v53 = vld [vmem:[%s3275_s0 + $0x200] sm:$0xff]  ;;  %v2303_v55 = vld [vmem:[%s3276_s1 + $0x208] sm:$0xff]  ;;  %v3297_v48 = vsub.f32 %v2222_v51, %v2227_v48  ;;  %v3299_v46 = vsub.f32 %v2232_v46, %v2245_v50 }
  0x2c   :  { %1276 = vst [vmem:[%s3277_s2 + $0x138] sm:$0xff] %v396_v56  ;;  %v2270_v56 = vld [vmem:[%s3275_s0 + $0x1f8] sm:$0xff]  ;;  %v2293_v57 = vld [vmem:[%s3276_s1 + $0x200] sm:$0xff]  ;;  %v2323_v59 = vld [vmem:[%s3276_s1 + $0x210] sm:$0xff]  ;;  %v3301_v49 = vsub.f32 %v2250_v52, %v2255_v49 }
  0x2d   :  { %1279 = vst [vmem:[%s3277_s2 + $0x140] sm:$0xff] %v406_v60  ;;  %v2298_v60 = vld [vmem:[%s3275_s0 + $0x208] sm:$0xff]  ;;  %v2328_v58 = vld [vmem:[%s3275_s0 + $0x218] sm:$0xff]  ;;  %v2351_v62 = vld [vmem:[%s3276_s1 + $0x220] sm:$0xff]  ;;  %v3302_v54 = vsub.f32 %v2270_v56, %v2275_v54  ;;  %v3303_v53 = vsub.f32 %v2280_v53, %v2293_v57 }
  0x2e   :  { %1282 = vst [vmem:[%s3277_s2 + $0x148] sm:$0xff] %v416_v61  ;;  %v2318_v61 = vld [vmem:[%s3275_s0 + $0x210] sm:$0xff]  ;;  %v2341_v63 = vld [vmem:[%s3276_s1 + $0x218] sm:$0xff]  ;;  %v2371_v2 = vld [vmem:[%s3276_s1 + $0x228] sm:$0xff]  ;;  %v3304_v55 = vsub.f32 %v2298_v60, %v2303_v55 }
  0x2f   :  { %1285 = vst [vmem:[%s3277_s2 + $0x150] sm:$0xff] %v426_v1  ;;  %v2346_v1 = vld [vmem:[%s3275_s0 + $0x220] sm:$0xff]  ;;  %v2376_v0 = vld [vmem:[%s3275_s0 + $0x230] sm:$0xff]  ;;  %v2399_v3 = vld [vmem:[%s3276_s1 + $0x238] sm:$0xff]  ;;  %v3305_v59 = vsub.f32 %v2318_v61, %v2323_v59  ;;  %v3306_v58 = vsub.f32 %v2328_v58, %v2341_v63 }
  0x30   :  { %1288 = vst [vmem:[%s3277_s2 + $0x158] sm:$0xff] %v436_v5  ;;  %v2366_v5 = vld [vmem:[%s3275_s0 + $0x228] sm:$0xff]  ;;  %v2389_v4 = vld [vmem:[%s3276_s1 + $0x230] sm:$0xff]  ;;  %v2419_v8 = vld [vmem:[%s3276_s1 + $0x240] sm:$0xff]  ;;  %v3307_v62 = vsub.f32 %v2346_v1, %v2351_v62 }
  0x31   :  { %1291 = vst [vmem:[%s3277_s2 + $0x160] sm:$0xff] %v446_v6  ;;  %v2394_v6 = vld [vmem:[%s3275_s0 + $0x238] sm:$0xff]  ;;  %v2424_v7 = vld [vmem:[%s3275_s0 + $0x248] sm:$0xff]  ;;  %v2447_v9 = vld [vmem:[%s3276_s1 + $0x250] sm:$0xff]  ;;  %v3308_v2 = vsub.f32 %v2366_v5, %v2371_v2  ;;  %v3309_v0 = vsub.f32 %v2376_v0, %v2389_v4 }
  0x32   :  { %1294 = vst [vmem:[%s3277_s2 + $0x168] sm:$0xff] %v456_v10  ;;  %v2414_v10 = vld [vmem:[%s3275_s0 + $0x240] sm:$0xff]  ;;  %v2437_v11 = vld [vmem:[%s3276_s1 + $0x248] sm:$0xff]  ;;  %v2467_v13 = vld [vmem:[%s3276_s1 + $0x258] sm:$0xff]  ;;  %v3310_v3 = vsub.f32 %v2394_v6, %v2399_v3 }
  0x33   :  { %1297 = vst [vmem:[%s3277_s2 + $0x170] sm:$0xff] %v466_v14  ;;  %v2442_v14 = vld [vmem:[%s3275_s0 + $0x250] sm:$0xff]  ;;  %v2472_v12 = vld [vmem:[%s3275_s0 + $0x260] sm:$0xff]  ;;  %v2495_v16 = vld [vmem:[%s3276_s1 + $0x268] sm:$0xff]  ;;  %v3311_v8 = vsub.f32 %v2414_v10, %v2419_v8  ;;  %v3312_v7 = vsub.f32 %v2424_v7, %v2437_v11 }
  0x34   :  { %1300 = vst [vmem:[%s3277_s2 + $0x178] sm:$0xff] %v476_v15  ;;  %v2462_v15 = vld [vmem:[%s3275_s0 + $0x258] sm:$0xff]  ;;  %v2485_v17 = vld [vmem:[%s3276_s1 + $0x260] sm:$0xff]  ;;  %v2515_v20 = vld [vmem:[%s3276_s1 + $0x270] sm:$0xff]  ;;  %v3313_v9 = vsub.f32 %v2442_v14, %v2447_v9 }
  0x35   :  { %1303 = vst [vmem:[%s3277_s2 + $0x180] sm:$0xff] %v486_v19  ;;  %v2490_v19 = vld [vmem:[%s3275_s0 + $0x268] sm:$0xff]  ;;  %v2520_v18 = vld [vmem:[%s3275_s0 + $0x278] sm:$0xff]  ;;  %v2543_v21 = vld [vmem:[%s3276_s1 + $0x280] sm:$0xff]  ;;  %v3314_v13 = vsub.f32 %v2462_v15, %v2467_v13  ;;  %v3315_v12 = vsub.f32 %v2472_v12, %v2485_v17 }
  0x36   :  { %1306 = vst [vmem:[%s3277_s2 + $0x188] sm:$0xff] %v496_v23  ;;  %v2510_v23 = vld [vmem:[%s3275_s0 + $0x270] sm:$0xff]  ;;  %v2533_v22 = vld [vmem:[%s3276_s1 + $0x278] sm:$0xff]  ;;  %v2563_v26 = vld [vmem:[%s3276_s1 + $0x288] sm:$0xff]  ;;  %v3316_v16 = vsub.f32 %v2490_v19, %v2495_v16 }
  0x37   :  { %1309 = vst [vmem:[%s3277_s2 + $0x190] sm:$0xff] %v506_v24  ;;  %v2538_v24 = vld [vmem:[%s3275_s0 + $0x280] sm:$0xff]  ;;  %v2568_v25 = vld [vmem:[%s3275_s0 + $0x290] sm:$0xff]  ;;  %v2591_v27 = vld [vmem:[%s3276_s1 + $0x298] sm:$0xff]  ;;  %v3317_v20 = vsub.f32 %v2510_v23, %v2515_v20  ;;  %v3318_v18 = vsub.f32 %v2520_v18, %v2533_v22 }
  0x38   :  { %1312 = vst [vmem:[%s3277_s2 + $0x198] sm:$0xff] %v516_v28  ;;  %v2558_v28 = vld [vmem:[%s3275_s0 + $0x288] sm:$0xff]  ;;  %v2581_v29 = vld [vmem:[%s3276_s1 + $0x290] sm:$0xff]  ;;  %v2611_v31 = vld [vmem:[%s3276_s1 + $0x2a0] sm:$0xff]  ;;  %v3319_v21 = vsub.f32 %v2538_v24, %v2543_v21 }
  0x39   :  { %1315 = vst [vmem:[%s3277_s2 + $0x1a0] sm:$0xff] %v526_v32  ;;  %v2586_v32 = vld [vmem:[%s3275_s0 + $0x298] sm:$0xff]  ;;  %v2616_v30 = vld [vmem:[%s3275_s0 + $0x2a8] sm:$0xff]  ;;  %v2639_v34 = vld [vmem:[%s3276_s1 + $0x2b0] sm:$0xff]  ;;  %v3320_v26 = vsub.f32 %v2558_v28, %v2563_v26  ;;  %v3321_v25 = vsub.f32 %v2568_v25, %v2581_v29 }
  0x3a   :  { %1318 = vst [vmem:[%s3277_s2 + $0x1a8] sm:$0xff] %v536_v33  ;;  %v2606_v33 = vld [vmem:[%s3275_s0 + $0x2a0] sm:$0xff]  ;;  %v2629_v35 = vld [vmem:[%s3276_s1 + $0x2a8] sm:$0xff]  ;;  %v2659_v38 = vld [vmem:[%s3276_s1 + $0x2b8] sm:$0xff]  ;;  %v3322_v28 = vsub.f32 %v2586_v32, %v2591_v27 }
  0x3b   :  { %1321 = vst [vmem:[%s3277_s2 + $0x1b0] sm:$0xff] %v546_v37  ;;  %v2634_v37 = vld [vmem:[%s3275_s0 + $0x2b0] sm:$0xff]  ;;  %v2682_v42 = vld [vmem:[%s3275_s0 + $0x2c8] sm:$0xff]  ;;  %v2730_v45 = vld [vmem:[%s3275_s0 + $0x2e0] sm:$0xff]  ;;  %v3323_v27 = vsub.f32 %v2606_v33, %v2611_v31  ;;  %v3324_v29 = vsub.f32 %v2616_v30, %v2629_v35 }
  0x3c   :  { %3286 = vst [vmem:[#allocation1_spill] sm:$0xff] %v2639_v34  ;;  %v2664_v34 = vld [vmem:[%s3275_s0 + $0x2c0] sm:$0xff]  ;;  %v2707_v43 = vld [vmem:[%s3276_s1 + $0x2d0] sm:$0xff]  ;;  %v2755_v47 = vld [vmem:[%s3276_s1 + $0x2e8] sm:$0xff] }
  0x3d   :  { %1324 = vst [vmem:[%s3277_s2 + $0x1b8] sm:$0xff] %v3287_v36  ;;  %v2654_v36 = vld [vmem:[%s3275_s0 + $0x2b8] sm:$0xff]  ;;  %v2803_v50 = vld [vmem:[%s3276_s1 + $0x300] sm:$0xff]  ;;  %v2826_v52 = vld [vmem:[%s3275_s0 + $0x310] sm:$0xff] }
  0x3e   :  { %3288 = vst [vmem:[#allocation2_spill] sm:$0xff] %v2659_v38  ;;  %v2687_v38 = vld [vmem:[%s3276_s1 + $0x2c8] sm:$0xff]  ;;  %v2778_v51 = vld [vmem:[%s3275_s0 + $0x2f8] sm:$0xff]  ;;  %v2869_v57 = vld [vmem:[%s3276_s1 + $0x320] sm:$0xff] }
  0x3f   :  { %1327 = vst [vmem:[%s3277_s2 + $0x1c0] sm:$0xff] %v3289_v39  ;;  %v2677_v39 = vld [vmem:[%s3276_s1 + $0x2c0] sm:$0xff]  ;;  %v2851_v56 = vld [vmem:[%s3276_s1 + $0x318] sm:$0xff]  ;;  %v2887_v60 = vld [vmem:[%s3276_s1 + $0x328] sm:$0xff] }
  0x40   :  { %3290 = vst [vmem:[#allocation3_spill] sm:$0xff] %v2687_v38  ;;  %v2712_v38 = vld [vmem:[%s3275_s0 + $0x2d8] sm:$0xff]  ;;  %v2905_v61 = vld [vmem:[%s3276_s1 + $0x330] sm:$0xff]  ;;  %v2941_v1 = vld [vmem:[%s3276_s1 + $0x340] sm:$0xff]  ;;  %v3329_v34 = vsub.f32 %v2664_v34, %v2677_v39 }
  0x41   :  { %1330 = vst [vmem:[%s3277_s2 + $0x1c8] sm:$0xff] %v3291_v41  ;;  %v2702_v41 = vld [vmem:[%s3275_s0 + $0x2d0] sm:$0xff]  ;;  %v2923_v63 = vld [vmem:[%s3276_s1 + $0x338] sm:$0xff]  ;;  %v2959_v5 = vld [vmem:[%s3276_s1 + $0x348] sm:$0xff] }
  0x42   :  { %3292 = vst [vmem:[#allocation4_spill] sm:$0xff] %v2707_v43  ;;  %v2735_v43 = vld [vmem:[%s3276_s1 + $0x2e0] sm:$0xff]  ;;  %v2977_v4 = vld [vmem:[%s3276_s1 + $0x350] sm:$0xff] }
  0x43   :  { %1333 = vst [vmem:[%s3277_s2 + $0x1d0] sm:$0xff] %v3293_v40  ;;  %v2725_v40 = vld [vmem:[%s3276_s1 + $0x2d8] sm:$0xff]  ;;  %v3325_v32 = vld [vmem:[#allocation1_spill] sm:$0xff] }
  0x44   :  { %3294 = vst [vmem:[#allocation5_spill] sm:$0xff] %v2735_v43  ;;  %v2760_v43 = vld [vmem:[%s3275_s0 + $0x2f0] sm:$0xff]  ;;  %v3326_v30 = vsub.f32 %v2634_v37, %v3325_v32  ;;  %v3334_v38 = vsub.f32 %v2712_v38, %v2725_v40 }
  0x45   :  { %1336 = vst [vmem:[%s3277_s2 + $0x1d8] sm:$0xff] %v3295_v44  ;;  %v2750_v44 = vld [vmem:[%s3275_s0 + $0x2e8] sm:$0xff] }
  0x46   :  { %3296 = vst [vmem:[#allocation6_spill] sm:$0xff] %v2755_v47  ;;  %v2783_v47 = vld [vmem:[%s3276_s1 + $0x2f8] sm:$0xff]  ;;  %v3327_v31 = vld [vmem:[#allocation2_spill] sm:$0xff] }
  0x47   :  { %1339 = vst [vmem:[%s3277_s2 + $0x1e0] sm:$0xff] %v3297_v48  ;;  %v2773_v48 = vld [vmem:[%s3276_s1 + $0x2f0] sm:$0xff]  ;;  %v3328_v33 = vsub.f32 %v2654_v36, %v3327_v31 }
  0x48   :  { %3298 = vst [vmem:[#allocation7_spill] sm:$0xff] %v2783_v47  ;;  %v2808_v47 = vld [vmem:[%s3275_s0 + $0x308] sm:$0xff]  ;;  %v3330_v35 = vld [vmem:[#allocation3_spill] sm:$0xff]  ;;  %v3339_v43 = vsub.f32 %v2760_v43, %v2773_v48 }
  0x49   :  { %1342 = vst [vmem:[%s3277_s2 + $0x1e8] sm:$0xff] %v3299_v46  ;;  %v2798_v46 = vld [vmem:[%s3275_s0 + $0x300] sm:$0xff]  ;;  %v3331_v37 = vsub.f32 %v2682_v42, %v3330_v35  ;;  %v3332_v36 = vld [vmem:[#allocation4_spill] sm:$0xff] }
  0x4a   :  { %3300 = vst [vmem:[#allocation8_spill] sm:$0xff] %v2803_v50  ;;  %v2831_v50 = vld [vmem:[%s3276_s1 + $0x310] sm:$0xff]  ;;  %v3333_v42 = vsub.f32 %v2702_v41, %v3332_v36 }
  0x4b   :  { %1345 = vst [vmem:[%s3277_s2 + $0x1f0] sm:$0xff] %v3301_v49  ;;  %v2821_v49 = vld [vmem:[%s3276_s1 + $0x308] sm:$0xff]  ;;  %v3335_v39 = vld [vmem:[#allocation5_spill] sm:$0xff]  ;;  %v3345_v50 = vsub.f32 %v2826_v52, %v2831_v50 }
  0x4c   :  { %1348 = vst [vmem:[%s3277_s2 + $0x1f8] sm:$0xff] %v3302_v54  ;;  %v2846_v54 = vld [vmem:[%s3275_s0 + $0x318] sm:$0xff]  ;;  %v3336_v41 = vsub.f32 %v2730_v45, %v3335_v39  ;;  %v3344_v47 = vsub.f32 %v2808_v47, %v2821_v49 }
  0x4d   :  { %1351 = vst [vmem:[%s3277_s2 + $0x200] sm:$0xff] %v3303_v53  ;;  %v2864_v53 = vld [vmem:[%s3275_s0 + $0x320] sm:$0xff]  ;;  %v3337_v45 = vld [vmem:[#allocation6_spill] sm:$0xff]  ;;  %v3346_v52 = vsub.f32 %v2846_v54, %v2851_v56 }
  0x4e   :  { %1354 = vst [vmem:[%s3277_s2 + $0x208] sm:$0xff] %v3304_v55  ;;  %v2882_v55 = vld [vmem:[%s3275_s0 + $0x328] sm:$0xff]  ;;  %v3338_v40 = vsub.f32 %v2750_v44, %v3337_v45  ;;  %v3347_v49 = vsub.f32 %v2864_v53, %v2869_v57 }
  0x4f   :  { %1357 = vst [vmem:[%s3277_s2 + $0x210] sm:$0xff] %v3305_v59  ;;  %v2900_v59 = vld [vmem:[%s3275_s0 + $0x330] sm:$0xff]  ;;  %v3348_v56 = vsub.f32 %v2882_v55, %v2887_v60 }
  0x50   :  { %1360 = vst [vmem:[%s3277_s2 + $0x218] sm:$0xff] %v3306_v58  ;;  %v2918_v58 = vld [vmem:[%s3275_s0 + $0x338] sm:$0xff]  ;;  %v3340_v44 = vld [vmem:[#allocation7_spill] sm:$0xff]  ;;  %v3349_v54 = vsub.f32 %v2900_v59, %v2905_v61 }
  0x51   :  { %1363 = vst [vmem:[%s3277_s2 + $0x220] sm:$0xff] %v3307_v62  ;;  %v2936_v62 = vld [vmem:[%s3275_s0 + $0x340] sm:$0xff]  ;;  %v3341_v51 = vsub.f32 %v2778_v51, %v3340_v44  ;;  %v3342_v48 = vld [vmem:[#allocation8_spill] sm:$0xff]  ;;  %v3350_v57 = vsub.f32 %v2918_v58, %v2923_v63 }
  0x52   :  { %1366 = vst [vmem:[%s3277_s2 + $0x228] sm:$0xff] %v3308_v2  ;;  %v2954_v2 = vld [vmem:[%s3275_s0 + $0x348] sm:$0xff]  ;;  %v3343_v46 = vsub.f32 %v2798_v46, %v3342_v48  ;;  %v3351_v53 = vsub.f32 %v2936_v62, %v2941_v1 }
  0x53   :  { %1369 = vst [vmem:[%s3277_s2 + $0x230] sm:$0xff] %v3309_v0  ;;  %v2972_v0 = vld [vmem:[%s3275_s0 + $0x350] sm:$0xff]  ;;  %v3352_v60 = vsub.f32 %v2954_v2, %v2959_v5 }
  0x54   :  { %1372 = vst [vmem:[%s3277_s2 + $0x238] sm:$0xff] %v3310_v3  ;;  %v1066_v6 = vsub.f32 %v2972_v0, %v2977_v4  ;;  %v1478_v4 = vld [vmem:[%s3275_s0 + $0x358] sm:$0xff]  ;;  %v1481_v3 = vld [vmem:[%s3275_s0 + $0x360] sm:$0xff] }
  0x55   :  { %v1479_v0 = vld [vmem:[%s3276_s1 + $0x358] sm:$0xff]  ;;  %1375 = vst [vmem:[%s3277_s2 + $0x240] sm:$0xff] %v3311_v8  ;;  %v1485_v8 = vld [vmem:[%s3276_s1 + $0x368] sm:$0xff] }
  0x56   :  { %v1076_v10 = vsub.f32 %v1478_v4, %v1479_v0  ;;  %v1482_v4 = vld [vmem:[%s3276_s1 + $0x360] sm:$0xff]  ;;  %1378 = vst [vmem:[%s3277_s2 + $0x248] sm:$0xff] %v3312_v7  ;;  %v1484_v0 = vld [vmem:[%s3275_s0 + $0x368] sm:$0xff]  ;;  %v1490_v7 = vld [vmem:[%s3275_s0 + $0x378] sm:$0xff] }
  0x57   :  { %v1086_v11 = vsub.f32 %v1481_v3, %v1482_v4  ;;  %1381 = vst [vmem:[%s3277_s2 + $0x250] sm:$0xff] %v3313_v9  ;;  %v1096_v14 = vsub.f32 %v1484_v0, %v1485_v8  ;;  %v1487_v3 = vld [vmem:[%s3275_s0 + $0x370] sm:$0xff]  ;;  %v1491_v0 = vld [vmem:[%s3276_s1 + $0x378] sm:$0xff]  ;;  %v1493_v8 = vld [vmem:[%s3275_s0 + $0x380] sm:$0xff] }
  0x58   :  { %v1488_v4 = vld [vmem:[%s3276_s1 + $0x370] sm:$0xff]  ;;  %1384 = vst [vmem:[%s3277_s2 + $0x258] sm:$0xff] %v3314_v13  ;;  %v1116_v17 = vsub.f32 %v1490_v7, %v1491_v0  ;;  %v1494_v9 = vld [vmem:[%s3276_s1 + $0x380] sm:$0xff]  ;;  %v1502_v0 = vld [vmem:[%s3275_s0 + $0x398] sm:$0xff] }
  0x59   :  { %v1106_v15 = vsub.f32 %v1487_v3, %v1488_v4  ;;  %1387 = vst [vmem:[%s3277_s2 + $0x260] sm:$0xff] %v3315_v12  ;;  %v1126_v19 = vsub.f32 %v1493_v8, %v1494_v9  ;;  %v1496_v3 = vld [vmem:[%s3275_s0 + $0x388] sm:$0xff]  ;;  %v1499_v13 = vld [vmem:[%s3275_s0 + $0x390] sm:$0xff]  ;;  %v1503_v12 = vld [vmem:[%s3276_s1 + $0x398] sm:$0xff] }
  0x5a   :  { %1390 = vst [vmem:[%s3277_s2 + $0x268] sm:$0xff] %v3316_v16  ;;  %v1497_v4 = vld [vmem:[%s3276_s1 + $0x388] sm:$0xff]  ;;  %v1500_v7 = vld [vmem:[%s3276_s1 + $0x390] sm:$0xff]  ;;  %v1156_v24 = vsub.f32 %v1502_v0, %v1503_v12 }
  0x5b   :  { %1393 = vst [vmem:[%s3277_s2 + $0x270] sm:$0xff] %v3317_v20  ;;  %v1136_v23 = vsub.f32 %v1496_v3, %v1497_v4  ;;  %v1146_v22 = vsub.f32 %v1499_v13, %v1500_v7 }
  0x5c   :  { %1396 = vst [vmem:[%s3277_s2 + $0x278] sm:$0xff] %v3318_v18 }
  0x5d   :  { %1399 = vst [vmem:[%s3277_s2 + $0x280] sm:$0xff] %v3319_v21 }
  0x5e   :  { %1402 = vst [vmem:[%s3277_s2 + $0x288] sm:$0xff] %v3320_v26 }
  0x5f   :  { %1405 = vst [vmem:[%s3277_s2 + $0x290] sm:$0xff] %v3321_v25 }
  0x60   :  { %1408 = vst [vmem:[%s3277_s2 + $0x298] sm:$0xff] %v3322_v28 }
  0x61   :  { %1411 = vst [vmem:[%s3277_s2 + $0x2a0] sm:$0xff] %v3323_v27 }
  0x62   :  { %1414 = vst [vmem:[%s3277_s2 + $0x2a8] sm:$0xff] %v3324_v29 }
  0x63   :  { %1417 = vst [vmem:[%s3277_s2 + $0x2b0] sm:$0xff] %v3326_v30 }
  0x64   :  { %1420 = vst [vmem:[%s3277_s2 + $0x2b8] sm:$0xff] %v3328_v33 }
  0x65   :  { %1423 = vst [vmem:[%s3277_s2 + $0x2c0] sm:$0xff] %v3329_v34 }
  0x66   :  { %1426 = vst [vmem:[%s3277_s2 + $0x2c8] sm:$0xff] %v3331_v37 }
  0x67   :  { %1429 = vst [vmem:[%s3277_s2 + $0x2d0] sm:$0xff] %v3333_v42 }
  0x68   :  { %1432 = vst [vmem:[%s3277_s2 + $0x2d8] sm:$0xff] %v3334_v38 }
  0x69   :  { %1435 = vst [vmem:[%s3277_s2 + $0x2e0] sm:$0xff] %v3336_v41 }
  0x6a   :  { %1438 = vst [vmem:[%s3277_s2 + $0x2e8] sm:$0xff] %v3338_v40 }
  0x6b   :  { %1441 = vst [vmem:[%s3277_s2 + $0x2f0] sm:$0xff] %v3339_v43 }
  0x6c   :  { %1444 = vst [vmem:[%s3277_s2 + $0x2f8] sm:$0xff] %v3341_v51 }
  0x6d   :  { %1447 = vst [vmem:[%s3277_s2 + $0x300] sm:$0xff] %v3343_v46 }
  0x6e   :  { %1450 = vst [vmem:[%s3277_s2 + $0x308] sm:$0xff] %v3344_v47 }
  0x6f   :  { %1453 = vst [vmem:[%s3277_s2 + $0x310] sm:$0xff] %v3345_v50 }
  0x70   :  { %1456 = vst [vmem:[%s3277_s2 + $0x318] sm:$0xff] %v3346_v52 }
  0x71   :  { %1459 = vst [vmem:[%s3277_s2 + $0x320] sm:$0xff] %v3347_v49 }
  0x72   :  { %1462 = vst [vmem:[%s3277_s2 + $0x328] sm:$0xff] %v3348_v56 }
  0x73   :  { %1465 = vst [vmem:[%s3277_s2 + $0x330] sm:$0xff] %v3349_v54 }
  0x74   :  { %1468 = vst [vmem:[%s3277_s2 + $0x338] sm:$0xff] %v3350_v57 }
  0x75   :  { %1471 = vst [vmem:[%s3277_s2 + $0x340] sm:$0xff] %v3351_v53 }
  0x76   :  { %1474 = vst [vmem:[%s3277_s2 + $0x348] sm:$0xff] %v3352_v60 }
  0x77   :  { %1477 = vst [vmem:[%s3277_s2 + $0x350] sm:$0xff] %v1066_v6 }
  0x78   :  { %1480 = vst [vmem:[%s3277_s2 + $0x358] sm:$0xff] %v1076_v10 }
  0x79   :  { %1483 = vst [vmem:[%s3277_s2 + $0x360] sm:$0xff] %v1086_v11 }
  0x7a   :  { %1486 = vst [vmem:[%s3277_s2 + $0x368] sm:$0xff] %v1096_v14 }
  0x7b   :  { %1489 = vst [vmem:[%s3277_s2 + $0x370] sm:$0xff] %v1106_v15 }
  0x7c   :  { %1492 = vst [vmem:[%s3277_s2 + $0x378] sm:$0xff] %v1116_v17 }
  0x7d   :  { %1495 = vst [vmem:[%s3277_s2 + $0x380] sm:$0xff] %v1126_v19 }
  0x7e   :  { %1498 = vst [vmem:[%s3277_s2 + $0x388] sm:$0xff] %v1136_v23 }
  0x7f   :  { %1501 = vst [vmem:[%s3277_s2 + $0x390] sm:$0xff] %v1146_v22 }
  0x80   :  { %1504 = vst [vmem:[%s3277_s2 + $0x398] sm:$0xff] %v1156_v24 }

// kernel: pino_graph_forward.8
= control target key start
LH: loop header
LB: loop body
LE: loop exit
PB: predicated region body
PF: predicated region fallthrough
CT: control target
= control target key end

     0   :  { %vm118_vm0 = vcmask 1041408   ;;  %vm69_vm1 = vcmask 31744   ;;  %vm532_vm2 = vcmask 261120   ;;  %s1633_s1 = inlined_call_operand.vmem [shape: bf16[4,32], index: 1, kind: input, shape index: {}]   ;;  %s1634_s0 = inlined_call_operand.vmem [shape: f32[256,4], index: 0, kind: input, shape index: {}]   ;;  %s1635_s2 = inlined_call_operand.vmem [shape: bf16[32,32], index: 2, kind: input, shape index: {}]   ;;  %s1636_s3 = inlined_call_operand.vmem [shape: f32[2,32], index: 3, kind: input, shape index: {}]   ;;  %s1637_s4 = inlined_call_operand.vmem [shape: f32[256,32], index: 4, kind: output, shape index: {}]  }
   0x1   :  { %v67_v0 = vld [vmem:[%s1633_s1] sm:$0x3]  ;;  %v20_v2 = vld [vmem:[%s1634_s0 + $0x8] sm:$0xff]  ;;  %v21_v5 = vld [vmem:[%s1634_s0 + $0x10] sm:$0xff] }
   0x2   :  { %v19_v1 = vld [vmem:[%s1634_s0] sm:$0xff]  ;;  %v120_v3 = vsel %vm118_vm0, %v67_v0, 0  ;;  %v22_v6 = vld [vmem:[%s1634_s0 + $0x18] sm:$0xff]  ;;  %v24_v9 = vld [vmem:[%s1634_s0 + $0x28] sm:$0xff] }
   0x3   :  { %v51_v4 = vpack.c.bf16 %v20_v2, %v19_v1  ;;  %129 = vmatpush.bf16.msra.mxu0 %v120_v3  ;;  %1036 = vmatpush.bf16.msra.mxu3 %v120_v3  ;;  %v52_v7 = vpack.c.bf16 %v22_v6, %v21_v5  ;;  %v23_v8 = vld [vmem:[%s1634_s0 + $0x20] sm:$0xff]  ;;  %v25_v11 = vld [vmem:[%s1634_s0 + $0x30] sm:$0xff]  ;;  %v26_v12 = vld [vmem:[%s1634_s0 + $0x38] sm:$0xff] }
   0x4   :  { %v53_v10 = vpack.c.bf16 %v24_v9, %v23_v8  ;;  %v54_v13 = vpack.c.bf16 %v26_v12, %v25_v11  ;;  %v27_v14 = vld [vmem:[%s1634_s0 + $0x40] sm:$0xff]  ;;  %v28_v15 = vld [vmem:[%s1634_s0 + $0x48] sm:$0xff]  ;;  %v29_v17 = vld [vmem:[%s1634_s0 + $0x50] sm:$0xff] }
   0x5   :  { %v55_v16 = vpack.c.bf16 %v28_v15, %v27_v14  ;;  %v30_v18 = vld [vmem:[%s1634_s0 + $0x58] sm:$0xff]  ;;  %v37_v20 = vld [vmem:[%s1634_s0 + $0x90] sm:$0xff]  ;;  %v31_v23 = vld [vmem:[%s1634_s0 + $0x60] sm:$0xff] }
   0x6   :  { %994 = vmatmul.msk.bf16.vlgmr.msra.gmra.mxu0 %vm69_vm1, %v51_v4  ;;  %v56_v19 = vpack.c.bf16 %v30_v18, %v29_v17  ;;  %v38_v21 = vld [vmem:[%s1634_s0 + $0x98] sm:$0xff]  ;;  %v32_v24 = vld [vmem:[%s1634_s0 + $0x68] sm:$0xff]  ;;  %v39_v26 = vld [vmem:[%s1634_s0 + $0xa0] sm:$0xff] }
   0x7   :  { %v60_v22 = vpack.c.bf16 %v38_v21, %v37_v20  ;;  %v57_v25 = vpack.c.bf16 %v32_v24, %v31_v23  ;;  %v40_v27 = vld [vmem:[%s1634_s0 + $0xa8] sm:$0xff]  ;;  %v33_v29 = vld [vmem:[%s1634_s0 + $0x70] sm:$0xff]  ;;  %v34_v30 = vld [vmem:[%s1634_s0 + $0x78] sm:$0xff] }
   0x8   :  { %v61_v28 = vpack.c.bf16 %v40_v27, %v39_v26  ;;  %v58_v31 = vpack.c.bf16 %v34_v30, %v33_v29  ;;  %v41_v32 = vld [vmem:[%s1634_s0 + $0xb0] sm:$0xff]  ;;  %v42_v33 = vld [vmem:[%s1634_s0 + $0xb8] sm:$0xff]  ;;  %v1035_v35 = vld [vmem:[%s1635_s2 + $0x8] sm:$0xff] }
   0x9   :  { %1003 = vmatmul.msk.bf16.vlgmr.msra.gmra.mxu3 %vm69_vm1, %v60_v22  ;;  %v62_v34 = vpack.c.bf16 %v42_v33, %v41_v32  ;;  %v1278_v36 = vld [vmem:[%s1636_s3] sm:$0x3]  ;;  %587 = vmatpush.bf16.msra.mxu1 %v1035_v35  ;;  %v36_v38 = vld [vmem:[%s1634_s0 + $0x88] sm:$0xff]  ;;  %v45_v60 = vld [vmem:[%s1634_s0 + $0xd0] sm:$0xff] }
   0xa   :  { %1037 = vmatpush.bf16.msra.mxu2 %v1035_v35  ;;  %v35_v37 = vld [vmem:[%s1634_s0 + $0x80] sm:$0xff]  ;;  %v1287_v39 = vperm.slane %v1278_v36, 0  ;;  %v44_v45 = vld [vmem:[%s1634_s0 + $0xc8] sm:$0xff]  ;;  %v46_v61 = vld [vmem:[%s1634_s0 + $0xd8] sm:$0xff] }
   0xb   :  { %v1034_v40 = vld [vmem:[%s1635_s2] sm:$0xff]  ;;  %v59_v41 = vpack.c.bf16 %v36_v38, %v35_v37  ;;  %v64_v62 = vpack.c.bf16 %v46_v61, %v45_v60  ;;  %v48_v23 = vld [vmem:[%s1634_s0 + $0xe8] sm:$0xff] }
   0xc   :  { %v43_v44 = vld [vmem:[%s1634_s0 + $0xc0] sm:$0xff] }
   0xd   :  { %588 = vmatpush.bf16.msra.mxu1 %v1034_v40  ;;  %v63_v46 = vpack.c.bf16 %v44_v45, %v43_v44  ;;  %v47_v22 = vld [vmem:[%s1634_s0 + $0xe0] sm:$0xff] }
   0xe   :  { %1038 = vmatpush.bf16.msra.mxu2 %v1034_v40  ;;  %v65_v24 = vpack.c.bf16 %v48_v23, %v47_v22 }
  0x16   :  { %995 = vmatmul.msk.bf16.gmra.mxu0 %vm69_vm1, %v52_v7 }
  0x19   :  { %1004 = vmatmul.msk.bf16.gmra.mxu3 %vm69_vm1, %v61_v28 }
  0x26   :  { %996 = vmatmul.msk.bf16.gmra.mxu0 %vm69_vm1, %v53_v10 }
  0x29   :  { %1005 = vmatmul.msk.bf16.gmra.mxu3 %vm69_vm1, %v62_v34 }
  0x36   :  { %997 = vmatmul.msk.bf16.gmra.mxu0 %vm69_vm1, %v54_v13 }
  0x39   :  { %1006 = vmatmul.msk.bf16.gmra.mxu3 %vm69_vm1, %v63_v46 }
  0x46   :  { %998 = vmatmul.msk.bf16.gmra.mxu0 %vm69_vm1, %v55_v16 }
  0x49   :  { %1007 = vmatmul.msk.bf16.gmra.mxu3 %vm69_vm1, %v64_v62 }
  0x56   :  { %999 = vmatmul.msk.bf16.gmra.mxu0 %vm69_vm1, %v56_v19 }
  0x59   :  { %1008 = vmatmul.msk.bf16.gmra.mxu3 %vm69_vm1, %v65_v24 }
  0x66   :  { %1000 = vmatmul.msk.bf16.gmra.mxu0 %vm69_vm1, %v57_v25 }
  0x76   :  { %1001 = vmatmul.msk.bf16.gmra.mxu0 %vm69_vm1, %v58_v31 }
  0x83   :  { %v131_v42 = vpop.f32.mrf.mxu0 }
  0x84   :  { %v132_v43 = vadd.f32 %v131_v42, %v1287_v39 }
  0x86   :  { %v243_v47 = vmul.f32 0.044715, %v132_v43  ;;  %1002 = vmatmul.msk.bf16.gmra.mxu0 %vm69_vm1, %v59_v41  ;;  %v211_v10 = vmul.f32 0.5, %v132_v43 }
  0x88   :  { %v275_v48 = vmul.f32 %v243_v47, %v132_v43 }
  0x8a   :  { %v307_v49 = vmul.f32 %v275_v48, %v132_v43 }
  0x8b   :  { %v133_v50 = vpop.f32.mrf.mxu0 }
  0x8c   :  { %v134_v51 = vadd.f32 %v133_v50, %v1287_v39  ;;  %v339_v52 = vadd.f32 %v307_v49, %v132_v43  ;;  %v49_v50 = vld [vmem:[%s1634_s0 + $0xf0] sm:$0xff] }
  0x8e   :  { %v244_v53 = vmul.f32 0.044715, %v134_v51  ;;  %v371_v55 = vmul.f32 0.7978846, %v339_v52  ;;  %v212_v11 = vmul.f32 0.5, %v134_v51 }
  0x90   :  { %v276_v54 = vmul.f32 %v244_v53, %v134_v51  ;;  %1039 = vtanh.f32 %v371_v55 }
  0x92   :  { %v308_v56 = vmul.f32 %v276_v54, %v134_v51 }
  0x93   :  { %v136_v57 = vpop.f32.mrf.mxu0 }
  0x94   :  { %v137_v58 = vadd.f32 %v136_v57, %v1287_v39  ;;  %v340_v59 = vadd.f32 %v308_v56, %v134_v51  ;;  %v50_v51 = vld [vmem:[%s1634_s0 + $0xf8] sm:$0xff] }
  0x95   :  { %v66_v52 = vpack.c.bf16 %v50_v51, %v49_v50 }
  0x96   :  { %v245_v63 = vmul.f32 0.044715, %v137_v58  ;;  %v372_v0 = vmul.f32 0.7978846, %v340_v59  ;;  %v1040_v2 = vpop.eup %1039  ;;  %v213_v37 = vmul.f32 0.5, %v137_v58 }
  0x97   :  { %v435_v7 = vadd.f32 1.0, %v1040_v2  ;;  %1009 = vmatmul.msk.bf16.gmra.mxu3 %vm69_vm1, %v66_v52 }
  0x98   :  { %v277_v1 = vmul.f32 %v245_v63, %v137_v58  ;;  %1041 = vtanh.f32 %v372_v0 }
  0x99   :  { %v467_v15 = vmul.f32 %v435_v7, %v211_v10 }
  0x9a   :  { %v309_v3 = vmul.f32 %v277_v1, %v137_v58 }
  0x9b   :  { %v138_v4 = vpop.f32.mrf.mxu0 }
  0x9c   :  { %v139_v5 = vadd.f32 %v138_v4, %v1287_v39  ;;  %v341_v6 = vadd.f32 %v309_v3, %v137_v58 }
  0x9e   :  { %v1042_v8 = vpop.eup %1041  ;;  %v246_v9 = vmul.f32 0.044715, %v139_v5  ;;  %v373_v14 = vmul.f32 0.7978846, %v341_v6  ;;  %v214_v38 = vmul.f32 0.5, %v139_v5 }
  0x9f   :  { %v436_v12 = vadd.f32 1.0, %v1042_v8 }
  0xa0   :  { %v278_v13 = vmul.f32 %v246_v9, %v139_v5  ;;  %1043 = vtanh.f32 %v373_v14 }
  0xa1   :  { %v468_v16 = vmul.f32 %v436_v12, %v212_v11 }
  0xa2   :  { %v310_v17 = vmul.f32 %v278_v13, %v139_v5 }
  0xa3   :  { %v141_v18 = vpop.f32.mrf.mxu0  ;;  %v499_v19 = vpack.c.bf16 %v468_v16, %v467_v15 }
  0xa4   :  { %v142_v20 = vadd.f32 %v141_v18, %v1287_v39  ;;  %v342_v21 = vadd.f32 %v310_v17, %v139_v5 }
  0xa5   :  { %1018 = vmatmul.msk.bf16.vlgmr.msra.gmra.mxu1 %vm532_vm2, %v499_v19 }
  0xa6   :  { %v247_v25 = vmul.f32 0.044715, %v142_v20  ;;  %v374_v26 = vmul.f32 0.7978846, %v342_v21  ;;  %v1044_v28 = vpop.eup %1043  ;;  %v215_v0 = vmul.f32 0.5, %v142_v20 }
  0xa7   :  { %v437_v33 = vadd.f32 1.0, %v1044_v28 }
  0xa8   :  { %v279_v27 = vmul.f32 %v247_v25, %v142_v20  ;;  %1045 = vtanh.f32 %v374_v26 }
  0xa9   :  { %v469_v43 = vmul.f32 %v437_v33, %v213_v37 }
  0xaa   :  { %v311_v29 = vmul.f32 %v279_v27, %v142_v20 }
  0xab   :  { %v143_v30 = vpop.f32.mrf.mxu0 }
  0xac   :  { %v144_v31 = vadd.f32 %v143_v30, %v1287_v39  ;;  %v343_v32 = vadd.f32 %v311_v29, %v142_v20 }
  0xae   :  { %v1046_v34 = vpop.eup %1045  ;;  %v248_v35 = vmul.f32 0.044715, %v144_v31  ;;  %v375_v42 = vmul.f32 0.7978846, %v343_v32  ;;  %v216_v1 = vmul.f32 0.5, %v144_v31 }
  0xaf   :  { %v438_v40 = vadd.f32 1.0, %v1046_v34 }
  0xb0   :  { %v280_v41 = vmul.f32 %v248_v35, %v144_v31  ;;  %1047 = vtanh.f32 %v375_v42 }
  0xb1   :  { %v470_v44 = vmul.f32 %v438_v40, %v214_v38 }
  0xb2   :  { %v312_v45 = vmul.f32 %v280_v41, %v144_v31 }
  0xb3   :  { %v146_v46 = vpop.f32.mrf.mxu0  ;;  %v500_v47 = vpack.c.bf16 %v470_v44, %v469_v43 }
  0xb4   :  { %v147_v48 = vadd.f32 %v146_v46, %v1287_v39  ;;  %v344_v49 = vadd.f32 %v312_v45, %v144_v31 }
  0xb5   :  { %1019 = vmatmul.msk.bf16.gmra.mxu1 %vm532_vm2, %v500_v47 }
  0xb6   :  { %v249_v53 = vmul.f32 0.044715, %v147_v48  ;;  %v376_v54 = vmul.f32 0.7978846, %v344_v49  ;;  %v1048_v56 = vpop.eup %1047  ;;  %v217_v23 = vmul.f32 0.5, %v147_v48 }
  0xb7   :  { %v439_v61 = vadd.f32 1.0, %v1048_v56 }
  0xb8   :  { %v281_v55 = vmul.f32 %v249_v53, %v147_v48  ;;  %1049 = vtanh.f32 %v376_v54 }
  0xb9   :  { %v471_v5 = vmul.f32 %v439_v61, %v215_v0 }
  0xba   :  { %v313_v57 = vmul.f32 %v281_v55, %v147_v48 }
  0xbb   :  { %v148_v58 = vpop.f32.mrf.mxu0 }
  0xbc   :  { %v149_v59 = vadd.f32 %v148_v58, %v1287_v39  ;;  %v345_v60 = vadd.f32 %v313_v57, %v147_v48 }
  0xbe   :  { %v1050_v62 = vpop.eup %1049  ;;  %v250_v63 = vmul.f32 0.044715, %v149_v59  ;;  %v377_v4 = vmul.f32 0.7978846, %v345_v60  ;;  %v218_v24 = vmul.f32 0.5, %v149_v59  ;;  %v176_v60 = vpop.f32.mrf.mxu3 }
  0xbf   :  { %v440_v2 = vadd.f32 1.0, %v1050_v62 }
  0xc0   :  { %v282_v3 = vmul.f32 %v250_v63, %v149_v59  ;;  %1051 = vtanh.f32 %v377_v4 }
  0xc1   :  { %v472_v6 = vmul.f32 %v440_v2, %v216_v1 }
  0xc2   :  { %v314_v7 = vmul.f32 %v282_v3, %v149_v59 }
  0xc3   :  { %v151_v8 = vpop.f32.mrf.mxu0  ;;  %v501_v9 = vpack.c.bf16 %v472_v6, %v471_v5 }
  0xc4   :  { %v152_v10 = vadd.f32 %v151_v8, %v1287_v39  ;;  %v346_v11 = vadd.f32 %v314_v7, %v149_v59 }
  0xc5   :  { %1020 = vmatmul.msk.bf16.gmra.mxu1 %vm532_vm2, %v501_v9 }
  0xc6   :  { %v251_v12 = vmul.f32 0.044715, %v152_v10  ;;  %v378_v13 = vmul.f32 0.7978846, %v346_v11  ;;  %v1052_v15 = vpop.eup %1051  ;;  %v219_v48 = vmul.f32 0.5, %v152_v10  ;;  %v178_v11 = vpop.f32.mrf.mxu3 }
  0xc7   :  { %v441_v20 = vadd.f32 1.0, %v1052_v15 }
  0xc8   :  { %v283_v14 = vmul.f32 %v251_v12, %v152_v10  ;;  %1053 = vtanh.f32 %v378_v13 }
  0xc9   :  { %v473_v28 = vmul.f32 %v441_v20, %v217_v23 }
  0xca   :  { %v315_v16 = vmul.f32 %v283_v14, %v152_v10 }
  0xcb   :  { %v153_v17 = vpop.f32.mrf.mxu0 }
  0xcc   :  { %v154_v18 = vadd.f32 %v153_v17, %v1287_v39  ;;  %v347_v19 = vadd.f32 %v315_v16, %v152_v10 }
  0xce   :  { %v1054_v21 = vpop.eup %1053  ;;  %v252_v22 = vmul.f32 0.044715, %v154_v18  ;;  %v379_v27 = vmul.f32 0.7978846, %v347_v19  ;;  %v220_v49 = vmul.f32 0.5, %v154_v18 }
  0xcf   :  { %v442_v25 = vadd.f32 1.0, %v1054_v21 }
  0xd0   :  { %v284_v26 = vmul.f32 %v252_v22, %v154_v18  ;;  %1055 = vtanh.f32 %v379_v27 }
  0xd1   :  { %v474_v29 = vmul.f32 %v442_v25, %v218_v24  ;;  %v181_v24 = vpop.f32.mrf.mxu3 }
  0xd2   :  { %v316_v30 = vmul.f32 %v284_v26, %v154_v18 }
  0xd3   :  { %v156_v31 = vpop.f32.mrf.mxu0  ;;  %v502_v32 = vpack.c.bf16 %v474_v29, %v473_v28 }
  0xd4   :  { %v157_v33 = vadd.f32 %v156_v31, %v1287_v39  ;;  %v348_v34 = vadd.f32 %v316_v30, %v154_v18 }
  0xd5   :  { %1021 = vmatmul.msk.bf16.gmra.mxu1 %vm532_vm2, %v502_v32 }
  0xd6   :  { %v253_v35 = vmul.f32 0.044715, %v157_v33  ;;  %v380_v37 = vmul.f32 0.7978846, %v348_v34  ;;  %v1056_v40 = vpop.eup %1055  ;;  %v221_v8 = vmul.f32 0.5, %v157_v33 }
  0xd7   :  { %v443_v45 = vadd.f32 1.0, %v1056_v40 }
  0xd8   :  { %v285_v38 = vmul.f32 %v253_v35, %v157_v33  ;;  %1057 = vtanh.f32 %v380_v37 }
  0xd9   :  { %v475_v53 = vmul.f32 %v443_v45, %v219_v48  ;;  %v183_v45 = vpop.f32.mrf.mxu3 }
  0xda   :  { %v317_v41 = vmul.f32 %v285_v38, %v157_v33 }
  0xdb   :  { %v158_v42 = vpop.f32.mrf.mxu0 }
  0xdc   :  { %v159_v43 = vadd.f32 %v158_v42, %v1287_v39  ;;  %v349_v44 = vadd.f32 %v317_v41, %v157_v33 }
  0xde   :  { %v1058_v46 = vpop.eup %1057  ;;  %v254_v47 = vmul.f32 0.044715, %v159_v43  ;;  %v381_v52 = vmul.f32 0.7978846, %v349_v44  ;;  %v222_v9 = vmul.f32 0.5, %v159_v43 }
  0xdf   :  { %v444_v50 = vadd.f32 1.0, %v1058_v46 }
  0xe0   :  { %v286_v51 = vmul.f32 %v254_v47, %v159_v43  ;;  %1059 = vtanh.f32 %v381_v52 }
  0xe1   :  { %v476_v54 = vmul.f32 %v444_v50, %v220_v49 }
  0xe2   :  { %v318_v55 = vmul.f32 %v286_v51, %v159_v43  ;;  %v1346_v51 = vadd.f32 %v176_v60, %v1287_v39 }
  0xe3   :  { %v161_v56 = vpop.f32.mrf.mxu0  ;;  %v503_v57 = vpack.c.bf16 %v476_v54, %v475_v53  ;;  %v1349_v53 = vadd.f32 %v178_v11, %v1287_v39 }
  0xe4   :  { %v162_v58 = vadd.f32 %v161_v56, %v1287_v39  ;;  %v350_v59 = vadd.f32 %v318_v55, %v159_v43 }
  0xe5   :  { %1022 = vmatmul.msk.bf16.gmra.mxu1 %vm532_vm2, %v503_v57 }
  0xe6   :  { %v255_v61 = vmul.f32 0.044715, %v162_v58  ;;  %v382_v62 = vmul.f32 0.7978846, %v350_v59  ;;  %v1060_v0 = vpop.eup %1059  ;;  %v223_v33 = vmul.f32 0.5, %v162_v58 }
  0xe7   :  { %v445_v5 = vadd.f32 1.0, %v1060_v0 }
  0xe8   :  { %v287_v63 = vmul.f32 %v255_v61, %v162_v58  ;;  %1061 = vtanh.f32 %v382_v62  ;;  %v186_v61 = vpop.f32.mrf.mxu3 }
  0xe9   :  { %v477_v14 = vmul.f32 %v445_v5, %v221_v8 }
  0xea   :  { %v319_v1 = vmul.f32 %v287_v63, %v162_v58  ;;  %v262_v63 = vmul.f32 0.044715, %v1349_v53 }
  0xeb   :  { %v163_v2 = vpop.f32.mrf.mxu0 }
  0xec   :  { %v164_v3 = vadd.f32 %v163_v2, %v1287_v39  ;;  %v351_v4 = vadd.f32 %v319_v1, %v162_v58  ;;  %v261_v58 = vmul.f32 0.044715, %v1346_v51  ;;  %v294_v8 = vmul.f32 %v262_v63, %v1349_v53 }
  0xee   :  { %v1062_v6 = vpop.eup %1061  ;;  %v256_v7 = vmul.f32 0.044715, %v164_v3  ;;  %v383_v13 = vmul.f32 0.7978846, %v351_v4  ;;  %v224_v34 = vmul.f32 0.5, %v164_v3  ;;  %v293_v5 = vmul.f32 %v261_v58, %v1346_v51 }
  0xef   :  { %v446_v10 = vadd.f32 1.0, %v1062_v6 }
  0xf0   :  { %v288_v12 = vmul.f32 %v256_v7, %v164_v3  ;;  %1063 = vtanh.f32 %v383_v13 }
  0xf1   :  { %v478_v15 = vmul.f32 %v446_v10, %v222_v9 }
  0xf2   :  { %v320_v16 = vmul.f32 %v288_v12, %v164_v3  ;;  %v325_v12 = vmul.f32 %v293_v5, %v1346_v51 }
  0xf3   :  { %v166_v17 = vpop.f32.mrf.mxu0  ;;  %v504_v18 = vpack.c.bf16 %v478_v15, %v477_v14  ;;  %v326_v14 = vmul.f32 %v294_v8, %v1349_v53  ;;  %v188_v15 = vpop.f32.mrf.mxu3 }
  0xf4   :  { %v167_v19 = vadd.f32 %v166_v17, %v1287_v39  ;;  %v352_v20 = vadd.f32 %v320_v16, %v164_v3  ;;  %v1360_v16 = vadd.f32 %v181_v24, %v1287_v39  ;;  %v357_v17 = vadd.f32 %v325_v12, %v1346_v51 }
  0xf5   :  { %1023 = vmatmul.msk.bf16.gmra.mxu1 %vm532_vm2, %v504_v18 }
  0xf6   :  { %v257_v21 = vmul.f32 0.044715, %v167_v19  ;;  %v384_v22 = vmul.f32 0.7978846, %v352_v20  ;;  %v1064_v25 = vpop.eup %1063  ;;  %v225_v1 = vmul.f32 0.5, %v167_v19  ;;  %v358_v20 = vadd.f32 %v326_v14, %v1349_v53 }
  0xf7   :  { %v447_v30 = vadd.f32 1.0, %v1064_v25 }
  0xf8   :  { %v289_v23 = vmul.f32 %v257_v21, %v167_v19  ;;  %1065 = vtanh.f32 %v384_v22  ;;  %v263_v21 = vmul.f32 0.044715, %v1360_v16 }
  0xf9   :  { %v479_v40 = vmul.f32 %v447_v30, %v223_v33 }
  0xfa   :  { %v321_v26 = vmul.f32 %v289_v23, %v167_v19  ;;  %v389_v23 = vmul.f32 0.7978846, %v357_v17 }
  0xfb   :  { %v168_v27 = vpop.f32.mrf.mxu0 }
  0xfc   :  { %v169_v28 = vadd.f32 %v168_v27, %v1287_v39  ;;  %v353_v29 = vadd.f32 %v321_v26, %v167_v19  ;;  %v1364_v19 = vadd.f32 %v183_v45, %v1287_v39  ;;  %v390_v27 = vmul.f32 0.7978846, %v358_v20 }
  0xfe   :  { %v1066_v31 = vpop.eup %1065  ;;  %v258_v32 = vmul.f32 0.044715, %v169_v28  ;;  %v385_v38 = vmul.f32 0.7978846, %v353_v29  ;;  %v226_v60 = vmul.f32 0.5, %v169_v28 }
  0xff   :  { %v448_v35 = vadd.f32 1.0, %v1066_v31  ;;  %v264_v26 = vmul.f32 0.044715, %v1364_v19  ;;  %v295_v31 = vmul.f32 %v263_v21, %v1360_v16 }
 0x100   :  { %v290_v37 = vmul.f32 %v258_v32, %v169_v28  ;;  %1067 = vtanh.f32 %v385_v38 }
 0x101   :  { %v480_v41 = vmul.f32 %v448_v35, %v224_v34  ;;  %v191_v34 = vpop.f32.mrf.mxu3  ;;  %v296_v35 = vmul.f32 %v264_v26, %v1364_v19 }
 0x102   :  { %v322_v42 = vmul.f32 %v290_v37, %v169_v28  ;;  %v1400_v26 = vadd.f32 %v191_v34, %v1287_v39 }
 0x103   :  { %v171_v43 = vpop.f32.mrf.mxu0  ;;  %v505_v44 = vpack.c.bf16 %v480_v41, %v479_v40 }
 0x104   :  { %v172_v46 = vadd.f32 %v171_v43, %v1287_v39  ;;  %v354_v47 = vadd.f32 %v322_v42, %v169_v28  ;;  %v1370_v28 = vperm.slane %v1278_v36, 1  ;;  %v327_v36 = vmul.f32 %v295_v31, %v1360_v16 }
 0x105   :  { %1024 = vmatmul.msk.bf16.gmra.mxu1 %vm532_vm2, %v505_v44  ;;  %v328_v42 = vmul.f32 %v296_v35, %v1364_v19  ;;  %v231_v31 = vmul.f32 0.5, %v1360_v16 }
 0x106   :  { %v259_v48 = vmul.f32 0.044715, %v172_v46  ;;  %v386_v49 = vmul.f32 0.7978846, %v354_v47  ;;  %v1068_v52 = vpop.eup %1067  ;;  %v227_v24 = vmul.f32 0.5, %v172_v46 }
 0x107   :  { %v449_v59 = vadd.f32 1.0, %v1068_v52  ;;  %v229_v52 = vmul.f32 0.5, %v1346_v51 }
 0x108   :  { %v291_v50 = vmul.f32 %v259_v48, %v172_v46  ;;  %1069 = vtanh.f32 %v386_v49  ;;  %v359_v48 = vadd.f32 %v327_v36, %v1360_v16  ;;  %v1383_v49 = vadd.f32 %v188_v15, %v1287_v39 }
 0x109   :  { %v481_v6 = vmul.f32 %v449_v59, %v225_v1  ;;  %v193_v58 = vpop.f32.mrf.mxu3 }
 0x10a   :  { %v323_v54 = vmul.f32 %v291_v50, %v172_v46  ;;  %v391_v1 = vmul.f32 0.7978846, %v359_v48 }
 0x10b   :  { %v173_v55 = vpop.f32.mrf.mxu0 }
 0x10c   :  { %v174_v56 = vadd.f32 %v173_v55, %v1287_v39  ;;  %v355_v57 = vadd.f32 %v323_v54, %v172_v46  ;;  %v1379_v46 = vadd.f32 %v186_v61, %v1287_v39  ;;  %v230_v54 = vmul.f32 0.5, %v1349_v53 }
 0x10d   :  { %v360_v55 = vadd.f32 %v328_v42, %v1364_v19 }
 0x10e   :  { %v1070_v62 = vpop.eup %1069  ;;  %v260_v0 = vmul.f32 0.044715, %v174_v56  ;;  %v387_v4 = vmul.f32 0.7978846, %v355_v57  ;;  %v228_v29 = vmul.f32 0.5, %v174_v56 }
 0x10f   :  { %v450_v2 = vadd.f32 1.0, %v1070_v62  ;;  %v265_v62 = vmul.f32 0.044715, %v1379_v46 }
 0x110   :  { %v292_v3 = vmul.f32 %v260_v0, %v174_v56  ;;  %1071 = vtanh.f32 %v387_v4 }
 0x111   :  { %v482_v7 = vmul.f32 %v450_v2, %v226_v60  ;;  %v266_v60 = vmul.f32 0.044715, %v1383_v49  ;;  %v392_v2 = vmul.f32 0.7978846, %v360_v55  ;;  %v297_v4 = vmul.f32 %v265_v62, %v1379_v46  ;;  %v1395_v14 = vpop.f32.mrf.mxu3 }
 0x112   :  { %v324_v9 = vmul.f32 %v292_v3, %v174_v56 }
 0x113   :  { %v506_v10 = vpack.c.bf16 %v482_v7, %v481_v6  ;;  %v298_v6 = vmul.f32 %v266_v60, %v1383_v49  ;;  %v329_v15 = vmul.f32 %v297_v4, %v1379_v46 }
 0x114   :  { %v356_v11 = vadd.f32 %v324_v9, %v174_v56 }
 0x115   :  { %1025 = vmatmul.msk.bf16.gmra.mxu1 %vm532_vm2, %v506_v10  ;;  %v330_v20 = vmul.f32 %v298_v6, %v1383_v49 }
 0x116   :  { %v388_v13 = vmul.f32 0.7978846, %v356_v11  ;;  %v1072_v18 = vpop.eup %1071 }
 0x117   :  { %v451_v22 = vadd.f32 1.0, %v1072_v18 }
 0x118   :  { %1073 = vtanh.f32 %v388_v13 }
 0x119   :  { %v483_v32 = vmul.f32 %v451_v22, %v227_v24  ;;  %1075 = vtanh.f32 %v389_v23  ;;  %v361_v24 = vadd.f32 %v329_v15, %v1379_v46  ;;  %v198_v48 = vpop.f32.mrf.mxu3  ;;  %v234_v15 = vmul.f32 0.5, %v1383_v49 }
 0x11a   :  { %1077 = vtanh.f32 %v390_v27 }
 0x11e   :  { %v1074_v25 = vpop.eup %1073 }
 0x11f   :  { %v452_v30 = vadd.f32 1.0, %v1074_v25  ;;  %v1076_v43 = vpop.eup %1075 }
 0x120   :  { %v1078_v45 = vpop.eup %1077  ;;  %v453_v59 = vadd.f32 1.0, %v1076_v43  ;;  %v393_v43 = vmul.f32 0.7978846, %v361_v24 }
 0x121   :  { %v484_v33 = vmul.f32 %v452_v30, %v228_v29  ;;  %v454_v61 = vadd.f32 1.0, %v1078_v45  ;;  %v1408_v29 = vadd.f32 %v193_v58, %v1287_v39 }
 0x122   :  { %v590_v37 = vpop.f32.mrf.mxu1  ;;  %v485_v3 = vmul.f32 %v453_v59, %v229_v52 }
 0x123   :  { %v591_v38 = vadd.f32 %v590_v37, %v1370_v28  ;;  %v507_v40 = vpack.c.bf16 %v484_v33, %v483_v32  ;;  %v486_v53 = vmul.f32 %v454_v61, %v230_v54  ;;  %v232_v32 = vmul.f32 0.5, %v1364_v19 }
 0x124   :  { %v362_v33 = vadd.f32 %v330_v20, %v1383_v49 }
 0x125   :  { %v702_v41 = vmul.f32 0.044715, %v591_v38  ;;  %1026 = vmatmul.msk.bf16.vlgmr.msra.gmra.mxu2 %vm532_vm2, %v507_v40  ;;  %v508_v10 = vpack.c.bf16 %v486_v53, %v485_v3  ;;  %v670_v17 = vmul.f32 0.5, %v591_v38  ;;  %v267_v40 = vmul.f32 0.044715, %v1400_v26 }
 0x126   :  { %v394_v16 = vmul.f32 0.7978846, %v362_v33 }
 0x127   :  { %v734_v44 = vmul.f32 %v702_v41, %v591_v38  ;;  %v299_v54 = vmul.f32 %v267_v40, %v1400_v26 }
 0x129   :  { %v766_v47 = vmul.f32 %v734_v44, %v591_v38 }
 0x12a   :  { %v592_v50 = vpop.f32.mrf.mxu1 }
 0x12b   :  { %v798_v56 = vadd.f32 %v766_v47, %v591_v38  ;;  %v593_v57 = vadd.f32 %v592_v50, %v1370_v28  ;;  %v268_v47 = vmul.f32 0.044715, %v1408_v29 }
 0x12d   :  { %v830_v63 = vmul.f32 0.7978846, %v798_v56  ;;  %v703_v0 = vmul.f32 0.044715, %v593_v57  ;;  %v671_v44 = vmul.f32 0.5, %v593_v57 }
 0x12f   :  { %1079 = vtanh.f32 %v830_v63  ;;  %v735_v51 = vmul.f32 %v703_v0, %v593_v57  ;;  %v331_v63 = vmul.f32 %v299_v54, %v1400_v26 }
 0x130   :  { %1081 = vtanh.f32 %v391_v1 }
 0x131   :  { %v767_v5 = vmul.f32 %v735_v51, %v593_v57  ;;  %1083 = vtanh.f32 %v392_v2 }
 0x132   :  { %v595_v7 = vpop.f32.mrf.mxu1 }
 0x133   :  { %v799_v8 = vadd.f32 %v767_v5, %v593_v57  ;;  %v596_v9 = vadd.f32 %v595_v7, %v1370_v28  ;;  %v300_v57 = vmul.f32 %v268_v47, %v1408_v29  ;;  %v363_v7 = vadd.f32 %v331_v63, %v1400_v26 }
 0x135   :  { %v1080_v11 = vpop.eup %1079  ;;  %v831_v12 = vmul.f32 0.7978846, %v799_v8  ;;  %v704_v13 = vmul.f32 0.044715, %v596_v9  ;;  %1027 = vmatmul.msk.bf16.gmra.mxu2 %vm532_vm2, %v508_v10  ;;  %v672_v2 = vmul.f32 0.5, %v596_v9  ;;  %v332_v3 = vmul.f32 %v300_v57, %v1408_v29 }
 0x136   :  { %v894_v18 = vadd.f32 1.0, %v1080_v11  ;;  %v1082_v21 = vpop.eup %1081  ;;  %v1429_v8 = vadd.f32 %v1395_v14, %v1287_v39  ;;  %v201_v11 = vpop.f32.mrf.mxu3 }
 0x137   :  { %1085 = vtanh.f32 %v831_v12  ;;  %v736_v22 = vmul.f32 %v704_v13, %v596_v9  ;;  %v1084_v23 = vpop.eup %1083  ;;  %v455_v37 = vadd.f32 1.0, %v1082_v21  ;;  %v233_v13 = vmul.f32 0.5, %v1379_v46 }
 0x138   :  { %v926_v25 = vmul.f32 %v894_v18, %v670_v17  ;;  %v456_v38 = vadd.f32 1.0, %v1084_v23  ;;  %v364_v17 = vadd.f32 %v332_v3, %v1408_v29 }
 0x139   :  { %v768_v27 = vmul.f32 %v736_v22, %v596_v9  ;;  %v487_v50 = vmul.f32 %v455_v37, %v231_v31  ;;  %v395_v22 = vmul.f32 0.7978846, %v363_v7 }
 0x13a   :  { %958 = vst.msk [vmem:[%s1637_s4] sm:$0xff] %vm532_vm2, %v926_v25  ;;  %v597_v30 = vpop.f32.mrf.mxu1  ;;  %v488_v52 = vmul.f32 %v456_v38, %v232_v32  ;;  %v269_v25 = vmul.f32 0.044715, %v1429_v8  ;;  %v396_v46 = vmul.f32 0.7978846, %v364_v17 }
 0x13b   :  { %v800_v34 = vadd.f32 %v768_v27, %v596_v9  ;;  %v598_v35 = vadd.f32 %v597_v30, %v1370_v28  ;;  %v1436_v9 = vadd.f32 %v198_v48, %v1287_v39 }
 0x13c   :  { %v509_v62 = vpack.c.bf16 %v488_v52, %v487_v50  ;;  %v301_v38 = vmul.f32 %v269_v25, %v1429_v8 }
 0x13d   :  { %v1086_v41 = vpop.eup %1085  ;;  %v832_v36 = vmul.f32 0.7978846, %v800_v34  ;;  %v705_v42 = vmul.f32 0.044715, %v598_v35  ;;  %v673_v30 = vmul.f32 0.5, %v598_v35 }
 0x13e   :  { %v895_v45 = vadd.f32 1.0, %v1086_v41  ;;  %v270_v32 = vmul.f32 0.044715, %v1436_v9 }
 0x13f   :  { %1087 = vtanh.f32 %v832_v36  ;;  %v737_v19 = vmul.f32 %v705_v42, %v598_v35  ;;  %v203_v42 = vpop.f32.mrf.mxu3 }
 0x140   :  { %v927_v55 = vmul.f32 %v895_v45, %v671_v44  ;;  %1089 = vtanh.f32 %v393_v43 }
 0x141   :  { %v769_v56 = vmul.f32 %v737_v19, %v598_v35  ;;  %1091 = vtanh.f32 %v394_v16  ;;  %v333_v19 = vmul.f32 %v301_v38, %v1429_v8 }
 0x142   :  { %959 = vst.msk [vmem:[%s1637_s4 + $0x8] sm:$0xff] %vm532_vm2, %v927_v55  ;;  %v600_v58 = vpop.f32.mrf.mxu1 }
 0x143   :  { %v801_v59 = vadd.f32 %v769_v56, %v598_v35  ;;  %v601_v61 = vadd.f32 %v600_v58, %v1370_v28  ;;  %v302_v35 = vmul.f32 %v270_v32, %v1436_v9  ;;  %v1455_v58 = vadd.f32 %v201_v11, %v1287_v39 }
 0x145   :  { %v1088_v0 = vpop.eup %1087  ;;  %v833_v1 = vmul.f32 0.7978846, %v801_v59  ;;  %v706_v60 = vmul.f32 0.044715, %v601_v61  ;;  %1028 = vmatmul.msk.bf16.gmra.mxu2 %vm532_vm2, %v509_v62  ;;  %v674_v48 = vmul.f32 0.5, %v601_v61  ;;  %v334_v52 = vmul.f32 %v302_v35, %v1436_v9 }
 0x146   :  { %v896_v51 = vadd.f32 1.0, %v1088_v0  ;;  %v1090_v53 = vpop.eup %1089  ;;  %v365_v62 = vadd.f32 %v333_v19, %v1429_v8  ;;  %v235_v0 = vmul.f32 0.5, %v1400_v26 }
 0x147   :  { %1093 = vtanh.f32 %v833_v1  ;;  %v738_v4 = vmul.f32 %v706_v60, %v601_v61  ;;  %v1092_v5 = vpop.eup %1091  ;;  %v457_v20 = vadd.f32 1.0, %v1090_v53  ;;  %v236_v1 = vmul.f32 0.5, %v1408_v29  ;;  %v206_v7 = vpop.f32.mrf.mxu3 }
 0x148   :  { %v928_v6 = vmul.f32 %v896_v51, %v672_v2  ;;  %v458_v21 = vadd.f32 1.0, %v1092_v5  ;;  %v366_v60 = vadd.f32 %v334_v52, %v1436_v9  ;;  %v397_v11 = vmul.f32 0.7978846, %v365_v62 }
 0x149   :  { %v770_v10 = vmul.f32 %v738_v4, %v601_v61  ;;  %v489_v33 = vmul.f32 %v457_v20, %v233_v13  ;;  %v271_v4 = vmul.f32 0.044715, %v1455_v58 }
 0x14a   :  { %960 = vst.msk [vmem:[%s1637_s4 + $0x10] sm:$0xff] %vm532_vm2, %v928_v6  ;;  %v602_v12 = vpop.f32.mrf.mxu1  ;;  %v490_v34 = vmul.f32 %v458_v21, %v234_v15  ;;  %v398_v15 = vmul.f32 0.7978846, %v366_v60 }
 0x14b   :  { %v802_v18 = vadd.f32 %v770_v10, %v601_v61  ;;  %v603_v14 = vadd.f32 %v602_v12, %v1370_v28  ;;  %v1463_v61 = vadd.f32 %v203_v42, %v1287_v39  ;;  %v303_v20 = vmul.f32 %v271_v4, %v1455_v58 }
 0x14c   :  { %v510_v44 = vpack.c.bf16 %v490_v34, %v489_v33  ;;  %v1483_v42 = vadd.f32 %v206_v7, %v1287_v39 }
 0x14d   :  { %v1094_v23 = vpop.eup %1093  ;;  %v834_v27 = vmul.f32 0.7978846, %v802_v18  ;;  %v707_v24 = vmul.f32 0.044715, %v603_v14  ;;  %v675_v12 = vmul.f32 0.5, %v603_v14 }
 0x14e   :  { %v897_v31 = vadd.f32 1.0, %v1094_v23  ;;  %v272_v26 = vmul.f32 0.044715, %v1463_v61 }
 0x14f   :  { %1095 = vtanh.f32 %v834_v27  ;;  %v739_v49 = vmul.f32 %v707_v24, %v603_v14  ;;  %v208_v38 = vpop.f32.mrf.mxu3 }
 0x150   :  { %v929_v37 = vmul.f32 %v897_v31, %v673_v30  ;;  %1097 = vtanh.f32 %v395_v22  ;;  %v335_v30 = vmul.f32 %v303_v20, %v1455_v58 }
 0x151   :  { %v771_v40 = vmul.f32 %v739_v49, %v603_v14  ;;  %1099 = vtanh.f32 %v396_v46 }
 0x152   :  { %961 = vst.msk [vmem:[%s1637_s4 + $0x18] sm:$0xff] %vm532_vm2, %v929_v37  ;;  %v605_v41 = vpop.f32.mrf.mxu1 }
 0x153   :  { %v803_v36 = vadd.f32 %v771_v40, %v603_v14  ;;  %v606_v43 = vadd.f32 %v605_v41, %v1370_v28  ;;  %v304_v14 = vmul.f32 %v272_v26, %v1463_v61 }
 0x155   :  { %v1096_v45 = vpop.eup %1095  ;;  %v835_v47 = vmul.f32 0.7978846, %v803_v36  ;;  %v708_v16 = vmul.f32 0.044715, %v606_v43  ;;  %1029 = vmatmul.msk.bf16.gmra.mxu2 %vm532_vm2, %v510_v44  ;;  %v676_v49 = vmul.f32 0.5, %v606_v43  ;;  %v336_v34 = vmul.f32 %v304_v14, %v1463_v61 }
 0x156   :  { %v898_v50 = vadd.f32 1.0, %v1096_v45  ;;  %v1098_v54 = vpop.eup %1097  ;;  %v367_v36 = vadd.f32 %v335_v30, %v1455_v58 }
 0x157   :  { %1101 = vtanh.f32 %v835_v47  ;;  %v740_v55 = vmul.f32 %v708_v16, %v606_v43  ;;  %v1100_v56 = vpop.eup %1099  ;;  %v459_v3 = vadd.f32 1.0, %v1098_v54  ;;  %v237_v47 = vmul.f32 0.5, %v1429_v8 }
 0x158   :  { %v930_v57 = vmul.f32 %v898_v50, %v674_v48  ;;  %v460_v53 = vadd.f32 1.0, %v1100_v56  ;;  %v238_v16 = vmul.f32 0.5, %v1436_v9  ;;  %v368_v19 = vadd.f32 %v336_v34, %v1463_v61 }
 0x159   :  { %v772_v59 = vmul.f32 %v740_v55, %v606_v43  ;;  %v491_v17 = vmul.f32 %v459_v3, %v235_v0  ;;  %v399_v55 = vmul.f32 0.7978846, %v367_v36 }
 0x15a   :  { %962 = vst.msk [vmem:[%s1637_s4 + $0x20] sm:$0xff] %vm532_vm2, %v930_v57  ;;  %v607_v63 = vpop.f32.mrf.mxu1  ;;  %v492_v18 = vmul.f32 %v460_v53, %v236_v1  ;;  %v273_v57 = vmul.f32 0.044715, %v1483_v42  ;;  %v400_v8 = vmul.f32 0.7978846, %v368_v19 }
 0x15b   :  { %v804_v2 = vadd.f32 %v772_v59, %v606_v43  ;;  %v608_v51 = vadd.f32 %v607_v63, %v1370_v28  ;;  %v1490_v43 = vadd.f32 %v208_v38, %v1287_v39 }
 0x15c   :  { %v511_v24 = vpack.c.bf16 %v492_v18, %v491_v17  ;;  %v305_v3 = vmul.f32 %v273_v57, %v1483_v42 }
 0x15d   :  { %v1102_v5 = vpop.eup %1101  ;;  %v836_v6 = vmul.f32 0.7978846, %v804_v2  ;;  %v709_v10 = vmul.f32 0.044715, %v608_v51  ;;  %v677_v39 = vmul.f32 0.5, %v608_v51 }
 0x15e   :  { %v899_v13 = vadd.f32 1.0, %v1102_v5  ;;  %v274_v0 = vmul.f32 0.044715, %v1490_v43 }
 0x15f   :  { %1103 = vtanh.f32 %v836_v6  ;;  %v741_v29 = vmul.f32 %v709_v10, %v608_v51 }
 0x160   :  { %v931_v21 = vmul.f32 %v899_v13, %v675_v12  ;;  %1105 = vtanh.f32 %v397_v11  ;;  %v337_v13 = vmul.f32 %v305_v3, %v1483_v42 }
 0x161   :  { %v773_v22 = vmul.f32 %v741_v29, %v608_v51  ;;  %1107 = vtanh.f32 %v398_v15 }
 0x162   :  { %963 = vst.msk [vmem:[%s1637_s4 + $0x28] sm:$0xff] %vm532_vm2, %v931_v21  ;;  %v610_v23 = vpop.f32.mrf.mxu1  ;;  %v369_v14 = vadd.f32 %v337_v13, %v1483_v42 }
 0x163   :  { %v805_v25 = vadd.f32 %v773_v22, %v608_v51  ;;  %v611_v27 = vadd.f32 %v610_v23, %v1370_v28  ;;  %v306_v51 = vmul.f32 %v274_v0, %v1490_v43  ;;  %v241_v0 = vmul.f32 0.5, %v1483_v42 }
 0x165   :  { %v1104_v31 = vpop.eup %1103  ;;  %v837_v32 = vmul.f32 0.7978846, %v805_v25  ;;  %v710_v46 = vmul.f32 0.044715, %v611_v27  ;;  %1030 = vmatmul.msk.bf16.gmra.mxu2 %vm532_vm2, %v511_v24  ;;  %v678_v26 = vmul.f32 0.5, %v611_v27  ;;  %v338_v29 = vmul.f32 %v306_v51, %v1490_v43 }
 0x166   :  { %v900_v33 = vadd.f32 1.0, %v1104_v31  ;;  %v1106_v37 = vpop.eup %1105  ;;  %v239_v25 = vmul.f32 0.5, %v1455_v58 }
 0x167   :  { %1109 = vtanh.f32 %v837_v32  ;;  %v742_v40 = vmul.f32 %v710_v46, %v611_v27  ;;  %v1108_v35 = vpop.eup %1107  ;;  %v461_v52 = vadd.f32 1.0, %v1106_v37  ;;  %v370_v24 = vadd.f32 %v338_v29, %v1490_v43 }
 0x168   :  { %v932_v41 = vmul.f32 %v900_v33, %v676_v49  ;;  %v462_v54 = vadd.f32 1.0, %v1108_v35  ;;  %v401_v37 = vmul.f32 0.7978846, %v369_v14 }
 0x169   :  { %v774_v44 = vmul.f32 %v742_v40, %v611_v27  ;;  %v493_v1 = vmul.f32 %v461_v52, %v237_v47  ;;  %v402_v35 = vmul.f32 0.7978846, %v370_v24 }
 0x16a   :  { %964 = vst.msk [vmem:[%s1637_s4 + $0x30] sm:$0xff] %vm532_vm2, %v932_v41  ;;  %v612_v45 = vpop.f32.mrf.mxu1  ;;  %v494_v60 = vmul.f32 %v462_v54, %v238_v16 }
 0x16b   :  { %v806_v48 = vadd.f32 %v774_v44, %v611_v27  ;;  %v613_v50 = vadd.f32 %v612_v45, %v1370_v28  ;;  %v240_v27 = vmul.f32 0.5, %v1463_v61 }
 0x16c   :  { %v512_v7 = vpack.c.bf16 %v494_v60, %v493_v1 }
 0x16d   :  { %v1110_v56 = vpop.eup %1109  ;;  %v838_v59 = vmul.f32 0.7978846, %v806_v48  ;;  %v711_v62 = vmul.f32 0.044715, %v613_v50  ;;  %v679_v38 = vmul.f32 0.5, %v613_v50 }
 0x16e   :  { %v901_v63 = vadd.f32 1.0, %v1110_v56 }
 0x16f   :  { %1111 = vtanh.f32 %v838_v59  ;;  %v743_v9 = vmul.f32 %v711_v62, %v613_v50 }
 0x170   :  { %v933_v2 = vmul.f32 %v901_v63, %v677_v39  ;;  %1113 = vtanh.f32 %v399_v55 }
 0x171   :  { %v775_v53 = vmul.f32 %v743_v9, %v613_v50  ;;  %1115 = vtanh.f32 %v400_v8  ;;  %v242_v8 = vmul.f32 0.5, %v1490_v43 }
 0x172   :  { %965 = vst.msk [vmem:[%s1637_s4 + $0x38] sm:$0xff] %vm532_vm2, %v933_v2  ;;  %v615_v4 = vpop.f32.mrf.mxu1 }
 0x173   :  { %v807_v5 = vadd.f32 %v775_v53, %v613_v50  ;;  %v616_v6 = vadd.f32 %v615_v4, %v1370_v28 }
 0x175   :  { %v1112_v10 = vpop.eup %1111  ;;  %v839_v11 = vmul.f32 0.7978846, %v807_v5  ;;  %v712_v12 = vmul.f32 0.044715, %v616_v6  ;;  %1031 = vmatmul.msk.bf16.gmra.mxu2 %vm532_vm2, %v512_v7  ;;  %v680_v54 = vmul.f32 0.5, %v616_v6 }
 0x176   :  { %v902_v15 = vadd.f32 1.0, %v1112_v10  ;;  %v1114_v17 = vpop.eup %1113 }
 0x177   :  { %1117 = vtanh.f32 %v839_v11  ;;  %v744_v18 = vmul.f32 %v712_v12, %v616_v6  ;;  %v1116_v20 = vpop.eup %1115  ;;  %v463_v32 = vadd.f32 1.0, %v1114_v17 }
 0x178   :  { %v934_v21 = vmul.f32 %v902_v15, %v678_v26  ;;  %v464_v46 = vadd.f32 1.0, %v1116_v20 }
 0x179   :  { %v776_v22 = vmul.f32 %v744_v18, %v616_v6  ;;  %v495_v36 = vmul.f32 %v463_v32, %v239_v25 }
 0x17a   :  { %966 = vst.msk [vmem:[%s1637_s4 + $0x40] sm:$0xff] %vm532_vm2, %v934_v21  ;;  %v617_v23 = vpop.f32.mrf.mxu1  ;;  %v496_v58 = vmul.f32 %v464_v46, %v240_v27 }
 0x17b   :  { %v808_v30 = vadd.f32 %v776_v22, %v616_v6  ;;  %v618_v31 = vadd.f32 %v617_v23, %v1370_v28 }
 0x17c   :  { %v513_v19 = vpack.c.bf16 %v496_v58, %v495_v36 }
 0x17d   :  { %v1118_v49 = vpop.eup %1117  ;;  %v840_v33 = vmul.f32 0.7978846, %v808_v30  ;;  %v713_v34 = vmul.f32 0.044715, %v618_v31  ;;  %v681_v4 = vmul.f32 0.5, %v618_v31 }
 0x17e   :  { %v903_v40 = vadd.f32 1.0, %v1118_v49 }
 0x17f   :  { %1119 = vtanh.f32 %v840_v33  ;;  %v745_v41 = vmul.f32 %v713_v34, %v618_v31 }
 0x180   :  { %v935_v44 = vmul.f32 %v903_v40, %v679_v38  ;;  %1121 = vtanh.f32 %v401_v37 }
 0x181   :  { %v777_v61 = vmul.f32 %v745_v41, %v618_v31  ;;  %1123 = vtanh.f32 %v402_v35 }
 0x182   :  { %967 = vst.msk [vmem:[%s1637_s4 + $0x48] sm:$0xff] %vm532_vm2, %v935_v44  ;;  %v620_v45 = vpop.f32.mrf.mxu1 }
 0x183   :  { %v809_v47 = vadd.f32 %v777_v61, %v618_v31  ;;  %v621_v16 = vadd.f32 %v620_v45, %v1370_v28 }
 0x185   :  { %v1120_v48 = vpop.eup %1119  ;;  %v841_v50 = vmul.f32 0.7978846, %v809_v47  ;;  %v714_v52 = vmul.f32 0.044715, %v621_v16  ;;  %1032 = vmatmul.msk.bf16.gmra.mxu2 %vm532_vm2, %v513_v19  ;;  %v682_v18 = vmul.f32 0.5, %v621_v16 }
 0x186   :  { %v904_v55 = vadd.f32 1.0, %v1120_v48  ;;  %v1122_v56 = vpop.eup %1121 }
 0x187   :  { %1125 = vtanh.f32 %v841_v50  ;;  %v746_v57 = vmul.f32 %v714_v52, %v621_v16  ;;  %v1124_v59 = vpop.eup %1123  ;;  %v465_v60 = vadd.f32 1.0, %v1122_v56 }
 0x188   :  { %v936_v62 = vmul.f32 %v904_v55, %v680_v54  ;;  %v466_v2 = vadd.f32 1.0, %v1124_v59 }
 0x189   :  { %v778_v39 = vmul.f32 %v746_v57, %v621_v16  ;;  %v497_v7 = vmul.f32 %v465_v60, %v241_v0 }
 0x18a   :  { %968 = vst.msk [vmem:[%s1637_s4 + $0x50] sm:$0xff] %vm532_vm2, %v936_v62  ;;  %v622_v63 = vpop.f32.mrf.mxu1  ;;  %v498_v10 = vmul.f32 %v466_v2, %v242_v8 }
 0x18b   :  { %v810_v9 = vadd.f32 %v778_v39, %v621_v16  ;;  %v623_v1 = vadd.f32 %v622_v63, %v1370_v28 }
 0x18c   :  { %v514_v26 = vpack.c.bf16 %v498_v10, %v497_v7 }
 0x18d   :  { %v1126_v3 = vpop.eup %1125  ;;  %v842_v53 = vmul.f32 0.7978846, %v810_v9  ;;  %v715_v51 = vmul.f32 0.044715, %v623_v1  ;;  %v683_v32 = vmul.f32 0.5, %v623_v1 }
 0x18e   :  { %v905_v5 = vadd.f32 1.0, %v1126_v3 }
 0x18f   :  { %1127 = vtanh.f32 %v842_v53  ;;  %v747_v6 = vmul.f32 %v715_v51, %v623_v1 }
 0x190   :  { %v937_v11 = vmul.f32 %v905_v5, %v681_v4 }
 0x191   :  { %v779_v12 = vmul.f32 %v747_v6, %v623_v1 }
 0x192   :  { %969 = vst.msk [vmem:[%s1637_s4 + $0x58] sm:$0xff] %vm532_vm2, %v937_v11  ;;  %v625_v42 = vpop.f32.mrf.mxu1 }
 0x193   :  { %v811_v43 = vadd.f32 %v779_v12, %v623_v1  ;;  %v626_v13 = vadd.f32 %v625_v42, %v1370_v28 }
 0x195   :  { %v1128_v15 = vpop.eup %1127  ;;  %v843_v29 = vmul.f32 0.7978846, %v811_v43  ;;  %v716_v17 = vmul.f32 0.044715, %v626_v13  ;;  %1033 = vmatmul.msk.bf16.gmra.mxu2 %vm532_vm2, %v514_v26  ;;  %v684_v35 = vmul.f32 0.5, %v626_v13 }
 0x196   :  { %v906_v20 = vadd.f32 1.0, %v1128_v15 }
 0x197   :  { %1129 = vtanh.f32 %v843_v29  ;;  %v748_v21 = vmul.f32 %v716_v17, %v626_v13 }
 0x198   :  { %v938_v22 = vmul.f32 %v906_v20, %v682_v18 }
 0x199   :  { %v780_v14 = vmul.f32 %v748_v21, %v626_v13 }
 0x19a   :  { %970 = vst.msk [vmem:[%s1637_s4 + $0x60] sm:$0xff] %vm532_vm2, %v938_v22  ;;  %v627_v23 = vpop.f32.mrf.mxu1 }
 0x19b   :  { %v812_v25 = vadd.f32 %v780_v14, %v626_v13  ;;  %v628_v27 = vadd.f32 %v627_v23, %v1370_v28 }
 0x19d   :  { %v1130_v24 = vpop.eup %1129  ;;  %v844_v30 = vmul.f32 0.7978846, %v812_v25  ;;  %v717_v31 = vmul.f32 0.044715, %v628_v27  ;;  %v685_v16 = vmul.f32 0.5, %v628_v27 }
 0x19e   :  { %v907_v46 = vadd.f32 1.0, %v1130_v24 }
 0x19f   :  { %1131 = vtanh.f32 %v844_v30  ;;  %v749_v49 = vmul.f32 %v717_v31, %v628_v27 }
 0x1a0   :  { %v939_v33 = vmul.f32 %v907_v46, %v683_v32 }
 0x1a1   :  { %v781_v34 = vmul.f32 %v749_v49, %v628_v27 }
 0x1a2   :  { %971 = vst.msk [vmem:[%s1637_s4 + $0x68] sm:$0xff] %vm532_vm2, %v939_v33 }
 0x1a3   :  { %v813_v37 = vadd.f32 %v781_v34, %v628_v27 }
 0x1a5   :  { %v1132_v38 = vpop.eup %1131  ;;  %v845_v40 = vmul.f32 0.7978846, %v813_v37 }
 0x1a6   :  { %v908_v41 = vadd.f32 1.0, %v1132_v38 }
 0x1a7   :  { %1133 = vtanh.f32 %v845_v40 }
 0x1a8   :  { %v940_v36 = vmul.f32 %v908_v41, %v684_v35  ;;  %v630_v58 = vpop.f32.mrf.mxu2 }
 0x1a9   :  { %v631_v44 = vadd.f32 %v630_v58, %v1370_v28 }
 0x1aa   :  { %972 = vst.msk [vmem:[%s1637_s4 + $0x70] sm:$0xff] %vm532_vm2, %v940_v36 }
 0x1ab   :  { %v718_v61 = vmul.f32 0.044715, %v631_v44  ;;  %v686_v60 = vmul.f32 0.5, %v631_v44 }
 0x1ad   :  { %v1134_v45 = vpop.eup %1133  ;;  %v750_v47 = vmul.f32 %v718_v61, %v631_v44 }
 0x1ae   :  { %v909_v19 = vadd.f32 1.0, %v1134_v45 }
 0x1af   :  { %v782_v48 = vmul.f32 %v750_v47, %v631_v44 }
 0x1b0   :  { %v941_v50 = vmul.f32 %v909_v19, %v685_v16  ;;  %v632_v52 = vpop.f32.mrf.mxu2 }
 0x1b1   :  { %v814_v54 = vadd.f32 %v782_v48, %v631_v44  ;;  %v633_v55 = vadd.f32 %v632_v52, %v1370_v28 }
 0x1b2   :  { %973 = vst.msk [vmem:[%s1637_s4 + $0x78] sm:$0xff] %vm532_vm2, %v941_v50 }
 0x1b3   :  { %v846_v56 = vmul.f32 0.7978846, %v814_v54  ;;  %v719_v57 = vmul.f32 0.044715, %v633_v55  ;;  %v687_v12 = vmul.f32 0.5, %v633_v55 }
 0x1b5   :  { %1135 = vtanh.f32 %v846_v56  ;;  %v751_v59 = vmul.f32 %v719_v57, %v633_v55 }
 0x1b7   :  { %v783_v62 = vmul.f32 %v751_v59, %v633_v55 }
 0x1b8   :  { %v635_v39 = vpop.f32.mrf.mxu2 }
 0x1b9   :  { %v815_v63 = vadd.f32 %v783_v62, %v633_v55  ;;  %v636_v0 = vadd.f32 %v635_v39, %v1370_v28 }
 0x1bb   :  { %v1136_v8 = vpop.eup %1135  ;;  %v847_v9 = vmul.f32 0.7978846, %v815_v63  ;;  %v720_v1 = vmul.f32 0.044715, %v636_v0  ;;  %v688_v22 = vmul.f32 0.5, %v636_v0 }
 0x1bc   :  { %v910_v2 = vadd.f32 1.0, %v1136_v8 }
 0x1bd   :  { %1137 = vtanh.f32 %v847_v9  ;;  %v752_v3 = vmul.f32 %v720_v1, %v636_v0 }
 0x1be   :  { %v942_v53 = vmul.f32 %v910_v2, %v686_v60 }
 0x1bf   :  { %v784_v51 = vmul.f32 %v752_v3, %v636_v0 }
 0x1c0   :  { %974 = vst.msk [vmem:[%s1637_s4 + $0x80] sm:$0xff] %vm532_vm2, %v942_v53  ;;  %v637_v4 = vpop.f32.mrf.mxu2 }
 0x1c1   :  { %v816_v5 = vadd.f32 %v784_v51, %v636_v0  ;;  %v638_v6 = vadd.f32 %v637_v4, %v1370_v28 }
 0x1c3   :  { %v1138_v7 = vpop.eup %1137  ;;  %v848_v10 = vmul.f32 0.7978846, %v816_v5  ;;  %v721_v11 = vmul.f32 0.044715, %v638_v6  ;;  %v689_v33 = vmul.f32 0.5, %v638_v6 }
 0x1c4   :  { %v911_v42 = vadd.f32 1.0, %v1138_v7 }
 0x1c5   :  { %1139 = vtanh.f32 %v848_v10  ;;  %v753_v43 = vmul.f32 %v721_v11, %v638_v6 }
 0x1c6   :  { %v943_v13 = vmul.f32 %v911_v42, %v687_v12 }
 0x1c7   :  { %v785_v26 = vmul.f32 %v753_v43, %v638_v6 }
 0x1c8   :  { %975 = vst.msk [vmem:[%s1637_s4 + $0x88] sm:$0xff] %vm532_vm2, %v943_v13  ;;  %v640_v15 = vpop.f32.mrf.mxu2 }
 0x1c9   :  { %v817_v29 = vadd.f32 %v785_v26, %v638_v6  ;;  %v641_v17 = vadd.f32 %v640_v15, %v1370_v28 }
 0x1cb   :  { %v1140_v18 = vpop.eup %1139  ;;  %v849_v20 = vmul.f32 0.7978846, %v817_v29  ;;  %v722_v21 = vmul.f32 0.044715, %v641_v17  ;;  %v690_v45 = vmul.f32 0.5, %v641_v17 }
 0x1cc   :  { %v912_v14 = vadd.f32 1.0, %v1140_v18 }
 0x1cd   :  { %1141 = vtanh.f32 %v849_v20  ;;  %v754_v23 = vmul.f32 %v722_v21, %v641_v17 }
 0x1ce   :  { %v944_v25 = vmul.f32 %v912_v14, %v688_v22 }
 0x1cf   :  { %v786_v27 = vmul.f32 %v754_v23, %v641_v17 }
 0x1d0   :  { %976 = vst.msk [vmem:[%s1637_s4 + $0x90] sm:$0xff] %vm532_vm2, %v944_v25  ;;  %v642_v24 = vpop.f32.mrf.mxu2 }
 0x1d1   :  { %v818_v30 = vadd.f32 %v786_v27, %v641_v17  ;;  %v643_v31 = vadd.f32 %v642_v24, %v1370_v28 }
 0x1d3   :  { %v1142_v32 = vpop.eup %1141  ;;  %v850_v46 = vmul.f32 0.7978846, %v818_v30  ;;  %v723_v49 = vmul.f32 0.044715, %v643_v31  ;;  %v691_v59 = vmul.f32 0.5, %v643_v31 }
 0x1d4   :  { %v913_v34 = vadd.f32 1.0, %v1142_v32 }
 0x1d5   :  { %1143 = vtanh.f32 %v850_v46  ;;  %v755_v37 = vmul.f32 %v723_v49, %v643_v31 }
 0x1d6   :  { %v945_v38 = vmul.f32 %v913_v34, %v689_v33 }
 0x1d7   :  { %v787_v40 = vmul.f32 %v755_v37, %v643_v31 }
 0x1d8   :  { %977 = vst.msk [vmem:[%s1637_s4 + $0x98] sm:$0xff] %vm532_vm2, %v945_v38  ;;  %v645_v35 = vpop.f32.mrf.mxu2 }
 0x1d9   :  { %v819_v41 = vadd.f32 %v787_v40, %v643_v31  ;;  %v646_v36 = vadd.f32 %v645_v35, %v1370_v28 }
 0x1db   :  { %v1144_v58 = vpop.eup %1143  ;;  %v851_v44 = vmul.f32 0.7978846, %v819_v41  ;;  %v724_v61 = vmul.f32 0.044715, %v646_v36  ;;  %v692_v53 = vmul.f32 0.5, %v646_v36 }
 0x1dc   :  { %v914_v47 = vadd.f32 1.0, %v1144_v58 }
 0x1dd   :  { %1145 = vtanh.f32 %v851_v44  ;;  %v756_v16 = vmul.f32 %v724_v61, %v646_v36 }
 0x1de   :  { %v946_v19 = vmul.f32 %v914_v47, %v690_v45 }
 0x1df   :  { %v788_v48 = vmul.f32 %v756_v16, %v646_v36 }
 0x1e0   :  { %978 = vst.msk [vmem:[%s1637_s4 + $0xa0] sm:$0xff] %vm532_vm2, %v946_v19  ;;  %v647_v50 = vpop.f32.mrf.mxu2 }
 0x1e1   :  { %v820_v52 = vadd.f32 %v788_v48, %v646_v36  ;;  %v648_v54 = vadd.f32 %v647_v50, %v1370_v28 }
 0x1e3   :  { %v1146_v55 = vpop.eup %1145  ;;  %v852_v56 = vmul.f32 0.7978846, %v820_v52  ;;  %v725_v57 = vmul.f32 0.044715, %v648_v54  ;;  %v693_v13 = vmul.f32 0.5, %v648_v54 }
 0x1e4   :  { %v915_v62 = vadd.f32 1.0, %v1146_v55 }
 0x1e5   :  { %1147 = vtanh.f32 %v852_v56  ;;  %v757_v39 = vmul.f32 %v725_v57, %v648_v54 }
 0x1e6   :  { %v947_v63 = vmul.f32 %v915_v62, %v691_v59 }
 0x1e7   :  { %v789_v0 = vmul.f32 %v757_v39, %v648_v54 }
 0x1e8   :  { %979 = vst.msk [vmem:[%s1637_s4 + $0xa8] sm:$0xff] %vm532_vm2, %v947_v63  ;;  %v650_v8 = vpop.f32.mrf.mxu2 }
 0x1e9   :  { %v821_v9 = vadd.f32 %v789_v0, %v648_v54  ;;  %v651_v1 = vadd.f32 %v650_v8, %v1370_v28 }
 0x1eb   :  { %v1148_v60 = vpop.eup %1147  ;;  %v853_v2 = vmul.f32 0.7978846, %v821_v9  ;;  %v726_v3 = vmul.f32 0.044715, %v651_v1  ;;  %v694_v25 = vmul.f32 0.5, %v651_v1 }
 0x1ec   :  { %v916_v51 = vadd.f32 1.0, %v1148_v60 }
 0x1ed   :  { %1149 = vtanh.f32 %v853_v2  ;;  %v758_v4 = vmul.f32 %v726_v3, %v651_v1 }
 0x1ee   :  { %v948_v5 = vmul.f32 %v916_v51, %v692_v53 }
 0x1ef   :  { %v790_v6 = vmul.f32 %v758_v4, %v651_v1 }
 0x1f0   :  { %980 = vst.msk [vmem:[%s1637_s4 + $0xb0] sm:$0xff] %vm532_vm2, %v948_v5  ;;  %v652_v7 = vpop.f32.mrf.mxu2 }
 0x1f1   :  { %v822_v10 = vadd.f32 %v790_v6, %v651_v1  ;;  %v653_v11 = vadd.f32 %v652_v7, %v1370_v28 }
 0x1f3   :  { %v1150_v12 = vpop.eup %1149  ;;  %v854_v42 = vmul.f32 0.7978846, %v822_v10  ;;  %v727_v43 = vmul.f32 0.044715, %v653_v11  ;;  %v695_v38 = vmul.f32 0.5, %v653_v11 }
 0x1f4   :  { %v917_v26 = vadd.f32 1.0, %v1150_v12 }
 0x1f5   :  { %1151 = vtanh.f32 %v854_v42  ;;  %v759_v15 = vmul.f32 %v727_v43, %v653_v11 }
 0x1f6   :  { %v949_v29 = vmul.f32 %v917_v26, %v693_v13 }
 0x1f7   :  { %v791_v17 = vmul.f32 %v759_v15, %v653_v11 }
 0x1f8   :  { %981 = vst.msk [vmem:[%s1637_s4 + $0xb8] sm:$0xff] %vm532_vm2, %v949_v29  ;;  %v655_v18 = vpop.f32.mrf.mxu2 }
 0x1f9   :  { %v823_v20 = vadd.f32 %v791_v17, %v653_v11  ;;  %v656_v21 = vadd.f32 %v655_v18, %v1370_v28 }
 0x1fb   :  { %v1152_v22 = vpop.eup %1151  ;;  %v855_v14 = vmul.f32 0.7978846, %v823_v20  ;;  %v728_v23 = vmul.f32 0.044715, %v656_v21  ;;  %v696_v19 = vmul.f32 0.5, %v656_v21 }
 0x1fc   :  { %v918_v27 = vadd.f32 1.0, %v1152_v22 }
 0x1fd   :  { %1153 = vtanh.f32 %v855_v14  ;;  %v760_v24 = vmul.f32 %v728_v23, %v656_v21 }
 0x1fe   :  { %v950_v30 = vmul.f32 %v918_v27, %v694_v25 }
 0x1ff   :  { %v792_v31 = vmul.f32 %v760_v24, %v656_v21 }
 0x200   :  { %982 = vst.msk [vmem:[%s1637_s4 + $0xc0] sm:$0xff] %vm532_vm2, %v950_v30  ;;  %v657_v32 = vpop.f32.mrf.mxu2 }
 0x201   :  { %v824_v46 = vadd.f32 %v792_v31, %v656_v21  ;;  %v658_v49 = vadd.f32 %v657_v32, %v1370_v28 }
 0x203   :  { %v1154_v33 = vpop.eup %1153  ;;  %v856_v34 = vmul.f32 0.7978846, %v824_v46  ;;  %v729_v37 = vmul.f32 0.044715, %v658_v49  ;;  %v697_v63 = vmul.f32 0.5, %v658_v49 }
 0x204   :  { %v919_v40 = vadd.f32 1.0, %v1154_v33 }
 0x205   :  { %1155 = vtanh.f32 %v856_v34  ;;  %v761_v35 = vmul.f32 %v729_v37, %v658_v49 }
 0x206   :  { %v951_v41 = vmul.f32 %v919_v40, %v695_v38 }
 0x207   :  { %v793_v36 = vmul.f32 %v761_v35, %v658_v49 }
 0x208   :  { %983 = vst.msk [vmem:[%s1637_s4 + $0xc8] sm:$0xff] %vm532_vm2, %v951_v41  ;;  %v660_v58 = vpop.f32.mrf.mxu2 }
 0x209   :  { %v825_v44 = vadd.f32 %v793_v36, %v658_v49  ;;  %v661_v61 = vadd.f32 %v660_v58, %v1370_v28 }
 0x20b   :  { %v1156_v45 = vpop.eup %1155  ;;  %v857_v47 = vmul.f32 0.7978846, %v825_v44  ;;  %v730_v16 = vmul.f32 0.044715, %v661_v61  ;;  %v698_v5 = vmul.f32 0.5, %v661_v61 }
 0x20c   :  { %v920_v48 = vadd.f32 1.0, %v1156_v45 }
 0x20d   :  { %1157 = vtanh.f32 %v857_v47  ;;  %v762_v50 = vmul.f32 %v730_v16, %v661_v61 }
 0x20e   :  { %v952_v52 = vmul.f32 %v920_v48, %v696_v19 }
 0x20f   :  { %v794_v54 = vmul.f32 %v762_v50, %v661_v61 }
 0x210   :  { %984 = vst.msk [vmem:[%s1637_s4 + $0xd0] sm:$0xff] %vm532_vm2, %v952_v52  ;;  %v662_v55 = vpop.f32.mrf.mxu2 }
 0x211   :  { %v826_v56 = vadd.f32 %v794_v54, %v661_v61  ;;  %v663_v57 = vadd.f32 %v662_v55, %v1370_v28 }
 0x213   :  { %v1158_v59 = vpop.eup %1157  ;;  %v858_v62 = vmul.f32 0.7978846, %v826_v56  ;;  %v731_v39 = vmul.f32 0.044715, %v663_v57  ;;  %v699_v29 = vmul.f32 0.5, %v663_v57 }
 0x214   :  { %v921_v0 = vadd.f32 1.0, %v1158_v59 }
 0x215   :  { %1159 = vtanh.f32 %v858_v62  ;;  %v763_v8 = vmul.f32 %v731_v39, %v663_v57 }
 0x216   :  { %v953_v9 = vmul.f32 %v921_v0, %v697_v63 }
 0x217   :  { %v795_v1 = vmul.f32 %v763_v8, %v663_v57 }
 0x218   :  { %985 = vst.msk [vmem:[%s1637_s4 + $0xd8] sm:$0xff] %vm532_vm2, %v953_v9  ;;  %v665_v60 = vpop.f32.mrf.mxu2 }
 0x219   :  { %v827_v2 = vadd.f32 %v795_v1, %v663_v57  ;;  %v666_v3 = vadd.f32 %v665_v60, %v1370_v28 }
 0x21b   :  { %v1160_v53 = vpop.eup %1159  ;;  %v859_v51 = vmul.f32 0.7978846, %v827_v2  ;;  %v732_v4 = vmul.f32 0.044715, %v666_v3  ;;  %v700_v25 = vmul.f32 0.5, %v666_v3 }
 0x21c   :  { %v922_v6 = vadd.f32 1.0, %v1160_v53 }
 0x21d   :  { %1161 = vtanh.f32 %v859_v51  ;;  %v764_v7 = vmul.f32 %v732_v4, %v666_v3 }
 0x21e   :  { %v954_v10 = vmul.f32 %v922_v6, %v698_v5 }
 0x21f   :  { %v796_v11 = vmul.f32 %v764_v7, %v666_v3 }
 0x220   :  { %986 = vst.msk [vmem:[%s1637_s4 + $0xe0] sm:$0xff] %vm532_vm2, %v954_v10  ;;  %v667_v12 = vpop.f32.mrf.mxu2 }
 0x221   :  { %v828_v42 = vadd.f32 %v796_v11, %v666_v3  ;;  %v668_v43 = vadd.f32 %v667_v12, %v1370_v28 }
 0x223   :  { %v1162_v13 = vpop.eup %1161  ;;  %v860_v26 = vmul.f32 0.7978846, %v828_v42  ;;  %v733_v15 = vmul.f32 0.044715, %v668_v43  ;;  %v701_v30 = vmul.f32 0.5, %v668_v43 }
 0x224   :  { %v923_v17 = vadd.f32 1.0, %v1162_v13 }
 0x225   :  { %1163 = vtanh.f32 %v860_v26  ;;  %v765_v18 = vmul.f32 %v733_v15, %v668_v43 }
 0x226   :  { %v955_v20 = vmul.f32 %v923_v17, %v699_v29 }
 0x227   :  { %v797_v21 = vmul.f32 %v765_v18, %v668_v43 }
 0x228   :  { %987 = vst.msk [vmem:[%s1637_s4 + $0xe8] sm:$0xff] %vm532_vm2, %v955_v20 }
 0x229   :  { %v829_v22 = vadd.f32 %v797_v21, %v668_v43 }
 0x22b   :  { %v1164_v14 = vpop.eup %1163  ;;  %v861_v23 = vmul.f32 0.7978846, %v829_v22 }
 0x22c   :  { %v924_v27 = vadd.f32 1.0, %v1164_v14 }
 0x22d   :  { %1165 = vtanh.f32 %v861_v23 }
 0x22e   :  { %v956_v28 = vmul.f32 %v924_v27, %v700_v25 }
 0x230   :  { %988 = vst.msk [vmem:[%s1637_s4 + $0xf0] sm:$0xff] %vm532_vm2, %v956_v28 }
 0x233   :  { %v1166_v24 = vpop.eup %1165 }
 0x234   :  { %v925_v31 = vadd.f32 1.0, %v1166_v24 }
 0x236   :  { %v957_v32 = vmul.f32 %v925_v31, %v701_v30 }
 0x238   :  { %989 = vst.msk [vmem:[%s1637_s4 + $0xf8] sm:$0xff] %vm532_vm2, %v957_v32 }

// kernel: pino_graph_forward.10
= control target key start
LH: loop header
LB: loop body
LE: loop exit
PB: predicated region body
PF: predicated region fallthrough
CT: control target
= control target key end

     0   :  { %vm100_vm0 = vcmask 523264   ;;  %vm559_vm1 = vcmask 261120   ;;  %s1548_s1 = inlined_call_operand.vmem [shape: bf16[64,32], index: 1, kind: input, shape index: {}]   ;;  %s1549_s0 = inlined_call_operand.vmem [shape: f32[256,64], index: 0, kind: input, shape index: {}]   ;;  %s1550_s2 = inlined_call_operand.vmem [shape: bf16[32,32], index: 2, kind: input, shape index: {}]   ;;  %s1551_s3 = inlined_call_operand.vmem [shape: f32[2,32], index: 3, kind: input, shape index: {}]   ;;  %s1552_s4 = inlined_call_operand.vmem [shape: f32[256,32], index: 4, kind: output, shape index: {}]  }
   0x1   :  { %v824_v0 = vld [vmem:[%s1548_s1 + $0x18] sm:$0xff]  ;;  %v823_v1 = vld [vmem:[%s1548_s1 + $0x10] sm:$0xff]  ;;  %v822_v2 = vld [vmem:[%s1548_s1 + $0x8] sm:$0xff] }
   0x2   :  { %153 = vmatpush.bf16.msra.mxu0 %v824_v0  ;;  %827 = vmatpush.bf16.msra.mxu2 %v824_v0  ;;  %v821_v3 = vld [vmem:[%s1548_s1] sm:$0xff]  ;;  %v964_v5 = vld [vmem:[%s1549_s0 + $0x8] sm:$0xff]  ;;  %v979_v10 = vld [vmem:[%s1549_s0 + $0x10] sm:$0xff] }
   0x3   :  { %v959_v4 = vld [vmem:[%s1549_s0] sm:$0xff]  ;;  %v36_v7 = vld [vmem:[%s1549_s0 + $0x88] sm:$0xff]  ;;  %v984_v11 = vld [vmem:[%s1549_s0 + $0x18] sm:$0xff] }
   0x4   :  { %v35_v6 = vld [vmem:[%s1549_s0 + $0x80] sm:$0xff]  ;;  %v51_v8 = vpack.c.bf16 %v964_v5, %v959_v4  ;;  %v989_v12 = vld [vmem:[%s1549_s0 + $0x90] sm:$0xff]  ;;  %v994_v13 = vld [vmem:[%s1549_s0 + $0x98] sm:$0xff]  ;;  %v52_v14 = vpack.c.bf16 %v984_v11, %v979_v10 }
   0x5   :  { %v59_v9 = vpack.c.bf16 %v36_v7, %v35_v6  ;;  %v60_v15 = vpack.c.bf16 %v994_v13, %v989_v12  ;;  %v1005_v16 = vld [vmem:[%s1549_s0 + $0x20] sm:$0xff]  ;;  %v1010_v17 = vld [vmem:[%s1549_s0 + $0x28] sm:$0xff]  ;;  %v1028_v22 = vld [vmem:[%s1549_s0 + $0x30] sm:$0xff] }
   0x6   :  { %154 = vmatpush.bf16.msra.mxu0 %v823_v1  ;;  %828 = vmatpush.bf16.msra.mxu2 %v823_v1  ;;  %v1015_v18 = vld [vmem:[%s1549_s0 + $0xa0] sm:$0xff]  ;;  %v40_v19 = vld [vmem:[%s1549_s0 + $0xa8] sm:$0xff]  ;;  %v53_v20 = vpack.c.bf16 %v1010_v17, %v1005_v16  ;;  %v26_v23 = vld [vmem:[%s1549_s0 + $0x38] sm:$0xff] }
   0x7   :  { %v61_v21 = vpack.c.bf16 %v40_v19, %v1015_v18  ;;  %v41_v24 = vld [vmem:[%s1549_s0 + $0xb0] sm:$0xff]  ;;  %v42_v25 = vld [vmem:[%s1549_s0 + $0xb8] sm:$0xff]  ;;  %v54_v26 = vpack.c.bf16 %v26_v23, %v1028_v22  ;;  %v27_v28 = vld [vmem:[%s1549_s0 + $0x40] sm:$0xff] }
   0x8   :  { %v62_v27 = vpack.c.bf16 %v42_v25, %v41_v24  ;;  %v28_v29 = vld [vmem:[%s1549_s0 + $0x48] sm:$0xff]  ;;  %v43_v30 = vld [vmem:[%s1549_s0 + $0xc0] sm:$0xff]  ;;  %v29_v34 = vld [vmem:[%s1549_s0 + $0x50] sm:$0xff] }
   0x9   :  { %v44_v31 = vld [vmem:[%s1549_s0 + $0xc8] sm:$0xff]  ;;  %v55_v32 = vpack.c.bf16 %v28_v29, %v27_v28  ;;  %v30_v35 = vld [vmem:[%s1549_s0 + $0x58] sm:$0xff]  ;;  %v45_v36 = vld [vmem:[%s1549_s0 + $0xd0] sm:$0xff] }
   0xa   :  { %155 = vmatpush.bf16.msra.mxu0 %v822_v2  ;;  %829 = vmatpush.bf16.msra.mxu2 %v822_v2  ;;  %v63_v33 = vpack.c.bf16 %v44_v31, %v43_v30  ;;  %v46_v37 = vld [vmem:[%s1549_s0 + $0xd8] sm:$0xff]  ;;  %v56_v38 = vpack.c.bf16 %v30_v35, %v29_v34  ;;  %v31_v40 = vld [vmem:[%s1549_s0 + $0x60] sm:$0xff]  ;;  %v32_v41 = vld [vmem:[%s1549_s0 + $0x68] sm:$0xff] }
   0xb   :  { %v64_v39 = vpack.c.bf16 %v46_v37, %v45_v36  ;;  %v47_v42 = vld [vmem:[%s1549_s0 + $0xe0] sm:$0xff]  ;;  %v48_v43 = vld [vmem:[%s1549_s0 + $0xe8] sm:$0xff]  ;;  %v57_v44 = vpack.c.bf16 %v32_v41, %v31_v40  ;;  %v33_v46 = vld [vmem:[%s1549_s0 + $0x70] sm:$0xff] }
   0xc   :  { %v65_v45 = vpack.c.bf16 %v48_v43, %v47_v42  ;;  %v34_v47 = vld [vmem:[%s1549_s0 + $0x78] sm:$0xff]  ;;  %v49_v48 = vld [vmem:[%s1549_s0 + $0xf0] sm:$0xff]  ;;  %v826_v52 = vld [vmem:[%s1550_s2 + $0x8] sm:$0xff] }
   0xd   :  { %v50_v49 = vld [vmem:[%s1549_s0 + $0xf8] sm:$0xff]  ;;  %v58_v50 = vpack.c.bf16 %v34_v47, %v33_v46  ;;  %v1104_v53 = vld [vmem:[%s1551_s3] sm:$0x3]  ;;  %614 = vmatpush.bf16.msra.mxu1 %v826_v52  ;;  %831 = vmatpush.bf16.msra.mxu3 %v826_v52 }
   0xe   :  { %156 = vmatpush.bf16.msra.mxu0 %v821_v3  ;;  %830 = vmatpush.bf16.msra.mxu2 %v821_v3  ;;  %v66_v51 = vpack.c.bf16 %v50_v49, %v49_v48  ;;  %v1107_v54 = vperm.slane %v1104_v53, 0  ;;  %v825_v55 = vld [vmem:[%s1550_s2] sm:$0xff] }
  0x11   :  { %781 = vmatmul.msk.bf16.vlgmr.msra.gmra.mxu0 %vm100_vm0, %v51_v8  ;;  %789 = vmatmul.msk.bf16.vlgmr.msra.gmra.mxu2 %vm100_vm0, %v59_v9 }
  0x12   :  { %615 = vmatpush.bf16.msra.mxu1 %v825_v55  ;;  %832 = vmatpush.bf16.msra.mxu3 %v825_v55 }
  0x21   :  { %782 = vmatmul.msk.bf16.gmra.mxu0 %vm100_vm0, %v52_v14  ;;  %790 = vmatmul.msk.bf16.gmra.mxu2 %vm100_vm0, %v60_v15 }
  0x31   :  { %783 = vmatmul.msk.bf16.gmra.mxu0 %vm100_vm0, %v53_v20  ;;  %791 = vmatmul.msk.bf16.gmra.mxu2 %vm100_vm0, %v61_v21 }
  0x41   :  { %784 = vmatmul.msk.bf16.gmra.mxu0 %vm100_vm0, %v54_v26  ;;  %792 = vmatmul.msk.bf16.gmra.mxu2 %vm100_vm0, %v62_v27 }
  0x51   :  { %785 = vmatmul.msk.bf16.gmra.mxu0 %vm100_vm0, %v55_v32  ;;  %793 = vmatmul.msk.bf16.gmra.mxu2 %vm100_vm0, %v63_v33 }
  0x61   :  { %786 = vmatmul.msk.bf16.gmra.mxu0 %vm100_vm0, %v56_v38  ;;  %794 = vmatmul.msk.bf16.gmra.mxu2 %vm100_vm0, %v64_v39 }
  0x71   :  { %787 = vmatmul.msk.bf16.gmra.mxu0 %vm100_vm0, %v57_v44  ;;  %795 = vmatmul.msk.bf16.gmra.mxu2 %vm100_vm0, %v65_v45 }
  0x81   :  { %788 = vmatmul.msk.bf16.gmra.mxu0 %vm100_vm0, %v58_v50  ;;  %796 = vmatmul.msk.bf16.gmra.mxu2 %vm100_vm0, %v66_v51 }
  0x8e   :  { %v158_v56 = vpop.f32.mrf.mxu0 }
  0x8f   :  { %v159_v57 = vadd.f32 %v158_v56, %v1107_v54 }
  0x91   :  { %v270_v58 = vmul.f32 0.044715, %v159_v57  ;;  %v238_v46 = vmul.f32 0.5, %v159_v57 }
  0x93   :  { %v302_v59 = vmul.f32 %v270_v58, %v159_v57 }
  0x94   :  { %v198_v60 = vpop.f32.mrf.mxu2 }
  0x95   :  { %v1114_v61 = vadd.f32 %v198_v60, %v1107_v54  ;;  %v334_v62 = vmul.f32 %v302_v59, %v159_v57 }
  0x96   :  { %v160_v63 = vpop.f32.mrf.mxu0 }
  0x97   :  { %v286_v0 = vmul.f32 0.044715, %v1114_v61  ;;  %v161_v1 = vadd.f32 %v160_v63, %v1107_v54  ;;  %v366_v2 = vadd.f32 %v334_v62, %v159_v57 }
  0x99   :  { %v318_v3 = vmul.f32 %v286_v0, %v1114_v61  ;;  %v271_v6 = vmul.f32 0.044715, %v161_v1  ;;  %v398_v7 = vmul.f32 0.7978846, %v366_v2  ;;  %v239_v47 = vmul.f32 0.5, %v161_v1 }
  0x9b   :  { %v303_v8 = vmul.f32 %v271_v6, %v161_v1  ;;  %v350_v9 = vmul.f32 %v318_v3, %v1114_v61  ;;  %833 = vtanh.f32 %v398_v7 }
  0x9c   :  { %v200_v14 = vpop.f32.mrf.mxu2 }
  0x9d   :  { %v201_v15 = vadd.f32 %v200_v14, %v1107_v54  ;;  %v335_v19 = vmul.f32 %v303_v8, %v161_v1  ;;  %v382_v25 = vadd.f32 %v350_v9, %v1114_v61 }
  0x9e   :  { %v163_v20 = vpop.f32.mrf.mxu0 }
  0x9f   :  { %v287_v21 = vmul.f32 0.044715, %v201_v15  ;;  %v1122_v23 = vadd.f32 %v163_v20, %v1107_v54  ;;  %v367_v24 = vadd.f32 %v335_v19, %v161_v1  ;;  %v414_v31 = vmul.f32 0.7978846, %v382_v25 }
  0xa0   :  { %v254_v19 = vmul.f32 0.5, %v1114_v61  ;;  %v255_v20 = vmul.f32 0.5, %v201_v15 }
  0xa1   :  { %v319_v26 = vmul.f32 %v287_v21, %v201_v15  ;;  %v272_v27 = vmul.f32 0.044715, %v1122_v23  ;;  %v399_v28 = vmul.f32 0.7978846, %v367_v24  ;;  %v834_v32 = vpop.eup %833 }
  0xa2   :  { %v462_v41 = vadd.f32 1.0, %v834_v32 }
  0xa3   :  { %v304_v29 = vmul.f32 %v272_v27, %v1122_v23  ;;  %835 = vtanh.f32 %v399_v28  ;;  %v351_v30 = vmul.f32 %v319_v26, %v201_v15 }
  0xa4   :  { %v203_v33 = vpop.f32.mrf.mxu2  ;;  %837 = vtanh.f32 %v414_v31  ;;  %v494_v55 = vmul.f32 %v462_v41, %v238_v46 }
  0xa5   :  { %v1128_v34 = vadd.f32 %v203_v33, %v1107_v54  ;;  %v336_v35 = vmul.f32 %v304_v29, %v1122_v23  ;;  %v383_v36 = vadd.f32 %v351_v30, %v201_v15 }
  0xa6   :  { %v165_v37 = vpop.f32.mrf.mxu0 }
  0xa7   :  { %v288_v38 = vmul.f32 0.044715, %v1128_v34  ;;  %v166_v39 = vadd.f32 %v165_v37, %v1107_v54  ;;  %v368_v40 = vadd.f32 %v336_v35, %v1122_v23  ;;  %v415_v42 = vmul.f32 0.7978846, %v383_v36 }
  0xa9   :  { %v836_v43 = vpop.eup %835  ;;  %v320_v44 = vmul.f32 %v288_v38, %v1128_v34  ;;  %v273_v45 = vmul.f32 0.044715, %v166_v39  ;;  %839 = vtanh.f32 %v415_v42  ;;  %v400_v50 = vmul.f32 0.7978846, %v368_v40 }
  0xaa   :  { %v463_v48 = vadd.f32 1.0, %v836_v43  ;;  %v838_v58 = vpop.eup %837  ;;  %v240_v43 = vmul.f32 0.5, %v1122_v23 }
  0xab   :  { %v305_v49 = vmul.f32 %v273_v45, %v166_v39  ;;  %v352_v51 = vmul.f32 %v320_v44, %v1128_v34  ;;  %841 = vtanh.f32 %v400_v50  ;;  %v478_v6 = vadd.f32 1.0, %v838_v58 }
  0xac   :  { %v205_v52 = vpop.f32.mrf.mxu2  ;;  %v495_v56 = vmul.f32 %v463_v48, %v239_v47  ;;  %v241_v44 = vmul.f32 0.5, %v166_v39 }
  0xad   :  { %v1137_v59 = vadd.f32 %v205_v52, %v1107_v54  ;;  %v337_v60 = vmul.f32 %v305_v49, %v166_v39  ;;  %v384_v62 = vadd.f32 %v352_v51, %v1128_v34  ;;  %v1150_v27 = vmul.f32 %v478_v6, %v254_v19 }
  0xae   :  { %v168_v63 = vpop.f32.mrf.mxu0  ;;  %v526_v57 = vpack.c.bf16 %v495_v56, %v494_v55 }
  0xaf   :  { %v289_v0 = vmul.f32 0.044715, %v1137_v59  ;;  %v1142_v1 = vadd.f32 %v168_v63, %v1107_v54  ;;  %v369_v2 = vadd.f32 %v337_v60, %v166_v39  ;;  %v840_v3 = vpop.eup %839  ;;  %v416_v14 = vmul.f32 0.7978846, %v384_v62 }
  0xb0   :  { %805 = vmatmul.msk.bf16.vlgmr.msra.gmra.mxu1 %vm559_vm1, %v526_v57  ;;  %v479_v21 = vadd.f32 1.0, %v840_v3  ;;  %v257_v3 = vmul.f32 0.5, %v1137_v59 }
  0xb1   :  { %v321_v7 = vmul.f32 %v289_v0, %v1137_v59  ;;  %v274_v8 = vmul.f32 0.044715, %v1142_v1  ;;  %v401_v9 = vmul.f32 0.7978846, %v369_v2  ;;  %v842_v29 = vpop.eup %841  ;;  %v256_v2 = vmul.f32 0.5, %v1128_v34 }
  0xb2   :  { %v1152_v28 = vmul.f32 %v479_v21, %v255_v20  ;;  %v464_v38 = vadd.f32 1.0, %v842_v29 }
  0xb3   :  { %v306_v24 = vmul.f32 %v274_v8, %v1142_v1  ;;  %843 = vtanh.f32 %v401_v9  ;;  %v353_v25 = vmul.f32 %v321_v7, %v1137_v59 }
  0xb4   :  { %v208_v26 = vpop.f32.mrf.mxu2  ;;  %845 = vtanh.f32 %v416_v14  ;;  %v534_v32 = vpack.c.bf16 %v1152_v28, %v1150_v27  ;;  %v496_v51 = vmul.f32 %v464_v38, %v240_v43  ;;  %v242_v43 = vmul.f32 0.5, %v1142_v1 }
  0xb5   :  { %v1155_v30 = vadd.f32 %v208_v26, %v1107_v54  ;;  %v385_v31 = vadd.f32 %v353_v25, %v1137_v59  ;;  %v338_v61 = vmul.f32 %v306_v24, %v1142_v1 }
  0xb6   :  { %v170_v15 = vpop.f32.mrf.mxu0 }
  0xb7   :  { %v290_v33 = vmul.f32 0.044715, %v1155_v30  ;;  %v171_v35 = vadd.f32 %v170_v15, %v1107_v54  ;;  %v417_v36 = vmul.f32 0.7978846, %v385_v31  ;;  %v370_v37 = vadd.f32 %v338_v61, %v1142_v1 }
  0xb9   :  { %v844_v40 = vpop.eup %843  ;;  %v322_v41 = vmul.f32 %v290_v33, %v1155_v30  ;;  %v275_v42 = vmul.f32 0.044715, %v171_v35  ;;  %847 = vtanh.f32 %v417_v36  ;;  %v402_v48 = vmul.f32 0.7978846, %v370_v37 }
  0xba   :  { %v465_v45 = vadd.f32 1.0, %v844_v40  ;;  %v846_v46 = vpop.eup %845 }
  0xbb   :  { %v307_v47 = vmul.f32 %v275_v42, %v171_v35  ;;  %v354_v49 = vmul.f32 %v322_v41, %v1155_v30  ;;  %v480_v63 = vadd.f32 1.0, %v846_v46  ;;  %849 = vtanh.f32 %v402_v48 }
  0xbc   :  { %v210_v50 = vpop.f32.mrf.mxu2  ;;  %v497_v52 = vmul.f32 %v465_v45, %v241_v44  ;;  %v243_v44 = vmul.f32 0.5, %v171_v35 }
  0xbd   :  { %v1168_v55 = vadd.f32 %v210_v50, %v1107_v54  ;;  %v339_v56 = vmul.f32 %v307_v47, %v171_v35  ;;  %v386_v58 = vadd.f32 %v354_v49, %v1155_v30  ;;  %v512_v19 = vmul.f32 %v480_v63, %v256_v2 }
  0xbe   :  { %v173_v60 = vpop.f32.mrf.mxu0  ;;  %v527_v62 = vpack.c.bf16 %v497_v52, %v496_v51  ;;  %v258_v2 = vmul.f32 0.5, %v1155_v30 }
  0xbf   :  { %v848_v23 = vpop.eup %847  ;;  %v291_v39 = vmul.f32 0.044715, %v1168_v55  ;;  %v1173_v57 = vadd.f32 %v173_v60, %v1107_v54  ;;  %v371_v0 = vadd.f32 %v339_v56, %v171_v35  ;;  %v418_v14 = vmul.f32 0.7978846, %v386_v58 }
  0xc0   :  { %806 = vmatmul.msk.bf16.gmra.mxu1 %vm559_vm1, %v527_v62  ;;  %v481_v6 = vadd.f32 1.0, %v848_v23 }
  0xc1   :  { %v323_v7 = vmul.f32 %v291_v39, %v1168_v55  ;;  %v276_v8 = vmul.f32 0.044715, %v1173_v57  ;;  %v403_v9 = vmul.f32 0.7978846, %v371_v0  ;;  %v850_v29 = vpop.eup %849 }
  0xc2   :  { %v513_v20 = vmul.f32 %v481_v6, %v257_v3  ;;  %v466_v38 = vadd.f32 1.0, %v850_v29  ;;  %v259_v3 = vmul.f32 0.5, %v1168_v55 }
  0xc3   :  { %v308_v21 = vmul.f32 %v276_v8, %v1173_v57  ;;  %851 = vtanh.f32 %v403_v9  ;;  %v355_v24 = vmul.f32 %v323_v7, %v1168_v55 }
  0xc4   :  { %v213_v25 = vpop.f32.mrf.mxu2  ;;  %v535_v26 = vpack.c.bf16 %v513_v20, %v512_v19  ;;  %853 = vtanh.f32 %v418_v14  ;;  %v498_v51 = vmul.f32 %v466_v38, %v242_v43  ;;  %v244_v43 = vmul.f32 0.5, %v1173_v57 }
  0xc5   :  { %v1183_v34 = vadd.f32 %v213_v25, %v1107_v54  ;;  %v387_v59 = vadd.f32 %v355_v24, %v1168_v55  ;;  %v340_v31 = vmul.f32 %v308_v21, %v1173_v57 }
  0xc6   :  { %v175_v61 = vpop.f32.mrf.mxu0  ;;  %814 = vmatmul.msk.bf16.vlgmr.msra.gmra.mxu3 %vm559_vm1, %v535_v26 }
  0xc7   :  { %v292_v15 = vmul.f32 0.044715, %v1183_v34  ;;  %v176_v33 = vadd.f32 %v175_v61, %v1107_v54  ;;  %v419_v36 = vmul.f32 0.7978846, %v387_v59  ;;  %v372_v37 = vadd.f32 %v340_v31, %v1173_v57 }
  0xc9   :  { %v852_v40 = vpop.eup %851  ;;  %v324_v41 = vmul.f32 %v292_v15, %v1183_v34  ;;  %v277_v42 = vmul.f32 0.044715, %v176_v33  ;;  %855 = vtanh.f32 %v419_v36  ;;  %v404_v48 = vmul.f32 0.7978846, %v372_v37 }
  0xca   :  { %v467_v45 = vadd.f32 1.0, %v852_v40  ;;  %v854_v46 = vpop.eup %853 }
  0xcb   :  { %v309_v47 = vmul.f32 %v277_v42, %v176_v33  ;;  %v356_v49 = vmul.f32 %v324_v41, %v1183_v34  ;;  %v482_v23 = vadd.f32 1.0, %v854_v46  ;;  %857 = vtanh.f32 %v404_v48 }
  0xcc   :  { %v215_v50 = vpop.f32.mrf.mxu2  ;;  %v499_v52 = vmul.f32 %v467_v45, %v243_v44  ;;  %v245_v44 = vmul.f32 0.5, %v176_v33 }
  0xcd   :  { %v1195_v56 = vadd.f32 %v215_v50, %v1107_v54  ;;  %v341_v58 = vmul.f32 %v309_v47, %v176_v33  ;;  %v388_v60 = vadd.f32 %v356_v49, %v1183_v34  ;;  %v514_v19 = vmul.f32 %v482_v23, %v258_v2 }
  0xce   :  { %v178_v62 = vpop.f32.mrf.mxu0  ;;  %v528_v63 = vpack.c.bf16 %v499_v52, %v498_v51  ;;  %v260_v2 = vmul.f32 0.5, %v1183_v34 }
  0xcf   :  { %v856_v1 = vpop.eup %855  ;;  %v293_v35 = vmul.f32 0.044715, %v1195_v56  ;;  %v1200_v39 = vadd.f32 %v178_v62, %v1107_v54  ;;  %v373_v0 = vadd.f32 %v341_v58, %v176_v33  ;;  %v420_v14 = vmul.f32 0.7978846, %v388_v60 }
  0xd0   :  { %807 = vmatmul.msk.bf16.gmra.mxu1 %vm559_vm1, %v528_v63  ;;  %v483_v6 = vadd.f32 1.0, %v856_v1 }
  0xd1   :  { %v325_v7 = vmul.f32 %v293_v35, %v1195_v56  ;;  %v278_v8 = vmul.f32 0.044715, %v1200_v39  ;;  %v405_v9 = vmul.f32 0.7978846, %v373_v0  ;;  %v858_v29 = vpop.eup %857 }
  0xd2   :  { %v515_v20 = vmul.f32 %v483_v6, %v259_v3  ;;  %v468_v38 = vadd.f32 1.0, %v858_v29  ;;  %v261_v3 = vmul.f32 0.5, %v1195_v56 }
  0xd3   :  { %v310_v21 = vmul.f32 %v278_v8, %v1200_v39  ;;  %859 = vtanh.f32 %v405_v9  ;;  %v357_v24 = vmul.f32 %v325_v7, %v1195_v56 }
  0xd4   :  { %v218_v25 = vpop.f32.mrf.mxu2  ;;  %v536_v26 = vpack.c.bf16 %v515_v20, %v514_v19  ;;  %861 = vtanh.f32 %v420_v14  ;;  %v500_v51 = vmul.f32 %v468_v38, %v244_v43  ;;  %v246_v43 = vmul.f32 0.5, %v1200_v39 }
  0xd5   :  { %v1210_v30 = vadd.f32 %v218_v25, %v1107_v54  ;;  %v389_v55 = vadd.f32 %v357_v24, %v1195_v56  ;;  %v342_v59 = vmul.f32 %v310_v21, %v1200_v39 }
  0xd6   :  { %v180_v31 = vpop.f32.mrf.mxu0  ;;  %815 = vmatmul.msk.bf16.gmra.mxu3 %vm559_vm1, %v536_v26 }
  0xd7   :  { %v294_v61 = vmul.f32 0.044715, %v1210_v30  ;;  %v181_v15 = vadd.f32 %v180_v31, %v1107_v54  ;;  %v421_v36 = vmul.f32 0.7978846, %v389_v55  ;;  %v374_v37 = vadd.f32 %v342_v59, %v1200_v39 }
  0xd9   :  { %v860_v40 = vpop.eup %859  ;;  %v326_v41 = vmul.f32 %v294_v61, %v1210_v30  ;;  %v279_v42 = vmul.f32 0.044715, %v181_v15  ;;  %863 = vtanh.f32 %v421_v36  ;;  %v406_v48 = vmul.f32 0.7978846, %v374_v37 }
  0xda   :  { %v469_v45 = vadd.f32 1.0, %v860_v40  ;;  %v862_v46 = vpop.eup %861 }
  0xdb   :  { %v311_v47 = vmul.f32 %v279_v42, %v181_v15  ;;  %v358_v49 = vmul.f32 %v326_v41, %v1210_v30  ;;  %v484_v1 = vadd.f32 1.0, %v862_v46  ;;  %865 = vtanh.f32 %v406_v48 }
  0xdc   :  { %v220_v50 = vpop.f32.mrf.mxu2  ;;  %v501_v52 = vmul.f32 %v469_v45, %v245_v44  ;;  %v247_v44 = vmul.f32 0.5, %v181_v15 }
  0xdd   :  { %v1222_v58 = vadd.f32 %v220_v50, %v1107_v54  ;;  %v343_v60 = vmul.f32 %v311_v47, %v181_v15  ;;  %v390_v62 = vadd.f32 %v358_v49, %v1210_v30  ;;  %v516_v19 = vmul.f32 %v484_v1, %v260_v2 }
  0xde   :  { %v183_v63 = vpop.f32.mrf.mxu0  ;;  %v529_v23 = vpack.c.bf16 %v501_v52, %v500_v51  ;;  %v262_v2 = vmul.f32 0.5, %v1210_v30 }
  0xdf   :  { %v864_v57 = vpop.eup %863  ;;  %v295_v33 = vmul.f32 0.044715, %v1222_v58  ;;  %v1227_v35 = vadd.f32 %v183_v63, %v1107_v54  ;;  %v375_v0 = vadd.f32 %v343_v60, %v181_v15  ;;  %v422_v14 = vmul.f32 0.7978846, %v390_v62 }
  0xe0   :  { %808 = vmatmul.msk.bf16.gmra.mxu1 %vm559_vm1, %v529_v23  ;;  %v485_v6 = vadd.f32 1.0, %v864_v57 }
  0xe1   :  { %v327_v7 = vmul.f32 %v295_v33, %v1222_v58  ;;  %v280_v8 = vmul.f32 0.044715, %v1227_v35  ;;  %v407_v9 = vmul.f32 0.7978846, %v375_v0  ;;  %v866_v29 = vpop.eup %865 }
  0xe2   :  { %v517_v20 = vmul.f32 %v485_v6, %v261_v3  ;;  %v470_v38 = vadd.f32 1.0, %v866_v29  ;;  %v263_v3 = vmul.f32 0.5, %v1222_v58 }
  0xe3   :  { %v312_v21 = vmul.f32 %v280_v8, %v1227_v35  ;;  %867 = vtanh.f32 %v407_v9  ;;  %v359_v24 = vmul.f32 %v327_v7, %v1222_v58 }
  0xe4   :  { %v223_v25 = vpop.f32.mrf.mxu2  ;;  %v537_v26 = vpack.c.bf16 %v517_v20, %v516_v19  ;;  %869 = vtanh.f32 %v422_v14  ;;  %v502_v51 = vmul.f32 %v470_v38, %v246_v43  ;;  %v248_v43 = vmul.f32 0.5, %v1227_v35 }
  0xe5   :  { %v1237_v34 = vadd.f32 %v223_v25, %v1107_v54  ;;  %v391_v56 = vadd.f32 %v359_v24, %v1222_v58  ;;  %v344_v55 = vmul.f32 %v312_v21, %v1227_v35 }
  0xe6   :  { %v185_v59 = vpop.f32.mrf.mxu0  ;;  %816 = vmatmul.msk.bf16.gmra.mxu3 %vm559_vm1, %v537_v26 }
  0xe7   :  { %v296_v31 = vmul.f32 0.044715, %v1237_v34  ;;  %v186_v61 = vadd.f32 %v185_v59, %v1107_v54  ;;  %v423_v36 = vmul.f32 0.7978846, %v391_v56  ;;  %v376_v37 = vadd.f32 %v344_v55, %v1227_v35 }
  0xe9   :  { %v868_v40 = vpop.eup %867  ;;  %v328_v41 = vmul.f32 %v296_v31, %v1237_v34  ;;  %v281_v42 = vmul.f32 0.044715, %v186_v61  ;;  %871 = vtanh.f32 %v423_v36  ;;  %v408_v48 = vmul.f32 0.7978846, %v376_v37 }
  0xea   :  { %v471_v45 = vadd.f32 1.0, %v868_v40  ;;  %v870_v46 = vpop.eup %869 }
  0xeb   :  { %v313_v47 = vmul.f32 %v281_v42, %v186_v61  ;;  %v360_v49 = vmul.f32 %v328_v41, %v1237_v34  ;;  %v486_v57 = vadd.f32 1.0, %v870_v46  ;;  %873 = vtanh.f32 %v408_v48 }
  0xec   :  { %v225_v50 = vpop.f32.mrf.mxu2  ;;  %v503_v52 = vmul.f32 %v471_v45, %v247_v44  ;;  %v249_v44 = vmul.f32 0.5, %v186_v61 }
  0xed   :  { %v1249_v60 = vadd.f32 %v225_v50, %v1107_v54  ;;  %v345_v62 = vmul.f32 %v313_v47, %v186_v61  ;;  %v392_v63 = vadd.f32 %v360_v49, %v1237_v34  ;;  %v518_v19 = vmul.f32 %v486_v57, %v262_v2 }
  0xee   :  { %v188_v23 = vpop.f32.mrf.mxu0  ;;  %v530_v1 = vpack.c.bf16 %v503_v52, %v502_v51  ;;  %v264_v2 = vmul.f32 0.5, %v1237_v34 }
  0xef   :  { %v872_v39 = vpop.eup %871  ;;  %v297_v15 = vmul.f32 0.044715, %v1249_v60  ;;  %v1254_v33 = vadd.f32 %v188_v23, %v1107_v54  ;;  %v377_v0 = vadd.f32 %v345_v62, %v186_v61  ;;  %v424_v14 = vmul.f32 0.7978846, %v392_v63 }
  0xf0   :  { %809 = vmatmul.msk.bf16.gmra.mxu1 %vm559_vm1, %v530_v1  ;;  %v487_v6 = vadd.f32 1.0, %v872_v39 }
  0xf1   :  { %v329_v7 = vmul.f32 %v297_v15, %v1249_v60  ;;  %v282_v8 = vmul.f32 0.044715, %v1254_v33  ;;  %v409_v9 = vmul.f32 0.7978846, %v377_v0  ;;  %v874_v29 = vpop.eup %873 }
  0xf2   :  { %v519_v20 = vmul.f32 %v487_v6, %v263_v3  ;;  %v472_v38 = vadd.f32 1.0, %v874_v29  ;;  %v265_v3 = vmul.f32 0.5, %v1249_v60 }
  0xf3   :  { %v314_v21 = vmul.f32 %v282_v8, %v1254_v33  ;;  %875 = vtanh.f32 %v409_v9  ;;  %v361_v24 = vmul.f32 %v329_v7, %v1249_v60 }
  0xf4   :  { %v228_v25 = vpop.f32.mrf.mxu2  ;;  %v538_v26 = vpack.c.bf16 %v519_v20, %v518_v19  ;;  %877 = vtanh.f32 %v424_v14  ;;  %v504_v51 = vmul.f32 %v472_v38, %v248_v43  ;;  %v250_v43 = vmul.f32 0.5, %v1254_v33 }
  0xf5   :  { %v1264_v30 = vadd.f32 %v228_v25, %v1107_v54  ;;  %v393_v58 = vadd.f32 %v361_v24, %v1249_v60  ;;  %v346_v56 = vmul.f32 %v314_v21, %v1254_v33 }
  0xf6   :  { %v190_v55 = vpop.f32.mrf.mxu0  ;;  %817 = vmatmul.msk.bf16.gmra.mxu3 %vm559_vm1, %v538_v26 }
  0xf7   :  { %v298_v59 = vmul.f32 0.044715, %v1264_v30  ;;  %v191_v31 = vadd.f32 %v190_v55, %v1107_v54  ;;  %v425_v36 = vmul.f32 0.7978846, %v393_v58  ;;  %v378_v37 = vadd.f32 %v346_v56, %v1254_v33 }
  0xf9   :  { %v876_v40 = vpop.eup %875  ;;  %v330_v41 = vmul.f32 %v298_v59, %v1264_v30  ;;  %v283_v42 = vmul.f32 0.044715, %v191_v31  ;;  %879 = vtanh.f32 %v425_v36  ;;  %v410_v48 = vmul.f32 0.7978846, %v378_v37 }
  0xfa   :  { %v473_v45 = vadd.f32 1.0, %v876_v40  ;;  %v878_v46 = vpop.eup %877 }
  0xfb   :  { %v315_v47 = vmul.f32 %v283_v42, %v191_v31  ;;  %v362_v49 = vmul.f32 %v330_v41, %v1264_v30  ;;  %v488_v39 = vadd.f32 1.0, %v878_v46  ;;  %881 = vtanh.f32 %v410_v48 }
  0xfc   :  { %v230_v50 = vpop.f32.mrf.mxu2  ;;  %v505_v52 = vmul.f32 %v473_v45, %v249_v44  ;;  %v251_v44 = vmul.f32 0.5, %v191_v31 }
  0xfd   :  { %v231_v62 = vadd.f32 %v230_v50, %v1107_v54  ;;  %v347_v63 = vmul.f32 %v315_v47, %v191_v31  ;;  %v394_v23 = vadd.f32 %v362_v49, %v1264_v30  ;;  %v520_v19 = vmul.f32 %v488_v39, %v264_v2 }
  0xfe   :  { %v193_v1 = vpop.f32.mrf.mxu0  ;;  %v531_v57 = vpack.c.bf16 %v505_v52, %v504_v51 }
  0xff   :  { %v880_v15 = vpop.eup %879  ;;  %v299_v35 = vmul.f32 0.044715, %v231_v62  ;;  %v1278_v61 = vadd.f32 %v193_v1, %v1107_v54  ;;  %v379_v0 = vadd.f32 %v347_v63, %v191_v31  ;;  %v426_v14 = vmul.f32 0.7978846, %v394_v23 }
 0x100   :  { %810 = vmatmul.msk.bf16.gmra.mxu1 %vm559_vm1, %v531_v57  ;;  %v489_v6 = vadd.f32 1.0, %v880_v15  ;;  %v266_v31 = vmul.f32 0.5, %v1264_v30 }
 0x101   :  { %v331_v7 = vmul.f32 %v299_v35, %v231_v62  ;;  %v284_v8 = vmul.f32 0.044715, %v1278_v61  ;;  %v411_v9 = vmul.f32 0.7978846, %v379_v0  ;;  %v882_v29 = vpop.eup %881  ;;  %v267_v0 = vmul.f32 0.5, %v231_v62 }
 0x102   :  { %v521_v20 = vmul.f32 %v489_v6, %v265_v3  ;;  %v474_v38 = vadd.f32 1.0, %v882_v29  ;;  %v252_v30 = vmul.f32 0.5, %v1278_v61 }
 0x103   :  { %v316_v21 = vmul.f32 %v284_v8, %v1278_v61  ;;  %883 = vtanh.f32 %v411_v9  ;;  %v363_v24 = vmul.f32 %v331_v7, %v231_v62 }
 0x104   :  { %v233_v25 = vpop.f32.mrf.mxu2  ;;  %v539_v26 = vpack.c.bf16 %v521_v20, %v520_v19  ;;  %885 = vtanh.f32 %v426_v14  ;;  %v506_v51 = vmul.f32 %v474_v38, %v250_v43 }
 0x105   :  { %v1286_v58 = vadd.f32 %v233_v25, %v1107_v54  ;;  %v395_v34 = vadd.f32 %v363_v24, %v231_v62  ;;  %v348_v60 = vmul.f32 %v316_v21, %v1278_v61 }
 0x106   :  { %v195_v56 = vpop.f32.mrf.mxu0  ;;  %818 = vmatmul.msk.bf16.gmra.mxu3 %vm559_vm1, %v539_v26 }
 0x107   :  { %v300_v55 = vmul.f32 0.044715, %v1286_v58  ;;  %v196_v59 = vadd.f32 %v195_v56, %v1107_v54  ;;  %v427_v36 = vmul.f32 0.7978846, %v395_v34  ;;  %v380_v37 = vadd.f32 %v348_v60, %v1278_v61 }
 0x108   :  { %v1306_v61 = vperm.slane %v1104_v53, 1 }
 0x109   :  { %v884_v40 = vpop.eup %883  ;;  %v332_v41 = vmul.f32 %v300_v55, %v1286_v58  ;;  %v285_v42 = vmul.f32 0.044715, %v196_v59  ;;  %887 = vtanh.f32 %v427_v36  ;;  %v412_v48 = vmul.f32 0.7978846, %v380_v37 }
 0x10a   :  { %v475_v45 = vadd.f32 1.0, %v884_v40  ;;  %v886_v46 = vpop.eup %885  ;;  %v253_v62 = vmul.f32 0.5, %v196_v59  ;;  %v268_v37 = vmul.f32 0.5, %v1286_v58 }
 0x10b   :  { %v317_v47 = vmul.f32 %v285_v42, %v196_v59  ;;  %v364_v49 = vmul.f32 %v332_v41, %v1286_v58  ;;  %v490_v39 = vadd.f32 1.0, %v886_v46  ;;  %889 = vtanh.f32 %v412_v48 }
 0x10c   :  { %v235_v50 = vpop.f32.mrf.mxu2  ;;  %v507_v52 = vmul.f32 %v475_v45, %v251_v44 }
 0x10d   :  { %v236_v63 = vadd.f32 %v235_v50, %v1107_v54  ;;  %v349_v23 = vmul.f32 %v317_v47, %v196_v59  ;;  %v396_v1 = vadd.f32 %v364_v49, %v1286_v58  ;;  %v522_v8 = vmul.f32 %v490_v39, %v266_v31 }
 0x10e   :  { %v532_v57 = vpack.c.bf16 %v507_v52, %v506_v51 }
 0x10f   :  { %v888_v15 = vpop.eup %887  ;;  %v301_v35 = vmul.f32 0.044715, %v236_v63  ;;  %v381_v33 = vadd.f32 %v349_v23, %v196_v59  ;;  %v428_v7 = vmul.f32 0.7978846, %v396_v1  ;;  %v269_v38 = vmul.f32 0.5, %v236_v63 }
 0x110   :  { %811 = vmatmul.msk.bf16.gmra.mxu1 %vm559_vm1, %v532_v57  ;;  %v491_v2 = vadd.f32 1.0, %v888_v15 }
 0x111   :  { %v333_v3 = vmul.f32 %v301_v35, %v236_v63  ;;  %v413_v6 = vmul.f32 0.7978846, %v381_v33  ;;  %v890_v19 = vpop.eup %889 }
 0x112   :  { %v523_v54 = vmul.f32 %v491_v2, %v267_v0  ;;  %v476_v24 = vadd.f32 1.0, %v890_v19 }
 0x113   :  { %891 = vtanh.f32 %v413_v6  ;;  %v365_v9 = vmul.f32 %v333_v3, %v236_v63  ;;  %v898_v3 = vld [vmem:[%s1549_s0 + $0x38] sm:$0xff] }
 0x114   :  { %v540_v14 = vpack.c.bf16 %v523_v54, %v522_v8  ;;  %893 = vtanh.f32 %v428_v7  ;;  %v508_v34 = vmul.f32 %v476_v24, %v252_v30  ;;  %v899_v54 = vld [vmem:[%s1549_s0 + $0xb0] sm:$0xff]  ;;  %v901_v30 = vld [vmem:[%s1549_s0 + $0xb8] sm:$0xff] }
 0x115   :  { %v397_v20 = vadd.f32 %v365_v9, %v236_v63 }
 0x116   :  { %819 = vmatmul.msk.bf16.gmra.mxu3 %vm559_vm1, %v540_v14 }
 0x117   :  { %v429_v21 = vmul.f32 0.7978846, %v397_v20  ;;  %v900_v20 = vld [vmem:[%s1549_s0 + $0x40] sm:$0xff] }
 0x119   :  { %v892_v25 = vpop.eup %891  ;;  %895 = vtanh.f32 %v429_v21 }
 0x11a   :  { %v477_v26 = vadd.f32 1.0, %v892_v25  ;;  %v894_v29 = vpop.eup %893 }
 0x11b   :  { %v492_v55 = vadd.f32 1.0, %v894_v29 }
 0x11c   :  { %v509_v60 = vmul.f32 %v477_v26, %v253_v62 }
 0x11d   :  { %v524_v41 = vmul.f32 %v492_v55, %v268_v37 }
 0x11e   :  { %v533_v56 = vpack.c.bf16 %v509_v60, %v508_v34  ;;  %v902_v34 = vld [vmem:[%s1549_s0 + $0x48] sm:$0xff] }
 0x11f   :  { %v896_v36 = vpop.eup %895 }
 0x120   :  { %812 = vmatmul.msk.bf16.gmra.mxu1 %vm559_vm1, %v533_v56  ;;  %v493_v40 = vadd.f32 1.0, %v896_v36  ;;  %v903_v36 = vld [vmem:[%s1549_s0 + $0xc0] sm:$0xff] }
 0x122   :  { %v525_v42 = vmul.f32 %v493_v40, %v269_v38 }
 0x124   :  { %v541_v43 = vpack.c.bf16 %v525_v42, %v524_v41  ;;  %v904_v41 = vld [vmem:[%s1549_s0 + $0x50] sm:$0xff] }
 0x126   :  { %820 = vmatmul.msk.bf16.gmra.mxu3 %vm559_vm1, %v541_v43 }
 0x12d   :  { %v617_v59 = vpop.f32.mrf.mxu1 }
 0x12e   :  { %v618_v44 = vadd.f32 %v617_v59, %v1306_v61 }
 0x130   :  { %v697_v45 = vadd.f32 %v618_v44, %v959_v4  ;;  %813 = vmatmul.msk.bf16.gmra.mxu1 %vm559_vm1, %v534_v32  ;;  %v905_v44 = vld [vmem:[%s1549_s0 + $0xc8] sm:$0xff] }
 0x132   :  { %729 = vst.msk [vmem:[%s1552_s4] sm:$0xff] %vm559_vm1, %v697_v45 }
 0x135   :  { %v619_v58 = vpop.f32.mrf.mxu1 }
 0x136   :  { %v620_v46 = vadd.f32 %v619_v58, %v1306_v61 }
 0x138   :  { %v698_v53 = vadd.f32 %v620_v46, %v964_v5 }
 0x13a   :  { %730 = vst.msk [vmem:[%s1552_s4 + $0x8] sm:$0xff] %vm559_vm1, %v698_v53  ;;  %v906_v53 = vld [vmem:[%s1549_s0 + $0x58] sm:$0xff] }
 0x13d   :  { %v622_v4 = vpop.f32.mrf.mxu1 }
 0x13e   :  { %v623_v27 = vadd.f32 %v622_v4, %v1306_v61 }
 0x140   :  { %v699_v28 = vadd.f32 %v623_v27, %v979_v10 }
 0x142   :  { %731 = vst.msk [vmem:[%s1552_s4 + $0x10] sm:$0xff] %vm559_vm1, %v699_v28 }
 0x145   :  { %v624_v32 = vpop.f32.mrf.mxu1 }
 0x146   :  { %v625_v47 = vadd.f32 %v624_v32, %v1306_v61  ;;  %v907_v32 = vld [vmem:[%s1549_s0 + $0xd0] sm:$0xff] }
 0x148   :  { %v700_v5 = vadd.f32 %v625_v47, %v984_v11 }
 0x149   :  { %v662_v48 = vpop.f32.mrf.mxu3 }
 0x14a   :  { %732 = vst.msk [vmem:[%s1552_s4 + $0x18] sm:$0xff] %vm559_vm1, %v700_v5  ;;  %v663_v49 = vadd.f32 %v662_v48, %v1306_v61 }
 0x14c   :  { %v715_v10 = vadd.f32 %v663_v49, %v989_v12  ;;  %v908_v49 = vld [vmem:[%s1549_s0 + $0x60] sm:$0xff] }
 0x14d   :  { %v627_v50 = vpop.f32.mrf.mxu1 }
 0x14e   :  { %747 = vst.msk [vmem:[%s1552_s4 + $0x90] sm:$0xff] %vm559_vm1, %v715_v10  ;;  %v628_v51 = vadd.f32 %v627_v50, %v1306_v61 }
 0x150   :  { %v701_v11 = vadd.f32 %v628_v51, %v1005_v16 }
 0x151   :  { %v664_v52 = vpop.f32.mrf.mxu3 }
 0x152   :  { %733 = vst.msk [vmem:[%s1552_s4 + $0x20] sm:$0xff] %vm559_vm1, %v701_v11  ;;  %v665_v63 = vadd.f32 %v664_v52, %v1306_v61  ;;  %v909_v11 = vld [vmem:[%s1549_s0 + $0xd8] sm:$0xff] }
 0x154   :  { %v716_v12 = vadd.f32 %v665_v63, %v994_v13 }
 0x155   :  { %v629_v23 = vpop.f32.mrf.mxu1 }
 0x156   :  { %748 = vst.msk [vmem:[%s1552_s4 + $0x98] sm:$0xff] %vm559_vm1, %v716_v12  ;;  %v630_v1 = vadd.f32 %v629_v23, %v1306_v61  ;;  %v910_v23 = vld [vmem:[%s1549_s0 + $0x68] sm:$0xff] }
 0x158   :  { %v702_v16 = vadd.f32 %v630_v1, %v1010_v17 }
 0x159   :  { %v667_v57 = vpop.f32.mrf.mxu3 }
 0x15a   :  { %734 = vst.msk [vmem:[%s1552_s4 + $0x28] sm:$0xff] %vm559_vm1, %v702_v16  ;;  %v668_v39 = vadd.f32 %v667_v57, %v1306_v61 }
 0x15c   :  { %v717_v13 = vadd.f32 %v668_v39, %v1015_v18  ;;  %v897_v18 = vld [vmem:[%s1549_s0 + $0xa8] sm:$0xff]  ;;  %v911_v39 = vld [vmem:[%s1549_s0 + $0xe0] sm:$0xff] }
 0x15d   :  { %v632_v15 = vpop.f32.mrf.mxu1 }
 0x15e   :  { %749 = vst.msk [vmem:[%s1552_s4 + $0xa0] sm:$0xff] %vm559_vm1, %v717_v13  ;;  %v633_v35 = vadd.f32 %v632_v15, %v1306_v61 }
 0x160   :  { %v703_v17 = vadd.f32 %v633_v35, %v1028_v22 }
 0x161   :  { %v669_v33 = vpop.f32.mrf.mxu3 }
 0x162   :  { %735 = vst.msk [vmem:[%s1552_s4 + $0x30] sm:$0xff] %vm559_vm1, %v703_v17  ;;  %v670_v31 = vadd.f32 %v669_v33, %v1306_v61  ;;  %v912_v17 = vld [vmem:[%s1549_s0 + $0x70] sm:$0xff] }
 0x164   :  { %v718_v0 = vadd.f32 %v897_v18, %v670_v31 }
 0x165   :  { %v634_v2 = vpop.f32.mrf.mxu1 }
 0x166   :  { %750 = vst.msk [vmem:[%s1552_s4 + $0xa8] sm:$0xff] %vm559_vm1, %v718_v0  ;;  %v635_v22 = vadd.f32 %v634_v2, %v1306_v61  ;;  %v913_v0 = vld [vmem:[%s1549_s0 + $0xe8] sm:$0xff] }
 0x168   :  { %v704_v6 = vadd.f32 %v898_v3, %v635_v22 }
 0x169   :  { %v672_v7 = vpop.f32.mrf.mxu3 }
 0x16a   :  { %736 = vst.msk [vmem:[%s1552_s4 + $0x38] sm:$0xff] %vm559_vm1, %v704_v6  ;;  %v673_v8 = vadd.f32 %v672_v7, %v1306_v61  ;;  %v914_v6 = vld [vmem:[%s1549_s0 + $0x78] sm:$0xff] }
 0x16c   :  { %v719_v9 = vadd.f32 %v899_v54, %v673_v8 }
 0x16d   :  { %v637_v14 = vpop.f32.mrf.mxu1 }
 0x16e   :  { %751 = vst.msk [vmem:[%s1552_s4 + $0xb0] sm:$0xff] %vm559_vm1, %v719_v9  ;;  %v638_v19 = vadd.f32 %v637_v14, %v1306_v61  ;;  %v915_v9 = vld [vmem:[%s1549_s0 + $0xf0] sm:$0xff] }
 0x170   :  { %v705_v21 = vadd.f32 %v900_v20, %v638_v19 }
 0x171   :  { %v674_v24 = vpop.f32.mrf.mxu3 }
 0x172   :  { %737 = vst.msk [vmem:[%s1552_s4 + $0x40] sm:$0xff] %vm559_vm1, %v705_v21  ;;  %v675_v25 = vadd.f32 %v674_v24, %v1306_v61  ;;  %v916_v21 = vld [vmem:[%s1549_s0 + $0x80] sm:$0xff] }
 0x174   :  { %v720_v62 = vadd.f32 %v901_v30, %v675_v25 }
 0x175   :  { %v639_v26 = vpop.f32.mrf.mxu1 }
 0x176   :  { %752 = vst.msk [vmem:[%s1552_s4 + $0xb8] sm:$0xff] %vm559_vm1, %v720_v62  ;;  %v640_v29 = vadd.f32 %v639_v26, %v1306_v61  ;;  %v917_v62 = vld [vmem:[%s1549_s0 + $0xf8] sm:$0xff] }
 0x178   :  { %v706_v60 = vadd.f32 %v902_v34, %v640_v29 }
 0x179   :  { %v677_v56 = vpop.f32.mrf.mxu3 }
 0x17a   :  { %738 = vst.msk [vmem:[%s1552_s4 + $0x48] sm:$0xff] %vm559_vm1, %v706_v60  ;;  %v678_v55 = vadd.f32 %v677_v56, %v1306_v61  ;;  %v918_v60 = vld [vmem:[%s1549_s0 + $0x88] sm:$0xff] }
 0x17c   :  { %v721_v37 = vadd.f32 %v903_v36, %v678_v55 }
 0x17d   :  { %v642_v38 = vpop.f32.mrf.mxu1 }
 0x17e   :  { %753 = vst.msk [vmem:[%s1552_s4 + $0xc0] sm:$0xff] %vm559_vm1, %v721_v37  ;;  %v643_v40 = vadd.f32 %v642_v38, %v1306_v61 }
 0x180   :  { %v707_v42 = vadd.f32 %v904_v41, %v643_v40 }
 0x181   :  { %v679_v43 = vpop.f32.mrf.mxu3 }
 0x182   :  { %739 = vst.msk [vmem:[%s1552_s4 + $0x50] sm:$0xff] %vm559_vm1, %v707_v42  ;;  %v680_v59 = vadd.f32 %v679_v43, %v1306_v61 }
 0x184   :  { %v722_v45 = vadd.f32 %v905_v44, %v680_v59 }
 0x185   :  { %v644_v58 = vpop.f32.mrf.mxu1 }
 0x186   :  { %754 = vst.msk [vmem:[%s1552_s4 + $0xc8] sm:$0xff] %vm559_vm1, %v722_v45  ;;  %v645_v46 = vadd.f32 %v644_v58, %v1306_v61 }
 0x188   :  { %v708_v4 = vadd.f32 %v906_v53, %v645_v46 }
 0x189   :  { %v682_v27 = vpop.f32.mrf.mxu3 }
 0x18a   :  { %740 = vst.msk [vmem:[%s1552_s4 + $0x58] sm:$0xff] %vm559_vm1, %v708_v4  ;;  %v683_v28 = vadd.f32 %v682_v27, %v1306_v61 }
 0x18c   :  { %v723_v47 = vadd.f32 %v907_v32, %v683_v28 }
 0x18d   :  { %v647_v5 = vpop.f32.mrf.mxu1 }
 0x18e   :  { %755 = vst.msk [vmem:[%s1552_s4 + $0xd0] sm:$0xff] %vm559_vm1, %v723_v47  ;;  %v648_v48 = vadd.f32 %v647_v5, %v1306_v61 }
 0x190   :  { %v709_v10 = vadd.f32 %v908_v49, %v648_v48 }
 0x191   :  { %v684_v50 = vpop.f32.mrf.mxu3 }
 0x192   :  { %741 = vst.msk [vmem:[%s1552_s4 + $0x60] sm:$0xff] %vm559_vm1, %v709_v10  ;;  %v685_v51 = vadd.f32 %v684_v50, %v1306_v61 }
 0x194   :  { %v724_v52 = vadd.f32 %v909_v11, %v685_v51 }
 0x195   :  { %v649_v63 = vpop.f32.mrf.mxu1 }
 0x196   :  { %756 = vst.msk [vmem:[%s1552_s4 + $0xd8] sm:$0xff] %vm559_vm1, %v724_v52  ;;  %v650_v12 = vadd.f32 %v649_v63, %v1306_v61 }
 0x198   :  { %v710_v1 = vadd.f32 %v910_v23, %v650_v12 }
 0x199   :  { %v687_v16 = vpop.f32.mrf.mxu3 }
 0x19a   :  { %742 = vst.msk [vmem:[%s1552_s4 + $0x68] sm:$0xff] %vm559_vm1, %v710_v1  ;;  %v688_v57 = vadd.f32 %v687_v16, %v1306_v61 }
 0x19c   :  { %v725_v13 = vadd.f32 %v911_v39, %v688_v57 }
 0x19d   :  { %v652_v15 = vpop.f32.mrf.mxu1 }
 0x19e   :  { %757 = vst.msk [vmem:[%s1552_s4 + $0xe0] sm:$0xff] %vm559_vm1, %v725_v13  ;;  %v653_v35 = vadd.f32 %v652_v15, %v1306_v61 }
 0x1a0   :  { %v711_v33 = vadd.f32 %v912_v17, %v653_v35 }
 0x1a1   :  { %v689_v31 = vpop.f32.mrf.mxu3 }
 0x1a2   :  { %743 = vst.msk [vmem:[%s1552_s4 + $0x70] sm:$0xff] %vm559_vm1, %v711_v33  ;;  %v690_v18 = vadd.f32 %v689_v31, %v1306_v61 }
 0x1a4   :  { %v726_v2 = vadd.f32 %v913_v0, %v690_v18 }
 0x1a5   :  { %v654_v22 = vpop.f32.mrf.mxu1 }
 0x1a6   :  { %758 = vst.msk [vmem:[%s1552_s4 + $0xe8] sm:$0xff] %vm559_vm1, %v726_v2  ;;  %v655_v3 = vadd.f32 %v654_v22, %v1306_v61 }
 0x1a8   :  { %v712_v7 = vadd.f32 %v914_v6, %v655_v3 }
 0x1a9   :  { %v692_v8 = vpop.f32.mrf.mxu3 }
 0x1aa   :  { %744 = vst.msk [vmem:[%s1552_s4 + $0x78] sm:$0xff] %vm559_vm1, %v712_v7  ;;  %v693_v54 = vadd.f32 %v692_v8, %v1306_v61 }
 0x1ac   :  { %v727_v14 = vadd.f32 %v915_v9, %v693_v54 }
 0x1ad   :  { %v657_v19 = vpop.f32.mrf.mxu1 }
 0x1ae   :  { %759 = vst.msk [vmem:[%s1552_s4 + $0xf0] sm:$0xff] %vm559_vm1, %v727_v14  ;;  %v658_v20 = vadd.f32 %v657_v19, %v1306_v61 }
 0x1b0   :  { %v713_v24 = vadd.f32 %v916_v21, %v658_v20 }
 0x1b1   :  { %v694_v25 = vpop.f32.mrf.mxu3 }
 0x1b2   :  { %745 = vst.msk [vmem:[%s1552_s4 + $0x80] sm:$0xff] %vm559_vm1, %v713_v24  ;;  %v695_v30 = vadd.f32 %v694_v25, %v1306_v61 }
 0x1b4   :  { %v728_v26 = vadd.f32 %v917_v62, %v695_v30 }
 0x1b5   :  { %v659_v29 = vpop.f32.mrf.mxu1 }
 0x1b6   :  { %760 = vst.msk [vmem:[%s1552_s4 + $0xf8] sm:$0xff] %vm559_vm1, %v728_v26  ;;  %v660_v34 = vadd.f32 %v659_v29, %v1306_v61 }
 0x1b8   :  { %v714_v56 = vadd.f32 %v918_v60, %v660_v34 }
 0x1ba   :  { %746 = vst.msk [vmem:[%s1552_s4 + $0x88] sm:$0xff] %vm559_vm1, %v714_v56 }

// kernel: pino_graph_forward.9
= control target key start
LH: loop header
LB: loop body
LE: loop exit
PB: predicated region body
PF: predicated region fallthrough
CT: control target
= control target key end

     0   :  { %vm405_vm0 = vcmask 1041408   ;;  %vm230_vm1 = vcmask 556032   ;;  %vm1827_vm2 = vcmask 261120   ;;  %s6623_s1 = inlined_call_operand.vmem [shape: bf16[68,32], index: 1, kind: input, shape index: {}]   ;;  %s6624_s0 = inlined_call_operand.vmem [shape: f32[928,68], index: 0, kind: input, shape index: {}]   ;;  %s6625_s2 = inlined_call_operand.vmem [shape: bf16[32,32], index: 2, kind: input, shape index: {}]   ;;  %s6626_s3 = inlined_call_operand.vmem [shape: f32[2,32], index: 3, kind: input, shape index: {}]   ;;  %s6627_s4 = inlined_call_operand.vmem [shape: f32[928,32], index: 4, kind: output, shape index: {}]  }
   0x1   :  { %v201_v0 = vld [vmem:[%s6623_s1 + $0x20] sm:$0x3]  ;;  %v3608_v4 = vld [vmem:[%s6623_s1 + $0x18] sm:$0xff]  ;;  %v3607_v5 = vld [vmem:[%s6623_s1 + $0x10] sm:$0xff] }
   0x2   :  { %v220_v1 = vunpack.c.l.b16 %v201_v0  ;;  %v3606_v6 = vld [vmem:[%s6623_s1 + $0x8] sm:$0xff]  ;;  %v3605_v7 = vld [vmem:[%s6623_s1] sm:$0xff]  ;;  %v77_v10 = vld [vmem:[%s6624_s0 + $0x1d0] sm:$0xff] }
   0x3   :  { %v19_v8 = vld [vmem:[%s6624_s0] sm:$0xff]  ;;  %v20_v9 = vld [vmem:[%s6624_s0 + $0x8] sm:$0xff]  ;;  %v78_v11 = vld [vmem:[%s6624_s0 + $0x1d8] sm:$0xff] }
   0x4   :  { %v225_v2 = vpack.c.b16 %v220_v1, %v220_v1  ;;  %v135_v12 = vpack.c.bf16 %v20_v9, %v19_v8  ;;  %v164_v13 = vpack.c.bf16 %v78_v11, %v77_v10  ;;  %v21_v14 = vld [vmem:[%s6624_s0 + $0x10] sm:$0xff]  ;;  %v22_v15 = vld [vmem:[%s6624_s0 + $0x18] sm:$0xff]  ;;  %v79_v16 = vld [vmem:[%s6624_s0 + $0x1e0] sm:$0xff] }
   0x5   :  { %v80_v17 = vld [vmem:[%s6624_s0 + $0x1e8] sm:$0xff]  ;;  %v136_v18 = vpack.c.bf16 %v22_v15, %v21_v14  ;;  %v23_v20 = vld [vmem:[%s6624_s0 + $0x20] sm:$0xff]  ;;  %v81_v22 = vld [vmem:[%s6624_s0 + $0x1f0] sm:$0xff] }
   0x6   :  { %v407_v3 = vsel %vm405_vm0, %v225_v2, 0  ;;  %v165_v19 = vpack.c.bf16 %v80_v17, %v79_v16  ;;  %v24_v21 = vld [vmem:[%s6624_s0 + $0x28] sm:$0xff]  ;;  %v82_v23 = vld [vmem:[%s6624_s0 + $0x1f8] sm:$0xff]  ;;  %v25_v26 = vld [vmem:[%s6624_s0 + $0x30] sm:$0xff] }
   0x7   :  { %412 = vmatpush.bf16.msra.mxu0 %v407_v3  ;;  %3611 = vmatpush.bf16.msra.mxu2 %v407_v3  ;;  %v137_v24 = vpack.c.bf16 %v24_v21, %v23_v20  ;;  %v166_v25 = vpack.c.bf16 %v82_v23, %v81_v22  ;;  %v26_v27 = vld [vmem:[%s6624_s0 + $0x38] sm:$0xff]  ;;  %v83_v28 = vld [vmem:[%s6624_s0 + $0x200] sm:$0xff]  ;;  %v84_v29 = vld [vmem:[%s6624_s0 + $0x208] sm:$0xff] }
   0x8   :  { %v138_v30 = vpack.c.bf16 %v26_v27, %v25_v26  ;;  %v167_v31 = vpack.c.bf16 %v84_v29, %v83_v28  ;;  %v27_v32 = vld [vmem:[%s6624_s0 + $0x40] sm:$0xff]  ;;  %v28_v33 = vld [vmem:[%s6624_s0 + $0x48] sm:$0xff]  ;;  %v85_v34 = vld [vmem:[%s6624_s0 + $0x210] sm:$0xff] }
   0x9   :  { %v86_v35 = vld [vmem:[%s6624_s0 + $0x218] sm:$0xff]  ;;  %v139_v36 = vpack.c.bf16 %v28_v33, %v27_v32  ;;  %v29_v38 = vld [vmem:[%s6624_s0 + $0x50] sm:$0xff]  ;;  %v87_v40 = vld [vmem:[%s6624_s0 + $0x220] sm:$0xff] }
   0xa   :  { %v168_v37 = vpack.c.bf16 %v86_v35, %v85_v34  ;;  %v30_v39 = vld [vmem:[%s6624_s0 + $0x58] sm:$0xff]  ;;  %v88_v41 = vld [vmem:[%s6624_s0 + $0x228] sm:$0xff]  ;;  %v31_v44 = vld [vmem:[%s6624_s0 + $0x60] sm:$0xff] }
   0xb   :  { %413 = vmatpush.bf16.msra.mxu0 %v3608_v4  ;;  %3612 = vmatpush.bf16.msra.mxu2 %v3608_v4  ;;  %v140_v42 = vpack.c.bf16 %v30_v39, %v29_v38  ;;  %v169_v43 = vpack.c.bf16 %v88_v41, %v87_v40  ;;  %v32_v45 = vld [vmem:[%s6624_s0 + $0x68] sm:$0xff]  ;;  %v89_v46 = vld [vmem:[%s6624_s0 + $0x230] sm:$0xff]  ;;  %v90_v47 = vld [vmem:[%s6624_s0 + $0x238] sm:$0xff] }
   0xc   :  { %v141_v48 = vpack.c.bf16 %v32_v45, %v31_v44  ;;  %v170_v49 = vpack.c.bf16 %v90_v47, %v89_v46  ;;  %v33_v50 = vld [vmem:[%s6624_s0 + $0x70] sm:$0xff]  ;;  %v34_v51 = vld [vmem:[%s6624_s0 + $0x78] sm:$0xff]  ;;  %v91_v52 = vld [vmem:[%s6624_s0 + $0x240] sm:$0xff] }
   0xd   :  { %v92_v53 = vld [vmem:[%s6624_s0 + $0x248] sm:$0xff]  ;;  %v142_v54 = vpack.c.bf16 %v34_v51, %v33_v50  ;;  %v18_v57 = vld [vmem:[%s6626_s3] sm:$0x3]  ;;  %v93_v60 = vld [vmem:[%s6624_s0 + $0x250] sm:$0xff] }
   0xe   :  { %v171_v55 = vpack.c.bf16 %v92_v53, %v91_v52  ;;  %v3610_v56 = vld [vmem:[%s6625_s2 + $0x8] sm:$0xff]  ;;  %v35_v58 = vld [vmem:[%s6624_s0 + $0x80] sm:$0xff]  ;;  %v94_v61 = vld [vmem:[%s6624_s0 + $0x258] sm:$0xff]  ;;  %v4253_v62 = vperm.slane %v18_v57, 0 }
   0xf   :  { %414 = vmatpush.bf16.msra.mxu0 %v3607_v5  ;;  %3613 = vmatpush.bf16.msra.mxu2 %v3607_v5  ;;  %v36_v59 = vld [vmem:[%s6624_s0 + $0x88] sm:$0xff]  ;;  %v3609_v63 = vld [vmem:[%s6625_s2] sm:$0xff]  ;;  %v172_v1 = vpack.c.bf16 %v94_v61, %v93_v60  ;;  %v97_v45 = vld [vmem:[%s6624_s0 + $0x270] sm:$0xff] }
  0x10   :  { %2008 = vmatpush.bf16.msra.mxu1 %v3610_v56  ;;  %3616 = vmatpush.bf16.msra.mxu3 %v3610_v56  ;;  %v143_v0 = vpack.c.bf16 %v36_v59, %v35_v58  ;;  %v95_v14 = vld [vmem:[%s6624_s0 + $0x260] sm:$0xff]  ;;  %v96_v15 = vld [vmem:[%s6624_s0 + $0x268] sm:$0xff]  ;;  %v98_v46 = vld [vmem:[%s6624_s0 + $0x278] sm:$0xff] }
  0x11   :  { %v173_v20 = vpack.c.bf16 %v96_v15, %v95_v14  ;;  %v39_v40 = vld [vmem:[%s6624_s0 + $0xa0] sm:$0xff]  ;;  %v40_v41 = vld [vmem:[%s6624_s0 + $0xa8] sm:$0xff] }
  0x12   :  { %v145_v53 = vpack.c.bf16 %v40_v41, %v39_v40 }
  0x13   :  { %415 = vmatpush.bf16.msra.mxu0 %v3606_v6  ;;  %3614 = vmatpush.bf16.msra.mxu2 %v3606_v6 }
  0x14   :  { %2009 = vmatpush.bf16.msra.mxu1 %v3609_v63  ;;  %3617 = vmatpush.bf16.msra.mxu3 %v3609_v63 }
  0x17   :  { %416 = vmatpush.bf16.msra.mxu0 %v3605_v7  ;;  %3615 = vmatpush.bf16.msra.mxu2 %v3605_v7 }
  0x1a   :  { %3481 = vmatmul.msk.bf16.vlgmr.msra.gmra.mxu0 %vm230_vm1, %v135_v12  ;;  %3510 = vmatmul.msk.bf16.vlgmr.msra.gmra.mxu2 %vm230_vm1, %v164_v13  ;;  %v37_v12 = vld [vmem:[%s6624_s0 + $0x90] sm:$0xff]  ;;  %v38_v13 = vld [vmem:[%s6624_s0 + $0x98] sm:$0xff] }
  0x2a   :  { %3482 = vmatmul.msk.bf16.gmra.mxu0 %vm230_vm1, %v136_v18  ;;  %3511 = vmatmul.msk.bf16.gmra.mxu2 %vm230_vm1, %v165_v19  ;;  %v144_v19 = vpack.c.bf16 %v38_v13, %v37_v12 }
  0x3a   :  { %3483 = vmatmul.msk.bf16.gmra.mxu0 %vm230_vm1, %v137_v24  ;;  %3512 = vmatmul.msk.bf16.gmra.mxu2 %vm230_vm1, %v166_v25 }
  0x4a   :  { %3484 = vmatmul.msk.bf16.gmra.mxu0 %vm230_vm1, %v138_v30  ;;  %3513 = vmatmul.msk.bf16.gmra.mxu2 %vm230_vm1, %v167_v31 }
  0x5a   :  { %3485 = vmatmul.msk.bf16.gmra.mxu0 %vm230_vm1, %v139_v36  ;;  %3514 = vmatmul.msk.bf16.gmra.mxu2 %vm230_vm1, %v168_v37 }
  0x6a   :  { %3486 = vmatmul.msk.bf16.gmra.mxu0 %vm230_vm1, %v140_v42  ;;  %3515 = vmatmul.msk.bf16.gmra.mxu2 %vm230_vm1, %v169_v43 }
  0x7a   :  { %3487 = vmatmul.msk.bf16.gmra.mxu0 %vm230_vm1, %v141_v48  ;;  %3516 = vmatmul.msk.bf16.gmra.mxu2 %vm230_vm1, %v170_v49 }
  0x8a   :  { %3488 = vmatmul.msk.bf16.gmra.mxu0 %vm230_vm1, %v142_v54  ;;  %3517 = vmatmul.msk.bf16.gmra.mxu2 %vm230_vm1, %v171_v55  ;;  %v174_v55 = vpack.c.bf16 %v98_v46, %v97_v45 }
  0x97   :  { %v418_v2 = vpop.f32.mrf.mxu0 }
  0x98   :  { %v419_v3 = vadd.f32 %v418_v2, %v4253_v62 }
  0x9a   :  { %v824_v4 = vmul.f32 0.044715, %v419_v3  ;;  %3489 = vmatmul.msk.bf16.gmra.mxu0 %vm230_vm1, %v143_v0  ;;  %3518 = vmatmul.msk.bf16.gmra.mxu2 %vm230_vm1, %v172_v1  ;;  %v708_v42 = vmul.f32 0.5, %v419_v3 }
  0x9c   :  { %v940_v5 = vmul.f32 %v824_v4, %v419_v3 }
  0x9d   :  { %v4261_v6 = vpop.f32.mrf.mxu2 }
  0x9e   :  { %v1056_v7 = vmul.f32 %v940_v5, %v419_v3 }
  0x9f   :  { %v420_v8 = vpop.f32.mrf.mxu0 }
  0xa0   :  { %v421_v9 = vadd.f32 %v420_v8, %v4253_v62  ;;  %v1172_v10 = vadd.f32 %v1056_v7, %v419_v3 }
  0xa2   :  { %v825_v11 = vmul.f32 0.044715, %v421_v9  ;;  %v1288_v17 = vmul.f32 0.7978846, %v1172_v10  ;;  %v709_v43 = vmul.f32 0.5, %v421_v9 }
  0xa4   :  { %v941_v16 = vmul.f32 %v825_v11, %v421_v9  ;;  %3618 = vtanh.f32 %v1288_v17 }
  0xa5   :  { %v4276_v18 = vpop.f32.mrf.mxu2 }
  0xa6   :  { %v1057_v21 = vmul.f32 %v941_v16, %v421_v9 }
  0xa7   :  { %v423_v22 = vpop.f32.mrf.mxu0 }
  0xa8   :  { %v4279_v23 = vadd.f32 %v423_v22, %v4253_v62  ;;  %v1173_v24 = vadd.f32 %v1057_v21, %v421_v9  ;;  %v41_v22 = vld [vmem:[%s6624_s0 + $0xb0] sm:$0xff] }
  0xaa   :  { %v826_v25 = vmul.f32 0.044715, %v4279_v23  ;;  %3490 = vmatmul.msk.bf16.gmra.mxu0 %vm230_vm1, %v144_v19  ;;  %3519 = vmatmul.msk.bf16.gmra.mxu2 %vm230_vm1, %v173_v20  ;;  %v1289_v26 = vmul.f32 0.7978846, %v1173_v24  ;;  %v3619_v29 = vpop.eup %3618  ;;  %v42_v24 = vld [vmem:[%s6624_s0 + $0xb8] sm:$0xff] }
  0xab   :  { %v1520_v36 = vadd.f32 1.0, %v3619_v29  ;;  %v100_v29 = vld [vmem:[%s6624_s0 + $0x288] sm:$0xff] }
  0xac   :  { %v942_v27 = vmul.f32 %v826_v25, %v4279_v23  ;;  %3620 = vtanh.f32 %v1289_v26  ;;  %v710_v25 = vmul.f32 0.5, %v4279_v23 }
  0xad   :  { %v568_v28 = vpop.f32.mrf.mxu2  ;;  %v1636_v51 = vmul.f32 %v1520_v36, %v708_v42 }
  0xae   :  { %v4286_v30 = vadd.f32 %v568_v28, %v4253_v62  ;;  %v1058_v31 = vmul.f32 %v942_v27, %v4279_v23  ;;  %v99_v28 = vld [vmem:[%s6624_s0 + $0x280] sm:$0xff] }
  0xaf   :  { %v425_v32 = vpop.f32.mrf.mxu0 }
  0xb0   :  { %v884_v33 = vmul.f32 0.044715, %v4286_v30  ;;  %v426_v34 = vadd.f32 %v425_v32, %v4253_v62  ;;  %v1174_v35 = vadd.f32 %v1058_v31, %v4279_v23  ;;  %v146_v23 = vpack.c.bf16 %v42_v24, %v41_v22  ;;  %v102_v22 = vld [vmem:[%s6624_s0 + $0x298] sm:$0xff] }
  0xb2   :  { %v3621_v37 = vpop.eup %3620  ;;  %v1000_v38 = vmul.f32 %v884_v33, %v4286_v30  ;;  %v827_v39 = vmul.f32 0.044715, %v426_v34  ;;  %v1290_v48 = vmul.f32 0.7978846, %v1174_v35  ;;  %v711_v26 = vmul.f32 0.5, %v426_v34 }
  0xb3   :  { %v1521_v44 = vadd.f32 1.0, %v3621_v37 }
  0xb4   :  { %v943_v47 = vmul.f32 %v827_v39, %v426_v34  ;;  %v1116_v49 = vmul.f32 %v1000_v38, %v4286_v30  ;;  %3622 = vtanh.f32 %v1290_v48  ;;  %v175_v39 = vpack.c.bf16 %v100_v29, %v99_v28 }
  0xb5   :  { %v570_v50 = vpop.f32.mrf.mxu2  ;;  %v1637_v52 = vmul.f32 %v1521_v44, %v709_v43 }
  0xb6   :  { %v4307_v54 = vadd.f32 %v570_v50, %v4253_v62  ;;  %v1059_v56 = vmul.f32 %v943_v47, %v426_v34  ;;  %v1232_v57 = vadd.f32 %v1116_v49, %v4286_v30  ;;  %v768_v49 = vmul.f32 0.5, %v4286_v30 }
  0xb7   :  { %v428_v58 = vpop.f32.mrf.mxu0  ;;  %v1752_v59 = vpack.c.bf16 %v1637_v52, %v1636_v51 }
  0xb8   :  { %v885_v60 = vmul.f32 0.044715, %v4307_v54  ;;  %v4312_v61 = vadd.f32 %v428_v58, %v4253_v62  ;;  %v1175_v63 = vadd.f32 %v1059_v56, %v426_v34  ;;  %v1348_v3 = vmul.f32 0.7978846, %v1232_v57 }
  0xb9   :  { %3547 = vmatmul.msk.bf16.vlgmr.msra.gmra.mxu1 %vm1827_vm2, %v1752_v59  ;;  %v769_v50 = vmul.f32 0.5, %v4307_v54 }
  0xba   :  { %v1001_v0 = vmul.f32 %v885_v60, %v4307_v54  ;;  %v828_v1 = vmul.f32 0.044715, %v4312_v61  ;;  %3491 = vmatmul.msk.bf16.gmra.mxu0 %vm230_vm1, %v145_v53  ;;  %3520 = vmatmul.msk.bf16.gmra.mxu2 %vm230_vm1, %v174_v55  ;;  %v1291_v2 = vmul.f32 0.7978846, %v1175_v63  ;;  %v3623_v8 = vpop.eup %3622 }
  0xbb   :  { %v1522_v17 = vadd.f32 1.0, %v3623_v8 }
  0xbc   :  { %v944_v4 = vmul.f32 %v828_v1, %v4312_v61  ;;  %3624 = vtanh.f32 %v1291_v2  ;;  %v1117_v5 = vmul.f32 %v1001_v0, %v4307_v54 }
  0xbd   :  { %v573_v7 = vpop.f32.mrf.mxu2  ;;  %3626 = vtanh.f32 %v1348_v3  ;;  %v1638_v37 = vmul.f32 %v1522_v17, %v710_v25  ;;  %v712_v17 = vmul.f32 0.5, %v4312_v61 }
  0xbe   :  { %v4322_v9 = vadd.f32 %v573_v7, %v4253_v62  ;;  %v1233_v10 = vadd.f32 %v1117_v5, %v4307_v54  ;;  %v1060_v11 = vmul.f32 %v944_v4, %v4312_v61 }
  0xbf   :  { %v430_v12 = vpop.f32.mrf.mxu0 }
  0xc0   :  { %v886_v13 = vmul.f32 0.044715, %v4322_v9  ;;  %v4328_v14 = vadd.f32 %v430_v12, %v4253_v62  ;;  %v1349_v15 = vmul.f32 0.7978846, %v1233_v10  ;;  %v1176_v16 = vadd.f32 %v1060_v11, %v4312_v61 }
  0xc2   :  { %v3625_v19 = vpop.eup %3624  ;;  %v1002_v20 = vmul.f32 %v886_v13, %v4322_v9  ;;  %v829_v21 = vmul.f32 0.044715, %v4328_v14  ;;  %3628 = vtanh.f32 %v1349_v15  ;;  %v1292_v33 = vmul.f32 0.7978846, %v1176_v16  ;;  %v43_v15 = vld [vmem:[%s6624_s0 + $0xc0] sm:$0xff]  ;;  %v44_v16 = vld [vmem:[%s6624_s0 + $0xc8] sm:$0xff] }
  0xc3   :  { %v1523_v27 = vadd.f32 1.0, %v3625_v19  ;;  %v3627_v31 = vpop.eup %3626  ;;  %v713_v19 = vmul.f32 0.5, %v4328_v14 }
  0xc4   :  { %v945_v32 = vmul.f32 %v829_v21, %v4328_v14  ;;  %v1118_v35 = vmul.f32 %v1002_v20, %v4322_v9  ;;  %v1580_v44 = vadd.f32 1.0, %v3627_v31  ;;  %3630 = vtanh.f32 %v1292_v33  ;;  %v101_v21 = vld [vmem:[%s6624_s0 + $0x290] sm:$0xff] }
  0xc5   :  { %v575_v36 = vpop.f32.mrf.mxu2  ;;  %v1639_v38 = vmul.f32 %v1523_v27, %v711_v26  ;;  %v147_v31 = vpack.c.bf16 %v44_v16, %v43_v15  ;;  %v104_v15 = vld [vmem:[%s6624_s0 + $0x2a8] sm:$0xff] }
  0xc6   :  { %v4349_v34 = vadd.f32 %v575_v36, %v4253_v62  ;;  %v1061_v40 = vmul.f32 %v945_v32, %v4328_v14  ;;  %v1234_v41 = vadd.f32 %v1118_v35, %v4322_v9  ;;  %v1696_v57 = vmul.f32 %v1580_v44, %v768_v49 }
  0xc7   :  { %v433_v42 = vpop.f32.mrf.mxu0  ;;  %v1753_v43 = vpack.c.bf16 %v1639_v38, %v1638_v37  ;;  %v176_v32 = vpack.c.bf16 %v102_v22, %v101_v21 }
  0xc8   :  { %v3629_v45 = vpop.eup %3628  ;;  %v887_v46 = vmul.f32 0.044715, %v4349_v34  ;;  %v4355_v47 = vadd.f32 %v433_v42, %v4253_v62  ;;  %v1177_v48 = vadd.f32 %v1061_v40, %v4328_v14  ;;  %v1350_v56 = vmul.f32 0.7978846, %v1234_v41 }
  0xc9   :  { %3548 = vmatmul.msk.bf16.gmra.mxu1 %vm1827_vm2, %v1753_v43  ;;  %v1581_v51 = vadd.f32 1.0, %v3629_v45  ;;  %v770_v42 = vmul.f32 0.5, %v4322_v9  ;;  %v771_v43 = vmul.f32 0.5, %v4349_v34 }
  0xca   :  { %v1003_v52 = vmul.f32 %v887_v46, %v4349_v34  ;;  %v830_v53 = vmul.f32 0.044715, %v4355_v47  ;;  %3492 = vmatmul.msk.bf16.gmra.mxu0 %vm230_vm1, %v146_v23  ;;  %3521 = vmatmul.msk.bf16.gmra.mxu2 %vm230_vm1, %v175_v39  ;;  %v1293_v55 = vmul.f32 0.7978846, %v1177_v48  ;;  %v3631_v63 = vpop.eup %3630 }
  0xcb   :  { %v1697_v58 = vmul.f32 %v1581_v51, %v769_v50  ;;  %v1524_v10 = vadd.f32 1.0, %v3631_v63 }
  0xcc   :  { %v946_v59 = vmul.f32 %v830_v53, %v4355_v47  ;;  %3632 = vtanh.f32 %v1293_v55  ;;  %v1119_v30 = vmul.f32 %v1003_v52, %v4349_v34 }
  0xcd   :  { %v578_v60 = vpop.f32.mrf.mxu2  ;;  %v1782_v54 = vpack.c.bf16 %v1697_v58, %v1696_v57  ;;  %3634 = vtanh.f32 %v1350_v56  ;;  %v1640_v29 = vmul.f32 %v1524_v10, %v712_v17  ;;  %v46_v10 = vld [vmem:[%s6624_s0 + $0xd8] sm:$0xff] }
  0xce   :  { %v4368_v0 = vadd.f32 %v578_v60, %v4253_v62  ;;  %v1235_v1 = vadd.f32 %v1119_v30, %v4349_v34  ;;  %v1062_v2 = vmul.f32 %v946_v59, %v4355_v47 }
  0xcf   :  { %v435_v3 = vpop.f32.mrf.mxu0  ;;  %3577 = vmatmul.msk.bf16.vlgmr.msra.gmra.mxu3 %vm1827_vm2, %v1782_v54 }
  0xd0   :  { %v888_v4 = vmul.f32 0.044715, %v4368_v0  ;;  %v4375_v5 = vadd.f32 %v435_v3, %v4253_v62  ;;  %v1351_v7 = vmul.f32 0.7978846, %v1235_v1  ;;  %v1178_v8 = vadd.f32 %v1062_v2, %v4355_v47 }
  0xd1   :  { %v4428_v1 = vadd.f32 %v4261_v6, %v4253_v62 }
  0xd2   :  { %v3633_v11 = vpop.eup %3632  ;;  %v1004_v12 = vmul.f32 %v888_v4, %v4368_v0  ;;  %v831_v13 = vmul.f32 0.044715, %v4375_v5  ;;  %3636 = vtanh.f32 %v1351_v7  ;;  %v1294_v26 = vmul.f32 0.7978846, %v1178_v8  ;;  %v45_v8 = vld [vmem:[%s6624_s0 + $0xd0] sm:$0xff] }
  0xd3   :  { %v1525_v20 = vadd.f32 1.0, %v3633_v11  ;;  %v3635_v24 = vpop.eup %3634  ;;  %v714_v11 = vmul.f32 0.5, %v4355_v47  ;;  %v715_v6 = vmul.f32 0.5, %v4375_v5  ;;  %v882_v21 = vmul.f32 0.044715, %v4428_v1 }
  0xd4   :  { %v947_v25 = vmul.f32 %v831_v13, %v4375_v5  ;;  %v1120_v27 = vmul.f32 %v1004_v12, %v4368_v0  ;;  %v1582_v38 = vadd.f32 1.0, %v3635_v24  ;;  %3638 = vtanh.f32 %v1294_v26  ;;  %v103_v13 = vld [vmem:[%s6624_s0 + $0x2a0] sm:$0xff] }
  0xd5   :  { %v580_v28 = vpop.f32.mrf.mxu2  ;;  %v1641_v61 = vmul.f32 %v1525_v20, %v713_v19  ;;  %v148_v24 = vpack.c.bf16 %v46_v10, %v45_v8  ;;  %v177_v26 = vpack.c.bf16 %v104_v15, %v103_v13  ;;  %v47_v8 = vld [vmem:[%s6624_s0 + $0xe0] sm:$0xff]  ;;  %v48_v10 = vld [vmem:[%s6624_s0 + $0xe8] sm:$0xff]  ;;  %v105_v15 = vld [vmem:[%s6624_s0 + $0x2b0] sm:$0xff] }
  0xd6   :  { %v4397_v14 = vadd.f32 %v580_v28, %v4253_v62  ;;  %v1063_v33 = vmul.f32 %v947_v25, %v4375_v5  ;;  %v1236_v35 = vadd.f32 %v1120_v27, %v4368_v0  ;;  %v1698_v50 = vmul.f32 %v1582_v38, %v770_v42 }
  0xd7   :  { %v438_v36 = vpop.f32.mrf.mxu0  ;;  %v1754_v37 = vpack.c.bf16 %v1641_v61, %v1640_v29  ;;  %v4456_v29 = vadd.f32 %v4276_v18, %v4253_v62  ;;  %v998_v38 = vmul.f32 %v882_v21, %v4428_v1 }
  0xd8   :  { %v3637_v23 = vpop.eup %3636  ;;  %v889_v39 = vmul.f32 0.044715, %v4397_v14  ;;  %v4403_v40 = vadd.f32 %v438_v36, %v4253_v62  ;;  %v1179_v41 = vadd.f32 %v1063_v33, %v4375_v5  ;;  %v1352_v49 = vmul.f32 0.7978846, %v1236_v35 }
  0xd9   :  { %3549 = vmatmul.msk.bf16.gmra.mxu1 %vm1827_vm2, %v1754_v37  ;;  %v1583_v44 = vadd.f32 1.0, %v3637_v23  ;;  %v772_v23 = vmul.f32 0.5, %v4368_v0  ;;  %v773_v18 = vmul.f32 0.5, %v4397_v14 }
  0xda   :  { %v1005_v45 = vmul.f32 %v889_v39, %v4397_v14  ;;  %v832_v46 = vmul.f32 0.044715, %v4403_v40  ;;  %3493 = vmatmul.msk.bf16.gmra.mxu0 %vm230_vm1, %v147_v31  ;;  %3522 = vmatmul.msk.bf16.gmra.mxu2 %vm230_vm1, %v176_v32  ;;  %v1295_v48 = vmul.f32 0.7978846, %v1179_v41  ;;  %v3639_v55 = vpop.eup %3638 }
  0xdb   :  { %v1699_v51 = vmul.f32 %v1583_v44, %v771_v43  ;;  %v1526_v2 = vadd.f32 1.0, %v3639_v55 }
  0xdc   :  { %v948_v52 = vmul.f32 %v832_v46, %v4403_v40  ;;  %3640 = vtanh.f32 %v1295_v48  ;;  %v1121_v9 = vmul.f32 %v1005_v45, %v4397_v14  ;;  %v883_v45 = vmul.f32 0.044715, %v4456_v29 }
  0xdd   :  { %v583_v53 = vpop.f32.mrf.mxu2  ;;  %v1783_v34 = vpack.c.bf16 %v1699_v51, %v1698_v50  ;;  %3642 = vtanh.f32 %v1352_v49  ;;  %v1642_v22 = vmul.f32 %v1526_v2, %v714_v11 }
  0xde   :  { %v4416_v56 = vadd.f32 %v583_v53, %v4253_v62  ;;  %v1237_v57 = vadd.f32 %v1121_v9, %v4397_v14  ;;  %v1064_v58 = vmul.f32 %v948_v52, %v4403_v40  ;;  %v1114_v14 = vmul.f32 %v998_v38, %v4428_v1 }
  0xdf   :  { %v440_v59 = vpop.f32.mrf.mxu0  ;;  %3578 = vmatmul.msk.bf16.gmra.mxu3 %vm1827_vm2, %v1783_v34  ;;  %v999_v55 = vmul.f32 %v883_v45, %v4456_v29 }
  0xe0   :  { %v890_v30 = vmul.f32 0.044715, %v4416_v56  ;;  %v4423_v60 = vadd.f32 %v440_v59, %v4253_v62  ;;  %v1353_v54 = vmul.f32 0.7978846, %v1237_v57  ;;  %v1180_v63 = vadd.f32 %v1064_v58, %v4403_v40 }
  0xe1   :  { %v1115_v11 = vmul.f32 %v999_v55, %v4456_v29 }
  0xe2   :  { %v3641_v3 = vpop.eup %3640  ;;  %v1006_v4 = vmul.f32 %v890_v30, %v4416_v56  ;;  %v833_v7 = vmul.f32 0.044715, %v4423_v60  ;;  %3644 = vtanh.f32 %v1353_v54  ;;  %v1296_v19 = vmul.f32 0.7978846, %v1180_v63 }
  0xe3   :  { %v1527_v12 = vadd.f32 1.0, %v3641_v3  ;;  %v3643_v16 = vpop.eup %3642  ;;  %v1230_v63 = vadd.f32 %v1114_v14, %v4428_v1 }
  0xe4   :  { %v949_v17 = vmul.f32 %v833_v7, %v4423_v60  ;;  %v1122_v20 = vmul.f32 %v1006_v4, %v4416_v56  ;;  %v1584_v32 = vadd.f32 1.0, %v3643_v16  ;;  %3646 = vtanh.f32 %v1296_v19  ;;  %v106_v16 = vld [vmem:[%s6624_s0 + $0x2b8] sm:$0xff] }
  0xe5   :  { %v585_v47 = vpop.f32.mrf.mxu2  ;;  %v1643_v5 = vmul.f32 %v1527_v12, %v715_v6  ;;  %v716_v6 = vmul.f32 0.5, %v4403_v40  ;;  %v717_v12 = vmul.f32 0.5, %v4423_v60 }
  0xe6   :  { %v4450_v25 = vadd.f32 %v585_v47, %v4253_v62  ;;  %v1065_v27 = vmul.f32 %v949_v17, %v4423_v60  ;;  %v1238_v28 = vadd.f32 %v1122_v20, %v4416_v56  ;;  %v1700_v46 = vmul.f32 %v1584_v32, %v772_v23 }
  0xe7   :  { %v443_v61 = vpop.f32.mrf.mxu0  ;;  %v1755_v31 = vpack.c.bf16 %v1643_v5, %v1642_v22  ;;  %v1346_v47 = vmul.f32 0.7978846, %v1230_v63  ;;  %v774_v32 = vmul.f32 0.5, %v4416_v56 }
  0xe8   :  { %v3645_v33 = vpop.eup %3644  ;;  %v891_v35 = vmul.f32 0.044715, %v4450_v25  ;;  %v4460_v36 = vadd.f32 %v443_v61, %v4253_v62  ;;  %v1181_v37 = vadd.f32 %v1065_v27, %v4423_v60  ;;  %v1354_v44 = vmul.f32 0.7978846, %v1238_v28 }
  0xe9   :  { %3550 = vmatmul.msk.bf16.gmra.mxu1 %vm1827_vm2, %v1755_v31  ;;  %v1585_v39 = vadd.f32 1.0, %v3645_v33  ;;  %v149_v60 = vpack.c.bf16 %v48_v10, %v47_v8 }
  0xea   :  { %v1007_v41 = vmul.f32 %v891_v35, %v4450_v25  ;;  %v834_v42 = vmul.f32 0.044715, %v4460_v36  ;;  %3494 = vmatmul.msk.bf16.gmra.mxu0 %vm230_vm1, %v148_v24  ;;  %3523 = vmatmul.msk.bf16.gmra.mxu2 %vm230_vm1, %v177_v26  ;;  %v1297_v43 = vmul.f32 0.7978846, %v1181_v37  ;;  %v3647_v52 = vpop.eup %3646  ;;  %v178_v26 = vpack.c.bf16 %v106_v16, %v105_v15 }
  0xeb   :  { %v1701_v48 = vmul.f32 %v1585_v39, %v773_v18  ;;  %v1528_v2 = vadd.f32 1.0, %v3647_v52  ;;  %v1231_v35 = vadd.f32 %v1115_v11, %v4456_v29  ;;  %v775_v39 = vmul.f32 0.5, %v4450_v25  ;;  %v49_v52 = vld [vmem:[%s6624_s0 + $0xf0] sm:$0xff] }
  0xec   :  { %v950_v49 = vmul.f32 %v834_v42, %v4460_v36  ;;  %3648 = vtanh.f32 %v1297_v43  ;;  %v1123_v0 = vmul.f32 %v1007_v41, %v4450_v25  ;;  %v718_v11 = vmul.f32 0.5, %v4460_v36 }
  0xed   :  { %v588_v50 = vpop.f32.mrf.mxu2  ;;  %v1784_v51 = vpack.c.bf16 %v1701_v48, %v1700_v46  ;;  %3650 = vtanh.f32 %v1354_v44  ;;  %v1644_v40 = vmul.f32 %v1528_v2, %v716_v6  ;;  %v1347_v42 = vmul.f32 0.7978846, %v1231_v35  ;;  %v107_v6 = vld [vmem:[%s6624_s0 + $0x2c0] sm:$0xff] }
  0xee   :  { %v4476_v9 = vadd.f32 %v588_v50, %v4253_v62  ;;  %v1239_v53 = vadd.f32 %v1123_v0, %v4450_v25  ;;  %v1066_v34 = vmul.f32 %v950_v49, %v4460_v36 }
  0xef   :  { %v445_v57 = vpop.f32.mrf.mxu0  ;;  %3579 = vmatmul.msk.bf16.gmra.mxu3 %vm1827_vm2, %v1784_v51 }
  0xf0   :  { %v892_v58 = vmul.f32 0.044715, %v4476_v9  ;;  %v4484_v59 = vadd.f32 %v445_v57, %v4253_v62  ;;  %v1355_v30 = vmul.f32 0.7978846, %v1239_v53  ;;  %v1182_v54 = vadd.f32 %v1066_v34, %v4460_v36  ;;  %v50_v53 = vld [vmem:[%s6624_s0 + $0xf8] sm:$0xff] }
  0xf2   :  { %v3649_v3 = vpop.eup %3648  ;;  %v1008_v4 = vmul.f32 %v892_v58, %v4476_v9  ;;  %v835_v7 = vmul.f32 0.044715, %v4484_v59  ;;  %3652 = vtanh.f32 %v1355_v30  ;;  %v1298_v20 = vmul.f32 0.7978846, %v1182_v54 }
  0xf3   :  { %v1529_v13 = vadd.f32 1.0, %v3649_v3  ;;  %v3651_v17 = vpop.eup %3650  ;;  %v719_v15 = vmul.f32 0.5, %v4484_v59 }
  0xf4   :  { %v951_v19 = vmul.f32 %v835_v7, %v4484_v59  ;;  %v1124_v21 = vmul.f32 %v1008_v4, %v4476_v9  ;;  %v1586_v33 = vadd.f32 1.0, %v3651_v17  ;;  %3654 = vtanh.f32 %v1298_v20 }
  0xf5   :  { %v590_v22 = vpop.f32.mrf.mxu2  ;;  %v1645_v5 = vmul.f32 %v1529_v13, %v717_v12  ;;  %3656 = vtanh.f32 %v1346_v47  ;;  %v150_v4 = vpack.c.bf16 %v50_v53, %v49_v52  ;;  %v108_v12 = vld [vmem:[%s6624_s0 + $0x2c8] sm:$0xff]  ;;  %v767_v17 = vmul.f32 0.5, %v4456_v29 }
  0xf6   :  { %v4508_v24 = vadd.f32 %v590_v22, %v4253_v62  ;;  %v1067_v27 = vmul.f32 %v951_v19, %v4484_v59  ;;  %v1240_v28 = vadd.f32 %v1124_v21, %v4476_v9  ;;  %v1702_v46 = vmul.f32 %v1586_v33, %v774_v32 }
  0xf7   :  { %v448_v61 = vpop.f32.mrf.mxu0  ;;  %v1756_v31 = vpack.c.bf16 %v1645_v5, %v1644_v40 }
  0xf8   :  { %v3653_v37 = vpop.eup %3652  ;;  %v893_v38 = vmul.f32 0.044715, %v4508_v24  ;;  %v4516_v23 = vadd.f32 %v448_v61, %v4253_v62  ;;  %v1183_v18 = vadd.f32 %v1067_v27, %v4484_v59  ;;  %v1356_v45 = vmul.f32 0.7978846, %v1240_v28 }
  0xf9   :  { %3551 = vmatmul.msk.bf16.gmra.mxu1 %vm1827_vm2, %v1756_v31  ;;  %v1587_v41 = vadd.f32 1.0, %v3653_v37  ;;  %v766_v27 = vmul.f32 0.5, %v4428_v1 }
  0xfa   :  { %v1009_v56 = vmul.f32 %v893_v38, %v4508_v24  ;;  %v836_v43 = vmul.f32 0.044715, %v4516_v23  ;;  %3495 = vmatmul.msk.bf16.gmra.mxu0 %vm230_vm1, %v149_v60  ;;  %3524 = vmatmul.msk.bf16.gmra.mxu2 %vm230_vm1, %v178_v26  ;;  %v1299_v44 = vmul.f32 0.7978846, %v1183_v18  ;;  %v3655_v50 = vpop.eup %3654  ;;  %v179_v26 = vpack.c.bf16 %v108_v12, %v107_v6  ;;  %v109_v12 = vld [vmem:[%s6624_s0 + $0x2d0] sm:$0xff] }
  0xfb   :  { %v1703_v48 = vmul.f32 %v1587_v41, %v775_v39  ;;  %v3657_v57 = vpop.eup %3656  ;;  %v1530_v3 = vadd.f32 1.0, %v3655_v50  ;;  %v776_v39 = vmul.f32 0.5, %v4476_v9  ;;  %v777_v41 = vmul.f32 0.5, %v4508_v24 }
  0xfc   :  { %v952_v49 = vmul.f32 %v836_v43, %v4516_v23  ;;  %3658 = vtanh.f32 %v1299_v44  ;;  %v1125_v25 = vmul.f32 %v1009_v56, %v4508_v24  ;;  %v1578_v19 = vadd.f32 1.0, %v3657_v57 }
  0xfd   :  { %v593_v0 = vpop.f32.mrf.mxu2  ;;  %v1785_v14 = vpack.c.bf16 %v1703_v48, %v1702_v46  ;;  %3660 = vtanh.f32 %v1347_v42  ;;  %v1646_v5 = vmul.f32 %v1530_v3, %v718_v11 }
  0xfe   :  { %v4528_v51 = vadd.f32 %v593_v0, %v4253_v62  ;;  %v1241_v34 = vadd.f32 %v1125_v25, %v4508_v24  ;;  %3662 = vtanh.f32 %v1356_v45  ;;  %v1068_v55 = vmul.f32 %v952_v49, %v4516_v23 }
  0xff   :  { %v450_v58 = vpop.f32.mrf.mxu0  ;;  %3580 = vmatmul.msk.bf16.gmra.mxu3 %vm1827_vm2, %v1785_v14  ;;  %v4565_v35 = vmul.f32 %v1578_v19, %v766_v27 }
 0x100   :  { %v894_v30 = vmul.f32 0.044715, %v4528_v51  ;;  %v4541_v54 = vadd.f32 %v450_v58, %v4253_v62  ;;  %v1357_v63 = vmul.f32 0.7978846, %v1241_v34  ;;  %v1184_v2 = vadd.f32 %v1068_v55, %v4516_v23 }
 0x102   :  { %v3659_v7 = vpop.eup %3658  ;;  %v1010_v8 = vmul.f32 %v894_v30, %v4528_v51  ;;  %v837_v10 = vmul.f32 0.044715, %v4541_v54  ;;  %3664 = vtanh.f32 %v1357_v63  ;;  %v1300_v36 = vmul.f32 0.7978846, %v1184_v2 }
 0x103   :  { %v3661_v13 = vpop.eup %3660  ;;  %v1531_v16 = vadd.f32 1.0, %v3659_v7  ;;  %v51_v7 = vld [vmem:[%s6624_s0 + $0x100] sm:$0xff]  ;;  %v721_v11 = vmul.f32 0.5, %v4541_v54 }
 0x104   :  { %v3663_v20 = vpop.eup %3662  ;;  %v953_v21 = vmul.f32 %v837_v10, %v4541_v54  ;;  %v1126_v47 = vmul.f32 %v1010_v8, %v4528_v51  ;;  %v1579_v22 = vadd.f32 1.0, %v3661_v13  ;;  %3666 = vtanh.f32 %v1300_v36  ;;  %v52_v8 = vld [vmem:[%s6624_s0 + $0x108] sm:$0xff]  ;;  %v110_v13 = vld [vmem:[%s6624_s0 + $0x2d8] sm:$0xff] }
 0x105   :  { %v595_v40 = vpop.f32.mrf.mxu2  ;;  %v1647_v60 = vmul.f32 %v1531_v16, %v719_v15  ;;  %v1588_v33 = vadd.f32 1.0, %v3663_v20  ;;  %v720_v10 = vmul.f32 0.5, %v4516_v23  ;;  %v151_v36 = vpack.c.bf16 %v52_v8, %v51_v7  ;;  %v111_v7 = vld [vmem:[%s6624_s0 + $0x2e0] sm:$0xff]  ;;  %v112_v8 = vld [vmem:[%s6624_s0 + $0x2e8] sm:$0xff] }
 0x106   :  { %v4559_v28 = vadd.f32 %v595_v40, %v4253_v62  ;;  %v1069_v59 = vmul.f32 %v953_v21, %v4541_v54  ;;  %v1242_v29 = vadd.f32 %v1126_v47, %v4528_v51  ;;  %v4563_v61 = vmul.f32 %v1579_v22, %v767_v17 }
 0x107   :  { %v453_v31 = vpop.f32.mrf.mxu0  ;;  %v1757_v32 = vpack.c.bf16 %v1647_v60, %v1646_v5  ;;  %v1704_v48 = vmul.f32 %v1588_v33, %v776_v39  ;;  %v180_v47 = vpack.c.bf16 %v110_v13, %v109_v12 }
 0x108   :  { %v3665_v37 = vpop.eup %3664  ;;  %v895_v38 = vmul.f32 0.044715, %v4559_v28  ;;  %v4569_v18 = vadd.f32 %v453_v31, %v4253_v62  ;;  %v1185_v1 = vadd.f32 %v1069_v59, %v4541_v54  ;;  %v1781_v56 = vpack.c.bf16 %v4563_v61, %v4565_v35 }
 0x109   :  { %3552 = vmatmul.msk.bf16.gmra.mxu1 %vm1827_vm2, %v1757_v32  ;;  %v1589_v42 = vadd.f32 1.0, %v3665_v37  ;;  %v1358_v46 = vmul.f32 0.7978846, %v1242_v29  ;;  %v778_v32 = vmul.f32 0.5, %v4528_v51  ;;  %v779_v33 = vmul.f32 0.5, %v4559_v28 }
 0x10a   :  { %v1011_v43 = vmul.f32 %v895_v38, %v4559_v28  ;;  %v838_v44 = vmul.f32 0.044715, %v4569_v18  ;;  %3496 = vmatmul.msk.bf16.gmra.mxu0 %vm230_vm1, %v150_v4  ;;  %3525 = vmatmul.msk.bf16.gmra.mxu2 %vm230_vm1, %v179_v26  ;;  %v1301_v45 = vmul.f32 0.7978846, %v1185_v1  ;;  %v3667_v14 = vpop.eup %3666 }
 0x10b   :  { %v1705_v49 = vmul.f32 %v1589_v42, %v777_v41  ;;  %v1532_v63 = vadd.f32 1.0, %v3667_v14 }
 0x10c   :  { %v954_v9 = vmul.f32 %v838_v44, %v4569_v18  ;;  %3668 = vtanh.f32 %v1301_v45  ;;  %v1127_v24 = vmul.f32 %v1011_v43, %v4559_v28 }
 0x10d   :  { %v598_v25 = vpop.f32.mrf.mxu2  ;;  %v1786_v0 = vpack.c.bf16 %v1705_v49, %v1704_v48  ;;  %3670 = vtanh.f32 %v1358_v46  ;;  %v1648_v21 = vmul.f32 %v1532_v63, %v720_v10  ;;  %v54_v63 = vld [vmem:[%s6624_s0 + $0x118] sm:$0xff] }
 0x10e   :  { %v4584_v50 = vadd.f32 %v598_v25, %v4253_v62  ;;  %v1243_v52 = vadd.f32 %v1127_v24, %v4559_v28  ;;  %v1070_v53 = vmul.f32 %v954_v9, %v4569_v18 }
 0x10f   :  { %v455_v34 = vpop.f32.mrf.mxu0  ;;  %3581 = vmatmul.msk.bf16.gmra.mxu3 %vm1827_vm2, %v1786_v0 }
 0x110   :  { %v896_v55 = vmul.f32 0.044715, %v4584_v50  ;;  %v4591_v57 = vadd.f32 %v455_v34, %v4253_v62  ;;  %v1359_v58 = vmul.f32 0.7978846, %v1243_v52  ;;  %v1186_v30 = vadd.f32 %v1070_v53, %v4569_v18 }
 0x112   :  { %v3669_v2 = vpop.eup %3668  ;;  %v1012_v3 = vmul.f32 %v896_v55, %v4584_v50  ;;  %v839_v4 = vmul.f32 0.044715, %v4591_v57  ;;  %3672 = vtanh.f32 %v1359_v58  ;;  %v1302_v17 = vmul.f32 0.7978846, %v1186_v30  ;;  %v53_v30 = vld [vmem:[%s6624_s0 + $0x110] sm:$0xff] }
 0x113   :  { %v1533_v6 = vadd.f32 1.0, %v3669_v2  ;;  %v3671_v15 = vpop.eup %3670  ;;  %v722_v2 = vmul.f32 0.5, %v4569_v18 }
 0x114   :  { %v955_v16 = vmul.f32 %v839_v4, %v4591_v57  ;;  %v1128_v19 = vmul.f32 %v1012_v3, %v4584_v50  ;;  %v1590_v26 = vadd.f32 1.0, %v3671_v15  ;;  %3674 = vtanh.f32 %v1302_v17 }
 0x115   :  { %v600_v20 = vpop.f32.mrf.mxu2  ;;  %v1649_v23 = vmul.f32 %v1533_v6, %v721_v11  ;;  %v723_v3 = vmul.f32 0.5, %v4591_v57  ;;  %v181_v17 = vpack.c.bf16 %v112_v8, %v111_v7 }
 0x116   :  { %v4613_v54 = vadd.f32 %v600_v20, %v4253_v62  ;;  %v1071_v22 = vmul.f32 %v955_v16, %v4591_v57  ;;  %v1244_v40 = vadd.f32 %v1128_v19, %v4584_v50  ;;  %v1706_v42 = vmul.f32 %v1590_v26, %v778_v32 }
 0x117   :  { %v458_v5 = vpop.f32.mrf.mxu0  ;;  %v1758_v60 = vpack.c.bf16 %v1649_v23, %v1648_v21  ;;  %v152_v16 = vpack.c.bf16 %v54_v63, %v53_v30  ;;  %v114_v30 = vld [vmem:[%s6624_s0 + $0x2f8] sm:$0xff] }
 0x118   :  { %v3673_v27 = vpop.eup %3672  ;;  %v897_v59 = vmul.f32 0.044715, %v4613_v54  ;;  %v4619_v29 = vadd.f32 %v458_v5, %v4253_v62  ;;  %v1187_v31 = vadd.f32 %v1071_v22, %v4591_v57  ;;  %v1360_v41 = vmul.f32 0.7978846, %v1244_v40 }
 0x119   :  { %3553 = vmatmul.msk.bf16.gmra.mxu1 %vm1827_vm2, %v1758_v60  ;;  %v1591_v37 = vadd.f32 1.0, %v3673_v27  ;;  %v780_v60 = vmul.f32 0.5, %v4584_v50  ;;  %v781_v26 = vmul.f32 0.5, %v4613_v54 }
 0x11a   :  { %v1013_v38 = vmul.f32 %v897_v59, %v4613_v54  ;;  %v840_v1 = vmul.f32 0.044715, %v4619_v29  ;;  %3497 = vmatmul.msk.bf16.gmra.mxu0 %vm230_vm1, %v151_v36  ;;  %3526 = vmatmul.msk.bf16.gmra.mxu2 %vm230_vm1, %v180_v47  ;;  %v1303_v39 = vmul.f32 0.7978846, %v1187_v31  ;;  %v3675_v46 = vpop.eup %3674  ;;  %v724_v63 = vmul.f32 0.5, %v4619_v29 }
 0x11b   :  { %v1707_v43 = vmul.f32 %v1591_v37, %v779_v33  ;;  %v1534_v53 = vadd.f32 1.0, %v3675_v46 }
 0x11c   :  { %v956_v44 = vmul.f32 %v840_v1, %v4619_v29  ;;  %3676 = vtanh.f32 %v1303_v39  ;;  %v1129_v51 = vmul.f32 %v1013_v38, %v4613_v54 }
 0x11d   :  { %v603_v45 = vpop.f32.mrf.mxu2  ;;  %v1787_v28 = vpack.c.bf16 %v1707_v43, %v1706_v42  ;;  %3678 = vtanh.f32 %v1360_v41  ;;  %v1650_v15 = vmul.f32 %v1534_v53, %v722_v2  ;;  %v4082_v53 = vld [vmem:[%s6626_s3] sm:$0x3] }
 0x11e   :  { %v4632_v48 = vadd.f32 %v603_v45, %v4253_v62  ;;  %v1245_v49 = vadd.f32 %v1129_v51, %v4613_v54  ;;  %v1072_v9 = vmul.f32 %v956_v44, %v4619_v29 }
 0x11f   :  { %v460_v24 = vpop.f32.mrf.mxu0  ;;  %3582 = vmatmul.msk.bf16.gmra.mxu3 %vm1827_vm2, %v1787_v28 }
 0x120   :  { %v898_v25 = vmul.f32 0.044715, %v4632_v48  ;;  %v4639_v0 = vadd.f32 %v460_v24, %v4253_v62  ;;  %v1361_v14 = vmul.f32 0.7978846, %v1245_v49  ;;  %v1188_v52 = vadd.f32 %v1072_v9, %v4619_v29  ;;  %v55_v24 = vld [vmem:[%s6624_s0 + $0x120] sm:$0xff] }
 0x122   :  { %v3677_v34 = vpop.eup %3676  ;;  %v1014_v55 = vmul.f32 %v898_v25, %v4632_v48  ;;  %v841_v58 = vmul.f32 0.044715, %v4639_v0  ;;  %3680 = vtanh.f32 %v1361_v14  ;;  %v1304_v6 = vmul.f32 0.7978846, %v1188_v52 }
 0x123   :  { %v1535_v4 = vadd.f32 1.0, %v3677_v34  ;;  %v3679_v10 = vpop.eup %3678  ;;  %v4698_v34 = vperm.slane %v4082_v53, 1  ;;  %v725_v2 = vmul.f32 0.5, %v4639_v0 }
 0x124   :  { %v957_v11 = vmul.f32 %v841_v58, %v4639_v0  ;;  %v1130_v12 = vmul.f32 %v1014_v55, %v4632_v48  ;;  %v1592_v36 = vadd.f32 1.0, %v3679_v10  ;;  %3682 = vtanh.f32 %v1304_v6  ;;  %v56_v55 = vld [vmem:[%s6624_s0 + $0x128] sm:$0xff]  ;;  %v113_v58 = vld [vmem:[%s6624_s0 + $0x2f0] sm:$0xff] }
 0x125   :  { %v605_v13 = vpop.f32.mrf.mxu2  ;;  %v1651_v18 = vmul.f32 %v1535_v4, %v723_v3 }
 0x126   :  { %v4661_v57 = vadd.f32 %v605_v13, %v4253_v62  ;;  %v1073_v19 = vmul.f32 %v957_v11, %v4639_v0  ;;  %v1246_v20 = vadd.f32 %v1130_v12, %v4632_v48  ;;  %v1708_v37 = vmul.f32 %v1592_v36, %v780_v60  ;;  %v4725_v36 = vld [vmem:[%s6624_s0 + $0x138] sm:$0xff] }
 0x127   :  { %v463_v21 = vpop.f32.mrf.mxu0  ;;  %v1759_v23 = vpack.c.bf16 %v1651_v18, %v1650_v15  ;;  %v153_v13 = vpack.c.bf16 %v56_v55, %v55_v24  ;;  %v182_v15 = vpack.c.bf16 %v114_v30, %v113_v58  ;;  %v782_v60 = vmul.f32 0.5, %v4632_v48  ;;  %v4739_v48 = vld [vmem:[%s6624_s0 + $0x300] sm:$0xff] }
 0x128   :  { %v3681_v47 = vpop.eup %3680  ;;  %v899_v22 = vmul.f32 0.044715, %v4661_v57  ;;  %v4667_v40 = vadd.f32 %v463_v21, %v4253_v62  ;;  %v1189_v5 = vadd.f32 %v1073_v19, %v4639_v0  ;;  %v1362_v33 = vmul.f32 0.7978846, %v1246_v20 }
 0x129   :  { %3554 = vmatmul.msk.bf16.gmra.mxu1 %vm1827_vm2, %v1759_v23  ;;  %v1593_v27 = vadd.f32 1.0, %v3681_v47  ;;  %v4720_v23 = vld [vmem:[%s6624_s0 + $0x130] sm:$0xff] }
 0x12a   :  { %v1015_v59 = vmul.f32 %v899_v22, %v4661_v57  ;;  %v842_v31 = vmul.f32 0.044715, %v4667_v40  ;;  %3498 = vmatmul.msk.bf16.gmra.mxu0 %vm230_vm1, %v152_v16  ;;  %3527 = vmatmul.msk.bf16.gmra.mxu2 %vm230_vm1, %v181_v17  ;;  %v1305_v32 = vmul.f32 0.7978846, %v1189_v5  ;;  %v3683_v41 = vpop.eup %3682 }
 0x12b   :  { %v1709_v38 = vmul.f32 %v1593_v27, %v781_v26  ;;  %v1536_v9 = vadd.f32 1.0, %v3683_v41 }
 0x12c   :  { %v958_v1 = vmul.f32 %v842_v31, %v4667_v40  ;;  %3684 = vtanh.f32 %v1305_v32  ;;  %v1131_v50 = vmul.f32 %v1015_v59, %v4661_v57  ;;  %v783_v59 = vmul.f32 0.5, %v4661_v57 }
 0x12d   :  { %v608_v39 = vpop.f32.mrf.mxu2  ;;  %v1788_v54 = vpack.c.bf16 %v1709_v38, %v1708_v37  ;;  %3686 = vtanh.f32 %v1362_v33  ;;  %v1652_v6 = vmul.f32 %v1536_v9, %v724_v63 }
 0x12e   :  { %v4680_v42 = vadd.f32 %v608_v39, %v4253_v62  ;;  %v1247_v43 = vadd.f32 %v1131_v50, %v4661_v57  ;;  %v1074_v44 = vmul.f32 %v958_v1, %v4667_v40  ;;  %v154_v1 = vpack.c.bf16 %v4725_v36, %v4720_v23  ;;  %v4744_v57 = vld [vmem:[%s6624_s0 + $0x308] sm:$0xff] }
 0x12f   :  { %v465_v51 = vpop.f32.mrf.mxu0  ;;  %3583 = vmatmul.msk.bf16.gmra.mxu3 %vm1827_vm2, %v1788_v54  ;;  %v183_v9 = vpack.c.bf16 %v4744_v57, %v4739_v48 }
 0x130   :  { %v900_v45 = vmul.f32 0.044715, %v4680_v42  ;;  %v4687_v28 = vadd.f32 %v465_v51, %v4253_v62  ;;  %v1363_v46 = vmul.f32 0.7978846, %v1247_v43  ;;  %v1190_v49 = vadd.f32 %v1074_v44, %v4667_v40 }
 0x131   :  { %v726_v44 = vmul.f32 0.5, %v4667_v40  ;;  %v4750_v24 = vmul.f32 0.5, %v4680_v42 }
 0x132   :  { %v3685_v25 = vpop.eup %3684  ;;  %v1016_v14 = vmul.f32 %v900_v45, %v4680_v42  ;;  %v843_v52 = vmul.f32 0.044715, %v4687_v28  ;;  %3688 = vtanh.f32 %v1363_v46  ;;  %v1306_v4 = vmul.f32 0.7978846, %v1190_v49 }
 0x133   :  { %v1537_v3 = vadd.f32 1.0, %v3685_v25  ;;  %v3687_v7 = vpop.eup %3686 }
 0x134   :  { %v959_v8 = vmul.f32 %v843_v52, %v4687_v28  ;;  %v1132_v10 = vmul.f32 %v1016_v14, %v4680_v42  ;;  %3690 = vtanh.f32 %v1306_v4  ;;  %v1594_v21 = vadd.f32 1.0, %v3687_v7 }
 0x135   :  { %v610_v11 = vpop.f32.mrf.mxu2  ;;  %v1653_v12 = vmul.f32 %v1537_v3, %v725_v2  ;;  %v727_v52 = vmul.f32 0.5, %v4687_v28  ;;  %v4764_v3 = vld [vmem:[%s6624_s0 + $0x148] sm:$0xff] }
 0x136   :  { %v611_v18 = vadd.f32 %v610_v11, %v4253_v62  ;;  %v2011_v16 = vpop.f32.mrf.mxu1  ;;  %v1075_v17 = vmul.f32 %v959_v8, %v4687_v28  ;;  %v1248_v29 = vadd.f32 %v1132_v10, %v4680_v42  ;;  %v1710_v39 = vmul.f32 %v1594_v21, %v782_v60  ;;  %v4759_v42 = vld [vmem:[%s6624_s0 + $0x140] sm:$0xff]  ;;  %v4770_v10 = vld [vmem:[%s6624_s0 + $0x310] sm:$0xff]  ;;  %v4775_v11 = vld [vmem:[%s6624_s0 + $0x318] sm:$0xff] }
 0x137   :  { %v2012_v0 = vadd.f32 %v2011_v16, %v4698_v34  ;;  %v468_v19 = vpop.f32.mrf.mxu0  ;;  %v1760_v20 = vpack.c.bf16 %v1653_v12, %v1652_v6 }
 0x138   :  { %v3689_v47 = vpop.eup %3688  ;;  %v901_v22 = vmul.f32 0.044715, %v611_v18  ;;  %v469_v5 = vadd.f32 %v468_v19, %v4253_v62  ;;  %v1191_v26 = vadd.f32 %v1075_v17, %v4687_v28  ;;  %v1364_v32 = vmul.f32 0.7978846, %v1248_v29 }
 0x139   :  { %v2417_v27 = vmul.f32 0.044715, %v2012_v0  ;;  %3555 = vmatmul.msk.bf16.gmra.mxu1 %vm1827_vm2, %v1760_v20  ;;  %v1595_v31 = vadd.f32 1.0, %v3689_v47  ;;  %v785_v2 = vmul.f32 0.5, %v611_v18  ;;  %v2301_v12 = vmul.f32 0.5, %v2012_v0 }
 0x13a   :  { %v1017_v33 = vmul.f32 %v901_v22, %v611_v18  ;;  %v844_v37 = vmul.f32 0.044715, %v469_v5  ;;  %3499 = vmatmul.msk.bf16.gmra.mxu0 %vm230_vm1, %v153_v13  ;;  %3528 = vmatmul.msk.bf16.gmra.mxu2 %vm230_vm1, %v182_v15  ;;  %v1307_v38 = vmul.f32 0.7978846, %v1191_v26  ;;  %3692 = vtanh.f32 %v1364_v32  ;;  %v3691_v41 = vpop.eup %3690 }
 0x13b   :  { %v2533_v50 = vmul.f32 %v2417_v27, %v2012_v0  ;;  %v1711_v54 = vmul.f32 %v1595_v31, %v783_v59  ;;  %v1538_v63 = vadd.f32 1.0, %v3691_v41  ;;  %v155_v19 = vpack.c.bf16 %v4764_v3, %v4759_v42 }
 0x13c   :  { %v960_v43 = vmul.f32 %v844_v37, %v469_v5  ;;  %3694 = vtanh.f32 %v1307_v38  ;;  %v1133_v51 = vmul.f32 %v1017_v33, %v611_v18  ;;  %v184_v47 = vpack.c.bf16 %v4775_v11, %v4770_v10 }
 0x13d   :  { %v2649_v45 = vmul.f32 %v2533_v50, %v2012_v0  ;;  %v613_v46 = vpop.f32.mrf.mxu2  ;;  %v1789_v49 = vpack.c.bf16 %v1711_v54, %v1710_v39  ;;  %v1654_v60 = vmul.f32 %v1538_v63, %v726_v44 }
 0x13e   :  { %v614_v25 = vadd.f32 %v613_v46, %v4253_v62  ;;  %v2013_v14 = vpop.f32.mrf.mxu1  ;;  %v1249_v53 = vadd.f32 %v1133_v51, %v611_v18  ;;  %v1076_v55 = vmul.f32 %v960_v43, %v469_v5  ;;  %v4777_v18 = vmul.f32 0.5, %v469_v5 }
 0x13f   :  { %v2765_v58 = vadd.f32 %v2649_v45, %v2012_v0  ;;  %v2014_v40 = vadd.f32 %v2013_v14, %v4698_v34  ;;  %v470_v30 = vpop.f32.mrf.mxu0  ;;  %3584 = vmatmul.msk.bf16.gmra.mxu3 %vm1827_vm2, %v1789_v49 }
 0x140   :  { %v902_v28 = vmul.f32 0.044715, %v614_v25  ;;  %v471_v4 = vadd.f32 %v470_v30, %v4253_v62  ;;  %v1365_v7 = vmul.f32 0.7978846, %v1249_v53  ;;  %v1192_v8 = vadd.f32 %v1076_v55, %v469_v5  ;;  %v3693_v6 = vpop.eup %3692 }
 0x141   :  { %v2881_v13 = vmul.f32 0.7978846, %v2765_v58  ;;  %v2418_v15 = vmul.f32 0.044715, %v2014_v40  ;;  %v4783_v27 = vmul.f32 0.5, %v2014_v40  ;;  %v1596_v32 = vadd.f32 1.0, %v3693_v6 }
 0x142   :  { %v3695_v16 = vpop.eup %3694  ;;  %v1018_v17 = vmul.f32 %v902_v28, %v614_v25  ;;  %v845_v29 = vmul.f32 0.044715, %v471_v4  ;;  %3696 = vtanh.f32 %v1365_v7  ;;  %v1308_v0 = vmul.f32 0.7978846, %v1192_v8 }
 0x143   :  { %3698 = vtanh.f32 %v2881_v13  ;;  %v2534_v20 = vmul.f32 %v2418_v15, %v2014_v40  ;;  %v1539_v21 = vadd.f32 1.0, %v3695_v16  ;;  %v4786_v50 = vmul.f32 0.5, %v614_v25 }
 0x144   :  { %v961_v22 = vmul.f32 %v845_v29, %v471_v4  ;;  %v1134_v26 = vmul.f32 %v1018_v17, %v614_v25  ;;  %3700 = vtanh.f32 %v1308_v0  ;;  %v4790_v49 = vmul.f32 0.5, %v471_v4  ;;  %v4819_v29 = vld [vmem:[%s6624_s0 + $0x158] sm:$0xff] }
 0x145   :  { %v2650_v5 = vmul.f32 %v2534_v20, %v2014_v40  ;;  %v615_v59 = vpop.f32.mrf.mxu2  ;;  %v1655_v31 = vmul.f32 %v1539_v21, %v727_v52 }
 0x146   :  { %v616_v33 = vadd.f32 %v615_v59, %v4253_v62  ;;  %v2016_v37 = vpop.f32.mrf.mxu1  ;;  %v1077_v38 = vmul.f32 %v961_v22, %v471_v4  ;;  %v1250_v44 = vadd.f32 %v1134_v26, %v614_v25 }
 0x147   :  { %v2766_v39 = vadd.f32 %v2650_v5, %v2014_v40  ;;  %v2017_v54 = vadd.f32 %v2016_v37, %v4698_v34  ;;  %v473_v41 = vpop.f32.mrf.mxu0  ;;  %v1761_v43 = vpack.c.bf16 %v1655_v31, %v1654_v60  ;;  %v1712_v40 = vmul.f32 %v1596_v32, %v4750_v24 }
 0x148   :  { %v3697_v51 = vpop.eup %3696  ;;  %v903_v45 = vmul.f32 0.044715, %v616_v33  ;;  %v474_v46 = vadd.f32 %v473_v41, %v4253_v62  ;;  %v1193_v14 = vadd.f32 %v1077_v38, %v471_v4  ;;  %v1366_v8 = vmul.f32 0.7978846, %v1250_v44  ;;  %v4840_v41 = vld [vmem:[%s6624_s0 + $0x328] sm:$0xff] }
 0x149   :  { %v3699_v52 = vpop.eup %3698  ;;  %v2882_v53 = vmul.f32 0.7978846, %v2766_v39  ;;  %v2419_v55 = vmul.f32 0.044715, %v2017_v54  ;;  %3556 = vmatmul.msk.bf16.gmra.mxu1 %vm1827_vm2, %v1761_v43  ;;  %v1597_v58 = vadd.f32 1.0, %v3697_v51  ;;  %v4809_v57 = vmul.f32 0.5, %v616_v33 }
 0x14a   :  { %v3113_v30 = vadd.f32 1.0, %v3699_v52  ;;  %v1019_v63 = vmul.f32 %v903_v45, %v616_v33  ;;  %v846_v28 = vmul.f32 0.044715, %v474_v46  ;;  %3500 = vmatmul.msk.bf16.gmra.mxu0 %vm230_vm1, %v154_v1  ;;  %3529 = vmatmul.msk.bf16.gmra.mxu2 %vm230_vm1, %v183_v9  ;;  %v1309_v25 = vmul.f32 0.7978846, %v1193_v14  ;;  %v3701_v6 = vpop.eup %3700 }
 0x14b   :  { %3702 = vtanh.f32 %v2882_v53  ;;  %v2535_v4 = vmul.f32 %v2419_v55, %v2017_v54  ;;  %v1713_v7 = vmul.f32 %v1597_v58, %v785_v2  ;;  %v1540_v36 = vadd.f32 1.0, %v3701_v6 }
 0x14c   :  { %v3229_v24 = vmul.f32 %v3113_v30, %v2301_v12  ;;  %v962_v13 = vmul.f32 %v846_v28, %v474_v46  ;;  %3704 = vtanh.f32 %v1309_v25  ;;  %v1135_v15 = vmul.f32 %v1019_v63, %v616_v33  ;;  %v4814_v12 = vld [vmem:[%s6624_s0 + $0x150] sm:$0xff] }
 0x14d   :  { %v2651_v16 = vmul.f32 %v2535_v4, %v2017_v54  ;;  %v618_v17 = vpop.f32.mrf.mxu2  ;;  %v1790_v23 = vpack.c.bf16 %v1713_v7, %v1712_v40  ;;  %3706 = vtanh.f32 %v1366_v8  ;;  %v4821_v20 = vmul.f32 0.5, %v2017_v54 }
 0x14e   :  { %3345 = vst.msk [vmem:[%s6627_s4] sm:$0xff] %vm1827_vm2, %v3229_v24  ;;  %v4807_v1 = vadd.f32 %v618_v17, %v4253_v62  ;;  %v2018_v48 = vpop.f32.mrf.mxu1  ;;  %v1251_v9 = vadd.f32 %v1135_v15, %v616_v33  ;;  %v1078_v2 = vmul.f32 %v962_v13, %v474_v46  ;;  %v4825_v0 = vmul.f32 0.5, %v474_v46 }
 0x14f   :  { %v2767_v21 = vadd.f32 %v2651_v16, %v2017_v54  ;;  %v2019_v22 = vadd.f32 %v2018_v48, %v4698_v34  ;;  %v475_v60 = vpop.f32.mrf.mxu0  ;;  %3585 = vmatmul.msk.bf16.gmra.mxu3 %vm1827_vm2, %v1790_v23  ;;  %v1656_v59 = vmul.f32 %v1540_v36, %v4777_v18  ;;  %v156_v39 = vpack.c.bf16 %v4819_v29, %v4814_v12  ;;  %v4835_v54 = vld [vmem:[%s6624_s0 + $0x320] sm:$0xff] }
 0x150   :  { %v904_v26 = vmul.f32 0.044715, %v4807_v1  ;;  %v476_v5 = vadd.f32 %v475_v60, %v4253_v62  ;;  %v1367_v31 = vmul.f32 0.7978846, %v1251_v9  ;;  %v1194_v38 = vadd.f32 %v1078_v2, %v474_v46 }
 0x151   :  { %v3703_v32 = vpop.eup %3702  ;;  %v2883_v33 = vmul.f32 0.7978846, %v2767_v21  ;;  %v2420_v37 = vmul.f32 0.044715, %v2019_v22  ;;  %v4842_v44 = vmul.f32 0.5, %v2019_v22  ;;  %v185_v30 = vpack.c.bf16 %v4840_v41, %v4835_v54 }
 0x152   :  { %v3705_v43 = vpop.eup %3704  ;;  %v3114_v18 = vadd.f32 1.0, %v3703_v32  ;;  %v847_v51 = vmul.f32 0.044715, %v476_v5  ;;  %v2161_v45 = vpop.f32.mrf.mxu3  ;;  %3708 = vtanh.f32 %v1367_v31  ;;  %v4847_v58 = vmul.f32 %v904_v26, %v4807_v1 }
 0x153   :  { %v3707_v46 = vpop.eup %3706  ;;  %3710 = vtanh.f32 %v2883_v33  ;;  %v2536_v14 = vmul.f32 %v2420_v37, %v2019_v22  ;;  %v2162_v52 = vadd.f32 %v2161_v45, %v4698_v34  ;;  %v1541_v53 = vadd.f32 1.0, %v3705_v43 }
 0x154   :  { %v3230_v55 = vmul.f32 %v3114_v18, %v4783_v27  ;;  %v963_v40 = vmul.f32 %v847_v51, %v476_v5  ;;  %v1598_v7 = vadd.f32 1.0, %v3707_v46  ;;  %v4859_v6 = vmul.f32 0.5, %v476_v5 }
 0x155   :  { %v2652_v63 = vmul.f32 %v2536_v14, %v2019_v22  ;;  %v2477_v28 = vmul.f32 0.044715, %v2162_v52  ;;  %v620_v25 = vpop.f32.mrf.mxu2  ;;  %v1657_v4 = vmul.f32 %v1541_v53, %v4790_v49  ;;  %v1310_v13 = vmul.f32 0.7978846, %v1194_v38 }
 0x156   :  { %3346 = vst.msk [vmem:[%s6627_s4 + $0x8] sm:$0xff] %vm1827_vm2, %v3230_v55  ;;  %v4857_v27 = vadd.f32 %v620_v25, %v4253_v62  ;;  %v2021_v8 = vpop.f32.mrf.mxu1  ;;  %v1079_v24 = vmul.f32 %v963_v40, %v476_v5  ;;  %v4862_v48 = vmul.f32 0.5, %v2162_v52 }
 0x157   :  { %v2768_v15 = vadd.f32 %v2652_v63, %v2019_v22  ;;  %v2593_v16 = vmul.f32 %v2477_v28, %v2162_v52  ;;  %v2022_v17 = vadd.f32 %v2021_v8, %v4698_v34  ;;  %v478_v23 = vpop.f32.mrf.mxu0  ;;  %v1762_v49 = vpack.c.bf16 %v1657_v4, %v1656_v59 }
 0x158   :  { %v3709_v36 = vpop.eup %3708  ;;  %v4865_v9 = vadd.f32 %v478_v23, %v4253_v62  ;;  %v1195_v2 = vadd.f32 %v1079_v24, %v476_v5  ;;  %3712 = vtanh.f32 %v1310_v13  ;;  %v1714_v22 = vmul.f32 %v1598_v7, %v4786_v50 }
 0x159   :  { %v3711_v21 = vpop.eup %3710  ;;  %v2884_v60 = vmul.f32 0.7978846, %v2768_v15  ;;  %v2709_v26 = vmul.f32 %v2593_v16, %v2162_v52  ;;  %v2421_v31 = vmul.f32 0.044715, %v2022_v17  ;;  %3557 = vmatmul.msk.bf16.gmra.mxu1 %vm1827_vm2, %v1762_v49  ;;  %v905_v33 = vmul.f32 0.044715, %v4857_v27 }
 0x15a   :  { %v3115_v32 = vadd.f32 1.0, %v3711_v21  ;;  %v848_v59 = vmul.f32 0.044715, %v4865_v9  ;;  %3501 = vmatmul.msk.bf16.gmra.mxu0 %vm230_vm1, %v155_v19  ;;  %3530 = vmatmul.msk.bf16.gmra.mxu2 %vm230_vm1, %v184_v47  ;;  %v2163_v5 = vpop.f32.mrf.mxu3  ;;  %v1599_v37 = vadd.f32 1.0, %v3709_v36  ;;  %v1311_v3 = vmul.f32 0.7978846, %v1195_v2 }
 0x15b   :  { %3714 = vtanh.f32 %v2884_v60  ;;  %v2825_v38 = vadd.f32 %v2709_v26, %v2162_v52  ;;  %v2537_v50 = vmul.f32 %v2421_v31, %v2022_v17  ;;  %v2164_v43 = vadd.f32 %v2163_v5, %v4698_v34 }
 0x15c   :  { %v3231_v18 = vmul.f32 %v3115_v32, %v4821_v20  ;;  %v964_v51 = vmul.f32 %v848_v59, %v4865_v9  ;;  %v1715_v42 = vmul.f32 %v1599_v37, %v4809_v57  ;;  %v4883_v45 = vmul.f32 0.5, %v2022_v17 }
 0x15d   :  { %v2941_v19 = vmul.f32 0.7978846, %v2825_v38  ;;  %v2653_v10 = vmul.f32 %v2537_v50, %v2022_v17  ;;  %v2478_v11 = vmul.f32 0.044715, %v2164_v43  ;;  %v623_v47 = vpop.f32.mrf.mxu2  ;;  %3716 = vtanh.f32 %v1311_v3 }
 0x15e   :  { %v3713_v46 = vpop.eup %3712  ;;  %3347 = vst.msk [vmem:[%s6627_s4 + $0x10] sm:$0xff] %vm1827_vm2, %v3231_v18  ;;  %v1080_v14 = vmul.f32 %v964_v51, %v4865_v9  ;;  %v4891_v20 = vadd.f32 %v623_v47, %v4253_v62  ;;  %v2023_v52 = vpop.f32.mrf.mxu1  ;;  %v1791_v57 = vpack.c.bf16 %v1715_v42, %v1714_v22  ;;  %v4895_v28 = vmul.f32 %v905_v33, %v4857_v27 }
 0x15f   :  { %3718 = vtanh.f32 %v2941_v19  ;;  %v2769_v53 = vadd.f32 %v2653_v10, %v2022_v17  ;;  %v2594_v55 = vmul.f32 %v2478_v11, %v2164_v43  ;;  %v2024_v40 = vadd.f32 %v2023_v52, %v4698_v34  ;;  %v480_v63 = vpop.f32.mrf.mxu0 }
 0x160   :  { %v1196_v25 = vadd.f32 %v1080_v14, %v4865_v9  ;;  %v906_v4 = vmul.f32 0.044715, %v4891_v20  ;;  %v4900_v7 = vadd.f32 %v480_v63, %v4253_v62  ;;  %3586 = vmatmul.msk.bf16.gmra.mxu3 %vm1827_vm2, %v1791_v57  ;;  %v1542_v16 = vadd.f32 1.0, %v3713_v46 }
 0x161   :  { %v3715_v8 = vpop.eup %3714  ;;  %v2885_v24 = vmul.f32 0.7978846, %v2769_v53  ;;  %v2710_v13 = vmul.f32 %v2594_v55, %v2164_v43  ;;  %v2422_v15 = vmul.f32 0.044715, %v2024_v40  ;;  %v4903_v23 = vmul.f32 0.5, %v2164_v43 }
 0x162   :  { %v3116_v17 = vadd.f32 1.0, %v3715_v8  ;;  %v4905_v49 = vmul.f32 0.5, %v2024_v40  ;;  %v849_v36 = vmul.f32 0.044715, %v4900_v7  ;;  %v2166_v2 = vpop.f32.mrf.mxu3  ;;  %v4910_v32 = vmul.f32 0.7978846, %v1196_v25 }
 0x163   :  { %3720 = vtanh.f32 %v2885_v24  ;;  %v2826_v21 = vadd.f32 %v2710_v13, %v2164_v43  ;;  %v2538_v60 = vmul.f32 %v2422_v15, %v2024_v40  ;;  %v2167_v26 = vadd.f32 %v2166_v2, %v4698_v34  ;;  %v3717_v31 = vpop.eup %3716 }
 0x164   :  { %v3232_v22 = vmul.f32 %v3116_v17, %v4842_v44  ;;  %v4913_v33 = vmul.f32 %v906_v4, %v4891_v20  ;;  %v965_v59 = vmul.f32 %v849_v36, %v4900_v7  ;;  %v1658_v43 = vmul.f32 %v1542_v16, %v4825_v0 }
 0x165   :  { %v3719_v5 = vpop.eup %3718  ;;  %v2942_v37 = vmul.f32 0.7978846, %v2826_v21  ;;  %v2654_v38 = vmul.f32 %v2538_v60, %v2024_v40  ;;  %v2479_v50 = vmul.f32 0.044715, %v2167_v26  ;;  %v625_v18 = vpop.f32.mrf.mxu2  ;;  %v1543_v3 = vadd.f32 1.0, %v3717_v31 }
 0x166   :  { %3348 = vst.msk [vmem:[%s6627_s4 + $0x18] sm:$0xff] %vm1827_vm2, %v3232_v22  ;;  %v3173_v44 = vadd.f32 1.0, %v3719_v5  ;;  %v4922_v51 = vadd.f32 %v625_v18, %v4253_v62  ;;  %v2026_v42 = vpop.f32.mrf.mxu1  ;;  %v4925_v19 = vmul.f32 0.5, %v4807_v1  ;;  %v4929_v14 = vmul.f32 0.5, %v2167_v26 }
 0x167   :  { %3722 = vtanh.f32 %v2942_v37  ;;  %v2770_v10 = vadd.f32 %v2654_v38, %v2024_v40  ;;  %v2595_v11 = vmul.f32 %v2479_v50, %v2167_v26  ;;  %v2027_v47 = vadd.f32 %v2026_v42, %v4698_v34  ;;  %v483_v0 = vpop.f32.mrf.mxu0 }
 0x168   :  { %v3289_v46 = vmul.f32 %v3173_v44, %v4862_v48  ;;  %v4932_v52 = vadd.f32 %v483_v0, %v4253_v62  ;;  %v1659_v57 = vmul.f32 %v1543_v3, %v4859_v6  ;;  %v4936_v63 = vmul.f32 %v965_v59, %v4900_v7 }
 0x169   :  { %v3721_v53 = vpop.eup %3720  ;;  %v2886_v55 = vmul.f32 0.7978846, %v2770_v10  ;;  %v2711_v25 = vmul.f32 %v2595_v11, %v2167_v26  ;;  %v2423_v40 = vmul.f32 0.044715, %v2027_v47  ;;  %v4943_v4 = vmul.f32 0.044715, %v4922_v51 }
 0x16a   :  { %3405 = vst.msk [vmem:[%s6627_s4 + $0x1e0] sm:$0xff] %vm1827_vm2, %v3289_v46  ;;  %v3117_v48 = vadd.f32 1.0, %v3721_v53  ;;  %v850_v8 = vmul.f32 0.044715, %v4932_v52  ;;  %v1763_v24 = vpack.c.bf16 %v1659_v57, %v1658_v43  ;;  %3502 = vmatmul.msk.bf16.gmra.mxu0 %vm230_vm1, %v156_v39  ;;  %3531 = vmatmul.msk.bf16.gmra.mxu2 %vm230_vm1, %v185_v30  ;;  %v2168_v6 = vpop.f32.mrf.mxu3  ;;  %v4956_v36 = vmul.f32 0.5, %v2027_v47 }
 0x16b   :  { %3724 = vtanh.f32 %v2886_v55  ;;  %v2827_v13 = vadd.f32 %v2711_v25, %v2167_v26  ;;  %v2539_v15 = vmul.f32 %v2423_v40, %v2027_v47  ;;  %v2169_v16 = vadd.f32 %v2168_v6, %v4698_v34 }
 0x16c   :  { %v3233_v17 = vmul.f32 %v3117_v48, %v4883_v45  ;;  %v966_v2 = vmul.f32 %v850_v8, %v4932_v52  ;;  %3558 = vmatmul.msk.bf16.gmra.mxu1 %vm1827_vm2, %v1763_v24  ;;  %v4961_v12 = vmul.f32 0.5, %v4857_v27  ;;  %v1136_v21 = vmul.f32 %v4847_v58, %v4807_v1 }
 0x16d   :  { %v3723_v29 = vpop.eup %3722  ;;  %v2943_v39 = vmul.f32 0.7978846, %v2827_v13  ;;  %v2655_v54 = vmul.f32 %v2539_v15, %v2027_v47  ;;  %v2480_v41 = vmul.f32 0.044715, %v2169_v16  ;;  %v628_v30 = vpop.f32.mrf.mxu2  ;;  %v4970_v26 = vmul.f32 0.5, %v2169_v16 }
 0x16e   :  { %3349 = vst.msk [vmem:[%s6627_s4 + $0x20] sm:$0xff] %vm1827_vm2, %v3233_v17  ;;  %v3174_v45 = vadd.f32 1.0, %v3723_v29  ;;  %v1082_v60 = vmul.f32 %v966_v2, %v4932_v52  ;;  %v4973_v31 = vadd.f32 %v628_v30, %v4253_v62  ;;  %v2028_v22 = vpop.f32.mrf.mxu1  ;;  %v1137_v43 = vmul.f32 %v4895_v28, %v4857_v27 }
 0x16f   :  { %3726 = vtanh.f32 %v2943_v39  ;;  %v2771_v59 = vadd.f32 %v2655_v54, %v2027_v47  ;;  %v2596_v5 = vmul.f32 %v2480_v41, %v2169_v16  ;;  %v2029_v37 = vadd.f32 %v2028_v22, %v4698_v34  ;;  %v485_v58 = vpop.f32.mrf.mxu0 }
 0x170   :  { %v3290_v38 = vmul.f32 %v3174_v45, %v4903_v23  ;;  %v908_v50 = vmul.f32 0.044715, %v4973_v31  ;;  %v4979_v18 = vadd.f32 %v485_v58, %v4253_v62  ;;  %v1198_v3 = vadd.f32 %v1082_v60, %v4932_v52 }
 0x171   :  { %v3725_v44 = vpop.eup %3724  ;;  %v2887_v42 = vmul.f32 0.7978846, %v2771_v59  ;;  %v2712_v10 = vmul.f32 %v2596_v5, %v2169_v16  ;;  %v2424_v11 = vmul.f32 0.044715, %v2029_v37  ;;  %v4989_v0 = vmul.f32 0.5, %v2029_v37 }
 0x172   :  { %3406 = vst.msk [vmem:[%s6627_s4 + $0x1e8] sm:$0xff] %vm1827_vm2, %v3290_v38  ;;  %v3118_v23 = vadd.f32 1.0, %v3725_v44  ;;  %v1024_v47 = vmul.f32 %v908_v50, %v4973_v31  ;;  %v851_v46 = vmul.f32 0.044715, %v4979_v18  ;;  %v2171_v57 = vpop.f32.mrf.mxu3  ;;  %v1252_v55 = vadd.f32 %v1136_v21, %v4807_v1 }
 0x173   :  { %3728 = vtanh.f32 %v2887_v42  ;;  %v2828_v28 = vadd.f32 %v2712_v10, %v2169_v16  ;;  %v2540_v53 = vmul.f32 %v2424_v11, %v2029_v37  ;;  %v1253_v8 = vadd.f32 %v1137_v43, %v4857_v27  ;;  %v63_v42 = vld [vmem:[%s6624_s0 + $0x160] sm:$0xff] }
 0x174   :  { %v3234_v25 = vmul.f32 %v3118_v23, %v4905_v49  ;;  %v1140_v40 = vmul.f32 %v1024_v47, %v4973_v31  ;;  %v967_v48 = vmul.f32 %v851_v46, %v4979_v18  ;;  %v1368_v15 = vmul.f32 0.7978846, %v1252_v55  ;;  %v121_v55 = vld [vmem:[%s6624_s0 + $0x330] sm:$0xff] }
 0x175   :  { %v3727_v24 = vpop.eup %3726  ;;  %v2944_v6 = vmul.f32 0.7978846, %v2828_v28  ;;  %v2656_v13 = vmul.f32 %v2540_v53, %v2029_v37  ;;  %v2172_v17 = vadd.f32 %v2171_v57, %v4698_v34  ;;  %v630_v2 = vpop.f32.mrf.mxu2  ;;  %v5004_v49 = vmul.f32 %v4943_v4, %v4922_v51 }
 0x176   :  { %3350 = vst.msk [vmem:[%s6627_s4 + $0x28] sm:$0xff] %vm1827_vm2, %v3234_v25  ;;  %v3175_v1 = vadd.f32 1.0, %v3727_v24  ;;  %v5006_v16 = vmul.f32 0.7978846, %v1198_v3  ;;  %v1369_v27 = vmul.f32 0.7978846, %v1253_v8  ;;  %v2031_v29 = vpop.f32.mrf.mxu1  ;;  %v1256_v39 = vadd.f32 %v1140_v40, %v4973_v31 }
 0x177   :  { %3730 = vtanh.f32 %v2944_v6  ;;  %v2772_v54 = vadd.f32 %v2656_v13, %v2029_v37  ;;  %v2481_v41 = vmul.f32 0.044715, %v2172_v17  ;;  %v488_v30 = vpop.f32.mrf.mxu0  ;;  %v5011_v45 = vmul.f32 %v967_v48, %v4979_v18  ;;  %v64_v3 = vld [vmem:[%s6624_s0 + $0x168] sm:$0xff] }
 0x178   :  { %v3291_v21 = vmul.f32 %v3175_v1, %v4929_v14  ;;  %3732 = vtanh.f32 %v1368_v15  ;;  %v5014_v60 = vadd.f32 %v630_v2, %v4253_v62  ;;  %v2032_v5 = vadd.f32 %v2031_v29, %v4698_v34 }
 0x179   :  { %v3729_v4 = vpop.eup %3728  ;;  %v2888_v22 = vmul.f32 0.7978846, %v2772_v54  ;;  %3734 = vtanh.f32 %v1369_v27  ;;  %v2597_v59 = vmul.f32 %v2481_v41, %v2172_v17  ;;  %v5021_v14 = vmul.f32 0.5, %v2172_v17 }
 0x17a   :  { %3407 = vst.msk [vmem:[%s6627_s4 + $0x1f0] sm:$0xff] %vm1827_vm2, %v3291_v21  ;;  %v3119_v37 = vadd.f32 1.0, %v3729_v4  ;;  %v909_v58 = vmul.f32 0.044715, %v5014_v60  ;;  %v5025_v38 = vadd.f32 %v488_v30, %v4253_v62  ;;  %v5027_v50 = vmul.f32 0.7978846, %v1256_v39  ;;  %v2173_v48 = vpop.f32.mrf.mxu3 }
 0x17b   :  { %3736 = vtanh.f32 %v2888_v22  ;;  %v2713_v43 = vmul.f32 %v2597_v59, %v2172_v17  ;;  %v2425_v44 = vmul.f32 0.044715, %v2032_v5  ;;  %v5036_v11 = vmul.f32 0.5, %v2032_v5 }
 0x17c   :  { %v3235_v10 = vmul.f32 %v3119_v37, %v4956_v36  ;;  %v852_v23 = vmul.f32 0.044715, %v5025_v38  ;;  %v732_v47 = vmul.f32 0.5, %v4865_v9  ;;  %v1197_v53 = vadd.f32 %v4936_v63, %v4900_v7  ;;  %v122_v36 = vld [vmem:[%s6624_s0 + $0x338] sm:$0xff] }
 0x17d   :  { %v3731_v46 = vpop.eup %3730  ;;  %v2829_v57 = vadd.f32 %v2713_v43, %v2172_v17  ;;  %v2541_v28 = vmul.f32 %v2425_v44, %v2032_v5  ;;  %3738 = vtanh.f32 %v4910_v32  ;;  %v1025_v40 = vmul.f32 %v909_v58, %v5014_v60  ;;  %v633_v29 = vpop.f32.mrf.mxu2 }
 0x17e   :  { %v3733_v25 = vpop.eup %3732  ;;  %3351 = vst.msk [vmem:[%s6627_s4 + $0x30] sm:$0xff] %vm1827_vm2, %v3235_v10  ;;  %v3176_v9 = vadd.f32 1.0, %v3731_v46  ;;  %v968_v63 = vmul.f32 %v852_v23, %v5025_v38  ;;  %v157_v32 = vpack.c.bf16 %v64_v3, %v63_v42  ;;  %v1313_v15 = vmul.f32 0.7978846, %v1197_v53  ;;  %v2033_v22 = vpop.f32.mrf.mxu1 }
 0x17f   :  { %v3735_v8 = vpop.eup %3734  ;;  %v1600_v24 = vadd.f32 1.0, %v3733_v25  ;;  %v2945_v6 = vmul.f32 0.7978846, %v2829_v57  ;;  %v2657_v13 = vmul.f32 %v2541_v28, %v2032_v5  ;;  %v186_v27 = vpack.c.bf16 %v122_v36, %v121_v55  ;;  %v490_v59 = vpop.f32.mrf.mxu0 }
 0x180   :  { %v3292_v17 = vmul.f32 %v3176_v9, %v4970_v26  ;;  %v1601_v2 = vadd.f32 1.0, %v3735_v8  ;;  %v1084_v1 = vmul.f32 %v968_v63, %v5025_v38  ;;  %3503 = vmatmul.msk.bf16.gmra.mxu0 %vm230_vm1, %v157_v32  ;;  %v2174_v30 = vadd.f32 %v2173_v48, %v4698_v34 }
 0x181   :  { %v3737_v39 = vpop.eup %3736  ;;  %v1716_v54 = vmul.f32 %v1600_v24, %v4925_v19  ;;  %3740 = vtanh.f32 %v2945_v6  ;;  %v2773_v41 = vadd.f32 %v2657_v13, %v2032_v5  ;;  %3532 = vmatmul.msk.bf16.gmra.mxu2 %vm230_vm1, %v186_v27  ;;  %v733_v5 = vmul.f32 0.5, %v4900_v7 }
 0x182   :  { %3408 = vst.msk [vmem:[%s6627_s4 + $0x1f8] sm:$0xff] %vm1827_vm2, %v3292_v17  ;;  %v3120_v26 = vadd.f32 1.0, %v3737_v39  ;;  %v1717_v21 = vmul.f32 %v1601_v2, %v4961_v12  ;;  %v1200_v4 = vadd.f32 %v1084_v1, %v5025_v38  ;;  %3742 = vtanh.f32 %v1313_v15  ;;  %v2176_v8 = vpop.f32.mrf.mxu3 }
 0x183   :  { %v3739_v19 = vpop.eup %3738  ;;  %v2889_v37 = vmul.f32 0.7978846, %v2773_v41  ;;  %v2482_v58 = vmul.f32 0.044715, %v2174_v30  ;;  %v5069_v43 = vadd.f32 %v633_v29, %v4253_v62  ;;  %v5073_v12 = vmul.f32 %v1025_v40, %v5014_v60 }
 0x184   :  { %v3236_v44 = vmul.f32 %v3120_v26, %v4989_v0  ;;  %v1792_v42 = vpack.c.bf16 %v1717_v21, %v1716_v54  ;;  %v1544_v3 = vadd.f32 1.0, %v3739_v19  ;;  %v2034_v46 = vadd.f32 %v2033_v22, %v4698_v34 }
 0x185   :  { %3744 = vtanh.f32 %v2889_v37  ;;  %v2598_v10 = vmul.f32 %v2482_v58, %v2174_v30  ;;  %v910_v23 = vmul.f32 0.044715, %v5069_v43  ;;  %v5082_v7 = vmul.f32 0.7978846, %v1200_v4  ;;  %v635_v41 = vpop.f32.mrf.mxu2 }
 0x186   :  { %3352 = vst.msk [vmem:[%s6627_s4 + $0x38] sm:$0xff] %vm1827_vm2, %v3236_v44  ;;  %3587 = vmatmul.msk.bf16.gmra.mxu3 %vm1827_vm2, %v1792_v42  ;;  %v1660_v0 = vmul.f32 %v1544_v3, %v732_v47  ;;  %v5084_v57 = vmul.f32 0.5, %v2174_v30  ;;  %v5087_v28 = vadd.f32 %v490_v59, %v4253_v62  ;;  %v2426_v25 = vmul.f32 0.044715, %v2034_v46  ;;  %v65_v3 = vld [vmem:[%s6624_s0 + $0x170] sm:$0xff] }
 0x187   :  { %v3741_v53 = vpop.eup %3740  ;;  %v2714_v55 = vmul.f32 %v2598_v10, %v2174_v30  ;;  %v1026_v36 = vmul.f32 %v910_v23, %v5069_v43  ;;  %v5091_v9 = vmul.f32 0.5, %v4891_v20  ;;  %v1138_v47 = vmul.f32 %v4913_v33, %v4891_v20  ;;  %v493_v4 = vpop.f32.mrf.mxu0 }
 0x188   :  { %v3743_v40 = vpop.eup %3742  ;;  %v3177_v63 = vadd.f32 1.0, %v3741_v53  ;;  %v853_v32 = vmul.f32 0.044715, %v5087_v28  ;;  %v1139_v48 = vmul.f32 %v5004_v49, %v4922_v51  ;;  %v2542_v15 = vmul.f32 %v2426_v25, %v2034_v46 }
 0x189   :  { %v1545_v24 = vadd.f32 1.0, %v3743_v40  ;;  %v2830_v6 = vadd.f32 %v2714_v55, %v2174_v30  ;;  %v1142_v13 = vmul.f32 %v1026_v36, %v5069_v43  ;;  %v5101_v2 = vmul.f32 0.5, %v4922_v51 }
 0x18a   :  { %v3293_v17 = vmul.f32 %v3177_v63, %v5021_v14  ;;  %v1254_v1 = vadd.f32 %v1138_v47, %v4891_v20  ;;  %v1255_v27 = vadd.f32 %v1139_v48, %v4922_v51  ;;  %v5105_v54 = vmul.f32 0.5, %v2034_v46  ;;  %v2036_v20 = vpop.f32.mrf.mxu1  ;;  %v2178_v47 = vpop.f32.mrf.mxu3 }
 0x18b   :  { %v3745_v29 = vpop.eup %3744  ;;  %v1661_v33 = vmul.f32 %v1545_v24, %v733_v5  ;;  %v2946_v39 = vmul.f32 0.7978846, %v2830_v6  ;;  %v2658_v49 = vmul.f32 %v2542_v15, %v2034_v46  ;;  %v969_v30 = vmul.f32 %v853_v32, %v5087_v28  ;;  %v123_v6 = vld [vmem:[%s6624_s0 + $0x340] sm:$0xff] }
 0x18c   :  { %3409 = vst.msk [vmem:[%s6627_s4 + $0x200] sm:$0xff] %vm1827_vm2, %v3293_v17  ;;  %v3121_v14 = vadd.f32 1.0, %v3745_v29  ;;  %v1370_v26 = vmul.f32 0.7978846, %v1254_v1  ;;  %v1371_v21 = vmul.f32 0.7978846, %v1255_v27  ;;  %v1258_v22 = vadd.f32 %v1142_v13, %v5069_v43 }
 0x18d   :  { %v1764_v51 = vpack.c.bf16 %v1661_v33, %v1660_v0  ;;  %3746 = vtanh.f32 %v2946_v39  ;;  %v2774_v59 = vadd.f32 %v2658_v49, %v2034_v46  ;;  %v2177_v37 = vadd.f32 %v2176_v8, %v4698_v34  ;;  %v66_v0 = vld [vmem:[%s6624_s0 + $0x178] sm:$0xff]  ;;  %v124_v13 = vld [vmem:[%s6624_s0 + $0x348] sm:$0xff] }
 0x18e   :  { %v3237_v19 = vmul.f32 %v3121_v14, %v5036_v11  ;;  %3748 = vtanh.f32 %v1370_v26  ;;  %v5116_v5 = vadd.f32 %v635_v41, %v4253_v62  ;;  %v2037_v44 = vadd.f32 %v2036_v20, %v4698_v34 }
 0x18f   :  { %3559 = vmatmul.msk.bf16.gmra.mxu1 %vm1827_vm2, %v1764_v51  ;;  %v2890_v58 = vmul.f32 0.7978846, %v2774_v59  ;;  %3750 = vtanh.f32 %v1371_v21  ;;  %v5121_v42 = vadd.f32 %v493_v4, %v4253_v62  ;;  %v5131_v11 = vmul.f32 %v969_v30, %v5087_v28 }
 0x190   :  { %3353 = vst.msk [vmem:[%s6627_s4 + $0x40] sm:$0xff] %vm1827_vm2, %v3237_v19  ;;  %v2483_v10 = vmul.f32 0.044715, %v2177_v37  ;;  %v911_v23 = vmul.f32 0.044715, %v5116_v5  ;;  %v1199_v46 = vadd.f32 %v5011_v45, %v4979_v18  ;;  %v5142_v25 = vmul.f32 0.5, %v2177_v37 }
 0x191   :  { %v5139_v53 = vmul.f32 0.7978846, %v1258_v22  ;;  %3752 = vtanh.f32 %v2890_v58  ;;  %v2427_v55 = vmul.f32 0.044715, %v2037_v44  ;;  %v854_v36 = vmul.f32 0.044715, %v5121_v42 }
 0x192   :  { %v2599_v40 = vmul.f32 %v2483_v10, %v2177_v37  ;;  %v1027_v63 = vmul.f32 %v911_v23, %v5116_v5  ;;  %v5145_v32 = vmul.f32 0.5, %v2037_v44  ;;  %v1315_v24 = vmul.f32 0.7978846, %v1199_v46  ;;  %v2038_v20 = vpop.f32.mrf.mxu1 }
 0x193   :  { %v3747_v48 = vpop.eup %3746  ;;  %v2543_v45 = vmul.f32 %v2427_v55, %v2037_v44  ;;  %v970_v8 = vmul.f32 %v854_v36, %v5121_v42  ;;  %3754 = vtanh.f32 %v5006_v16  ;;  %v734_v27 = vmul.f32 0.5, %v4932_v52  ;;  %v638_v16 = vpop.f32.mrf.mxu2 }
 0x194   :  { %v3749_v15 = vpop.eup %3748  ;;  %v3178_v17 = vadd.f32 1.0, %v3747_v48  ;;  %v2715_v1 = vmul.f32 %v2599_v40, %v2177_v37  ;;  %v158_v29 = vpack.c.bf16 %v66_v0, %v65_v3  ;;  %3756 = vtanh.f32 %v1315_v24 }
 0x195   :  { %v3751_v33 = vpop.eup %3750  ;;  %v1602_v39 = vadd.f32 1.0, %v3749_v15  ;;  %v2659_v49 = vmul.f32 %v2543_v45, %v2037_v44  ;;  %v1086_v41 = vmul.f32 %v970_v8, %v5121_v42  ;;  %v187_v21 = vpack.c.bf16 %v124_v13, %v123_v6  ;;  %v2181_v8 = vpop.f32.mrf.mxu3 }
 0x196   :  { %v3294_v14 = vmul.f32 %v3178_v17, %v5084_v57  ;;  %v1603_v30 = vadd.f32 1.0, %v3751_v33  ;;  %v2831_v26 = vadd.f32 %v2715_v1, %v2177_v37  ;;  %3504 = vmatmul.msk.bf16.gmra.mxu0 %vm230_vm1, %v158_v29  ;;  %v2179_v59 = vadd.f32 %v2178_v47, %v4698_v34 }
 0x197   :  { %v3753_v4 = vpop.eup %3752  ;;  %v1718_v51 = vmul.f32 %v1602_v39, %v5091_v9  ;;  %v2775_v52 = vadd.f32 %v2659_v49, %v2037_v44  ;;  %v1202_v22 = vadd.f32 %v1086_v41, %v5121_v42  ;;  %3533 = vmatmul.msk.bf16.gmra.mxu2 %vm230_vm1, %v187_v21  ;;  %v5169_v58 = vadd.f32 %v638_v16, %v4253_v62  ;;  %v495_v9 = vpop.f32.mrf.mxu0 }
 0x198   :  { %3410 = vst.msk [vmem:[%s6627_s4 + $0x208] sm:$0xff] %vm1827_vm2, %v3294_v14  ;;  %v3122_v57 = vadd.f32 1.0, %v3753_v4  ;;  %v1719_v19 = vmul.f32 %v1603_v30, %v5101_v2  ;;  %v2947_v37 = vmul.f32 0.7978846, %v2831_v26  ;;  %v5172_v3 = vmul.f32 %v1027_v63, %v5116_v5 }
 0x199   :  { %v3755_v44 = vpop.eup %3754  ;;  %v2891_v10 = vmul.f32 0.7978846, %v2775_v52  ;;  %v735_v23 = vmul.f32 0.5, %v4979_v18  ;;  %v2039_v46 = vadd.f32 %v2038_v20, %v4698_v34  ;;  %v5177_v40 = vmul.f32 0.7978846, %v1202_v22 }
 0x19a   :  { %v3238_v0 = vmul.f32 %v3122_v57, %v5105_v54  ;;  %v1793_v55 = vpack.c.bf16 %v1719_v19, %v1718_v51  ;;  %3758 = vtanh.f32 %v2947_v37  ;;  %v1546_v2 = vadd.f32 1.0, %v3755_v44  ;;  %v3757_v36 = vpop.eup %3756  ;;  %v2041_v22 = vpop.f32.mrf.mxu1 }
 0x19b   :  { %3760 = vtanh.f32 %v2891_v10  ;;  %v2484_v47 = vmul.f32 0.044715, %v2179_v59  ;;  %v912_v48 = vmul.f32 0.044715, %v5169_v58  ;;  %v1547_v18 = vadd.f32 1.0, %v3757_v36  ;;  %v68_v36 = vld [vmem:[%s6624_s0 + $0x188] sm:$0xff] }
 0x19c   :  { %3354 = vst.msk [vmem:[%s6627_s4 + $0x48] sm:$0xff] %vm1827_vm2, %v3238_v0  ;;  %3588 = vmatmul.msk.bf16.gmra.mxu3 %vm1827_vm2, %v1793_v55  ;;  %v5185_v63 = vmul.f32 0.5, %v2179_v59  ;;  %v2428_v54 = vmul.f32 0.044715, %v2039_v46  ;;  %v5188_v45 = vadd.f32 %v495_v9, %v4253_v62  ;;  %v1662_v24 = vmul.f32 %v1546_v2, %v734_v27  ;;  %v640_v27 = vpop.f32.mrf.mxu2 }
 0x19d   :  { %v2600_v6 = vmul.f32 %v2484_v47, %v2179_v59  ;;  %v1028_v13 = vmul.f32 %v912_v48, %v5169_v58  ;;  %v5191_v15 = vmul.f32 0.5, %v2039_v46  ;;  %v1663_v17 = vmul.f32 %v1547_v18, %v735_v23  ;;  %v125_v47 = vld [vmem:[%s6624_s0 + $0x350] sm:$0xff] }
 0x19e   :  { %v2544_v1 = vmul.f32 %v2428_v54, %v2039_v46  ;;  %v855_v29 = vmul.f32 0.044715, %v5188_v45  ;;  %v1257_v33 = vadd.f32 %v5073_v12, %v5014_v60  ;;  %3762 = vtanh.f32 %v5027_v50 }
 0x19f   :  { %v2716_v39 = vmul.f32 %v2600_v6, %v2179_v59  ;;  %v1144_v49 = vmul.f32 %v1028_v13, %v5169_v58  ;;  %v2182_v41 = vadd.f32 %v2181_v8, %v4698_v34  ;;  %v1765_v14 = vpack.c.bf16 %v1663_v17, %v1662_v24  ;;  %v498_v37 = vpop.f32.mrf.mxu0  ;;  %v126_v17 = vld [vmem:[%s6624_s0 + $0x358] sm:$0xff] }
 0x1a0   :  { %v3759_v16 = vpop.eup %3758  ;;  %v2660_v30 = vmul.f32 %v2544_v1, %v2039_v46  ;;  %v792_v26 = vmul.f32 0.5, %v4973_v31  ;;  %v1373_v21 = vmul.f32 0.7978846, %v1257_v33  ;;  %v971_v52 = vmul.f32 %v855_v29, %v5188_v45  ;;  %v2183_v1 = vpop.f32.mrf.mxu3 }
 0x1a1   :  { %v3761_v20 = vpop.eup %3760  ;;  %v3179_v4 = vadd.f32 1.0, %v3759_v16  ;;  %v2832_v51 = vadd.f32 %v2716_v39, %v2179_v59  ;;  %v793_v12 = vmul.f32 0.5, %v5014_v60  ;;  %3560 = vmatmul.msk.bf16.gmra.mxu1 %vm1827_vm2, %v1765_v14  ;;  %v1260_v50 = vadd.f32 %v1144_v49, %v5169_v58 }
 0x1a2   :  { %v3123_v57 = vadd.f32 1.0, %v3761_v20  ;;  %v2776_v19 = vadd.f32 %v2660_v30, %v2039_v46  ;;  %3764 = vtanh.f32 %v1373_v21  ;;  %v5205_v44 = vmul.f32 0.5, %v2182_v41 }
 0x1a3   :  { %v3295_v9 = vmul.f32 %v3179_v4, %v5142_v25  ;;  %v2948_v31 = vmul.f32 0.7978846, %v2832_v51  ;;  %v2485_v10 = vmul.f32 0.044715, %v2182_v41  ;;  %v5209_v60 = vadd.f32 %v640_v27, %v4253_v62 }
 0x1a4   :  { %v3239_v59 = vmul.f32 %v3123_v57, %v5145_v32  ;;  %v2892_v23 = vmul.f32 0.7978846, %v2776_v19  ;;  %v2042_v0 = vadd.f32 %v2041_v22, %v4698_v34  ;;  %v3763_v55 = vpop.eup %3762  ;;  %v5217_v25 = vmul.f32 %v971_v52, %v5188_v45  ;;  %v67_v32 = vld [vmem:[%s6624_s0 + $0x180] sm:$0xff] }
 0x1a5   :  { %3411 = vst.msk [vmem:[%s6627_s4 + $0x210] sm:$0xff] %vm1827_vm2, %v3295_v9  ;;  %3766 = vtanh.f32 %v2948_v31  ;;  %v2601_v46 = vmul.f32 %v2485_v10, %v2182_v41  ;;  %v5220_v2 = vadd.f32 %v498_v37, %v4253_v62  ;;  %v5235_v48 = vmul.f32 0.7978846, %v1260_v50  ;;  %v2043_v37 = vpop.f32.mrf.mxu1 }
 0x1a6   :  { %3355 = vst.msk [vmem:[%s6627_s4 + $0x50] sm:$0xff] %vm1827_vm2, %v3239_v59  ;;  %3768 = vtanh.f32 %v2892_v23  ;;  %v1604_v18 = vadd.f32 1.0, %v3763_v55  ;;  %v913_v54 = vmul.f32 0.044715, %v5209_v60  ;;  %v2429_v24 = vmul.f32 0.044715, %v2042_v0 }
 0x1a7   :  { %v2717_v8 = vmul.f32 %v2601_v46, %v2182_v41  ;;  %v856_v6 = vmul.f32 0.044715, %v5220_v2  ;;  %v736_v13 = vmul.f32 0.5, %v5025_v38  ;;  %v5243_v39 = vmul.f32 0.5, %v2042_v0  ;;  %v643_v38 = vpop.f32.mrf.mxu2  ;;  %v500_v9 = vpop.f32.mrf.mxu0 }
 0x1a8   :  { %v3765_v29 = vpop.eup %3764  ;;  %v1720_v33 = vmul.f32 %v1604_v18, %v792_v26  ;;  %v1201_v49 = vadd.f32 %v5131_v11, %v5087_v28  ;;  %3770 = vtanh.f32 %v5082_v7  ;;  %v2545_v14 = vmul.f32 %v2429_v24, %v2042_v0 }
 0x1a9   :  { %v1605_v27 = vadd.f32 1.0, %v3765_v29  ;;  %v2833_v16 = vadd.f32 %v2717_v8, %v2182_v41  ;;  %v972_v30 = vmul.f32 %v856_v6, %v5220_v2  ;;  %v1029_v21 = vmul.f32 %v913_v54, %v5209_v60 }
 0x1aa   :  { %v1317_v20 = vmul.f32 0.7978846, %v1201_v49  ;;  %v159_v4 = vpack.c.bf16 %v68_v36, %v67_v32  ;;  %v188_v51 = vpack.c.bf16 %v126_v17, %v125_v47  ;;  %v2661_v57 = vmul.f32 %v2545_v14, %v2042_v0  ;;  %v2186_v17 = vpop.f32.mrf.mxu3 }
 0x1ab   :  { %v3767_v52 = vpop.eup %3766  ;;  %v1721_v26 = vmul.f32 %v1605_v27, %v793_v12  ;;  %v2949_v22 = vmul.f32 0.7978846, %v2833_v16  ;;  %v1088_v50 = vmul.f32 %v972_v30, %v5220_v2  ;;  %v2184_v7 = vadd.f32 %v2183_v1, %v4698_v34 }
 0x1ac   :  { %v3769_v11 = vpop.eup %3768  ;;  %v3180_v19 = vadd.f32 1.0, %v3767_v52  ;;  %3772 = vtanh.f32 %v1317_v20  ;;  %3505 = vmatmul.msk.bf16.gmra.mxu0 %vm230_vm1, %v159_v4  ;;  %3534 = vmatmul.msk.bf16.gmra.mxu2 %vm230_vm1, %v188_v51  ;;  %v5255_v41 = vadd.f32 %v643_v38, %v4253_v62  ;;  %v2777_v10 = vadd.f32 %v2661_v57, %v2042_v0 }
 0x1ad   :  { %v3124_v31 = vadd.f32 1.0, %v3769_v11  ;;  %v1794_v12 = vpack.c.bf16 %v1721_v26, %v1720_v33  ;;  %3774 = vtanh.f32 %v2949_v22  ;;  %v1204_v55 = vadd.f32 %v1088_v50, %v5220_v2 }
 0x1ae   :  { %v3771_v59 = vpop.eup %3770  ;;  %v3296_v23 = vmul.f32 %v3180_v19, %v5185_v63  ;;  %v737_v46 = vmul.f32 0.5, %v5087_v28  ;;  %v2486_v32 = vmul.f32 0.044715, %v2184_v7  ;;  %v2893_v47 = vmul.f32 0.7978846, %v2777_v10 }
 0x1af   :  { %v3240_v36 = vmul.f32 %v3124_v31, %v5191_v15  ;;  %3589 = vmatmul.msk.bf16.gmra.mxu3 %vm1827_vm2, %v1794_v12  ;;  %v1548_v18 = vadd.f32 1.0, %v3771_v59  ;;  %v914_v54 = vmul.f32 0.044715, %v5255_v41  ;;  %v5268_v63 = vmul.f32 %v1029_v21, %v5209_v60  ;;  %v645_v57 = vpop.f32.mrf.mxu2 }
 0x1b0   :  { %3412 = vst.msk [vmem:[%s6627_s4 + $0x218] sm:$0xff] %vm1827_vm2, %v3296_v23  ;;  %v2602_v0 = vmul.f32 %v2486_v32, %v2184_v7  ;;  %v2044_v28 = vadd.f32 %v2043_v37, %v4698_v34  ;;  %v5272_v8 = vadd.f32 %v500_v9, %v4253_v62  ;;  %3776 = vtanh.f32 %v2893_v47  ;;  %v2046_v37 = vpop.f32.mrf.mxu1 }
 0x1b1   :  { %3356 = vst.msk [vmem:[%s6627_s4 + $0x58] sm:$0xff] %vm1827_vm2, %v3240_v36  ;;  %v5278_v15 = vmul.f32 0.7978846, %v1204_v55  ;;  %v5280_v24 = vmul.f32 0.5, %v2184_v7  ;;  %v1030_v6 = vmul.f32 %v914_v54, %v5255_v41  ;;  %v1664_v29 = vmul.f32 %v1548_v18, %v736_v13 }
 0x1b2   :  { %v3773_v1 = vpop.eup %3772  ;;  %v2718_v33 = vmul.f32 %v2602_v0, %v2184_v7  ;;  %v2430_v49 = vmul.f32 0.044715, %v2044_v28  ;;  %v857_v27 = vmul.f32 0.044715, %v5272_v8  ;;  %v794_v38 = vmul.f32 0.5, %v5069_v43 }
 0x1b3   :  { %v3775_v16 = vpop.eup %3774  ;;  %v1549_v14 = vadd.f32 1.0, %v3773_v1  ;;  %v1146_v30 = vmul.f32 %v1030_v6, %v5255_v41  ;;  %v1259_v21 = vadd.f32 %v5172_v3, %v5116_v5  ;;  %v5288_v51 = vmul.f32 0.5, %v2044_v28  ;;  %v503_v3 = vpop.f32.mrf.mxu0 }
 0x1b4   :  { %v3181_v20 = vadd.f32 1.0, %v3775_v16  ;;  %v2834_v4 = vadd.f32 %v2718_v33, %v2184_v7  ;;  %v2546_v52 = vmul.f32 %v2430_v49, %v2044_v28  ;;  %v973_v13 = vmul.f32 %v857_v27, %v5272_v8  ;;  %v69_v33 = vld [vmem:[%s6624_s0 + $0x190] sm:$0xff] }
 0x1b5   :  { %v1665_v26 = vmul.f32 %v1549_v14, %v737_v46  ;;  %v1375_v22 = vmul.f32 0.7978846, %v1259_v21  ;;  %3778 = vtanh.f32 %v5139_v53  ;;  %v1262_v43 = vadd.f32 %v1146_v30, %v5255_v41  ;;  %v70_v21 = vld [vmem:[%s6624_s0 + $0x198] sm:$0xff] }
 0x1b6   :  { %v3297_v50 = vmul.f32 %v3181_v20, %v5205_v44  ;;  %v2950_v11 = vmul.f32 0.7978846, %v2834_v4  ;;  %v2662_v19 = vmul.f32 %v2546_v52, %v2044_v28  ;;  %v3777_v9 = vpop.eup %3776  ;;  %v795_v31 = vmul.f32 0.5, %v5116_v5  ;;  %v128_v20 = vld [vmem:[%s6624_s0 + $0x368] sm:$0xff] }
 0x1b7   :  { %v1766_v7 = vpack.c.bf16 %v1665_v26, %v1664_v29  ;;  %3780 = vtanh.f32 %v1375_v22  ;;  %v2187_v12 = vadd.f32 %v2186_v17, %v4698_v34  ;;  %v3125_v53 = vadd.f32 1.0, %v3777_v9  ;;  %v2188_v17 = vpop.f32.mrf.mxu3 }
 0x1b8   :  { %3413 = vst.msk [vmem:[%s6627_s4 + $0x220] sm:$0xff] %vm1827_vm2, %v3297_v50  ;;  %3782 = vtanh.f32 %v2950_v11  ;;  %v2778_v44 = vadd.f32 %v2662_v19, %v2044_v28  ;;  %v5301_v10 = vadd.f32 %v645_v57, %v4253_v62  ;;  %v5305_v59 = vmul.f32 %v973_v13, %v5272_v8  ;;  %v648_v11 = vpop.f32.mrf.mxu2  ;;  %v2048_v9 = vpop.f32.mrf.mxu1 }
 0x1b9   :  { %3561 = vmatmul.msk.bf16.gmra.mxu1 %vm1827_vm2, %v1766_v7  ;;  %v2487_v5 = vmul.f32 0.044715, %v2187_v12  ;;  %v2047_v23 = vadd.f32 %v2046_v37, %v4698_v34  ;;  %v5309_v55 = vadd.f32 %v503_v3, %v4253_v62  ;;  %v3241_v46 = vmul.f32 %v3125_v53, %v5243_v39 }
 0x1ba   :  { %v5312_v32 = vmul.f32 0.7978846, %v1262_v43  ;;  %v2894_v36 = vmul.f32 0.7978846, %v2778_v44  ;;  %v915_v47 = vmul.f32 0.044715, %v5301_v10  ;;  %v1203_v30 = vadd.f32 %v5217_v25, %v5188_v45 }
 0x1bb   :  { %v3779_v18 = vpop.eup %3778  ;;  %v5315_v54 = vmul.f32 0.5, %v2187_v12  ;;  %v2603_v0 = vmul.f32 %v2487_v5, %v2187_v12  ;;  %v2431_v28 = vmul.f32 0.044715, %v2047_v23  ;;  %v858_v6 = vmul.f32 0.044715, %v5309_v55  ;;  %3357 = vst.msk [vmem:[%s6627_s4 + $0x60] sm:$0xff] %vm1827_vm2, %v3241_v46 }
 0x1bc   :  { %3784 = vtanh.f32 %v2894_v36  ;;  %v1606_v39 = vadd.f32 1.0, %v3779_v18  ;;  %v5322_v1 = vmul.f32 0.5, %v2047_v23  ;;  %v738_v29 = vmul.f32 0.5, %v5121_v42  ;;  %v127_v42 = vld [vmem:[%s6624_s0 + $0x360] sm:$0xff] }
 0x1bd   :  { %v3781_v49 = vpop.eup %3780  ;;  %v2719_v27 = vmul.f32 %v2603_v0, %v2187_v12  ;;  %v2547_v16 = vmul.f32 %v2431_v28, %v2047_v23  ;;  %v974_v14 = vmul.f32 %v858_v6, %v5309_v55  ;;  %v1031_v13 = vmul.f32 %v915_v47, %v5301_v10 }
 0x1be   :  { %v3783_v4 = vpop.eup %3782  ;;  %v1607_v52 = vadd.f32 1.0, %v3781_v49  ;;  %v1722_v26 = vmul.f32 %v1606_v39, %v794_v38  ;;  %3786 = vtanh.f32 %v5177_v40  ;;  %v1319_v19 = vmul.f32 0.7978846, %v1203_v30 }
 0x1bf   :  { %v3182_v25 = vadd.f32 1.0, %v3783_v4  ;;  %v2835_v22 = vadd.f32 %v2719_v27, %v2187_v12  ;;  %v2663_v57 = vmul.f32 %v2547_v16, %v2047_v23  ;;  %v1090_v50 = vmul.f32 %v974_v14, %v5309_v55  ;;  %v505_v12 = vpop.f32.mrf.mxu0  ;;  %v2191_v49 = vpop.f32.mrf.mxu3 }
 0x1c0   :  { %v1723_v43 = vmul.f32 %v1607_v52, %v795_v31  ;;  %v160_v37 = vpack.c.bf16 %v70_v21, %v69_v33  ;;  %v189_v3 = vpack.c.bf16 %v128_v20, %v127_v42  ;;  %3788 = vtanh.f32 %v1319_v19 }
 0x1c1   :  { %v3298_v7 = vmul.f32 %v3182_v25, %v5280_v24  ;;  %v2951_v53 = vmul.f32 0.7978846, %v2835_v22  ;;  %v2779_v44 = vadd.f32 %v2663_v57, %v2047_v23  ;;  %v1206_v38 = vadd.f32 %v1090_v50, %v5309_v55 }
 0x1c2   :  { %v3785_v5 = vpop.eup %3784  ;;  %v1795_v46 = vpack.c.bf16 %v1723_v43, %v1722_v26  ;;  %3506 = vmatmul.msk.bf16.gmra.mxu0 %vm230_vm1, %v160_v37  ;;  %3535 = vmatmul.msk.bf16.gmra.mxu2 %vm230_vm1, %v189_v3  ;;  %v2189_v40 = vadd.f32 %v2188_v17, %v4698_v34  ;;  %v5349_v31 = vadd.f32 %v648_v11, %v4253_v62  ;;  %v739_v36 = vmul.f32 0.5, %v5188_v45  ;;  %v2051_v37 = vpop.f32.mrf.mxu1 }
 0x1c3   :  { %3414 = vst.msk [vmem:[%s6627_s4 + $0x228] sm:$0xff] %vm1827_vm2, %v3298_v7  ;;  %v3126_v24 = vadd.f32 1.0, %v3785_v5  ;;  %3790 = vtanh.f32 %v2951_v53  ;;  %v2895_v23 = vmul.f32 0.7978846, %v2779_v44  ;;  %v5358_v18 = vmul.f32 %v1031_v13, %v5301_v10  ;;  %v650_v44 = vpop.f32.mrf.mxu2 }
 0x1c4   :  { %v3787_v47 = vpop.eup %3786  ;;  %3590 = vmatmul.msk.bf16.gmra.mxu3 %vm1827_vm2, %v1795_v46  ;;  %v2488_v0 = vmul.f32 0.044715, %v2189_v40  ;;  %v916_v28 = vmul.f32 0.044715, %v5349_v31  ;;  %v2049_v6 = vadd.f32 %v2048_v9, %v4698_v34  ;;  %v5364_v33 = vadd.f32 %v505_v12, %v4253_v62 }
 0x1c5   :  { %v3242_v17 = vmul.f32 %v3126_v24, %v5288_v51  ;;  %3792 = vtanh.f32 %v2895_v23  ;;  %v1550_v39 = vadd.f32 1.0, %v3787_v47  ;;  %v5366_v45 = vmul.f32 0.7978846, %v1206_v38 }
 0x1c6   :  { %v2604_v27 = vmul.f32 %v2488_v0, %v2189_v40  ;;  %v1032_v16 = vmul.f32 %v916_v28, %v5349_v31  ;;  %v2432_v14 = vmul.f32 0.044715, %v2049_v6  ;;  %v5373_v21 = vmul.f32 0.5, %v2189_v40  ;;  %v3789_v20 = vpop.eup %3788 }
 0x1c7   :  { %3358 = vst.msk [vmem:[%s6627_s4 + $0x68] sm:$0xff] %vm1827_vm2, %v3242_v17  ;;  %v1666_v30 = vmul.f32 %v1550_v39, %v738_v29  ;;  %v5375_v51 = vmul.f32 0.5, %v2049_v6  ;;  %v859_v42 = vmul.f32 0.044715, %v5364_v33  ;;  %v1261_v13 = vadd.f32 %v5268_v63, %v5209_v60  ;;  %v508_v46 = vpop.f32.mrf.mxu0  ;;  %v72_v17 = vld [vmem:[%s6624_s0 + $0x1a8] sm:$0xff]  ;;  %v2193_v39 = vpop.f32.mrf.mxu3 }
 0x1c8   :  { %v2720_v4 = vmul.f32 %v2604_v27, %v2189_v40  ;;  %v1148_v52 = vmul.f32 %v1032_v16, %v5349_v31  ;;  %v2548_v26 = vmul.f32 %v2432_v14, %v2049_v6  ;;  %v1551_v22 = vadd.f32 1.0, %v3789_v20 }
 0x1c9   :  { %v3791_v25 = vpop.eup %3790  ;;  %v975_v57 = vmul.f32 %v859_v42, %v5364_v33  ;;  %v796_v29 = vmul.f32 0.5, %v5169_v58  ;;  %3794 = vtanh.f32 %v5235_v48  ;;  %v2192_v19 = vadd.f32 %v2191_v49, %v4698_v34 }
 0x1ca   :  { %v3183_v50 = vadd.f32 1.0, %v3791_v25  ;;  %v2836_v11 = vadd.f32 %v2720_v4, %v2189_v40  ;;  %v2664_v43 = vmul.f32 %v2548_v26, %v2049_v6  ;;  %v1667_v9 = vmul.f32 %v1551_v22, %v739_v36 }
 0x1cb   :  { %v3793_v3 = vpop.eup %3792  ;;  %v1091_v7 = vmul.f32 %v975_v57, %v5364_v33  ;;  %v797_v63 = vmul.f32 0.5, %v5209_v60  ;;  %v1377_v53 = vmul.f32 0.7978846, %v1261_v13  ;;  %v1264_v48 = vadd.f32 %v1148_v52, %v5349_v31 }
 0x1cc   :  { %v3299_v38 = vmul.f32 %v3183_v50, %v5315_v54  ;;  %v3127_v5 = vadd.f32 1.0, %v3793_v3  ;;  %v2952_v58 = vmul.f32 0.7978846, %v2836_v11  ;;  %v1767_v40 = vpack.c.bf16 %v1667_v9, %v1666_v30  ;;  %v129_v11 = vld [vmem:[%s6624_s0 + $0x370] sm:$0xff] }
 0x1cd   :  { %v2780_v12 = vadd.f32 %v2664_v43, %v2049_v6  ;;  %v1207_v24 = vadd.f32 %v1091_v7, %v5364_v33  ;;  %3796 = vtanh.f32 %v1377_v53  ;;  %v2489_v23 = vmul.f32 0.044715, %v2192_v19  ;;  %v2053_v7 = vpop.f32.mrf.mxu1 }
 0x1ce   :  { %3415 = vst.msk [vmem:[%s6627_s4 + $0x230] sm:$0xff] %vm1827_vm2, %v3299_v38  ;;  %v3243_v60 = vmul.f32 %v3127_v5, %v5322_v1  ;;  %3798 = vtanh.f32 %v2952_v58  ;;  %v5396_v54 = vadd.f32 %v650_v44, %v4253_v62  ;;  %3562 = vmatmul.msk.bf16.gmra.mxu1 %vm1827_vm2, %v1767_v40  ;;  %v5399_v0 = vmul.f32 0.5, %v2192_v19  ;;  %v71_v1 = vld [vmem:[%s6624_s0 + $0x1a0] sm:$0xff]  ;;  %v653_v38 = vpop.f32.mrf.mxu2 }
 0x1cf   :  { %v3795_v36 = vpop.eup %3794  ;;  %v2896_v47 = vmul.f32 0.7978846, %v2780_v12  ;;  %v2052_v28 = vadd.f32 %v2051_v37, %v4698_v34  ;;  %v5403_v6 = vadd.f32 %v508_v46, %v4253_v62  ;;  %v5415_v49 = vmul.f32 0.7978846, %v1264_v48 }
 0x1d0   :  { %3359 = vst.msk [vmem:[%s6627_s4 + $0x70] sm:$0xff] %vm1827_vm2, %v3243_v60  ;;  %v1608_v27 = vadd.f32 1.0, %v3795_v36  ;;  %v2605_v16 = vmul.f32 %v2489_v23, %v2192_v19  ;;  %v917_v14 = vmul.f32 0.044715, %v5396_v54  ;;  %v5418_v30 = vmul.f32 0.7978846, %v1207_v24  ;;  %v510_v60 = vpop.f32.mrf.mxu0 }
 0x1d1   :  { %3800 = vtanh.f32 %v2896_v47  ;;  %v2433_v42 = vmul.f32 0.044715, %v2052_v28  ;;  %v860_v20 = vmul.f32 0.044715, %v5403_v6  ;;  %v740_v13 = vmul.f32 0.5, %v5220_v2 }
 0x1d2   :  { %v1724_v4 = vmul.f32 %v1608_v27, %v796_v29  ;;  %v2721_v52 = vmul.f32 %v2605_v16, %v2192_v19  ;;  %v1033_v26 = vmul.f32 %v917_v14, %v5396_v54  ;;  %v1205_v50 = vadd.f32 %v5305_v59, %v5272_v8  ;;  %v130_v29 = vld [vmem:[%s6624_s0 + $0x378] sm:$0xff]  ;;  %v2196_v16 = vpop.f32.mrf.mxu3 }
 0x1d3   :  { %v3797_v25 = vpop.eup %3796  ;;  %v2549_v22 = vmul.f32 %v2433_v42, %v2052_v28  ;;  %v976_v57 = vmul.f32 %v860_v20, %v5403_v6  ;;  %3802 = vtanh.f32 %v5278_v15  ;;  %v161_v9 = vpack.c.bf16 %v72_v17, %v71_v1 }
 0x1d4   :  { %v3799_v43 = vpop.eup %3798  ;;  %v1609_v37 = vadd.f32 1.0, %v3797_v25  ;;  %v2837_v2 = vadd.f32 %v2721_v52, %v2192_v19  ;;  %v1149_v3 = vmul.f32 %v1033_v26, %v5396_v54  ;;  %v1321_v15 = vmul.f32 0.7978846, %v1205_v50 }
 0x1d5   :  { %v3184_v53 = vadd.f32 1.0, %v3799_v43  ;;  %v2665_v44 = vmul.f32 %v2549_v22, %v2052_v28  ;;  %v1092_v59 = vmul.f32 %v976_v57, %v5403_v6  ;;  %3507 = vmatmul.msk.bf16.gmra.mxu0 %vm230_vm1, %v161_v9  ;;  %v190_v46 = vpack.c.bf16 %v130_v29, %v129_v11 }
 0x1d6   :  { %v1725_v5 = vmul.f32 %v1609_v37, %v797_v63  ;;  %v2953_v58 = vmul.f32 0.7978846, %v2837_v2  ;;  %v1265_v48 = vadd.f32 %v1149_v3, %v5396_v54  ;;  %3804 = vtanh.f32 %v1321_v15 }
 0x1d7   :  { %v3801_v40 = vpop.eup %3800  ;;  %v3300_v19 = vmul.f32 %v3184_v53, %v5373_v21  ;;  %v2781_v12 = vadd.f32 %v2665_v44, %v2052_v28  ;;  %v1208_v24 = vadd.f32 %v1092_v59, %v5403_v6  ;;  %v2317_v47 = vmul.f32 0.5, %v2052_v28  ;;  %3536 = vmatmul.msk.bf16.gmra.mxu2 %vm230_vm1, %v190_v46 }
 0x1d8   :  { %v3128_v23 = vadd.f32 1.0, %v3801_v40  ;;  %v1796_v36 = vpack.c.bf16 %v1725_v5, %v1724_v4  ;;  %3806 = vtanh.f32 %v2953_v58  ;;  %v5444_v1 = vmul.f32 0.7978846, %v1265_v48 }
 0x1d9   :  { %v3803_v63 = vpop.eup %3802  ;;  %3416 = vst.msk [vmem:[%s6627_s4 + $0x238] sm:$0xff] %vm1827_vm2, %v3300_v19  ;;  %v2897_v21 = vmul.f32 0.7978846, %v2781_v12  ;;  %v2194_v17 = vadd.f32 %v2193_v39, %v4698_v34  ;;  %v5448_v27 = vadd.f32 %v653_v38, %v4253_v62  ;;  %v2054_v42 = vadd.f32 %v2053_v7, %v4698_v34  ;;  %v2056_v7 = vpop.f32.mrf.mxu1 }
 0x1da   :  { %v3244_v14 = vmul.f32 %v3128_v23, %v5375_v51  ;;  %3591 = vmatmul.msk.bf16.gmra.mxu3 %vm1827_vm2, %v1796_v36  ;;  %v1552_v28 = vadd.f32 1.0, %v3803_v63  ;;  %v5454_v20 = vadd.f32 %v510_v60, %v4253_v62  ;;  %v5456_v4 = vmul.f32 0.7978846, %v1208_v24  ;;  %v2198_v63 = vpop.f32.mrf.mxu3 }
 0x1db   :  { %3808 = vtanh.f32 %v2897_v21  ;;  %v2490_v52 = vmul.f32 0.044715, %v2194_v17  ;;  %v918_v39 = vmul.f32 0.044715, %v5448_v27  ;;  %v741_v51 = vmul.f32 0.5, %v5272_v8 }
 0x1dc   :  { %3360 = vst.msk [vmem:[%s6627_s4 + $0x78] sm:$0xff] %vm1827_vm2, %v3244_v14  ;;  %v2434_v26 = vmul.f32 0.044715, %v2054_v42  ;;  %v861_v25 = vmul.f32 0.044715, %v5454_v20  ;;  %v3805_v22 = vpop.eup %3804  ;;  %v1668_v57 = vmul.f32 %v1552_v28, %v740_v13  ;;  %v5465_v50 = vmul.f32 0.5, %v2194_v17  ;;  %v655_v13 = vpop.f32.mrf.mxu2 }
 0x1dd   :  { %v2606_v11 = vmul.f32 %v2490_v52, %v2194_v17  ;;  %v1034_v29 = vmul.f32 %v918_v39, %v5448_v27  ;;  %v1553_v37 = vadd.f32 1.0, %v3805_v22  ;;  %v1263_v9 = vadd.f32 %v5358_v18, %v5301_v10  ;;  %v132_v22 = vld [vmem:[%s6624_s0 + $0x388] sm:$0xff] }
 0x1de   :  { %v3807_v43 = vpop.eup %3806  ;;  %v2550_v2 = vmul.f32 %v2434_v26, %v2054_v42  ;;  %v977_v3 = vmul.f32 %v861_v25, %v5454_v20  ;;  %3810 = vtanh.f32 %v5312_v32  ;;  %v2197_v18 = vadd.f32 %v2196_v16, %v4698_v34  ;;  %v513_v32 = vpop.f32.mrf.mxu0 }
 0x1df   :  { %v3185_v8 = vadd.f32 1.0, %v3807_v43  ;;  %v2722_v53 = vmul.f32 %v2606_v11, %v2194_v17  ;;  %v1150_v44 = vmul.f32 %v1034_v29, %v5448_v27  ;;  %v1669_v59 = vmul.f32 %v1553_v37, %v741_v51 }
 0x1e0   :  { %v2666_v15 = vmul.f32 %v2550_v2, %v2054_v42  ;;  %v1093_v38 = vmul.f32 %v977_v3, %v5454_v20  ;;  %v1379_v5 = vmul.f32 0.7978846, %v1263_v9  ;;  %v5482_v36 = vmul.f32 0.5, %v2054_v42 }
 0x1e1   :  { %v3809_v58 = vpop.eup %3808  ;;  %v3301_v48 = vmul.f32 %v3185_v8, %v5399_v0  ;;  %v2838_v46 = vadd.f32 %v2722_v53, %v2194_v17  ;;  %v1266_v40 = vadd.f32 %v1150_v44, %v5448_v27  ;;  %v1768_v12 = vpack.c.bf16 %v1669_v59, %v1668_v57  ;;  %v2058_v9 = vpop.f32.mrf.mxu1 }
 0x1e2   :  { %v3129_v19 = vadd.f32 1.0, %v3809_v58  ;;  %v2782_v24 = vadd.f32 %v2666_v15, %v2054_v42  ;;  %v1209_v60 = vadd.f32 %v1093_v38, %v5454_v20  ;;  %v798_v0 = vmul.f32 0.5, %v5255_v41  ;;  %v73_v41 = vld [vmem:[%s6624_s0 + $0x1b0] sm:$0xff] }
 0x1e3   :  { %3417 = vst.msk [vmem:[%s6627_s4 + $0x240] sm:$0xff] %vm1827_vm2, %v3301_v48  ;;  %v2954_v23 = vmul.f32 0.7978846, %v2838_v46  ;;  %3812 = vtanh.f32 %v1379_v5  ;;  %3563 = vmatmul.msk.bf16.gmra.mxu1 %vm1827_vm2, %v1768_v12  ;;  %v799_v16 = vmul.f32 0.5, %v5301_v10  ;;  %v2491_v14 = vmul.f32 0.044715, %v2197_v18 }
 0x1e4   :  { %v3245_v21 = vmul.f32 %v3129_v19, %v2317_v47  ;;  %v2898_v17 = vmul.f32 0.7978846, %v2782_v24  ;;  %v3811_v28 = vpop.eup %3810  ;;  %v5488_v52 = vadd.f32 %v655_v13, %v4253_v62  ;;  %v2057_v39 = vadd.f32 %v2056_v7, %v4698_v34  ;;  %v74_v47 = vld [vmem:[%s6624_s0 + $0x1b8] sm:$0xff]  ;;  %v131_v10 = vld [vmem:[%s6624_s0 + $0x380] sm:$0xff]  ;;  %v658_v13 = vpop.f32.mrf.mxu2 }
 0x1e5   :  { %3814 = vtanh.f32 %v2954_v23  ;;  %v5492_v42 = vadd.f32 %v513_v32, %v4253_v62  ;;  %v5507_v51 = vmul.f32 0.7978846, %v1266_v40  ;;  %v5509_v26 = vmul.f32 0.7978846, %v1209_v60 }
 0x1e6   :  { %3361 = vst.msk [vmem:[%s6627_s4 + $0x80] sm:$0xff] %vm1827_vm2, %v3245_v21  ;;  %3816 = vtanh.f32 %v2898_v17  ;;  %v2607_v25 = vmul.f32 %v2491_v14, %v2197_v18  ;;  %v1610_v57 = vadd.f32 1.0, %v3811_v28  ;;  %v5514_v11 = vmul.f32 0.5, %v2197_v18  ;;  %v515_v14 = vpop.f32.mrf.mxu0 }
 0x1e7   :  { %v919_v29 = vmul.f32 0.044715, %v5488_v52  ;;  %v2435_v43 = vmul.f32 0.044715, %v2057_v39  ;;  %v862_v2 = vmul.f32 0.044715, %v5492_v42  ;;  %3818 = vtanh.f32 %v5366_v45 }
 0x1e8   :  { %v2723_v37 = vmul.f32 %v2607_v25, %v2197_v18  ;;  %v742_v3 = vmul.f32 0.5, %v5309_v55  ;;  %3820 = vtanh.f32 %v5418_v30  ;;  %v162_v44 = vpack.c.bf16 %v74_v47, %v73_v41 }
 0x1e9   :  { %v3813_v7 = vpop.eup %3812  ;;  %v1035_v8 = vmul.f32 %v919_v29, %v5488_v52  ;;  %v2551_v53 = vmul.f32 %v2435_v43, %v2057_v39  ;;  %v978_v38 = vmul.f32 %v862_v2, %v5492_v42  ;;  %v191_v5 = vpack.c.bf16 %v132_v22, %v131_v10 }
 0x1ea   :  { %v1611_v59 = vadd.f32 1.0, %v3813_v7  ;;  %v2839_v15 = vadd.f32 %v2723_v37, %v2197_v18  ;;  %v1726_v48 = vmul.f32 %v1610_v57, %v798_v0  ;;  %3508 = vmatmul.msk.bf16.gmra.mxu0 %vm230_vm1, %v162_v44  ;;  %v2199_v45 = vadd.f32 %v2198_v63, %v4698_v34  ;;  %v2201_v0 = vpop.f32.mrf.mxu3 }
 0x1eb   :  { %v3815_v58 = vpop.eup %3814  ;;  %v1151_v55 = vmul.f32 %v1035_v8, %v5488_v52  ;;  %v2667_v46 = vmul.f32 %v2551_v53, %v2057_v39  ;;  %v1094_v24 = vmul.f32 %v978_v38, %v5492_v42  ;;  %3537 = vmatmul.msk.bf16.gmra.mxu2 %vm230_vm1, %v191_v5  ;;  %v5528_v60 = vmul.f32 0.5, %v2057_v39  ;;  %v2061_v8 = vpop.f32.mrf.mxu1 }
 0x1ec   :  { %v3817_v40 = vpop.eup %3816  ;;  %v3186_v19 = vadd.f32 1.0, %v3815_v58  ;;  %v1727_v12 = vmul.f32 %v1611_v59, %v799_v16  ;;  %v2955_v30 = vmul.f32 0.7978846, %v2839_v15  ;;  %v5531_v23 = vadd.f32 %v658_v13, %v4253_v62  ;;  %v660_v59 = vpop.f32.mrf.mxu2 }
 0x1ed   :  { %v3130_v18 = vadd.f32 1.0, %v3817_v40  ;;  %v2783_v32 = vadd.f32 %v2667_v46, %v2057_v39  ;;  %v3819_v21 = vpop.eup %3818  ;;  %v1267_v16 = vadd.f32 %v1151_v55, %v5488_v52  ;;  %v1210_v10 = vadd.f32 %v1094_v24, %v5492_v42 }
 0x1ee   :  { %v3302_v17 = vmul.f32 %v3186_v19, %v5465_v50  ;;  %v1797_v63 = vpack.c.bf16 %v1727_v12, %v1726_v48  ;;  %3822 = vtanh.f32 %v2955_v30  ;;  %v3821_v28 = vpop.eup %3820  ;;  %v1554_v25 = vadd.f32 1.0, %v3819_v21 }
 0x1ef   :  { %v3246_v41 = vmul.f32 %v3130_v18, %v5482_v36  ;;  %v2899_v47 = vmul.f32 0.7978846, %v2783_v32  ;;  %v743_v50 = vmul.f32 0.5, %v5364_v33  ;;  %v1555_v39 = vadd.f32 1.0, %v3821_v28 }
 0x1f0   :  { %3418 = vst.msk [vmem:[%s6627_s4 + $0x248] sm:$0xff] %vm1827_vm2, %v3302_v17  ;;  %3592 = vmatmul.msk.bf16.gmra.mxu3 %vm1827_vm2, %v1797_v63  ;;  %v2492_v22 = vmul.f32 0.044715, %v2199_v45  ;;  %v2059_v57 = vadd.f32 %v2058_v9, %v4698_v34  ;;  %v5548_v36 = vmul.f32 0.5, %v2199_v45  ;;  %v920_v29 = vmul.f32 0.044715, %v5531_v23 }
 0x1f1   :  { %3362 = vst.msk [vmem:[%s6627_s4 + $0x88] sm:$0xff] %vm1827_vm2, %v3246_v41  ;;  %3824 = vtanh.f32 %v2899_v47  ;;  %v5552_v43 = vadd.f32 %v515_v14, %v4253_v62  ;;  %v1670_v37 = vmul.f32 %v1554_v25, %v742_v3  ;;  %v1671_v2 = vmul.f32 %v1555_v39, %v743_v50 }
 0x1f2   :  { %v2608_v33 = vmul.f32 %v2492_v22, %v2199_v45  ;;  %v2436_v7 = vmul.f32 0.044715, %v2059_v57  ;;  %v5554_v53 = vmul.f32 0.7978846, %v1267_v16  ;;  %v5556_v9 = vmul.f32 0.7978846, %v1210_v10  ;;  %v2203_v21 = vpop.f32.mrf.mxu3  ;;  %v518_v16 = vpop.f32.mrf.mxu0 }
 0x1f3   :  { %v1036_v44 = vmul.f32 %v920_v29, %v5531_v23  ;;  %v863_v13 = vmul.f32 0.044715, %v5552_v43  ;;  %v1769_v38 = vpack.c.bf16 %v1671_v2, %v1670_v37  ;;  %3826 = vtanh.f32 %v5415_v49  ;;  %v75_v37 = vld [vmem:[%s6624_s0 + $0x1c0] sm:$0xff]  ;;  %v76_v2 = vld [vmem:[%s6624_s0 + $0x1c8] sm:$0xff] }
 0x1f4   :  { %v3823_v15 = vpop.eup %3822  ;;  %v2724_v5 = vmul.f32 %v2608_v33, %v2199_v45  ;;  %v2552_v58 = vmul.f32 %v2436_v7, %v2059_v57  ;;  %3828 = vtanh.f32 %v5444_v1  ;;  %v2202_v19 = vadd.f32 %v2201_v0, %v4698_v34  ;;  %v2063_v33 = vpop.f32.mrf.mxu1 }
 0x1f5   :  { %v3187_v3 = vadd.f32 1.0, %v3823_v15  ;;  %v1152_v48 = vmul.f32 %v1036_v44, %v5531_v23  ;;  %v979_v55 = vmul.f32 %v863_v13, %v5552_v43  ;;  %3564 = vmatmul.msk.bf16.gmra.mxu1 %vm1827_vm2, %v1769_v38  ;;  %v5567_v12 = vadd.f32 %v660_v59, %v4253_v62 }
 0x1f6   :  { %v2840_v46 = vadd.f32 %v2724_v5, %v2199_v45  ;;  %v2668_v40 = vmul.f32 %v2552_v58, %v2059_v57  ;;  %v5570_v49 = vmul.f32 0.5, %v2059_v57  ;;  %v2062_v32 = vadd.f32 %v2061_v8, %v4698_v34  ;;  %v133_v58 = vld [vmem:[%s6624_s0 + $0x390] sm:$0xff] }
 0x1f7   :  { %v3825_v30 = vpop.eup %3824  ;;  %v3303_v24 = vmul.f32 %v3187_v3, %v5514_v11  ;;  %v1095_v18 = vmul.f32 %v979_v55, %v5552_v43  ;;  %v800_v45 = vmul.f32 0.5, %v5349_v31  ;;  %v1268_v11 = vadd.f32 %v1152_v48, %v5531_v23  ;;  %v134_v3 = vld [vmem:[%s6624_s0 + $0x398] sm:$0xff] }
 0x1f8   :  { %v3131_v1 = vadd.f32 1.0, %v3825_v30  ;;  %v2956_v17 = vmul.f32 0.7978846, %v2840_v46  ;;  %v2784_v63 = vadd.f32 %v2668_v40, %v2059_v57  ;;  %v801_v0 = vmul.f32 0.5, %v5396_v54  ;;  %v663_v40 = vpop.f32.mrf.mxu2 }
 0x1f9   :  { %3419 = vst.msk [vmem:[%s6627_s4 + $0x250] sm:$0xff] %vm1827_vm2, %v3303_v24  ;;  %v5581_v14 = vmul.f32 0.5, %v2202_v19  ;;  %v2493_v28 = vmul.f32 0.044715, %v2202_v19  ;;  %v3827_v41 = vpop.eup %3826  ;;  %v921_v31 = vmul.f32 0.044715, %v5567_v12  ;;  %v1211_v50 = vadd.f32 %v1095_v18, %v5552_v43 }
 0x1fa   :  { %v3247_v47 = vmul.f32 %v3131_v1, %v5528_v60  ;;  %3830 = vtanh.f32 %v2956_v17  ;;  %v2900_v10 = vmul.f32 0.7978846, %v2784_v63  ;;  %v3829_v25 = vpop.eup %3828  ;;  %v1612_v39 = vadd.f32 1.0, %v3827_v41 }
 0x1fb   :  { %v2609_v22 = vmul.f32 %v2493_v28, %v2202_v19  ;;  %v2437_v57 = vmul.f32 0.044715, %v2062_v32  ;;  %v1613_v54 = vadd.f32 1.0, %v3829_v25  ;;  %v1037_v29 = vmul.f32 %v921_v31, %v5567_v12 }
 0x1fc   :  { %3363 = vst.msk [vmem:[%s6627_s4 + $0x90] sm:$0xff] %vm1827_vm2, %v3247_v47  ;;  %3832 = vtanh.f32 %v2900_v10  ;;  %v5592_v60 = vadd.f32 %v518_v16, %v4253_v62  ;;  %v5600_v7 = vmul.f32 0.7978846, %v1268_v11  ;;  %v5602_v44 = vmul.f32 0.5, %v2062_v32 }
 0x1fd   :  { %v2725_v8 = vmul.f32 %v2609_v22, %v2202_v19  ;;  %v2553_v13 = vmul.f32 %v2437_v57, %v2062_v32  ;;  %v1728_v59 = vmul.f32 %v1612_v39, %v800_v45  ;;  %v1729_v15 = vmul.f32 %v1613_v54, %v801_v0 }
 0x1fe   :  { %v1153_v38 = vmul.f32 %v1037_v29, %v5567_v12  ;;  %v864_v5 = vmul.f32 0.044715, %v5592_v60  ;;  %3834 = vtanh.f32 %v5456_v4  ;;  %v163_v46 = vpack.c.bf16 %v76_v2, %v75_v37 }
 0x1ff   :  { %v2841_v48 = vadd.f32 %v2725_v8, %v2202_v19  ;;  %v2669_v55 = vmul.f32 %v2553_v13, %v2062_v32  ;;  %v5613_v24 = vmul.f32 0.7978846, %v1211_v50  ;;  %v1798_v18 = vpack.c.bf16 %v1729_v15, %v1728_v59  ;;  %v2206_v19 = vpop.f32.mrf.mxu3  ;;  %v2066_v8 = vpop.f32.mrf.mxu1 }
 0x200   :  { %v3831_v30 = vpop.eup %3830  ;;  %v980_v1 = vmul.f32 %v864_v5, %v5592_v60  ;;  %3836 = vtanh.f32 %v5509_v26  ;;  %3509 = vmatmul.msk.bf16.gmra.mxu0 %vm230_vm1, %v163_v46  ;;  %v192_v16 = vpack.c.bf16 %v134_v3, %v133_v58  ;;  %v1269_v4 = vadd.f32 %v1153_v38, %v5567_v12  ;;  %v520_v26 = vpop.f32.mrf.mxu0 }
 0x201   :  { %v3188_v17 = vadd.f32 1.0, %v3831_v30  ;;  %v2957_v63 = vmul.f32 0.7978846, %v2841_v48  ;;  %v2785_v45 = vadd.f32 %v2669_v55, %v2062_v32  ;;  %3593 = vmatmul.msk.bf16.gmra.mxu3 %vm1827_vm2, %v1798_v18  ;;  %v2204_v28 = vadd.f32 %v2203_v21, %v4698_v34 }
 0x202   :  { %v3833_v11 = vpop.eup %3832  ;;  %v1096_v0 = vmul.f32 %v980_v1, %v5592_v60  ;;  %v5623_v41 = vadd.f32 %v663_v40, %v4253_v62  ;;  %3538 = vmatmul.msk.bf16.gmra.mxu2 %vm230_vm1, %v192_v16  ;;  %v744_v25 = vmul.f32 0.5, %v5403_v6  ;;  %v2064_v21 = vadd.f32 %v2063_v33, %v4698_v34  ;;  %v665_v40 = vpop.f32.mrf.mxu2 }
 0x203   :  { %v3304_v47 = vmul.f32 %v3188_v17, %v5548_v36  ;;  %v3132_v32 = vadd.f32 1.0, %v3833_v11  ;;  %3838 = vtanh.f32 %v2957_v63  ;;  %v2901_v10 = vmul.f32 0.7978846, %v2785_v45 }
 0x204   :  { %v1212_v31 = vadd.f32 %v1096_v0, %v5592_v60  ;;  %v2494_v50 = vmul.f32 0.044715, %v2204_v28  ;;  %v922_v39 = vmul.f32 0.044715, %v5623_v41  ;;  %v3835_v22 = vpop.eup %3834  ;;  %v5637_v57 = vadd.f32 %v520_v26, %v4253_v62 }
 0x205   :  { %3420 = vst.msk [vmem:[%s6627_s4 + $0x258] sm:$0xff] %vm1827_vm2, %v3304_v47  ;;  %v3248_v36 = vmul.f32 %v3132_v32, %v5570_v49  ;;  %3840 = vtanh.f32 %v2901_v10  ;;  %v5639_v29 = vmul.f32 0.7978846, %v1269_v4  ;;  %v1556_v6 = vadd.f32 1.0, %v3835_v22 }
 0x206   :  { %v3837_v54 = vpop.eup %3836  ;;  %v2610_v37 = vmul.f32 %v2494_v50, %v2204_v28  ;;  %v1038_v2 = vmul.f32 %v922_v39, %v5623_v41  ;;  %v745_v49 = vmul.f32 0.5, %v5454_v20  ;;  %v5647_v33 = vmul.f32 0.5, %v2204_v28 }
 0x207   :  { %3364 = vst.msk [vmem:[%s6627_s4 + $0x98] sm:$0xff] %vm1827_vm2, %v3248_v36  ;;  %v1557_v13 = vadd.f32 1.0, %v3837_v54  ;;  %v2438_v59 = vmul.f32 0.044715, %v2064_v21  ;;  %v5649_v15 = vmul.f32 0.7978846, %v1212_v31  ;;  %v1672_v48 = vmul.f32 %v1556_v6, %v744_v25  ;;  %v2208_v11 = vpop.f32.mrf.mxu3  ;;  %v2068_v54 = vpop.f32.mrf.mxu1 }
 0x208   :  { %v2726_v38 = vmul.f32 %v2610_v37, %v2204_v28  ;;  %v1154_v5 = vmul.f32 %v1038_v2, %v5623_v41  ;;  %v865_v58 = vmul.f32 0.044715, %v5637_v57  ;;  %3842 = vtanh.f32 %v5507_v51  ;;  %v523_v47 = vpop.f32.mrf.mxu0 }
 0x209   :  { %v3839_v3 = vpop.eup %3838  ;;  %v1673_v55 = vmul.f32 %v1557_v13, %v745_v49  ;;  %v2554_v46 = vmul.f32 %v2438_v59, %v2064_v21  ;;  %v5654_v18 = vmul.f32 0.5, %v2064_v21  ;;  %3844 = vtanh.f32 %v5554_v53 }
 0x20a   :  { %v3189_v30 = vadd.f32 1.0, %v3839_v3  ;;  %v2842_v20 = vadd.f32 %v2726_v38, %v2204_v28  ;;  %v981_v1 = vmul.f32 %v865_v58, %v5637_v57  ;;  %v2207_v16 = vadd.f32 %v2206_v19, %v4698_v34  ;;  %v668_v3 = vpop.f32.mrf.mxu2 }
 0x20b   :  { %v3841_v17 = vpop.eup %3840  ;;  %v1770_v63 = vpack.c.bf16 %v1673_v55, %v1672_v48  ;;  %v2670_v45 = vmul.f32 %v2554_v46, %v2064_v21  ;;  %v1270_v51 = vadd.f32 %v1154_v5, %v5623_v41  ;;  %v802_v10 = vmul.f32 0.5, %v5448_v27 }
 0x20c   :  { %v3305_v4 = vmul.f32 %v3189_v30, %v5581_v14  ;;  %v3133_v0 = vadd.f32 1.0, %v3841_v17  ;;  %v2958_v26 = vmul.f32 0.7978846, %v2842_v20  ;;  %v1097_v32 = vmul.f32 %v981_v1, %v5637_v57 }
 0x20d   :  { %3565 = vmatmul.msk.bf16.gmra.mxu1 %vm1827_vm2, %v1770_v63  ;;  %v2786_v28 = vadd.f32 %v2670_v45, %v2064_v21  ;;  %v2495_v31 = vmul.f32 0.044715, %v2207_v16  ;;  %v5670_v14 = vadd.f32 %v665_v40, %v4253_v62  ;;  %v2067_v19 = vadd.f32 %v2066_v8, %v4698_v34 }
 0x20e   :  { %3421 = vst.msk [vmem:[%s6627_s4 + $0x260] sm:$0xff] %vm1827_vm2, %v3305_v4  ;;  %v3249_v53 = vmul.f32 %v3133_v0, %v5602_v44  ;;  %3846 = vtanh.f32 %v2958_v26  ;;  %v3843_v25 = vpop.eup %3842  ;;  %v803_v39 = vmul.f32 0.5, %v5488_v52  ;;  %v5675_v27 = vadd.f32 %v523_v47, %v4253_v62 }
 0x20f   :  { %v2902_v50 = vmul.f32 0.7978846, %v2786_v28  ;;  %v2611_v22 = vmul.f32 %v2495_v31, %v2207_v16  ;;  %v5681_v44 = vmul.f32 0.7978846, %v1270_v51  ;;  %v1614_v36 = vadd.f32 1.0, %v3843_v25  ;;  %v3845_v6 = vpop.eup %3844  ;;  %v2211_v63 = vpop.f32.mrf.mxu3 }
 0x210   :  { %3365 = vst.msk [vmem:[%s6627_s4 + $0xa0] sm:$0xff] %vm1827_vm2, %v3249_v53  ;;  %v923_v21 = vmul.f32 0.044715, %v5670_v14  ;;  %v5684_v37 = vmul.f32 0.5, %v2207_v16  ;;  %v2439_v2 = vmul.f32 0.044715, %v2067_v19  ;;  %v1213_v8 = vadd.f32 %v1097_v32, %v5637_v57  ;;  %v525_v0 = vpop.f32.mrf.mxu0 }
 0x211   :  { %3848 = vtanh.f32 %v2902_v50  ;;  %v2727_v52 = vmul.f32 %v2611_v22, %v2207_v16  ;;  %v1615_v49 = vadd.f32 1.0, %v3845_v6  ;;  %v866_v59 = vmul.f32 0.044715, %v5675_v27 }
 0x212   :  { %v1039_v13 = vmul.f32 %v923_v21, %v5670_v14  ;;  %v1730_v38 = vmul.f32 %v1614_v36, %v802_v10  ;;  %v2555_v58 = vmul.f32 %v2439_v2, %v2067_v19  ;;  %3850 = vtanh.f32 %v5556_v9  ;;  %v2071_v21 = vpop.f32.mrf.mxu1 }
 0x213   :  { %v2843_v5 = vadd.f32 %v2727_v52, %v2207_v16  ;;  %v1731_v55 = vmul.f32 %v1615_v49, %v803_v39  ;;  %v982_v40 = vmul.f32 %v866_v59, %v5675_v27  ;;  %3852 = vtanh.f32 %v5613_v24 }
 0x214   :  { %v3847_v48 = vpop.eup %3846  ;;  %v1155_v46 = vmul.f32 %v1039_v13, %v5670_v14  ;;  %v2671_v1 = vmul.f32 %v2555_v58, %v2067_v19  ;;  %v2209_v17 = vadd.f32 %v2208_v11, %v4698_v34  ;;  %v5694_v16 = vmul.f32 0.5, %v2067_v19  ;;  %v670_v58 = vpop.f32.mrf.mxu2 }
 0x215   :  { %v3190_v30 = vadd.f32 1.0, %v3847_v48  ;;  %v2959_v20 = vmul.f32 0.7978846, %v2843_v5  ;;  %v1799_v45 = vpack.c.bf16 %v1731_v55, %v1730_v38  ;;  %v746_v9 = vmul.f32 0.5, %v5492_v42 }
 0x216   :  { %v5698_v4 = vadd.f32 %v668_v3, %v4253_v62  ;;  %v2787_v24 = vadd.f32 %v2671_v1, %v2067_v19  ;;  %v1098_v47 = vmul.f32 %v982_v40, %v5675_v27  ;;  %v5702_v32 = vmul.f32 0.7978846, %v1213_v8 }
 0x217   :  { %v3849_v26 = vpop.eup %3848  ;;  %v3306_v51 = vmul.f32 %v3190_v30, %v5647_v33  ;;  %3854 = vtanh.f32 %v2959_v20  ;;  %3594 = vmatmul.msk.bf16.gmra.mxu3 %vm1827_vm2, %v1799_v45  ;;  %v1271_v11 = vadd.f32 %v1155_v46, %v5670_v14  ;;  %v2496_v10 = vmul.f32 0.044715, %v2209_v17  ;;  %v2213_v1 = vpop.f32.mrf.mxu3 }
 0x218   :  { %v3134_v28 = vadd.f32 1.0, %v3849_v26  ;;  %v3851_v42 = vpop.eup %3850  ;;  %v2903_v31 = vmul.f32 0.7978846, %v2787_v24  ;;  %v924_v33 = vmul.f32 0.044715, %v5698_v4  ;;  %v2069_v53 = vadd.f32 %v2068_v54, %v4698_v34 }
 0x219   :  { %3422 = vst.msk [vmem:[%s6627_s4 + $0x268] sm:$0xff] %vm1827_vm2, %v3306_v51  ;;  %v5713_v19 = vadd.f32 %v525_v0, %v4253_v62  ;;  %v3853_v25 = vpop.eup %3852  ;;  %v747_v39 = vmul.f32 0.5, %v5552_v43  ;;  %v1558_v22 = vadd.f32 1.0, %v3851_v42  ;;  %v2612_v36 = vmul.f32 %v2496_v10, %v2209_v17  ;;  %v528_v51 = vpop.f32.mrf.mxu0 }
 0x21a   :  { %v3250_v50 = vmul.f32 %v3134_v28, %v5654_v18  ;;  %3856 = vtanh.f32 %v2903_v31  ;;  %v1214_v6 = vadd.f32 %v1098_v47, %v5675_v27  ;;  %v1559_v52 = vadd.f32 1.0, %v3853_v25 }
 0x21b   :  { %v1040_v2 = vmul.f32 %v924_v33, %v5698_v4  ;;  %v5723_v54 = vmul.f32 0.5, %v2209_v17  ;;  %v2728_v8 = vmul.f32 %v2612_v36, %v2209_v17  ;;  %v2440_v18 = vmul.f32 0.044715, %v2069_v53 }
 0x21c   :  { %3366 = vst.msk [vmem:[%s6627_s4 + $0xa8] sm:$0xff] %vm1827_vm2, %v3250_v50  ;;  %v867_v43 = vmul.f32 0.044715, %v5713_v19  ;;  %v5726_v13 = vmul.f32 0.7978846, %v1271_v11  ;;  %v1674_v59 = vmul.f32 %v1558_v22, %v746_v9  ;;  %v1675_v38 = vmul.f32 %v1559_v52, %v747_v39  ;;  %v2073_v39 = vpop.f32.mrf.mxu1 }
 0x21d   :  { %v3855_v49 = vpop.eup %3854  ;;  %v1156_v5 = vmul.f32 %v1040_v2, %v5698_v4  ;;  %v2844_v48 = vadd.f32 %v2728_v8, %v2209_v17  ;;  %v2556_v55 = vmul.f32 %v2440_v18, %v2069_v53  ;;  %v5730_v40 = vmul.f32 0.7978846, %v1214_v6 }
 0x21e   :  { %v3191_v3 = vadd.f32 1.0, %v3855_v49  ;;  %v983_v46 = vmul.f32 %v867_v43, %v5713_v19  ;;  %v1771_v30 = vpack.c.bf16 %v1675_v38, %v1674_v59  ;;  %3858 = vtanh.f32 %v5600_v7  ;;  %v673_v43 = vpop.f32.mrf.mxu2 }
 0x21f   :  { %v2212_v20 = vadd.f32 %v2211_v63, %v4698_v34  ;;  %v2960_v9 = vmul.f32 0.7978846, %v2844_v48  ;;  %v2672_v0 = vmul.f32 %v2556_v55, %v2069_v53  ;;  %v1272_v17 = vadd.f32 %v1156_v5, %v5698_v4 }
 0x220   :  { %v3307_v45 = vmul.f32 %v3191_v3, %v5684_v37  ;;  %v1099_v26 = vmul.f32 %v983_v46, %v5713_v19  ;;  %v3857_v24 = vpop.eup %3856  ;;  %3566 = vmatmul.msk.bf16.gmra.mxu1 %vm1827_vm2, %v1771_v30  ;;  %v5738_v47 = vmul.f32 0.5, %v2069_v53  ;;  %3860 = vtanh.f32 %v5639_v29  ;;  %v2216_v46 = vpop.f32.mrf.mxu3 }
 0x221   :  { %v2497_v7 = vmul.f32 0.044715, %v2212_v20  ;;  %v3135_v37 = vadd.f32 1.0, %v3857_v24  ;;  %3862 = vtanh.f32 %v2960_v9  ;;  %v2788_v63 = vadd.f32 %v2672_v0, %v2069_v53 }
 0x222   :  { %3423 = vst.msk [vmem:[%s6627_s4 + $0x270] sm:$0xff] %vm1827_vm2, %v3307_v45  ;;  %v804_v28 = vmul.f32 0.5, %v5531_v23  ;;  %v5747_v10 = vadd.f32 %v670_v58, %v4253_v62  ;;  %v2072_v42 = vadd.f32 %v2071_v21, %v4698_v34  ;;  %v5751_v31 = vadd.f32 %v528_v51, %v4253_v62 }
 0x223   :  { %v2613_v11 = vmul.f32 %v2497_v7, %v2212_v20  ;;  %v3251_v29 = vmul.f32 %v3135_v37, %v5694_v16  ;;  %v2904_v33 = vmul.f32 0.7978846, %v2788_v63  ;;  %v1215_v25 = vadd.f32 %v1099_v26, %v5713_v19 }
 0x224   :  { %v805_v50 = vmul.f32 0.5, %v5567_v12  ;;  %v3859_v53 = vpop.eup %3858  ;;  %v5756_v22 = vmul.f32 0.7978846, %v1272_v17  ;;  %v925_v36 = vmul.f32 0.044715, %v5747_v10  ;;  %v5763_v21 = vmul.f32 0.5, %v2212_v20 }
 0x225   :  { %v2729_v23 = vmul.f32 %v2613_v11, %v2212_v20  ;;  %v2441_v6 = vmul.f32 0.044715, %v2072_v42  ;;  %3367 = vst.msk [vmem:[%s6627_s4 + $0xb0] sm:$0xff] %vm1827_vm2, %v3251_v29  ;;  %3864 = vtanh.f32 %v2904_v33  ;;  %v1616_v16 = vadd.f32 1.0, %v3859_v53 }
 0x226   :  { %v868_v52 = vmul.f32 0.044715, %v5751_v31  ;;  %v3861_v12 = vpop.eup %3860  ;;  %v1041_v8 = vmul.f32 %v925_v36, %v5747_v10  ;;  %3866 = vtanh.f32 %v5649_v15  ;;  %v5768_v59 = vmul.f32 0.7978846, %v1215_v25 }
 0x227   :  { %v2845_v2 = vadd.f32 %v2729_v23, %v2212_v20  ;;  %v2557_v18 = vmul.f32 %v2441_v6, %v2072_v42  ;;  %v3863_v49 = vpop.eup %3862  ;;  %v1617_v38 = vadd.f32 1.0, %v3861_v12  ;;  %3868 = vtanh.f32 %v5702_v32  ;;  %v530_v32 = vpop.f32.mrf.mxu0 }
 0x228   :  { %v984_v5 = vmul.f32 %v868_v52, %v5751_v31  ;;  %v3192_v58 = vadd.f32 1.0, %v3863_v49  ;;  %v1157_v48 = vmul.f32 %v1041_v8, %v5747_v10  ;;  %v1732_v30 = vmul.f32 %v1616_v16, %v804_v28 }
 0x229   :  { %v2961_v3 = vmul.f32 0.7978846, %v2845_v2  ;;  %v2673_v55 = vmul.f32 %v2557_v18, %v2072_v42  ;;  %v1733_v20 = vmul.f32 %v1617_v38, %v805_v50  ;;  %v2214_v45 = vadd.f32 %v2213_v1, %v4698_v34  ;;  %v2076_v50 = vpop.f32.mrf.mxu1 }
 0x22a   :  { %v5775_v15 = vadd.f32 %v673_v43, %v4253_v62  ;;  %v3308_v9 = vmul.f32 %v3192_v58, %v5723_v54  ;;  %v1100_v26 = vmul.f32 %v984_v5, %v5751_v31  ;;  %v2325_v17 = vmul.f32 0.5, %v2072_v42  ;;  %v675_v5 = vpop.f32.mrf.mxu2 }
 0x22b   :  { %3870 = vtanh.f32 %v2961_v3  ;;  %v2789_v0 = vadd.f32 %v2673_v55, %v2072_v42  ;;  %v3865_v51 = vpop.eup %3864  ;;  %v1800_v24 = vpack.c.bf16 %v1733_v20, %v1732_v30  ;;  %v748_v7 = vmul.f32 0.5, %v5592_v60  ;;  %v2218_v55 = vpop.f32.mrf.mxu3 }
 0x22c   :  { %v2498_v37 = vmul.f32 0.044715, %v2214_v45  ;;  %v3867_v63 = vpop.eup %3866  ;;  %3424 = vst.msk [vmem:[%s6627_s4 + $0x278] sm:$0xff] %vm1827_vm2, %v3308_v9  ;;  %v3136_v1 = vadd.f32 1.0, %v3865_v51  ;;  %v1273_v54 = vadd.f32 %v1157_v48, %v5747_v10  ;;  %v2074_v11 = vadd.f32 %v2073_v39, %v4698_v34 }
 0x22d   :  { %v2905_v28 = vmul.f32 0.7978846, %v2789_v0  ;;  %v3869_v29 = vpop.eup %3868  ;;  %3595 = vmatmul.msk.bf16.gmra.mxu3 %vm1827_vm2, %v1800_v24  ;;  %v749_v42 = vmul.f32 0.5, %v5637_v57  ;;  %v1560_v33 = vadd.f32 1.0, %v3867_v63  ;;  %v926_v25 = vmul.f32 0.044715, %v5775_v15 }
 0x22e   :  { %v2614_v60 = vmul.f32 %v2498_v37, %v2214_v45  ;;  %v3252_v53 = vmul.f32 %v3136_v1, %v5738_v47  ;;  %v1216_v23 = vadd.f32 %v1100_v26, %v5751_v31  ;;  %v1561_v36 = vadd.f32 1.0, %v3869_v29 }
 0x22f   :  { %3872 = vtanh.f32 %v2905_v28  ;;  %v5791_v6 = vmul.f32 0.5, %v2214_v45  ;;  %v1042_v39 = vmul.f32 %v926_v25, %v5775_v15  ;;  %v2442_v52 = vmul.f32 0.044715, %v2074_v11 }
 0x230   :  { %v2730_v16 = vmul.f32 %v2614_v60, %v2214_v45  ;;  %3368 = vst.msk [vmem:[%s6627_s4 + $0xb8] sm:$0xff] %vm1827_vm2, %v3252_v53  ;;  %v5798_v57 = vmul.f32 0.7978846, %v1273_v54  ;;  %v1676_v2 = vmul.f32 %v1560_v33, %v748_v7  ;;  %v1677_v47 = vmul.f32 %v1561_v36, %v749_v42 }
 0x231   :  { %v3871_v12 = vpop.eup %3870  ;;  %v5801_v8 = vadd.f32 %v530_v32, %v4253_v62  ;;  %v1158_v49 = vmul.f32 %v1042_v39, %v5775_v15  ;;  %v2558_v38 = vmul.f32 %v2442_v52, %v2074_v11  ;;  %3874 = vtanh.f32 %v5681_v44  ;;  %v533_v44 = vpop.f32.mrf.mxu0 }
 0x232   :  { %v3193_v18 = vadd.f32 1.0, %v3871_v12  ;;  %v2846_v43 = vadd.f32 %v2730_v16, %v2214_v45  ;;  %v1772_v58 = vpack.c.bf16 %v1677_v47, %v1676_v2  ;;  %v2217_v48 = vadd.f32 %v2216_v46, %v4698_v34  ;;  %v2078_v42 = vpop.f32.mrf.mxu1 }
 0x233   :  { %v869_v3 = vmul.f32 0.044715, %v5801_v8  ;;  %v5808_v20 = vmul.f32 0.7978846, %v1216_v23  ;;  %v2674_v0 = vmul.f32 %v2558_v38, %v2074_v11  ;;  %v5811_v45 = vmul.f32 0.5, %v2074_v11 }
 0x234   :  { %v3309_v30 = vmul.f32 %v3193_v18, %v5763_v21  ;;  %v2962_v9 = vmul.f32 0.7978846, %v2846_v43  ;;  %3567 = vmatmul.msk.bf16.gmra.mxu1 %vm1827_vm2, %v1772_v58  ;;  %3876 = vtanh.f32 %v5726_v13  ;;  %v2499_v51 = vmul.f32 0.044715, %v2217_v48  ;;  %v678_v43 = vpop.f32.mrf.mxu2  ;;  %v5846_v58 = vpop.f32.mrf.mxu3 }
 0x235   :  { %v3873_v26 = vpop.eup %3872  ;;  %v985_v32 = vmul.f32 %v869_v3, %v5801_v8  ;;  %v2790_v46 = vadd.f32 %v2674_v0, %v2074_v11  ;;  %v806_v24 = vmul.f32 0.5, %v5623_v41  ;;  %v1274_v7 = vadd.f32 %v1158_v49, %v5775_v15 }
 0x236   :  { %3425 = vst.msk [vmem:[%s6627_s4 + $0x280] sm:$0xff] %vm1827_vm2, %v3309_v30  ;;  %v3137_v21 = vadd.f32 1.0, %v3873_v26  ;;  %3878 = vtanh.f32 %v2962_v9  ;;  %v2615_v37 = vmul.f32 %v2499_v51, %v2217_v48  ;;  %v5822_v63 = vadd.f32 %v675_v5, %v4253_v62 }
 0x237   :  { %v2077_v13 = vadd.f32 %v2076_v50, %v4698_v34  ;;  %v2906_v54 = vmul.f32 0.7978846, %v2790_v46  ;;  %v1101_v28 = vmul.f32 %v985_v32, %v5801_v8  ;;  %v5827_v29 = vadd.f32 %v533_v44, %v4253_v62  ;;  %v3875_v33 = vpop.eup %3874 }
 0x238   :  { %v3253_v1 = vmul.f32 %v3137_v21, %v2325_v17  ;;  %v807_v11 = vmul.f32 0.5, %v5670_v14  ;;  %v5830_v41 = vmul.f32 0.5, %v2217_v48  ;;  %v2731_v60 = vmul.f32 %v2615_v37, %v2217_v48 }
 0x239   :  { %v927_v25 = vmul.f32 0.044715, %v5822_v63  ;;  %3880 = vtanh.f32 %v2906_v54  ;;  %v1618_v17 = vadd.f32 1.0, %v3875_v33  ;;  %v2443_v50 = vmul.f32 0.044715, %v2077_v13  ;;  %v535_v26 = vpop.f32.mrf.mxu0 }
 0x23a   :  { %3369 = vst.msk [vmem:[%s6627_s4 + $0xc0] sm:$0xff] %vm1827_vm2, %v3253_v1  ;;  %v870_v53 = vmul.f32 0.044715, %v5827_v29  ;;  %v3877_v23 = vpop.eup %3876  ;;  %v5838_v36 = vmul.f32 0.7978846, %v1274_v7  ;;  %v2847_v16 = vadd.f32 %v2731_v60, %v2217_v48  ;;  %v750_v39 = vmul.f32 0.5, %v5675_v27  ;;  %v2081_v1 = vpop.f32.mrf.mxu1 }
 0x23b   :  { %v1043_v14 = vmul.f32 %v927_v25, %v5822_v63  ;;  %v1217_v12 = vadd.f32 %v1101_v28, %v5801_v8  ;;  %v1619_v2 = vadd.f32 1.0, %v3877_v23  ;;  %v2559_v47 = vmul.f32 %v2443_v50, %v2077_v13 }
 0x23c   :  { %v3879_v52 = vpop.eup %3878  ;;  %v986_v18 = vmul.f32 %v870_v53, %v5827_v29  ;;  %v2963_v38 = vmul.f32 0.7978846, %v2847_v16  ;;  %3882 = vtanh.f32 %v5730_v40  ;;  %v1734_v3 = vmul.f32 %v1618_v17, %v806_v24 }
 0x23d   :  { %v3194_v49 = vadd.f32 1.0, %v3879_v52  ;;  %v1159_v5 = vmul.f32 %v1043_v14, %v5822_v63  ;;  %v1735_v48 = vmul.f32 %v1619_v2, %v807_v11  ;;  %v2675_v30 = vmul.f32 %v2559_v47, %v2077_v13  ;;  %v680_v47 = vpop.f32.mrf.mxu2 }
 0x23e   :  { %3884 = vtanh.f32 %v5768_v59  ;;  %v1102_v9 = vmul.f32 %v986_v18, %v5827_v29  ;;  %v2219_v0 = vadd.f32 %v2218_v55, %v4698_v34  ;;  %v5852_v44 = vmul.f32 0.5, %v2077_v13 }
 0x23f   :  { %v3310_v27 = vmul.f32 %v3194_v49, %v5791_v6  ;;  %3886 = vtanh.f32 %v2963_v38  ;;  %v3881_v32 = vpop.eup %3880  ;;  %v1801_v51 = vpack.c.bf16 %v1735_v48, %v1734_v3  ;;  %v2791_v40 = vadd.f32 %v2675_v30, %v2077_v13 }
 0x240   :  { %v5855_v21 = vadd.f32 %v678_v43, %v4253_v62  ;;  %v3138_v59 = vadd.f32 1.0, %v3881_v32  ;;  %v5861_v6 = vmul.f32 0.7978846, %v1217_v12  ;;  %v1275_v46 = vadd.f32 %v1159_v5, %v5822_v63  ;;  %v2223_v5 = vpop.f32.mrf.mxu3 }
 0x241   :  { %3426 = vst.msk [vmem:[%s6627_s4 + $0x288] sm:$0xff] %vm1827_vm2, %v3310_v27  ;;  %v2079_v55 = vadd.f32 %v2078_v42, %v4698_v34  ;;  %3596 = vmatmul.msk.bf16.gmra.mxu3 %vm1827_vm2, %v1801_v51  ;;  %v2907_v24 = vmul.f32 0.7978846, %v2791_v40  ;;  %v751_v7 = vmul.f32 0.5, %v5713_v19  ;;  %v2500_v37 = vmul.f32 0.044715, %v2219_v0 }
 0x242   :  { %v5868_v13 = vadd.f32 %v535_v26, %v4253_v62  ;;  %v3883_v54 = vpop.eup %3882  ;;  %v3254_v28 = vmul.f32 %v3138_v59, %v5811_v45  ;;  %v1218_v33 = vadd.f32 %v1102_v9, %v5827_v29  ;;  %v928_v11 = vmul.f32 0.044715, %v5855_v21 }
 0x243   :  { %v2444_v60 = vmul.f32 0.044715, %v2079_v55  ;;  %3888 = vtanh.f32 %v2907_v24  ;;  %v1562_v42 = vadd.f32 1.0, %v3883_v54  ;;  %v2616_v17 = vmul.f32 %v2500_v37, %v2219_v0  ;;  %v2083_v54 = vpop.f32.mrf.mxu1 }
 0x244   :  { %v3885_v25 = vpop.eup %3884  ;;  %v871_v50 = vmul.f32 0.044715, %v5868_v13  ;;  %3370 = vst.msk [vmem:[%s6627_s4 + $0xc8] sm:$0xff] %vm1827_vm2, %v3254_v28  ;;  %v5878_v53 = vmul.f32 0.7978846, %v1275_v46  ;;  %v1044_v23 = vmul.f32 %v928_v11, %v5855_v21  ;;  %v5881_v52 = vmul.f32 0.5, %v2219_v0  ;;  %v538_v46 = vpop.f32.mrf.mxu0 }
 0x245   :  { %v3887_v19 = vpop.eup %3886  ;;  %v1563_v45 = vadd.f32 1.0, %v3885_v25  ;;  %v2560_v16 = vmul.f32 %v2444_v60, %v2079_v55  ;;  %v2732_v12 = vmul.f32 %v2616_v17, %v2219_v0  ;;  %v1678_v18 = vmul.f32 %v1562_v42, %v750_v39 }
 0x246   :  { %v3195_v14 = vadd.f32 1.0, %v3887_v19  ;;  %v987_v2 = vmul.f32 %v871_v50, %v5868_v13  ;;  %v1160_v49 = vmul.f32 %v1044_v23, %v5855_v21  ;;  %3890 = vtanh.f32 %v5756_v22  ;;  %v683_v23 = vpop.f32.mrf.mxu2 }
 0x247   :  { %v1679_v43 = vmul.f32 %v1563_v45, %v751_v7  ;;  %v2676_v38 = vmul.f32 %v2560_v16, %v2079_v55  ;;  %v2848_v48 = vadd.f32 %v2732_v12, %v2219_v0  ;;  %v5888_v27 = vmul.f32 0.7978846, %v1218_v33 }
 0x248   :  { %v3311_v3 = vmul.f32 %v3195_v14, %v5830_v41  ;;  %v1103_v30 = vmul.f32 %v987_v2, %v5868_v13  ;;  %3892 = vtanh.f32 %v5798_v57  ;;  %v1276_v41 = vadd.f32 %v1160_v49, %v5855_v21  ;;  %v2226_v2 = vpop.f32.mrf.mxu3 }
 0x249   :  { %v1773_v9 = vpack.c.bf16 %v1679_v43, %v1678_v18  ;;  %v2792_v26 = vadd.f32 %v2676_v38, %v2079_v55  ;;  %v3889_v32 = vpop.eup %3888  ;;  %v2964_v39 = vmul.f32 0.7978846, %v2848_v48  ;;  %v2222_v0 = vadd.f32 %v5846_v58, %v4698_v34 }
 0x24a   :  { %3427 = vst.msk [vmem:[%s6627_s4 + $0x290] sm:$0xff] %vm1827_vm2, %v3311_v3  ;;  %v5899_v22 = vadd.f32 %v680_v47, %v4253_v62  ;;  %v3139_v51 = vadd.f32 1.0, %v3889_v32  ;;  %v1219_v57 = vadd.f32 %v1103_v30, %v5868_v13  ;;  %v2082_v59 = vadd.f32 %v2081_v1, %v4698_v34 }
 0x24b   :  { %3568 = vmatmul.msk.bf16.gmra.mxu1 %vm1827_vm2, %v1773_v9  ;;  %v2908_v40 = vmul.f32 0.7978846, %v2792_v26  ;;  %3894 = vtanh.f32 %v2964_v39  ;;  %v2328_v24 = vmul.f32 0.5, %v2079_v55  ;;  %v808_v7 = vmul.f32 0.5, %v5698_v4 }
 0x24c   :  { %v2501_v37 = vmul.f32 0.044715, %v2222_v0  ;;  %v3255_v58 = vmul.f32 %v3139_v51, %v5852_v44  ;;  %v809_v28 = vmul.f32 0.5, %v5747_v10  ;;  %v929_v33 = vmul.f32 0.044715, %v5899_v22  ;;  %v3891_v11 = vpop.eup %3890 }
 0x24d   :  { %3896 = vtanh.f32 %v2908_v40  ;;  %v5908_v60 = vmul.f32 0.7978846, %v1276_v41  ;;  %v2445_v42 = vmul.f32 0.044715, %v2082_v59  ;;  %v5911_v1 = vadd.f32 %v538_v46, %v4253_v62 }
 0x24e   :  { %v2617_v25 = vmul.f32 %v2501_v37, %v2222_v0  ;;  %v3893_v55 = vpop.eup %3892  ;;  %3371 = vst.msk [vmem:[%s6627_s4 + $0xd0] sm:$0xff] %vm1827_vm2, %v3255_v58  ;;  %v5917_v4 = vmul.f32 0.7978846, %v1219_v57  ;;  %v1620_v44 = vadd.f32 1.0, %v3891_v11  ;;  %v1045_v10 = vmul.f32 %v929_v33, %v5899_v22  ;;  %v540_v57 = vpop.f32.mrf.mxu0 }
 0x24f   :  { %3898 = vtanh.f32 %v5808_v20  ;;  %v1621_v17 = vadd.f32 1.0, %v3893_v55  ;;  %v2561_v19 = vmul.f32 %v2445_v42, %v2082_v59  ;;  %v872_v45 = vmul.f32 0.044715, %v5911_v1  ;;  %v2086_v58 = vpop.f32.mrf.mxu1 }
 0x250   :  { %v2733_v50 = vmul.f32 %v2617_v25, %v2222_v0  ;;  %v1736_v16 = vmul.f32 %v1620_v44, %v808_v7  ;;  %v5922_v14 = vmul.f32 0.5, %v2222_v0  ;;  %3900 = vtanh.f32 %v5861_v6 }
 0x251   :  { %v2224_v12 = vadd.f32 %v2223_v5, %v4698_v34  ;;  %v3895_v47 = vpop.eup %3894  ;;  %v1737_v18 = vmul.f32 %v1621_v17, %v809_v28  ;;  %v2677_v49 = vmul.f32 %v2561_v19, %v2082_v59  ;;  %v988_v20 = vmul.f32 %v872_v45, %v5911_v1  ;;  %v685_v45 = vpop.f32.mrf.mxu2 }
 0x252   :  { %v2849_v43 = vadd.f32 %v2733_v50, %v2222_v0  ;;  %v3196_v3 = vadd.f32 1.0, %v3895_v47  ;;  %v1161_v48 = vmul.f32 %v1045_v10, %v5899_v22  ;;  %v5928_v30 = vmul.f32 0.5, %v2082_v59  ;;  %v5960_v47 = vpop.f32.mrf.mxu3 }
 0x253   :  { %v3897_v38 = vpop.eup %3896  ;;  %v2502_v9 = vmul.f32 0.044715, %v2224_v12  ;;  %v1802_v32 = vpack.c.bf16 %v1737_v18, %v1736_v16  ;;  %v2793_v6 = vadd.f32 %v2677_v49, %v2082_v59  ;;  %v1104_v51 = vmul.f32 %v988_v20, %v5911_v1 }
 0x254   :  { %v3140_v26 = vadd.f32 1.0, %v3897_v38  ;;  %v2965_v39 = vmul.f32 0.7978846, %v2849_v43  ;;  %v3312_v5 = vmul.f32 %v3196_v3, %v5881_v52  ;;  %v752_v0 = vmul.f32 0.5, %v5751_v31 }
 0x255   :  { %v3899_v41 = vpop.eup %3898  ;;  %v2618_v40 = vmul.f32 %v2502_v9, %v2224_v12  ;;  %3597 = vmatmul.msk.bf16.gmra.mxu3 %vm1827_vm2, %v1802_v32  ;;  %v2909_v7 = vmul.f32 0.7978846, %v2793_v6  ;;  %v1277_v52 = vadd.f32 %v1161_v48, %v5899_v22  ;;  %v5940_v31 = vadd.f32 %v683_v23, %v4253_v62 }
 0x256   :  { %v3256_v46 = vmul.f32 %v3140_v26, %v2328_v24  ;;  %3902 = vtanh.f32 %v2965_v39  ;;  %v1564_v37 = vadd.f32 1.0, %v3899_v41  ;;  %v3901_v28 = vpop.eup %3900  ;;  %3428 = vst.msk [vmem:[%s6627_s4 + $0x298] sm:$0xff] %vm1827_vm2, %v3312_v5  ;;  %v2084_v24 = vadd.f32 %v2083_v54, %v4698_v34  ;;  %v543_v5 = vpop.f32.mrf.mxu0 }
 0x257   :  { %v2734_v59 = vmul.f32 %v2618_v40, %v2224_v12  ;;  %3904 = vtanh.f32 %v2909_v7  ;;  %v753_v33 = vmul.f32 0.5, %v5801_v8  ;;  %v1565_v11 = vadd.f32 1.0, %v3901_v28 }
 0x258   :  { %3372 = vst.msk [vmem:[%s6627_s4 + $0xd8] sm:$0xff] %vm1827_vm2, %v3256_v46  ;;  %v5949_v25 = vadd.f32 %v540_v57, %v4253_v62  ;;  %v1220_v42 = vadd.f32 %v1104_v51, %v5911_v1  ;;  %v5952_v55 = vmul.f32 0.5, %v2224_v12  ;;  %v930_v10 = vmul.f32 0.044715, %v5940_v31  ;;  %v2088_v57 = vpop.f32.mrf.mxu1 }
 0x259   :  { %v2850_v44 = vadd.f32 %v2734_v59, %v2224_v12  ;;  %v1680_v54 = vmul.f32 %v1564_v37, %v752_v0  ;;  %v1681_v17 = vmul.f32 %v1565_v11, %v753_v33  ;;  %v2446_v50 = vmul.f32 0.044715, %v2084_v24 }
 0x25a   :  { %v873_v19 = vmul.f32 0.044715, %v5949_v25  ;;  %v5956_v23 = vmul.f32 0.7978846, %v1277_v52  ;;  %v1046_v16 = vmul.f32 %v930_v10, %v5940_v31  ;;  %3906 = vtanh.f32 %v5838_v36 }
 0x25b   :  { %v2966_v8 = vmul.f32 0.7978846, %v2850_v44  ;;  %v1774_v43 = vpack.c.bf16 %v1681_v17, %v1680_v54  ;;  %v2562_v12 = vmul.f32 %v2446_v50, %v2084_v24  ;;  %3908 = vtanh.f32 %v5878_v53  ;;  %v688_v17 = vpop.f32.mrf.mxu2 }
 0x25c   :  { %v3903_v18 = vpop.eup %3902  ;;  %v989_v49 = vmul.f32 %v873_v19, %v5949_v25  ;;  %v1162_v38 = vmul.f32 %v1046_v16, %v5940_v31  ;;  %v2227_v3 = vadd.f32 %v2226_v2, %v4698_v34  ;;  %v5966_v9 = vmul.f32 0.7978846, %v1220_v42 }
 0x25d   :  { %v3197_v20 = vadd.f32 1.0, %v3903_v18  ;;  %3910 = vtanh.f32 %v2966_v8  ;;  %v3905_v48 = vpop.eup %3904  ;;  %3569 = vmatmul.msk.bf16.gmra.mxu1 %vm1827_vm2, %v1774_v43  ;;  %v2678_v36 = vmul.f32 %v2562_v12, %v2084_v24  ;;  %v5970_v26 = vadd.f32 %v685_v45, %v4253_v62  ;;  %v2231_v16 = vpop.f32.mrf.mxu3 }
 0x25e   :  { %v2087_v32 = vadd.f32 %v2086_v58, %v4698_v34  ;;  %v3141_v53 = vadd.f32 1.0, %v3905_v48  ;;  %v5974_v6 = vmul.f32 0.5, %v2084_v24  ;;  %v810_v41 = vmul.f32 0.5, %v5775_v15 }
 0x25f   :  { %v3313_v39 = vmul.f32 %v3197_v20, %v5922_v14  ;;  %v2794_v2 = vadd.f32 %v2678_v36, %v2084_v24  ;;  %v811_v51 = vmul.f32 0.5, %v5822_v63  ;;  %v2503_v0 = vmul.f32 0.044715, %v2227_v3 }
 0x260   :  { %v931_v40 = vmul.f32 0.044715, %v5970_v26  ;;  %v3907_v46 = vpop.eup %3906  ;;  %v3257_v14 = vmul.f32 %v3141_v53, %v5928_v30  ;;  %v1278_v7 = vadd.f32 %v1162_v38, %v5940_v31  ;;  %v1105_v15 = vmul.f32 %v989_v49, %v5949_v25 }
 0x261   :  { %3429 = vst.msk [vmem:[%s6627_s4 + $0x2a0] sm:$0xff] %vm1827_vm2, %v3313_v39  ;;  %v2447_v37 = vmul.f32 0.044715, %v2087_v32  ;;  %v3909_v58 = vpop.eup %3908  ;;  %v2910_v28 = vmul.f32 0.7978846, %v2794_v2  ;;  %v1622_v63 = vadd.f32 1.0, %v3907_v46  ;;  %v2619_v59 = vmul.f32 %v2503_v0, %v2227_v3  ;;  %v2091_v0 = vpop.f32.mrf.mxu1 }
 0x262   :  { %v5986_v52 = vmul.f32 0.5, %v2227_v3  ;;  %3373 = vst.msk [vmem:[%s6627_s4 + $0xe0] sm:$0xff] %vm1827_vm2, %v3257_v14  ;;  %v1623_v33 = vadd.f32 1.0, %v3909_v58  ;;  %v1047_v30 = vmul.f32 %v931_v40, %v5970_v26  ;;  %v5994_v42 = vadd.f32 %v543_v5, %v4253_v62  ;;  %v545_v5 = vpop.f32.mrf.mxu0 }
 0x263   :  { %v3911_v24 = vpop.eup %3910  ;;  %v2563_v11 = vmul.f32 %v2447_v37, %v2087_v32  ;;  %3912 = vtanh.f32 %v2910_v28  ;;  %v1738_v10 = vmul.f32 %v1622_v63, %v810_v41  ;;  %v2735_v54 = vmul.f32 %v2619_v59, %v2227_v3 }
 0x264   :  { %v3198_v44 = vadd.f32 1.0, %v3911_v24  ;;  %v1739_v50 = vmul.f32 %v1623_v33, %v811_v51  ;;  %v1163_v19 = vmul.f32 %v1047_v30, %v5970_v26  ;;  %v874_v8 = vmul.f32 0.044715, %v5994_v42  ;;  %v690_v30 = vpop.f32.mrf.mxu2 }
 0x265   :  { %v2679_v45 = vmul.f32 %v2563_v11, %v2087_v32  ;;  %v5999_v43 = vmul.f32 0.7978846, %v1278_v7  ;;  %v1221_v12 = vadd.f32 %v1105_v15, %v5949_v25  ;;  %v2851_v49 = vadd.f32 %v2735_v54, %v2227_v3  ;;  %v2233_v54 = vpop.f32.mrf.mxu3 }
 0x266   :  { %v3314_v18 = vmul.f32 %v3198_v44, %v5952_v55  ;;  %v1803_v20 = vpack.c.bf16 %v1739_v50, %v1738_v10  ;;  %v6002_v38 = vmul.f32 0.5, %v2087_v32  ;;  %v990_v36 = vmul.f32 %v874_v8, %v5994_v42 }
 0x267   :  { %v2795_v48 = vadd.f32 %v2679_v45, %v2087_v32  ;;  %v2967_v39 = vmul.f32 0.7978846, %v2851_v49  ;;  %3914 = vtanh.f32 %v5888_v27  ;;  %v2229_v55 = vadd.f32 %v5960_v47, %v4698_v34 }
 0x268   :  { %3430 = vst.msk [vmem:[%s6627_s4 + $0x2a8] sm:$0xff] %vm1827_vm2, %v3314_v18  ;;  %v6013_v53 = vadd.f32 %v688_v17, %v4253_v62  ;;  %3598 = vmatmul.msk.bf16.gmra.mxu3 %vm1827_vm2, %v1803_v20  ;;  %v1279_v3 = vadd.f32 %v1163_v19, %v5970_v26  ;;  %v1106_v41 = vmul.f32 %v990_v36, %v5994_v42  ;;  %3916 = vtanh.f32 %v5917_v4 }
 0x269   :  { %v2911_v32 = vmul.f32 0.7978846, %v2795_v48  ;;  %v3913_v2 = vpop.eup %3912  ;;  %v6019_v51 = vmul.f32 0.7978846, %v1221_v12  ;;  %3918 = vtanh.f32 %v2967_v39  ;;  %v2504_v27 = vmul.f32 0.044715, %v2229_v55 }
 0x26a   :  { %v932_v47 = vmul.f32 0.044715, %v6013_v53  ;;  %v3142_v40 = vadd.f32 1.0, %v3913_v2  ;;  %v754_v46 = vmul.f32 0.5, %v5827_v29  ;;  %v2089_v14 = vadd.f32 %v2088_v57, %v4698_v34 }
 0x26b   :  { %3920 = vtanh.f32 %v2911_v32  ;;  %v755_v7 = vmul.f32 0.5, %v5868_v13  ;;  %v2620_v15 = vmul.f32 %v2504_v27, %v2229_v55  ;;  %v6027_v37 = vadd.f32 %v545_v5, %v4253_v62  ;;  %v2093_v27 = vpop.f32.mrf.mxu1 }
 0x26c   :  { %v1048_v4 = vmul.f32 %v932_v47, %v6013_v53  ;;  %v3258_v58 = vmul.f32 %v3142_v40, %v5974_v6  ;;  %v6030_v28 = vmul.f32 0.7978846, %v1279_v3  ;;  %v1222_v63 = vadd.f32 %v1106_v41, %v5994_v42  ;;  %v548_v41 = vpop.f32.mrf.mxu0 }
 0x26d   :  { %v2448_v59 = vmul.f32 0.044715, %v2089_v14  ;;  %v3915_v24 = vpop.eup %3914  ;;  %v6033_v33 = vmul.f32 0.5, %v2229_v55  ;;  %v2736_v29 = vmul.f32 %v2620_v15, %v2229_v55  ;;  %v875_v57 = vmul.f32 0.044715, %v6027_v37 }
 0x26e   :  { %v812_v13 = vmul.f32 0.5, %v5855_v21  ;;  %v3917_v11 = vpop.eup %3916  ;;  %3374 = vst.msk [vmem:[%s6627_s4 + $0xe8] sm:$0xff] %vm1827_vm2, %v3258_v58  ;;  %v1566_v6 = vadd.f32 1.0, %v3915_v24  ;;  %v1164_v44 = vmul.f32 %v1048_v4, %v6013_v53  ;;  %3922 = vtanh.f32 %v5908_v60 }
 0x26f   :  { %v2564_v10 = vmul.f32 %v2448_v59, %v2089_v14  ;;  %v3919_v17 = vpop.eup %3918  ;;  %v1567_v50 = vadd.f32 1.0, %v3917_v11  ;;  %v2852_v19 = vadd.f32 %v2736_v29, %v2229_v55  ;;  %v991_v45 = vmul.f32 %v875_v57, %v6027_v37 }
 0x270   :  { %v2232_v21 = vadd.f32 %v2231_v16, %v4698_v34  ;;  %v3199_v18 = vadd.f32 1.0, %v3919_v17  ;;  %v6045_v12 = vmul.f32 0.7978846, %v1222_v63  ;;  %3924 = vtanh.f32 %v5956_v23 }
 0x271   :  { %v3921_v8 = vpop.eup %3920  ;;  %v2680_v49 = vmul.f32 %v2564_v10, %v2089_v14  ;;  %v1682_v48 = vmul.f32 %v1566_v6, %v754_v46  ;;  %v1683_v36 = vmul.f32 %v1567_v50, %v755_v7  ;;  %v2968_v39 = vmul.f32 0.7978846, %v2852_v19 }
 0x272   :  { %v3143_v20 = vadd.f32 1.0, %v3921_v8  ;;  %v3315_v60 = vmul.f32 %v3199_v18, %v5986_v52  ;;  %v1280_v3 = vadd.f32 %v1164_v44, %v6013_v53  ;;  %v1107_v32 = vmul.f32 %v991_v45, %v6027_v37 }
 0x273   :  { %v2796_v55 = vadd.f32 %v2680_v49, %v2089_v14  ;;  %v1775_v5 = vpack.c.bf16 %v1683_v36, %v1682_v48  ;;  %3926 = vtanh.f32 %v2968_v39  ;;  %v2505_v2 = vmul.f32 0.044715, %v2232_v21  ;;  %v6078_v44 = vpop.f32.mrf.mxu3 }
 0x274   :  { %v3259_v16 = vmul.f32 %v3143_v20, %v6002_v38  ;;  %v3923_v47 = vpop.eup %3922  ;;  %3431 = vst.msk [vmem:[%s6627_s4 + $0x2b0] sm:$0xff] %vm1827_vm2, %v3315_v60  ;;  %v2332_v23 = vmul.f32 0.5, %v2089_v14  ;;  %v6057_v40 = vadd.f32 %v690_v30, %v4253_v62  ;;  %v2092_v46 = vadd.f32 %v2091_v0, %v4698_v34  ;;  %v693_v30 = vpop.f32.mrf.mxu2 }
 0x275   :  { %v2912_v52 = vmul.f32 0.7978846, %v2796_v55  ;;  %3570 = vmatmul.msk.bf16.gmra.mxu1 %vm1827_vm2, %v1775_v5  ;;  %v813_v38 = vmul.f32 0.5, %v5899_v22  ;;  %v1624_v7 = vadd.f32 1.0, %v3923_v47  ;;  %v2621_v15 = vmul.f32 %v2505_v2, %v2232_v21 }
 0x276   :  { %3375 = vst.msk [vmem:[%s6627_s4 + $0xf0] sm:$0xff] %vm1827_vm2, %v3259_v16  ;;  %v6067_v4 = vadd.f32 %v548_v41, %v4253_v62  ;;  %v3925_v14 = vpop.eup %3924  ;;  %v6069_v58 = vmul.f32 0.7978846, %v1280_v3  ;;  %v6071_v63 = vmul.f32 0.5, %v2232_v21  ;;  %v933_v0 = vmul.f32 0.044715, %v6057_v40  ;;  %v550_v3 = vpop.f32.mrf.mxu0 }
 0x277   :  { %3928 = vtanh.f32 %v2912_v52  ;;  %v1223_v59 = vadd.f32 %v1107_v32, %v6027_v37  ;;  %v1625_v24 = vadd.f32 1.0, %v3925_v14  ;;  %v2737_v29 = vmul.f32 %v2621_v15, %v2232_v21  ;;  %v2096_v41 = vpop.f32.mrf.mxu1 }
 0x278   :  { %v2449_v57 = vmul.f32 0.044715, %v2092_v46  ;;  %v1740_v22 = vmul.f32 %v1624_v7, %v812_v13  ;;  %v1049_v11 = vmul.f32 %v933_v0, %v6057_v40  ;;  %v876_v6 = vmul.f32 0.044715, %v6067_v4 }
 0x279   :  { %3930 = vtanh.f32 %v5966_v9  ;;  %v3927_v10 = vpop.eup %3926  ;;  %v1741_v17 = vmul.f32 %v1625_v24, %v813_v38  ;;  %v2853_v50 = vadd.f32 %v2737_v29, %v2232_v21  ;;  %v2234_v13 = vadd.f32 %v2233_v54, %v4698_v34 }
 0x27a   :  { %v2565_v19 = vmul.f32 %v2449_v57, %v2092_v46  ;;  %3932 = vtanh.f32 %v6019_v51  ;;  %v3200_v45 = vadd.f32 1.0, %v3927_v10  ;;  %v1165_v8 = vmul.f32 %v1049_v11, %v6057_v40 }
 0x27b   :  { %v992_v18 = vmul.f32 %v876_v6, %v6067_v4  ;;  %v1804_v49 = vpack.c.bf16 %v1741_v17, %v1740_v22  ;;  %v2969_v20 = vmul.f32 0.7978846, %v2853_v50  ;;  %v6085_v9 = vadd.f32 %v693_v30, %v4253_v62  ;;  %v6114_v11 = vpop.f32.mrf.mxu3 }
 0x27c   :  { %v2681_v48 = vmul.f32 %v2565_v19, %v2092_v46  ;;  %v3316_v39 = vmul.f32 %v3200_v45, %v6033_v33  ;;  %v6088_v21 = vmul.f32 0.7978846, %v1223_v59  ;;  %v756_v60 = vmul.f32 0.5, %v5911_v1  ;;  %v695_v29 = vpop.f32.mrf.mxu2 }
 0x27d   :  { %v3929_v36 = vpop.eup %3928  ;;  %v1108_v51 = vmul.f32 %v992_v18, %v6067_v4  ;;  %3599 = vmatmul.msk.bf16.gmra.mxu3 %vm1827_vm2, %v1804_v49  ;;  %3934 = vtanh.f32 %v2969_v20  ;;  %v2506_v32 = vmul.f32 0.044715, %v2234_v13  ;;  %v1281_v33 = vadd.f32 %v1165_v8, %v6057_v40 }
 0x27e   :  { %v3144_v55 = vadd.f32 1.0, %v3929_v36  ;;  %v2797_v54 = vadd.f32 %v2681_v48, %v2092_v46  ;;  %3432 = vst.msk [vmem:[%s6627_s4 + $0x2b8] sm:$0xff] %vm1827_vm2, %v3316_v39  ;;  %v2333_v5 = vmul.f32 0.5, %v2092_v46  ;;  %v934_v2 = vmul.f32 0.044715, %v6085_v9 }
 0x27f   :  { %v3931_v16 = vpop.eup %3930  ;;  %v2094_v1 = vadd.f32 %v2093_v27, %v4698_v34  ;;  %v2622_v15 = vmul.f32 %v2506_v32, %v2234_v13  ;;  %v1224_v14 = vadd.f32 %v1108_v51, %v6067_v4  ;;  %v757_v0 = vmul.f32 0.5, %v5949_v25  ;;  %v553_v51 = vpop.f32.mrf.mxu0 }
 0x280   :  { %v3933_v47 = vpop.eup %3932  ;;  %v3260_v52 = vmul.f32 %v3144_v55, %v2332_v23  ;;  %v2913_v38 = vmul.f32 0.7978846, %v2797_v54  ;;  %v1568_v7 = vadd.f32 1.0, %v3931_v16  ;;  %v1050_v24 = vmul.f32 %v934_v2, %v6085_v9  ;;  %v2098_v54 = vpop.f32.mrf.mxu1 }
 0x281   :  { %v1569_v59 = vadd.f32 1.0, %v3933_v47  ;;  %v6107_v46 = vmul.f32 0.5, %v2234_v13  ;;  %v2738_v27 = vmul.f32 %v2622_v15, %v2234_v13  ;;  %v2450_v23 = vmul.f32 0.044715, %v2094_v1 }
 0x282   :  { %3376 = vst.msk [vmem:[%s6627_s4 + $0xf8] sm:$0xff] %vm1827_vm2, %v3260_v52  ;;  %3936 = vtanh.f32 %v2913_v38  ;;  %v6109_v57 = vmul.f32 0.7978846, %v1281_v33  ;;  %v1684_v30 = vmul.f32 %v1568_v7, %v756_v60  ;;  %v6112_v25 = vadd.f32 %v550_v3, %v4253_v62 }
 0x283   :  { %v1685_v22 = vmul.f32 %v1569_v59, %v757_v0  ;;  %v3935_v6 = vpop.eup %3934  ;;  %v2854_v10 = vadd.f32 %v2738_v27, %v2234_v13  ;;  %v1166_v17 = vmul.f32 %v1050_v24, %v6085_v9  ;;  %v2566_v50 = vmul.f32 %v2450_v23, %v2094_v1 }
 0x284   :  { %3938 = vtanh.f32 %v5999_v43  ;;  %v3201_v19 = vadd.f32 1.0, %v3935_v6  ;;  %v6118_v45 = vmul.f32 0.7978846, %v1224_v14  ;;  %v877_v18 = vmul.f32 0.044715, %v6112_v25  ;;  %v698_v27 = vpop.f32.mrf.mxu2 }
 0x285   :  { %v1776_v8 = vpack.c.bf16 %v1685_v22, %v1684_v30  ;;  %v2970_v49 = vmul.f32 0.7978846, %v2854_v10  ;;  %v2682_v20 = vmul.f32 %v2566_v50, %v2094_v1  ;;  %3940 = vtanh.f32 %v6030_v28 }
 0x286   :  { %v2237_v48 = vadd.f32 %v6078_v44, %v4698_v34  ;;  %v3317_v13 = vmul.f32 %v3201_v19, %v6071_v63  ;;  %v6126_v36 = vmul.f32 0.5, %v2094_v1  ;;  %v993_v43 = vmul.f32 %v877_v18, %v6112_v25 }
 0x287   :  { %3571 = vmatmul.msk.bf16.gmra.mxu1 %vm1827_vm2, %v1776_v8  ;;  %v6130_v39 = vadd.f32 %v695_v29, %v4253_v62  ;;  %3942 = vtanh.f32 %v2970_v49  ;;  %v1282_v3 = vadd.f32 %v1166_v17, %v6085_v9  ;;  %v2798_v28 = vadd.f32 %v2682_v20, %v2094_v1  ;;  %v6156_v29 = vpop.f32.mrf.mxu3 }
 0x288   :  { %v3937_v60 = vpop.eup %3936  ;;  %v2507_v55 = vmul.f32 0.044715, %v2237_v48  ;;  %3433 = vst.msk [vmem:[%s6627_s4 + $0x2c0] sm:$0xff] %vm1827_vm2, %v3317_v13  ;;  %v1109_v44 = vmul.f32 %v993_v43, %v6112_v25  ;;  %v2097_v16 = vadd.f32 %v2096_v41, %v4698_v34  ;;  %v814_v47 = vmul.f32 0.5, %v5940_v31 }
 0x289   :  { %v3145_v63 = vadd.f32 1.0, %v3937_v60  ;;  %v935_v32 = vmul.f32 0.044715, %v6130_v39  ;;  %v2914_v2 = vmul.f32 0.7978846, %v2798_v28  ;;  %v6142_v1 = vadd.f32 %v553_v51, %v4253_v62  ;;  %v555_v51 = vpop.f32.mrf.mxu0 }
 0x28a   :  { %v3939_v33 = vpop.eup %3938  ;;  %v2623_v52 = vmul.f32 %v2507_v55, %v2237_v48  ;;  %v815_v7 = vmul.f32 0.5, %v5970_v26  ;;  %v6146_v59 = vmul.f32 0.7978846, %v1282_v3  ;;  %v2451_v41 = vmul.f32 0.044715, %v2097_v16  ;;  %v2101_v55 = vpop.f32.mrf.mxu1 }
 0x28b   :  { %v3261_v38 = vmul.f32 %v3145_v63, %v2333_v5  ;;  %v1626_v15 = vadd.f32 1.0, %v3939_v33  ;;  %v1051_v14 = vmul.f32 %v935_v32, %v6130_v39  ;;  %v3941_v0 = vpop.eup %3940  ;;  %3944 = vtanh.f32 %v2914_v2 }
 0x28c   :  { %v2739_v24 = vmul.f32 %v2623_v52, %v2237_v48  ;;  %v1225_v31 = vadd.f32 %v1109_v44, %v6112_v25  ;;  %v1627_v5 = vadd.f32 1.0, %v3941_v0  ;;  %v6153_v23 = vmul.f32 0.5, %v2237_v48 }
 0x28d   :  { %3377 = vst.msk [vmem:[%s6627_s4 + $0x100] sm:$0xff] %vm1827_vm2, %v3261_v38  ;;  %v758_v26 = vmul.f32 0.5, %v5994_v42  ;;  %v3943_v30 = vpop.eup %3942  ;;  %v1167_v6 = vmul.f32 %v1051_v14, %v6130_v39  ;;  %v2567_v10 = vmul.f32 %v2451_v41, %v2097_v16  ;;  %v878_v17 = vmul.f32 0.044715, %v6142_v1 }
 0x28e   :  { %v2855_v22 = vadd.f32 %v2739_v24, %v2237_v48  ;;  %v3202_v50 = vadd.f32 1.0, %v3943_v30  ;;  %v1742_v19 = vmul.f32 %v1626_v15, %v814_v47  ;;  %v1743_v8 = vmul.f32 %v1627_v5, %v815_v7  ;;  %v700_v24 = vpop.f32.mrf.mxu2 }
 0x28f   :  { %3946 = vtanh.f32 %v6045_v12  ;;  %v2683_v49 = vmul.f32 %v2567_v10, %v2097_v16  ;;  %v994_v20 = vmul.f32 %v878_v17, %v6142_v1  ;;  %v6164_v48 = vmul.f32 0.5, %v2097_v16 }
 0x290   :  { %v2971_v18 = vmul.f32 0.7978846, %v2855_v22  ;;  %3948 = vtanh.f32 %v6088_v21  ;;  %v3318_v42 = vmul.f32 %v3202_v50, %v6107_v46  ;;  %v1805_v13 = vpack.c.bf16 %v1743_v8, %v1742_v19 }
 0x291   :  { %v2239_v43 = vadd.f32 %v6114_v11, %v4698_v34  ;;  %v3945_v60 = vpop.eup %3944  ;;  %v1283_v3 = vadd.f32 %v1167_v6, %v6130_v39  ;;  %v2799_v12 = vadd.f32 %v2683_v49, %v2097_v16  ;;  %v6170_v28 = vadd.f32 %v698_v27, %v4253_v62 }
 0x292   :  { %3950 = vtanh.f32 %v2971_v18  ;;  %3434 = vst.msk [vmem:[%s6627_s4 + $0x2c8] sm:$0xff] %vm1827_vm2, %v3318_v42  ;;  %v3146_v21 = vadd.f32 1.0, %v3945_v60  ;;  %v6176_v46 = vmul.f32 0.7978846, %v1225_v31  ;;  %3600 = vmatmul.msk.bf16.gmra.mxu3 %vm1827_vm2, %v1805_v13  ;;  %v2099_v63 = vadd.f32 %v2098_v54, %v4698_v34  ;;  %v2243_v31 = vpop.f32.mrf.mxu3  ;;  %v558_v60 = vpop.f32.mrf.mxu0 }
 0x293   :  { %v2508_v11 = vmul.f32 0.044715, %v2239_v43  ;;  %v2915_v44 = vmul.f32 0.7978846, %v2799_v12  ;;  %v1110_v32 = vmul.f32 %v994_v20, %v6142_v1  ;;  %v936_v16 = vmul.f32 0.044715, %v6170_v28 }
 0x294   :  { %v6183_v33 = vadd.f32 %v555_v51, %v4253_v62  ;;  %v3262_v47 = vmul.f32 %v3146_v21, %v6126_v36  ;;  %v759_v52 = vmul.f32 0.5, %v6027_v37  ;;  %v2452_v7 = vmul.f32 0.044715, %v2099_v63 }
 0x295   :  { %v3947_v2 = vpop.eup %3946  ;;  %v2624_v38 = vmul.f32 %v2508_v11, %v2239_v43  ;;  %v6187_v14 = vmul.f32 0.7978846, %v1283_v3  ;;  %3952 = vtanh.f32 %v2915_v44  ;;  %v1052_v0 = vmul.f32 %v936_v16, %v6170_v28  ;;  %v6211_v11 = vpop.f32.mrf.mxu1 }
 0x296   :  { %v3949_v15 = vpop.eup %3948  ;;  %v1570_v54 = vadd.f32 1.0, %v3947_v2  ;;  %3378 = vst.msk [vmem:[%s6627_s4 + $0x108] sm:$0xff] %vm1827_vm2, %v3262_v47  ;;  %v2568_v36 = vmul.f32 %v2452_v7, %v2099_v63  ;;  %v879_v37 = vmul.f32 0.044715, %v6183_v33  ;;  %v1226_v30 = vadd.f32 %v1110_v32, %v6142_v1 }
 0x297   :  { %v1571_v41 = vadd.f32 1.0, %v3949_v15  ;;  %v2740_v27 = vmul.f32 %v2624_v38, %v2239_v43  ;;  %v6196_v6 = vmul.f32 0.5, %v2239_v43  ;;  %v1168_v10 = vmul.f32 %v1052_v0, %v6170_v28 }
 0x298   :  { %v3951_v5 = vpop.eup %3950  ;;  %v1686_v22 = vmul.f32 %v1570_v54, %v758_v26  ;;  %v2684_v8 = vmul.f32 %v2568_v36, %v2099_v63  ;;  %v6199_v18 = vmul.f32 0.5, %v2099_v63  ;;  %v995_v49 = vmul.f32 %v879_v37, %v6183_v33  ;;  %v703_v54 = vpop.f32.mrf.mxu2 }
 0x299   :  { %v3203_v17 = vadd.f32 1.0, %v3951_v5  ;;  %v1687_v50 = vmul.f32 %v1571_v41, %v759_v52  ;;  %v2856_v19 = vadd.f32 %v2740_v27, %v2239_v43  ;;  %3954 = vtanh.f32 %v6069_v58 }
 0x29a   :  { %v2242_v20 = vadd.f32 %v6156_v29, %v4698_v34  ;;  %v2800_v51 = vadd.f32 %v2684_v8, %v2099_v63  ;;  %v6206_v12 = vmul.f32 0.7978846, %v1226_v30  ;;  %v1284_v43 = vadd.f32 %v1168_v10, %v6170_v28 }
 0x29b   :  { %v3319_v42 = vmul.f32 %v3203_v17, %v6153_v23  ;;  %v1777_v26 = vpack.c.bf16 %v1687_v50, %v1686_v22  ;;  %v2972_v13 = vmul.f32 0.7978846, %v2856_v19  ;;  %v3953_v3 = vpop.eup %3952  ;;  %v1111_v21 = vmul.f32 %v995_v49, %v6183_v33 }
 0x29c   :  { %3956 = vtanh.f32 %v6109_v57  ;;  %v3147_v58 = vadd.f32 1.0, %v3953_v3  ;;  %v2916_v23 = vmul.f32 0.7978846, %v2800_v51  ;;  %v2509_v29 = vmul.f32 0.044715, %v2242_v20 }
 0x29d   :  { %3435 = vst.msk [vmem:[%s6627_s4 + $0x2d0] sm:$0xff] %vm1827_vm2, %v3319_v42  ;;  %3572 = vmatmul.msk.bf16.gmra.mxu1 %vm1827_vm2, %v1777_v26  ;;  %3958 = vtanh.f32 %v2972_v13  ;;  %v816_v63 = vmul.f32 0.5, %v6013_v53  ;;  %v6220_v44 = vadd.f32 %v700_v24, %v4253_v62  ;;  %v2102_v57 = vadd.f32 %v2101_v55, %v4698_v34  ;;  %v6239_v24 = vpop.f32.mrf.mxu3 }
 0x29e   :  { %v6224_v32 = vadd.f32 %v558_v60, %v4253_v62  ;;  %v3263_v16 = vmul.f32 %v3147_v58, %v6164_v48  ;;  %3960 = vtanh.f32 %v2916_v23  ;;  %v817_v2 = vmul.f32 0.5, %v6057_v40  ;;  %v2106_v60 = vpop.f32.mrf.mxu1  ;;  %v560_v58 = vpop.f32.mrf.mxu0 }
 0x29f   :  { %v2625_v47 = vmul.f32 %v2509_v29, %v2242_v20  ;;  %v3955_v52 = vpop.eup %3954  ;;  %v6228_v38 = vmul.f32 0.7978846, %v1284_v43  ;;  %v1227_v7 = vadd.f32 %v1111_v21, %v6183_v33  ;;  %v6231_v53 = vmul.f32 0.5, %v2242_v20 }
 0x2a0   :  { %v937_v15 = vmul.f32 0.044715, %v6220_v44  ;;  %3379 = vst.msk [vmem:[%s6627_s4 + $0x110] sm:$0xff] %vm1827_vm2, %v3263_v16  ;;  %v1628_v48 = vadd.f32 1.0, %v3955_v52  ;;  %v2453_v0 = vmul.f32 0.044715, %v2102_v57  ;;  %3962 = vtanh.f32 %v6118_v45 }
 0x2a1   :  { %v2741_v55 = vmul.f32 %v2625_v47, %v2242_v20  ;;  %v880_v40 = vmul.f32 0.044715, %v6224_v32  ;;  %v760_v36 = vmul.f32 0.5, %v6067_v4  ;;  %v2244_v37 = vadd.f32 %v2243_v31, %v4698_v34 }
 0x2a2   :  { %v3957_v41 = vpop.eup %3956  ;;  %v1053_v27 = vmul.f32 %v937_v15, %v6220_v44  ;;  %v2569_v10 = vmul.f32 %v2453_v0, %v2102_v57  ;;  %v6246_v17 = vadd.f32 %v703_v54, %v4253_v62  ;;  %3964 = vtanh.f32 %v6176_v46 }
 0x2a3   :  { %v3959_v5 = vpop.eup %3958  ;;  %v1629_v30 = vadd.f32 1.0, %v3957_v41  ;;  %v2857_v22 = vadd.f32 %v2741_v55, %v2242_v20  ;;  %v996_v8 = vmul.f32 %v880_v40, %v6224_v32  ;;  %v1744_v4 = vmul.f32 %v1628_v48, %v816_v63 }
 0x2a4   :  { %v3204_v50 = vadd.f32 1.0, %v3959_v5  ;;  %v1169_v19 = vmul.f32 %v1053_v27, %v6220_v44  ;;  %v3961_v49 = vpop.eup %3960  ;;  %v2685_v26 = vmul.f32 %v2569_v10, %v2102_v57  ;;  %v6252_v20 = vmul.f32 0.7978846, %v1227_v7 }
 0x2a5   :  { %v1745_v42 = vmul.f32 %v1629_v30, %v817_v2  ;;  %v2973_v45 = vmul.f32 0.7978846, %v2857_v22  ;;  %v3148_v13 = vadd.f32 1.0, %v3961_v49  ;;  %v2510_v21 = vmul.f32 0.044715, %v2244_v37  ;;  %v2248_v48 = vpop.f32.mrf.mxu3 }
 0x2a6   :  { %v3320_v31 = vmul.f32 %v3204_v50, %v6196_v6  ;;  %v1285_v51 = vadd.f32 %v1169_v19, %v6220_v44  ;;  %v2801_v43 = vadd.f32 %v2685_v26, %v2102_v57  ;;  %v3963_v23 = vpop.eup %3962  ;;  %v2337_v6 = vmul.f32 0.5, %v2102_v57 }
 0x2a7   :  { %v1806_v3 = vpack.c.bf16 %v1745_v42, %v1744_v4  ;;  %3966 = vtanh.f32 %v2973_v45  ;;  %v3264_v46 = vmul.f32 %v3148_v13, %v6199_v18  ;;  %v1112_v29 = vmul.f32 %v996_v8, %v6224_v32  ;;  %v705_v4 = vpop.f32.mrf.mxu2  ;;  %v2108_v42 = vpop.f32.mrf.mxu1 }
 0x2a8   :  { %3436 = vst.msk [vmem:[%s6627_s4 + $0x2d8] sm:$0xff] %vm1827_vm2, %v3320_v31  ;;  %v938_v63 = vmul.f32 0.044715, %v6246_v17  ;;  %v2917_v16 = vmul.f32 0.7978846, %v2801_v43  ;;  %v1572_v2 = vadd.f32 1.0, %v3963_v23  ;;  %v2626_v47 = vmul.f32 %v2510_v21, %v2244_v37  ;;  %v3965_v7 = vpop.eup %3964 }
 0x2a9   :  { %3601 = vmatmul.msk.bf16.gmra.mxu3 %vm1827_vm2, %v1806_v3  ;;  %v2104_v52 = vadd.f32 %v6211_v11, %v4698_v34  ;;  %3380 = vst.msk [vmem:[%s6627_s4 + $0x118] sm:$0xff] %vm1827_vm2, %v3264_v46  ;;  %v761_v18 = vmul.f32 0.5, %v6112_v25  ;;  %v6270_v57 = vmul.f32 0.5, %v2244_v37  ;;  %v6274_v54 = vadd.f32 %v560_v58, %v4253_v62 }
 0x2aa   :  { %v1054_v15 = vmul.f32 %v938_v63, %v6246_v17  ;;  %v6276_v55 = vmul.f32 0.7978846, %v1285_v51  ;;  %3968 = vtanh.f32 %v2917_v16  ;;  %v1573_v11 = vadd.f32 1.0, %v3965_v7 }
 0x2ab   :  { %v2742_v0 = vmul.f32 %v2626_v47, %v2244_v37  ;;  %v1228_v40 = vadd.f32 %v1112_v29, %v6224_v32  ;;  %v2454_v27 = vmul.f32 0.044715, %v2104_v52  ;;  %v881_v25 = vmul.f32 0.044715, %v6274_v54 }
 0x2ac   :  { %v1170_v41 = vmul.f32 %v1054_v15, %v6246_v17  ;;  %v1688_v30 = vmul.f32 %v1572_v2, %v760_v36  ;;  %v1689_v22 = vmul.f32 %v1573_v11, %v761_v18  ;;  %3970 = vtanh.f32 %v6146_v59 }
 0x2ad   :  { %v3967_v5 = vpop.eup %3966  ;;  %v2858_v10 = vadd.f32 %v2742_v0, %v2244_v37  ;;  %v2570_v8 = vmul.f32 %v2454_v27, %v2104_v52  ;;  %v997_v49 = vmul.f32 %v881_v25, %v6274_v54  ;;  %3972 = vtanh.f32 %v6187_v14 }
 0x2ae   :  { %v3205_v50 = vadd.f32 1.0, %v3967_v5  ;;  %v1286_v19 = vadd.f32 %v1170_v41, %v6246_v17  ;;  %v1778_v45 = vpack.c.bf16 %v1689_v22, %v1688_v30  ;;  %v2247_v31 = vadd.f32 %v6239_v24, %v4698_v34 }
 0x2af   :  { %v2974_v26 = vmul.f32 0.7978846, %v2858_v10  ;;  %v6288_v37 = vmul.f32 0.7978846, %v1228_v40  ;;  %v2686_v59 = vmul.f32 %v2570_v8, %v2104_v52  ;;  %v818_v13 = vmul.f32 0.5, %v6085_v9 }
 0x2b0   :  { %v3321_v36 = vmul.f32 %v3205_v50, %v6231_v53  ;;  %v3969_v51 = vpop.eup %3968  ;;  %3573 = vmatmul.msk.bf16.gmra.mxu1 %vm1827_vm2, %v1778_v45  ;;  %v1113_v3 = vmul.f32 %v997_v49, %v6274_v54  ;;  %v2511_v43 = vmul.f32 0.044715, %v2247_v31  ;;  %v6294_v21 = vadd.f32 %v705_v4, %v4253_v62  ;;  %v2251_v58 = vpop.f32.mrf.mxu3 }
 0x2b1   :  { %3974 = vtanh.f32 %v2974_v26  ;;  %v3149_v14 = vadd.f32 1.0, %v3969_v51  ;;  %v6300_v53 = vmul.f32 0.5, %v2104_v52  ;;  %v2802_v24 = vadd.f32 %v2686_v59, %v2104_v52  ;;  %v2111_v40 = vpop.f32.mrf.mxu1 }
 0x2b2   :  { %3437 = vst.msk [vmem:[%s6627_s4 + $0x2e0] sm:$0xff] %vm1827_vm2, %v3321_v36  ;;  %v2107_v9 = vadd.f32 %v2106_v60, %v4698_v34  ;;  %v3971_v23 = vpop.eup %3970  ;;  %v6303_v46 = vmul.f32 0.7978846, %v1286_v19  ;;  %v819_v29 = vmul.f32 0.5, %v6130_v39  ;;  %v2627_v63 = vmul.f32 %v2511_v43, %v2247_v31 }
 0x2b3   :  { %v939_v62 = vmul.f32 0.044715, %v6294_v21  ;;  %v3265_v16 = vmul.f32 %v3149_v14, %v2337_v6  ;;  %v2918_v2 = vmul.f32 0.7978846, %v2802_v24  ;;  %v1630_v47 = vadd.f32 1.0, %v3971_v23  ;;  %v3973_v18 = vpop.eup %3972 }
 0x2b4   :  { %v6307_v7 = vmul.f32 0.5, %v2247_v31  ;;  %v1229_v15 = vadd.f32 %v1113_v3, %v6274_v54  ;;  %v2743_v52 = vmul.f32 %v2627_v63, %v2247_v31  ;;  %v2455_v11 = vmul.f32 0.044715, %v2107_v9 }
 0x2b5   :  { %v1055_v60 = vmul.f32 %v939_v62, %v6294_v21  ;;  %3381 = vst.msk [vmem:[%s6627_s4 + $0x120] sm:$0xff] %vm1827_vm2, %v3265_v16  ;;  %3976 = vtanh.f32 %v2918_v2  ;;  %v1631_v39 = vadd.f32 1.0, %v3973_v18  ;;  %v762_v6 = vmul.f32 0.5, %v6142_v1 }
 0x2b6   :  { %v2249_v0 = vadd.f32 %v2248_v48, %v4698_v34  ;;  %v1746_v27 = vmul.f32 %v1630_v47, %v818_v13  ;;  %v2859_v25 = vadd.f32 %v2743_v52, %v2247_v31  ;;  %v2571_v5 = vmul.f32 %v2455_v11, %v2107_v9 }
 0x2b7   :  { %v3975_v41 = vpop.eup %3974  ;;  %3978 = vtanh.f32 %v6206_v12  ;;  %v1747_v22 = vmul.f32 %v1631_v39, %v819_v29  ;;  %v1171_v10 = vmul.f32 %v1055_v60, %v6294_v21  ;;  %v763_v8 = vmul.f32 0.5, %v6183_v33 }
 0x2b8   :  { %v3206_v30 = vadd.f32 1.0, %v3975_v41  ;;  %3980 = vtanh.f32 %v6252_v20  ;;  %v2975_v50 = vmul.f32 0.7978846, %v2859_v25  ;;  %v2687_v19 = vmul.f32 %v2571_v5, %v2107_v9  ;;  %v2253_v36 = vpop.f32.mrf.mxu3 }
 0x2b9   :  { %v2512_v1 = vmul.f32 0.044715, %v2249_v0  ;;  %v6322_v49 = vmul.f32 0.7978846, %v1229_v15  ;;  %v1807_v4 = vpack.c.bf16 %v1747_v22, %v1746_v27  ;;  %v2109_v45 = vadd.f32 %v2108_v42, %v4698_v34  ;;  %v2113_v29 = vpop.f32.mrf.mxu1 }
 0x2ba   :  { %v3322_v48 = vmul.f32 %v3206_v30, %v6270_v57  ;;  %3982 = vtanh.f32 %v2975_v50  ;;  %v6325_v12 = vmul.f32 0.5, %v2107_v9  ;;  %v2803_v26 = vadd.f32 %v2687_v19, %v2107_v9 }
 0x2bb   :  { %v2628_v31 = vmul.f32 %v2512_v1, %v2249_v0  ;;  %v3977_v59 = vpop.eup %3976  ;;  %3602 = vmatmul.msk.bf16.gmra.mxu3 %vm1827_vm2, %v1807_v4  ;;  %v1287_v33 = vadd.f32 %v1171_v10, %v6294_v21  ;;  %v6333_v20 = vmul.f32 0.5, %v2249_v0  ;;  %v2456_v57 = vmul.f32 0.044715, %v2109_v45 }
 0x2bc   :  { %3438 = vst.msk [vmem:[%s6627_s4 + $0x2e8] sm:$0xff] %vm1827_vm2, %v3322_v48  ;;  %3984 = vtanh.f32 %v6228_v38  ;;  %v3150_v13 = vadd.f32 1.0, %v3977_v59  ;;  %v2919_v51 = vmul.f32 0.7978846, %v2803_v26  ;;  %v2252_v9 = vadd.f32 %v2251_v58, %v4698_v34 }
 0x2bd   :  { %v3979_v42 = vpop.eup %3978  ;;  %v2744_v3 = vmul.f32 %v2628_v31, %v2249_v0  ;;  %3986 = vtanh.f32 %v6276_v55  ;;  %v2572_v24 = vmul.f32 %v2456_v57, %v2109_v45  ;;  %v2112_v23 = vadd.f32 %v2111_v40, %v4698_v34 }
 0x2be   :  { %v3981_v43 = vpop.eup %3980  ;;  %v1574_v14 = vadd.f32 1.0, %v3979_v42  ;;  %v3266_v63 = vmul.f32 %v3150_v13, %v6300_v53  ;;  %3988 = vtanh.f32 %v2919_v51  ;;  %v6340_v38 = vmul.f32 0.7978846, %v1287_v33 }
 0x2bf   :  { %v1575_v62 = vadd.f32 1.0, %v3981_v43  ;;  %v2860_v16 = vadd.f32 %v2744_v3, %v2249_v0  ;;  %v2688_v2 = vmul.f32 %v2572_v24, %v2109_v45  ;;  %v820_v47 = vmul.f32 0.5, %v6170_v28 }
 0x2c0   :  { %v2513_v18 = vmul.f32 0.044715, %v2252_v9  ;;  %v3983_v55 = vpop.eup %3982  ;;  %3382 = vst.msk [vmem:[%s6627_s4 + $0x128] sm:$0xff] %vm1827_vm2, %v3266_v63  ;;  %v1690_v58 = vmul.f32 %v1574_v14, %v762_v6  ;;  %v2457_v60 = vmul.f32 0.044715, %v2112_v23  ;;  %v821_v0 = vmul.f32 0.5, %v6220_v44 }
 0x2c1   :  { %v1691_v15 = vmul.f32 %v1575_v62, %v763_v8  ;;  %v2976_v52 = vmul.f32 0.7978846, %v2860_v16  ;;  %v3207_v11 = vadd.f32 1.0, %v3983_v55  ;;  %v2804_v39 = vadd.f32 %v2688_v2, %v2109_v45 }
 0x2c2   :  { %v3985_v53 = vpop.eup %3984  ;;  %v2629_v40 = vmul.f32 %v2513_v18, %v2252_v9  ;;  %v2573_v25 = vmul.f32 %v2457_v60, %v2112_v23  ;;  %v2340_v50 = vmul.f32 0.5, %v2109_v45  ;;  %v6357_v26 = vadd.f32 %v2253_v36, %v4698_v34 }
 0x2c3   :  { %v3987_v41 = vpop.eup %3986  ;;  %v1779_v27 = vpack.c.bf16 %v1691_v15, %v1690_v58  ;;  %3990 = vtanh.f32 %v2976_v52  ;;  %v1632_v28 = vadd.f32 1.0, %v3985_v53  ;;  %v3323_v5 = vmul.f32 %v3207_v11, %v6307_v7 }
 0x2c4   :  { %v2920_v30 = vmul.f32 0.7978846, %v2804_v39  ;;  %v1633_v22 = vadd.f32 1.0, %v3987_v41  ;;  %v2745_v10 = vmul.f32 %v2629_v40, %v2252_v9  ;;  %v3989_v6 = vpop.eup %3988  ;;  %v2689_v8 = vmul.f32 %v2573_v25, %v2112_v23  ;;  %v2256_v44 = vpop.f32.mrf.mxu3 }
 0x2c5   :  { %3574 = vmatmul.msk.bf16.gmra.mxu1 %vm1827_vm2, %v1779_v27  ;;  %v1748_v19 = vmul.f32 %v1632_v28, %v820_v47  ;;  %3992 = vtanh.f32 %v6288_v37  ;;  %3439 = vst.msk [vmem:[%s6627_s4 + $0x2f0] sm:$0xff] %vm1827_vm2, %v3323_v5  ;;  %v3151_v1 = vadd.f32 1.0, %v3989_v6  ;;  %v6360_v45 = vadd.f32 %v2113_v29, %v4698_v34 }
 0x2c6   :  { %3994 = vtanh.f32 %v2920_v30  ;;  %v1749_v7 = vmul.f32 %v1633_v22, %v821_v0  ;;  %v2861_v48 = vadd.f32 %v2745_v10, %v2252_v9  ;;  %v2805_v4 = vadd.f32 %v2689_v8, %v2112_v23 }
 0x2c7   :  { %3996 = vtanh.f32 %v6322_v49  ;;  %v3267_v37 = vmul.f32 %v3151_v1, %v6325_v12  ;;  %v2397_v59 = vmul.f32 0.5, %v2252_v9  ;;  %v2341_v13 = vmul.f32 0.5, %v2112_v23 }
 0x2c8   :  { %v1808_v31 = vpack.c.bf16 %v1749_v7, %v1748_v19  ;;  %v2977_v33 = vmul.f32 0.7978846, %v2861_v48  ;;  %v2116_v57 = vpop.f32.mrf.mxu1  ;;  %v2921_v51 = vmul.f32 0.7978846, %v2805_v4  ;;  %v764_v3 = vmul.f32 0.5, %v6224_v32 }
 0x2c9   :  { %v3991_v42 = vpop.eup %3990  ;;  %v2514_v43 = vmul.f32 0.044715, %v6357_v26  ;;  %3383 = vst.msk [vmem:[%s6627_s4 + $0x130] sm:$0xff] %vm1827_vm2, %v3267_v37  ;;  %v765_v12 = vmul.f32 0.5, %v6274_v54  ;;  %v2458_v36 = vmul.f32 0.044715, %v6360_v45  ;;  %v6373_v9 = vadd.f32 %v2256_v44, %v4698_v34 }
 0x2ca   :  { %v3208_v49 = vadd.f32 1.0, %v3991_v42  ;;  %3998 = vtanh.f32 %v2977_v33  ;;  %v6376_v32 = vadd.f32 %v2116_v57, %v4698_v34  ;;  %v822_v47 = vmul.f32 0.5, %v6246_v17 }
 0x2cb   :  { %v3993_v14 = vpop.eup %3992  ;;  %4000 = vtanh.f32 %v2921_v51  ;;  %v2630_v24 = vmul.f32 %v2514_v43, %v6357_v26  ;;  %3603 = vmatmul.msk.bf16.gmra.mxu3 %vm1827_vm2, %v1808_v31  ;;  %v2574_v54 = vmul.f32 %v2458_v36, %v6360_v45  ;;  %v823_v58 = vmul.f32 0.5, %v6294_v21 }
 0x2cc   :  { %v3995_v23 = vpop.eup %3994  ;;  %v3324_v29 = vmul.f32 %v3208_v49, %v6333_v20  ;;  %v1576_v63 = vadd.f32 1.0, %v3993_v14  ;;  %4002 = vtanh.f32 %v6303_v46  ;;  %v2258_v18 = vpop.f32.mrf.mxu3  ;;  %v2515_v46 = vmul.f32 0.044715, %v6373_v9 }
 0x2cd   :  { %v3997_v62 = vpop.eup %3996  ;;  %v3152_v16 = vadd.f32 1.0, %v3995_v23  ;;  %v2746_v2 = vmul.f32 %v2630_v24, %v6357_v26  ;;  %4004 = vtanh.f32 %v6340_v38  ;;  %v2690_v55 = vmul.f32 %v2574_v54, %v6360_v45 }
 0x2ce   :  { %3440 = vst.msk [vmem:[%s6627_s4 + $0x2f8] sm:$0xff] %vm1827_vm2, %v3324_v29  ;;  %v1577_v20 = vadd.f32 1.0, %v3997_v62  ;;  %v1692_v52 = vmul.f32 %v1576_v63, %v764_v3  ;;  %v2459_v17 = vmul.f32 0.044715, %v6376_v32  ;;  %v2631_v39 = vmul.f32 %v2515_v46, %v6373_v9 }
 0x2cf   :  { %v3268_v15 = vmul.f32 %v3152_v16, %v2340_v50  ;;  %v2862_v60 = vadd.f32 %v2746_v2, %v6357_v26  ;;  %v2806_v11 = vadd.f32 %v2690_v55, %v6360_v45  ;;  %v6397_v0 = vadd.f32 %v2258_v18, %v4698_v34 }
 0x2d0   :  { %v3999_v38 = vpop.eup %3998  ;;  %v1693_v53 = vmul.f32 %v1577_v20, %v765_v12  ;;  %v2118_v40 = vpop.f32.mrf.mxu1  ;;  %v2575_v28 = vmul.f32 %v2459_v17, %v6376_v32  ;;  %v2747_v6 = vmul.f32 %v2631_v39, %v6373_v9  ;;  %v2398_v14 = vmul.f32 0.5, %v6357_v26 }
 0x2d1   :  { %v4001_v41 = vpop.eup %4000  ;;  %3384 = vst.msk [vmem:[%s6627_s4 + $0x138] sm:$0xff] %vm1827_vm2, %v3268_v15  ;;  %v3209_v21 = vadd.f32 1.0, %v3999_v38  ;;  %v2978_v27 = vmul.f32 0.7978846, %v2862_v60  ;;  %v6405_v25 = vadd.f32 %v2118_v40, %v4698_v34  ;;  %v2922_v10 = vmul.f32 0.7978846, %v2806_v11 }
 0x2d2   :  { %v4003_v5 = vpop.eup %4002  ;;  %v3153_v30 = vadd.f32 1.0, %v4001_v41  ;;  %v1780_v22 = vpack.c.bf16 %v1693_v53, %v1692_v52  ;;  %v2691_v44 = vmul.f32 %v2575_v28, %v6376_v32  ;;  %v2863_v48 = vadd.f32 %v2747_v6, %v6373_v9 }
 0x2d3   :  { %v4005_v50 = vpop.eup %4004  ;;  %v3325_v19 = vmul.f32 %v3209_v21, %v2397_v59  ;;  %4006 = vtanh.f32 %v2978_v27  ;;  %v1634_v8 = vadd.f32 1.0, %v4003_v5  ;;  %v2516_v37 = vmul.f32 0.044715, %v6397_v0 }
 0x2d4   :  { %v3269_v1 = vmul.f32 %v3153_v30, %v2341_v13  ;;  %4008 = vtanh.f32 %v2922_v10  ;;  %v1635_v7 = vadd.f32 1.0, %v4005_v50  ;;  %v2807_v4 = vadd.f32 %v2691_v44, %v6376_v32 }
 0x2d5   :  { %3441 = vst.msk [vmem:[%s6627_s4 + $0x300] sm:$0xff] %vm1827_vm2, %v3325_v19  ;;  %3575 = vmatmul.msk.bf16.gmra.mxu1 %vm1827_vm2, %v1780_v22  ;;  %v1750_v31 = vmul.f32 %v1634_v8, %v822_v47  ;;  %v2979_v33 = vmul.f32 0.7978846, %v2863_v48  ;;  %v2460_v57 = vmul.f32 0.044715, %v6405_v25  ;;  %v2632_v13 = vmul.f32 %v2516_v37, %v6397_v0 }
 0x2d6   :  { %3385 = vst.msk [vmem:[%s6627_s4 + $0x140] sm:$0xff] %vm1827_vm2, %v3269_v1  ;;  %v1751_v59 = vmul.f32 %v1635_v7, %v823_v58  ;;  %v2923_v42 = vmul.f32 0.7978846, %v2807_v4  ;;  %v2342_v63 = vmul.f32 0.5, %v6360_v45  ;;  %v2399_v52 = vmul.f32 0.5, %v6373_v9 }
 0x2d7   :  { %4010 = vtanh.f32 %v2979_v33  ;;  %v2576_v3 = vmul.f32 %v2460_v57, %v6405_v25  ;;  %v2748_v49 = vmul.f32 %v2632_v13, %v6397_v0  ;;  %v2343_v38 = vmul.f32 0.5, %v6376_v32 }
 0x2d8   :  { %v1809_v51 = vpack.c.bf16 %v1751_v59, %v1750_v31  ;;  %4012 = vtanh.f32 %v2923_v42  ;;  %v2261_v12 = vpop.f32.mrf.mxu3  ;;  %v2400_v19 = vmul.f32 0.5, %v6397_v0  ;;  %v2344_v1 = vmul.f32 0.5, %v6405_v25 }
 0x2d9   :  { %v4007_v43 = vpop.eup %4006  ;;  %v2692_v23 = vmul.f32 %v2576_v3, %v6405_v25  ;;  %v2262_v29 = vadd.f32 %v2261_v12, %v4698_v34  ;;  %v2864_v62 = vadd.f32 %v2748_v49, %v6397_v0 }
 0x2da   :  { %v4009_v36 = vpop.eup %4008  ;;  %v3210_v24 = vadd.f32 1.0, %v4007_v43  ;;  %v2121_v16 = vpop.f32.mrf.mxu1 }
 0x2db   :  { %v3154_v54 = vadd.f32 1.0, %v4009_v36  ;;  %3604 = vmatmul.msk.bf16.gmra.mxu3 %vm1827_vm2, %v1809_v51  ;;  %v2808_v47 = vadd.f32 %v2692_v23, %v6405_v25  ;;  %v2517_v18 = vmul.f32 0.044715, %v2262_v29  ;;  %v2980_v55 = vmul.f32 0.7978846, %v2864_v62 }
 0x2dc   :  { %v3326_v2 = vmul.f32 %v3210_v24, %v2398_v14  ;;  %v2122_v26 = vadd.f32 %v2121_v16, %v4698_v34  ;;  %v2401_v57 = vmul.f32 0.5, %v2262_v29 }
 0x2dd   :  { %v3270_v20 = vmul.f32 %v3154_v54, %v2342_v63  ;;  %v4011_v58 = vpop.eup %4010  ;;  %v2924_v45 = vmul.f32 0.7978846, %v2808_v47  ;;  %v2633_v46 = vmul.f32 %v2517_v18, %v2262_v29  ;;  %4014 = vtanh.f32 %v2980_v55 }
 0x2de   :  { %3442 = vst.msk [vmem:[%s6627_s4 + $0x308] sm:$0xff] %vm1827_vm2, %v3326_v2  ;;  %v4013_v15 = vpop.eup %4012  ;;  %v3211_v60 = vadd.f32 1.0, %v4011_v58  ;;  %v2461_v17 = vmul.f32 0.044715, %v2122_v26  ;;  %v2345_v36 = vmul.f32 0.5, %v2122_v26 }
 0x2df   :  { %3386 = vst.msk [vmem:[%s6627_s4 + $0x148] sm:$0xff] %vm1827_vm2, %v3270_v20  ;;  %v3155_v53 = vadd.f32 1.0, %v4013_v15  ;;  %4016 = vtanh.f32 %v2924_v45  ;;  %v2749_v11 = vmul.f32 %v2633_v46, %v2262_v29 }
 0x2e0   :  { %v3327_v39 = vmul.f32 %v3211_v60, %v2399_v52  ;;  %v2577_v40 = vmul.f32 %v2461_v17, %v2122_v26  ;;  %v2263_v41 = vpop.f32.mrf.mxu3 }
 0x2e1   :  { %v3271_v21 = vmul.f32 %v3155_v53, %v2343_v38  ;;  %v2865_v27 = vadd.f32 %v2749_v11, %v2262_v29  ;;  %v2264_v28 = vadd.f32 %v2263_v41, %v4698_v34 }
 0x2e2   :  { %3443 = vst.msk [vmem:[%s6627_s4 + $0x310] sm:$0xff] %vm1827_vm2, %v3327_v39  ;;  %v2693_v9 = vmul.f32 %v2577_v40, %v2122_v26  ;;  %v2123_v5 = vpop.f32.mrf.mxu1 }
 0x2e3   :  { %3387 = vst.msk [vmem:[%s6627_s4 + $0x150] sm:$0xff] %vm1827_vm2, %v3271_v21  ;;  %v2981_v32 = vmul.f32 0.7978846, %v2865_v27  ;;  %v2518_v30 = vmul.f32 0.044715, %v2264_v28  ;;  %v2124_v22 = vadd.f32 %v2123_v5, %v4698_v34  ;;  %v4015_v10 = vpop.eup %4014  ;;  %v2402_v2 = vmul.f32 0.5, %v2264_v28 }
 0x2e4   :  { %v2809_v6 = vadd.f32 %v2693_v9, %v2122_v26  ;;  %v3212_v8 = vadd.f32 1.0, %v4015_v10 }
 0x2e5   :  { %3576 = vmatmul.msk.bf16.gmra.mxu1 %vm1827_vm2, %v1781_v56  ;;  %v4017_v50 = vpop.eup %4016  ;;  %4018 = vtanh.f32 %v2981_v32  ;;  %v2634_v44 = vmul.f32 %v2518_v30, %v2264_v28  ;;  %v2462_v4 = vmul.f32 0.044715, %v2124_v22  ;;  %v2346_v15 = vmul.f32 0.5, %v2124_v22 }
 0x2e6   :  { %v3156_v7 = vadd.f32 1.0, %v4017_v50  ;;  %v2925_v48 = vmul.f32 0.7978846, %v2809_v6  ;;  %v3328_v37 = vmul.f32 %v3212_v8, %v2400_v19 }
 0x2e7   :  { %v2750_v31 = vmul.f32 %v2634_v44, %v2264_v28  ;;  %v2578_v33 = vmul.f32 %v2462_v4, %v2124_v22 }
 0x2e8   :  { %v3272_v59 = vmul.f32 %v3156_v7, %v2344_v1  ;;  %4020 = vtanh.f32 %v2925_v48  ;;  %3444 = vst.msk [vmem:[%s6627_s4 + $0x318] sm:$0xff] %vm1827_vm2, %v3328_v37 }
 0x2e9   :  { %v2866_v61 = vadd.f32 %v2750_v31, %v2264_v28  ;;  %v2694_v35 = vmul.f32 %v2578_v33, %v2124_v22 }
 0x2ea   :  { %3388 = vst.msk [vmem:[%s6627_s4 + $0x158] sm:$0xff] %vm1827_vm2, %v3272_v59 }
 0x2eb   :  { %v4019_v56 = vpop.eup %4018  ;;  %v2982_v0 = vmul.f32 0.7978846, %v2866_v61  ;;  %v2266_v25 = vpop.f32.mrf.mxu3  ;;  %v2810_v13 = vadd.f32 %v2694_v35, %v2124_v22 }
 0x2ec   :  { %v3213_v42 = vadd.f32 1.0, %v4019_v56  ;;  %v2267_v51 = vadd.f32 %v2266_v25, %v4698_v34 }
 0x2ed   :  { %4022 = vtanh.f32 %v2982_v0  ;;  %v2926_v49 = vmul.f32 0.7978846, %v2810_v13 }
 0x2ee   :  { %v4021_v3 = vpop.eup %4020  ;;  %v3329_v43 = vmul.f32 %v3213_v42, %v2401_v57  ;;  %v2519_v12 = vmul.f32 0.044715, %v2267_v51  ;;  %v2403_v32 = vmul.f32 0.5, %v2267_v51 }
 0x2ef   :  { %v3157_v14 = vadd.f32 1.0, %v4021_v3  ;;  %4024 = vtanh.f32 %v2926_v49 }
 0x2f0   :  { %3445 = vst.msk [vmem:[%s6627_s4 + $0x320] sm:$0xff] %vm1827_vm2, %v3329_v43  ;;  %v2635_v24 = vmul.f32 %v2519_v12, %v2267_v51 }
 0x2f1   :  { %v3273_v23 = vmul.f32 %v3157_v14, %v2345_v36 }
 0x2f2   :  { %v2751_v29 = vmul.f32 %v2635_v24, %v2267_v51  ;;  %v2126_v63 = vpop.f32.mrf.mxu1 }
 0x2f3   :  { %v4023_v54 = vpop.eup %4022  ;;  %3389 = vst.msk [vmem:[%s6627_s4 + $0x160] sm:$0xff] %vm1827_vm2, %v3273_v23  ;;  %v2127_v62 = vadd.f32 %v2126_v63, %v4698_v34  ;;  %v2268_v16 = vpop.f32.mrf.mxu3 }
 0x2f4   :  { %v3214_v47 = vadd.f32 1.0, %v4023_v54  ;;  %v2867_v18 = vadd.f32 %v2751_v29, %v2267_v51  ;;  %v2269_v20 = vadd.f32 %v2268_v16, %v4698_v34 }
 0x2f5   :  { %v2463_v55 = vmul.f32 0.044715, %v2127_v62  ;;  %v4025_v26 = vpop.eup %4024  ;;  %v2347_v59 = vmul.f32 0.5, %v2127_v62 }
 0x2f6   :  { %v3330_v58 = vmul.f32 %v3214_v47, %v2402_v2  ;;  %v2983_v45 = vmul.f32 0.7978846, %v2867_v18  ;;  %v2520_v46 = vmul.f32 0.044715, %v2269_v20  ;;  %v3158_v52 = vadd.f32 1.0, %v4025_v26 }
 0x2f7   :  { %v2579_v60 = vmul.f32 %v2463_v55, %v2127_v62  ;;  %v2404_v35 = vmul.f32 0.5, %v2269_v20 }
 0x2f8   :  { %3446 = vst.msk [vmem:[%s6627_s4 + $0x328] sm:$0xff] %vm1827_vm2, %v3330_v58  ;;  %4026 = vtanh.f32 %v2983_v45  ;;  %v2636_v17 = vmul.f32 %v2520_v46, %v2269_v20  ;;  %v3274_v38 = vmul.f32 %v3158_v52, %v2346_v15 }
 0x2f9   :  { %v2695_v53 = vmul.f32 %v2579_v60, %v2127_v62 }
 0x2fa   :  { %v2752_v11 = vmul.f32 %v2636_v17, %v2269_v20  ;;  %v2128_v39 = vpop.f32.mrf.mxu1  ;;  %3390 = vst.msk [vmem:[%s6627_s4 + $0x168] sm:$0xff] %vm1827_vm2, %v3274_v38 }
 0x2fb   :  { %v2811_v40 = vadd.f32 %v2695_v53, %v2127_v62  ;;  %v2129_v41 = vadd.f32 %v2128_v39, %v4698_v34 }
 0x2fc   :  { %v2868_v21 = vadd.f32 %v2752_v11, %v2269_v20 }
 0x2fd   :  { %v2927_v27 = vmul.f32 0.7978846, %v2811_v40  ;;  %v2464_v28 = vmul.f32 0.044715, %v2129_v41  ;;  %v2348_v63 = vmul.f32 0.5, %v2129_v41 }
 0x2fe   :  { %v4027_v9 = vpop.eup %4026  ;;  %v2984_v5 = vmul.f32 0.7978846, %v2868_v21 }
 0x2ff   :  { %v3215_v30 = vadd.f32 1.0, %v4027_v9  ;;  %4028 = vtanh.f32 %v2927_v27  ;;  %v2580_v22 = vmul.f32 %v2464_v28, %v2129_v41 }
 0x300   :  { %4030 = vtanh.f32 %v2984_v5  ;;  %v2271_v10 = vpop.f32.mrf.mxu3 }
 0x301   :  { %v3331_v6 = vmul.f32 %v3215_v30, %v2403_v32  ;;  %v2696_v50 = vmul.f32 %v2580_v22, %v2129_v41  ;;  %v2272_v19 = vadd.f32 %v2271_v10, %v4698_v34 }
 0x303   :  { %3447 = vst.msk [vmem:[%s6627_s4 + $0x330] sm:$0xff] %vm1827_vm2, %v3331_v6  ;;  %v2812_v8 = vadd.f32 %v2696_v50, %v2129_v41  ;;  %v2521_v44 = vmul.f32 0.044715, %v2272_v19  ;;  %v2405_v45 = vmul.f32 0.5, %v2272_v19 }
 0x304   :  { %v2131_v1 = vpop.f32.mrf.mxu1 }
 0x305   :  { %v2132_v7 = vadd.f32 %v2131_v1, %v4698_v34  ;;  %v4029_v48 = vpop.eup %4028  ;;  %v2928_v4 = vmul.f32 0.7978846, %v2812_v8  ;;  %v2637_v37 = vmul.f32 %v2521_v44, %v2272_v19 }
 0x306   :  { %v4031_v31 = vpop.eup %4030  ;;  %v3159_v33 = vadd.f32 1.0, %v4029_v48 }
 0x307   :  { %v2465_v61 = vmul.f32 0.044715, %v2132_v7  ;;  %v3216_v56 = vadd.f32 1.0, %v4031_v31  ;;  %4032 = vtanh.f32 %v2928_v4  ;;  %v2753_v0 = vmul.f32 %v2637_v37, %v2272_v19 }
 0x308   :  { %v3275_v25 = vmul.f32 %v3159_v33, %v2347_v59  ;;  %v2273_v42 = vpop.f32.mrf.mxu3  ;;  %v2349_v11 = vmul.f32 0.5, %v2132_v7 }
 0x309   :  { %v2581_v57 = vmul.f32 %v2465_v61, %v2132_v7  ;;  %v3332_v13 = vmul.f32 %v3216_v56, %v2404_v35  ;;  %v2869_v51 = vadd.f32 %v2753_v0, %v2272_v19  ;;  %v2274_v3 = vadd.f32 %v2273_v42, %v4698_v34 }
 0x30a   :  { %3391 = vst.msk [vmem:[%s6627_s4 + $0x170] sm:$0xff] %vm1827_vm2, %v3275_v25 }
 0x30b   :  { %v2697_v43 = vmul.f32 %v2581_v57, %v2132_v7  ;;  %3448 = vst.msk [vmem:[%s6627_s4 + $0x338] sm:$0xff] %vm1827_vm2, %v3332_v13  ;;  %v2985_v49 = vmul.f32 0.7978846, %v2869_v51  ;;  %v2522_v12 = vmul.f32 0.044715, %v2274_v3  ;;  %v2406_v5 = vmul.f32 0.5, %v2274_v3 }
 0x30c   :  { %v2133_v36 = vpop.f32.mrf.mxu1 }
 0x30d   :  { %v2813_v14 = vadd.f32 %v2697_v43, %v2132_v7  ;;  %v2134_v24 = vadd.f32 %v2133_v36, %v4698_v34  ;;  %v4033_v23 = vpop.eup %4032  ;;  %4034 = vtanh.f32 %v2985_v49  ;;  %v2638_v29 = vmul.f32 %v2522_v12, %v2274_v3 }
 0x30e   :  { %v3160_v54 = vadd.f32 1.0, %v4033_v23 }
 0x30f   :  { %v2929_v62 = vmul.f32 0.7978846, %v2813_v14  ;;  %v2466_v16 = vmul.f32 0.044715, %v2134_v24  ;;  %v2754_v2 = vmul.f32 %v2638_v29, %v2274_v3  ;;  %v2350_v1 = vmul.f32 0.5, %v2134_v24 }
 0x310   :  { %v3276_v47 = vmul.f32 %v3160_v54, %v2348_v63 }
 0x311   :  { %4036 = vtanh.f32 %v2929_v62  ;;  %v2582_v18 = vmul.f32 %v2466_v16, %v2134_v24  ;;  %v2870_v20 = vadd.f32 %v2754_v2, %v2274_v3 }
 0x312   :  { %3392 = vst.msk [vmem:[%s6627_s4 + $0x178] sm:$0xff] %vm1827_vm2, %v3276_v47 }
 0x313   :  { %v2698_v55 = vmul.f32 %v2582_v18, %v2134_v24  ;;  %v4035_v26 = vpop.eup %4034  ;;  %v2986_v58 = vmul.f32 0.7978846, %v2870_v20 }
 0x314   :  { %v3217_v46 = vadd.f32 1.0, %v4035_v26 }
 0x315   :  { %v2814_v15 = vadd.f32 %v2698_v55, %v2134_v24  ;;  %4038 = vtanh.f32 %v2986_v58  ;;  %v2276_v52 = vpop.f32.mrf.mxu3 }
 0x316   :  { %v3333_v17 = vmul.f32 %v3217_v46, %v2405_v45  ;;  %v2277_v53 = vadd.f32 %v2276_v52, %v4698_v34 }
 0x317   :  { %v4037_v60 = vpop.eup %4036  ;;  %v2930_v38 = vmul.f32 0.7978846, %v2814_v15 }
 0x318   :  { %v3161_v39 = vadd.f32 1.0, %v4037_v60  ;;  %3449 = vst.msk [vmem:[%s6627_s4 + $0x340] sm:$0xff] %vm1827_vm2, %v3333_v17  ;;  %v2523_v40 = vmul.f32 0.044715, %v2277_v53  ;;  %v2407_v43 = vmul.f32 0.5, %v2277_v53 }
 0x319   :  { %4040 = vtanh.f32 %v2930_v38 }
 0x31a   :  { %v3277_v41 = vmul.f32 %v3161_v39, %v2349_v11  ;;  %v2136_v21 = vpop.f32.mrf.mxu1  ;;  %v2639_v27 = vmul.f32 %v2523_v40, %v2277_v53 }
 0x31b   :  { %v2137_v28 = vadd.f32 %v2136_v21, %v4698_v34  ;;  %v4039_v9 = vpop.eup %4038 }
 0x31c   :  { %3393 = vst.msk [vmem:[%s6627_s4 + $0x180] sm:$0xff] %vm1827_vm2, %v3277_v41  ;;  %v3218_v32 = vadd.f32 1.0, %v4039_v9  ;;  %v2755_v30 = vmul.f32 %v2639_v27, %v2277_v53 }
 0x31d   :  { %v2467_v22 = vmul.f32 0.044715, %v2137_v28  ;;  %v2278_v10 = vpop.f32.mrf.mxu3  ;;  %v2351_v63 = vmul.f32 0.5, %v2137_v28 }
 0x31e   :  { %v3334_v50 = vmul.f32 %v3218_v32, %v2406_v5  ;;  %v2871_v19 = vadd.f32 %v2755_v30, %v2277_v53  ;;  %v2279_v44 = vadd.f32 %v2278_v10, %v4698_v34 }
 0x31f   :  { %v4041_v6 = vpop.eup %4040  ;;  %v2583_v8 = vmul.f32 %v2467_v22, %v2137_v28 }
 0x320   :  { %v3162_v7 = vadd.f32 1.0, %v4041_v6  ;;  %3450 = vst.msk [vmem:[%s6627_s4 + $0x348] sm:$0xff] %vm1827_vm2, %v3334_v50  ;;  %v2987_v48 = vmul.f32 0.7978846, %v2871_v19  ;;  %v2524_v37 = vmul.f32 0.044715, %v2279_v44 }
 0x321   :  { %v2699_v4 = vmul.f32 %v2583_v8, %v2137_v28  ;;  %v2408_v26 = vmul.f32 0.5, %v2279_v44 }
 0x322   :  { %v3278_v31 = vmul.f32 %v3162_v7, %v2350_v1  ;;  %v2138_v59 = vpop.f32.mrf.mxu1  ;;  %4042 = vtanh.f32 %v2987_v48  ;;  %v2640_v61 = vmul.f32 %v2524_v37, %v2279_v44 }
 0x323   :  { %v2815_v33 = vadd.f32 %v2699_v4, %v2137_v28  ;;  %v2139_v35 = vadd.f32 %v2138_v59, %v4698_v34 }
 0x324   :  { %3394 = vst.msk [vmem:[%s6627_s4 + $0x188] sm:$0xff] %vm1827_vm2, %v3278_v31  ;;  %v2756_v0 = vmul.f32 %v2640_v61, %v2279_v44 }
 0x325   :  { %v2931_v56 = vmul.f32 0.7978846, %v2815_v33  ;;  %v2468_v25 = vmul.f32 0.044715, %v2139_v35  ;;  %v2352_v11 = vmul.f32 0.5, %v2139_v35 }
 0x326   :  { %v2872_v57 = vadd.f32 %v2756_v0, %v2279_v44 }
 0x327   :  { %4044 = vtanh.f32 %v2931_v56  ;;  %v2584_v42 = vmul.f32 %v2468_v25, %v2139_v35 }
 0x328   :  { %v4043_v13 = vpop.eup %4042  ;;  %v2988_v51 = vmul.f32 0.7978846, %v2872_v57 }
 0x329   :  { %v2700_v3 = vmul.f32 %v2584_v42, %v2139_v35  ;;  %v3219_v49 = vadd.f32 1.0, %v4043_v13 }
 0x32a   :  { %4046 = vtanh.f32 %v2988_v51 }
 0x32b   :  { %v2816_v12 = vadd.f32 %v2700_v3, %v2139_v35  ;;  %v3335_v36 = vmul.f32 %v3219_v49, %v2407_v43 }
 0x32c   :  { %v2281_v14 = vpop.f32.mrf.mxu3 }
 0x32d   :  { %v4045_v24 = vpop.eup %4044  ;;  %v2932_v23 = vmul.f32 0.7978846, %v2816_v12  ;;  %v2282_v29 = vadd.f32 %v2281_v14, %v4698_v34  ;;  %3451 = vst.msk [vmem:[%s6627_s4 + $0x350] sm:$0xff] %vm1827_vm2, %v3335_v36  ;;  %v2141_v62 = vpop.f32.mrf.mxu1 }
 0x32e   :  { %v3163_v54 = vadd.f32 1.0, %v4045_v24  ;;  %v2142_v2 = vadd.f32 %v2141_v62, %v4698_v34 }
 0x32f   :  { %4048 = vtanh.f32 %v2932_v23  ;;  %v2525_v16 = vmul.f32 0.044715, %v2282_v29  ;;  %v2409_v1 = vmul.f32 0.5, %v2282_v29 }
 0x330   :  { %v3279_v47 = vmul.f32 %v3163_v54, %v2351_v63  ;;  %v4047_v18 = vpop.eup %4046  ;;  %v2469_v55 = vmul.f32 0.044715, %v2142_v2  ;;  %v2353_v59 = vmul.f32 0.5, %v2142_v2 }
 0x331   :  { %v2641_v20 = vmul.f32 %v2525_v16, %v2282_v29  ;;  %v3220_v58 = vadd.f32 1.0, %v4047_v18 }
 0x332   :  { %3395 = vst.msk [vmem:[%s6627_s4 + $0x190] sm:$0xff] %vm1827_vm2, %v3279_v47  ;;  %v2585_v46 = vmul.f32 %v2469_v55, %v2142_v2 }
 0x333   :  { %v2757_v45 = vmul.f32 %v2641_v20, %v2282_v29  ;;  %v3336_v15 = vmul.f32 %v3220_v58, %v2408_v26 }
 0x334   :  { %v2283_v52 = vpop.f32.mrf.mxu3  ;;  %v2701_v38 = vmul.f32 %v2585_v46, %v2142_v2 }
 0x335   :  { %v4049_v60 = vpop.eup %4048  ;;  %v2873_v17 = vadd.f32 %v2757_v45, %v2282_v29  ;;  %v2284_v53 = vadd.f32 %v2283_v52, %v4698_v34  ;;  %3452 = vst.msk [vmem:[%s6627_s4 + $0x358] sm:$0xff] %vm1827_vm2, %v3336_v15  ;;  %v2143_v40 = vpop.f32.mrf.mxu1 }
 0x336   :  { %v3164_v39 = vadd.f32 1.0, %v4049_v60  ;;  %v2817_v21 = vadd.f32 %v2701_v38, %v2142_v2  ;;  %v2144_v9 = vadd.f32 %v2143_v40, %v4698_v34 }
 0x337   :  { %v2989_v41 = vmul.f32 0.7978846, %v2873_v17  ;;  %v2526_v27 = vmul.f32 0.044715, %v2284_v53  ;;  %v2410_v49 = vmul.f32 0.5, %v2284_v53 }
 0x338   :  { %v3280_v28 = vmul.f32 %v3164_v39, %v2352_v11  ;;  %v2933_v5 = vmul.f32 0.7978846, %v2817_v21  ;;  %v2470_v30 = vmul.f32 0.044715, %v2144_v9  ;;  %v2354_v63 = vmul.f32 0.5, %v2144_v9 }
 0x339   :  { %4050 = vtanh.f32 %v2989_v41  ;;  %v2642_v32 = vmul.f32 %v2526_v27, %v2284_v53 }
 0x33a   :  { %3396 = vst.msk [vmem:[%s6627_s4 + $0x198] sm:$0xff] %vm1827_vm2, %v3280_v28  ;;  %4052 = vtanh.f32 %v2933_v5  ;;  %v2586_v10 = vmul.f32 %v2470_v30, %v2144_v9 }
 0x33b   :  { %v2758_v22 = vmul.f32 %v2642_v32, %v2284_v53 }
 0x33c   :  { %v2702_v50 = vmul.f32 %v2586_v10, %v2144_v9 }
 0x33d   :  { %v2874_v6 = vadd.f32 %v2758_v22, %v2284_v53 }
 0x33e   :  { %v2286_v44 = vpop.f32.mrf.mxu3  ;;  %v2818_v48 = vadd.f32 %v2702_v50, %v2144_v9 }
 0x33f   :  { %v4051_v19 = vpop.eup %4050  ;;  %v2990_v8 = vmul.f32 0.7978846, %v2874_v6  ;;  %v2287_v4 = vadd.f32 %v2286_v44, %v4698_v34 }
 0x340   :  { %v3221_v7 = vadd.f32 1.0, %v4051_v19  ;;  %v4053_v37 = vpop.eup %4052  ;;  %v2934_v61 = vmul.f32 0.7978846, %v2818_v48 }
 0x341   :  { %4054 = vtanh.f32 %v2990_v8  ;;  %v3165_v33 = vadd.f32 1.0, %v4053_v37  ;;  %v2527_v56 = vmul.f32 0.044715, %v2287_v4  ;;  %v2411_v40 = vmul.f32 0.5, %v2287_v4 }
 0x342   :  { %v3337_v31 = vmul.f32 %v3221_v7, %v2409_v1  ;;  %v2146_v35 = vpop.f32.mrf.mxu1  ;;  %4056 = vtanh.f32 %v2934_v61 }
 0x343   :  { %v2147_v0 = vadd.f32 %v2146_v35, %v4698_v34  ;;  %v3281_v25 = vmul.f32 %v3165_v33, %v2353_v59  ;;  %v2643_v57 = vmul.f32 %v2527_v56, %v2287_v4 }
 0x344   :  { %3453 = vst.msk [vmem:[%s6627_s4 + $0x360] sm:$0xff] %vm1827_vm2, %v3337_v31 }
 0x345   :  { %v2471_v42 = vmul.f32 0.044715, %v2147_v0  ;;  %3397 = vst.msk [vmem:[%s6627_s4 + $0x1a0] sm:$0xff] %vm1827_vm2, %v3281_v25  ;;  %v2759_v51 = vmul.f32 %v2643_v57, %v2287_v4  ;;  %v2355_v5 = vmul.f32 0.5, %v2147_v0 }
 0x346   :  { %v2288_v43 = vpop.f32.mrf.mxu3 }
 0x347   :  { %v4055_v13 = vpop.eup %4054  ;;  %v2587_v3 = vmul.f32 %v2471_v42, %v2147_v0  ;;  %v2289_v36 = vadd.f32 %v2288_v43, %v4698_v34  ;;  %v2875_v14 = vadd.f32 %v2759_v51, %v2287_v4 }
 0x348   :  { %v3222_v12 = vadd.f32 1.0, %v4055_v13  ;;  %v4057_v23 = vpop.eup %4056 }
 0x349   :  { %v2703_v24 = vmul.f32 %v2587_v3, %v2147_v0  ;;  %v2528_v54 = vmul.f32 0.044715, %v2289_v36  ;;  %v3166_v16 = vadd.f32 1.0, %v4057_v23  ;;  %v2991_v2 = vmul.f32 0.7978846, %v2875_v14 }
 0x34a   :  { %v3338_v29 = vmul.f32 %v3222_v12, %v2410_v49  ;;  %v2148_v62 = vpop.f32.mrf.mxu1  ;;  %v2412_v59 = vmul.f32 0.5, %v2289_v36 }
 0x34b   :  { %v2819_v47 = vadd.f32 %v2703_v24, %v2147_v0  ;;  %v2149_v18 = vadd.f32 %v2148_v62, %v4698_v34  ;;  %v2644_v20 = vmul.f32 %v2528_v54, %v2289_v36  ;;  %v3282_v55 = vmul.f32 %v3166_v16, %v2354_v63 }
 0x34c   :  { %3454 = vst.msk [vmem:[%s6627_s4 + $0x368] sm:$0xff] %vm1827_vm2, %v3338_v29  ;;  %4058 = vtanh.f32 %v2991_v2 }
 0x34d   :  { %v2935_v26 = vmul.f32 0.7978846, %v2819_v47  ;;  %v2760_v58 = vmul.f32 %v2644_v20, %v2289_v36  ;;  %v2472_v45 = vmul.f32 0.044715, %v2149_v18  ;;  %3398 = vst.msk [vmem:[%s6627_s4 + $0x1a8] sm:$0xff] %vm1827_vm2, %v3282_v55  ;;  %v2356_v51 = vmul.f32 0.5, %v2149_v18 }
 0x34e   :  { %v2291_v46 = vpop.f32.mrf.mxu3 }
 0x34f   :  { %4060 = vtanh.f32 %v2935_v26  ;;  %v2876_v15 = vadd.f32 %v2760_v58, %v2289_v36  ;;  %v2588_v52 = vmul.f32 %v2472_v45, %v2149_v18  ;;  %v2292_v60 = vadd.f32 %v2291_v46, %v4698_v34 }
 0x351   :  { %v2992_v17 = vmul.f32 0.7978846, %v2876_v15  ;;  %v2704_v38 = vmul.f32 %v2588_v52, %v2149_v18  ;;  %v2529_v53 = vmul.f32 0.044715, %v2292_v60  ;;  %v2413_v62 = vmul.f32 0.5, %v2292_v60 }
 0x352   :  { %v2151_v11 = vpop.f32.mrf.mxu1  ;;  %v4059_v39 = vpop.eup %4058 }
 0x353   :  { %v2152_v41 = vadd.f32 %v2151_v11, %v4698_v34  ;;  %v3223_v21 = vadd.f32 1.0, %v4059_v39  ;;  %4062 = vtanh.f32 %v2992_v17  ;;  %v2820_v27 = vadd.f32 %v2704_v38, %v2149_v18 }
 0x354   :  { %v2645_v28 = vmul.f32 %v2529_v53, %v2292_v60 }
 0x355   :  { %v4061_v9 = vpop.eup %4060  ;;  %v2473_v32 = vmul.f32 0.044715, %v2152_v41  ;;  %v3339_v30 = vmul.f32 %v3223_v21, %v2411_v40  ;;  %v2936_v10 = vmul.f32 0.7978846, %v2820_v27  ;;  %v2357_v45 = vmul.f32 0.5, %v2152_v41 }
 0x356   :  { %v3167_v22 = vadd.f32 1.0, %v4061_v9  ;;  %v2761_v6 = vmul.f32 %v2645_v28, %v2292_v60  ;;  %v2293_v19 = vpop.f32.mrf.mxu3 }
 0x357   :  { %v2589_v50 = vmul.f32 %v2473_v32, %v2152_v41  ;;  %3455 = vst.msk [vmem:[%s6627_s4 + $0x370] sm:$0xff] %vm1827_vm2, %v3339_v30  ;;  %4064 = vtanh.f32 %v2936_v10  ;;  %v2294_v1 = vadd.f32 %v2293_v19, %v4698_v34 }
 0x358   :  { %v3283_v8 = vmul.f32 %v3167_v22, %v2355_v5  ;;  %v2877_v44 = vadd.f32 %v2761_v6, %v2292_v60 }
 0x359   :  { %v2705_v7 = vmul.f32 %v2589_v50, %v2152_v41  ;;  %v4063_v48 = vpop.eup %4062  ;;  %v2530_v37 = vmul.f32 0.044715, %v2294_v1  ;;  %v2414_v27 = vmul.f32 0.5, %v2294_v1 }
 0x35a   :  { %3399 = vst.msk [vmem:[%s6627_s4 + $0x1b0] sm:$0xff] %vm1827_vm2, %v3283_v8  ;;  %v2993_v4 = vmul.f32 0.7978846, %v2877_v44  ;;  %v2153_v31 = vpop.f32.mrf.mxu1  ;;  %v3224_v33 = vadd.f32 1.0, %v4063_v48 }
 0x35b   :  { %v2821_v61 = vadd.f32 %v2705_v7, %v2152_v41  ;;  %v2154_v35 = vadd.f32 %v2153_v31, %v4698_v34  ;;  %v2646_v56 = vmul.f32 %v2530_v37, %v2294_v1 }
 0x35c   :  { %4066 = vtanh.f32 %v2993_v4  ;;  %v3340_v0 = vmul.f32 %v3224_v33, %v2412_v59 }
 0x35d   :  { %v2937_v25 = vmul.f32 0.7978846, %v2821_v61  ;;  %v2474_v57 = vmul.f32 0.044715, %v2154_v35  ;;  %v4065_v42 = vpop.eup %4064  ;;  %v2762_v13 = vmul.f32 %v2646_v56, %v2294_v1  ;;  %v2358_v50 = vmul.f32 0.5, %v2154_v35 }
 0x35e   :  { %3456 = vst.msk [vmem:[%s6627_s4 + $0x378] sm:$0xff] %vm1827_vm2, %v3340_v0  ;;  %v3168_v3 = vadd.f32 1.0, %v4065_v42  ;;  %v2296_v49 = vpop.f32.mrf.mxu3 }
 0x35f   :  { %4068 = vtanh.f32 %v2937_v25  ;;  %v2590_v43 = vmul.f32 %v2474_v57, %v2154_v35  ;;  %v2878_v12 = vadd.f32 %v2762_v13, %v2294_v1  ;;  %v2297_v36 = vadd.f32 %v2296_v49, %v4698_v34 }
 0x360   :  { %v3284_v14 = vmul.f32 %v3168_v3, %v2356_v51 }
 0x361   :  { %v2706_v24 = vmul.f32 %v2590_v43, %v2154_v35  ;;  %v2994_v29 = vmul.f32 0.7978846, %v2878_v12  ;;  %v2531_v63 = vmul.f32 0.044715, %v2297_v36  ;;  %v2415_v37 = vmul.f32 0.5, %v2297_v36 }
 0x362   :  { %v4067_v23 = vpop.eup %4066  ;;  %v2156_v54 = vpop.f32.mrf.mxu1  ;;  %3400 = vst.msk [vmem:[%s6627_s4 + $0x1b8] sm:$0xff] %vm1827_vm2, %v3284_v14 }
 0x363   :  { %v3225_v16 = vadd.f32 1.0, %v4067_v23  ;;  %v2822_v2 = vadd.f32 %v2706_v24, %v2154_v35  ;;  %v2157_v47 = vadd.f32 %v2156_v54, %v4698_v34  ;;  %4070 = vtanh.f32 %v2994_v29 }
 0x364   :  { %v2647_v18 = vmul.f32 %v2531_v63, %v2297_v36 }
 0x365   :  { %v4069_v20 = vpop.eup %4068  ;;  %v3341_v55 = vmul.f32 %v3225_v16, %v2413_v62  ;;  %v2938_v26 = vmul.f32 0.7978846, %v2822_v2  ;;  %v2475_v58 = vmul.f32 0.044715, %v2157_v47  ;;  %v2359_v56 = vmul.f32 0.5, %v2157_v47 }
 0x366   :  { %v3169_v46 = vadd.f32 1.0, %v4069_v20  ;;  %v2763_v15 = vmul.f32 %v2647_v18, %v2297_v36  ;;  %v2298_v60 = vpop.f32.mrf.mxu3 }
 0x367   :  { %3457 = vst.msk [vmem:[%s6627_s4 + $0x380] sm:$0xff] %vm1827_vm2, %v3341_v55  ;;  %4072 = vtanh.f32 %v2938_v26  ;;  %v2591_v52 = vmul.f32 %v2475_v58, %v2157_v47  ;;  %v2299_v53 = vadd.f32 %v2298_v60, %v4698_v34 }
 0x368   :  { %v3285_v17 = vmul.f32 %v3169_v46, %v2357_v45  ;;  %v2879_v38 = vadd.f32 %v2763_v15, %v2297_v36 }
 0x369   :  { %v2707_v11 = vmul.f32 %v2591_v52, %v2157_v47  ;;  %v4071_v39 = vpop.eup %4070  ;;  %v2532_v41 = vmul.f32 0.044715, %v2299_v53  ;;  %v2416_v42 = vmul.f32 0.5, %v2299_v53 }
 0x36a   :  { %3401 = vst.msk [vmem:[%s6627_s4 + $0x1c0] sm:$0xff] %vm1827_vm2, %v3285_v17  ;;  %v2995_v40 = vmul.f32 0.7978846, %v2879_v38  ;;  %v2158_v21 = vpop.f32.mrf.mxu1  ;;  %v3226_v28 = vadd.f32 1.0, %v4071_v39 }
 0x36b   :  { %v2823_v9 = vadd.f32 %v2707_v11, %v2157_v47  ;;  %v2159_v5 = vadd.f32 %v2158_v21, %v4698_v34  ;;  %v2648_v32 = vmul.f32 %v2532_v41, %v2299_v53 }
 0x36c   :  { %4074 = vtanh.f32 %v2995_v40  ;;  %v3342_v22 = vmul.f32 %v3226_v28, %v2414_v27 }
 0x36d   :  { %v4073_v30 = vpop.eup %4072  ;;  %v2939_v10 = vmul.f32 0.7978846, %v2823_v9  ;;  %v2476_v6 = vmul.f32 0.044715, %v2159_v5  ;;  %v2764_v8 = vmul.f32 %v2648_v32, %v2299_v53  ;;  %v2360_v43 = vmul.f32 0.5, %v2159_v5 }
 0x36e   :  { %v3170_v19 = vadd.f32 1.0, %v4073_v30  ;;  %3458 = vst.msk [vmem:[%s6627_s4 + $0x388] sm:$0xff] %vm1827_vm2, %v3342_v22 }
 0x36f   :  { %4076 = vtanh.f32 %v2939_v10  ;;  %v2592_v44 = vmul.f32 %v2476_v6, %v2159_v5  ;;  %v2880_v7 = vadd.f32 %v2764_v8, %v2299_v53 }
 0x370   :  { %v3286_v1 = vmul.f32 %v3170_v19, %v2358_v50 }
 0x371   :  { %v2708_v48 = vmul.f32 %v2592_v44, %v2159_v5  ;;  %v2996_v4 = vmul.f32 0.7978846, %v2880_v7 }
 0x372   :  { %v4075_v34 = vpop.eup %4074  ;;  %3402 = vst.msk [vmem:[%s6627_s4 + $0x1c8] sm:$0xff] %vm1827_vm2, %v3286_v1 }
 0x373   :  { %v3227_v31 = vadd.f32 1.0, %v4075_v34  ;;  %v2824_v59 = vadd.f32 %v2708_v48, %v2159_v5  ;;  %4078 = vtanh.f32 %v2996_v4 }
 0x375   :  { %v4077_v33 = vpop.eup %4076  ;;  %v3343_v61 = vmul.f32 %v3227_v31, %v2415_v37  ;;  %v2940_v35 = vmul.f32 0.7978846, %v2824_v59 }
 0x376   :  { %v3171_v0 = vadd.f32 1.0, %v4077_v33 }
 0x377   :  { %3459 = vst.msk [vmem:[%s6627_s4 + $0x390] sm:$0xff] %vm1827_vm2, %v3343_v61  ;;  %4080 = vtanh.f32 %v2940_v35 }
 0x378   :  { %v3287_v25 = vmul.f32 %v3171_v0, %v2359_v56 }
 0x379   :  { %v4079_v57 = vpop.eup %4078 }
 0x37a   :  { %3403 = vst.msk [vmem:[%s6627_s4 + $0x1d0] sm:$0xff] %vm1827_vm2, %v3287_v25  ;;  %v3228_v13 = vadd.f32 1.0, %v4079_v57 }
 0x37c   :  { %v3344_v3 = vmul.f32 %v3228_v13, %v2416_v42 }
 0x37d   :  { %v4081_v51 = vpop.eup %4080 }
 0x37e   :  { %v3172_v49 = vadd.f32 1.0, %v4081_v51  ;;  %3460 = vst.msk [vmem:[%s6627_s4 + $0x398] sm:$0xff] %vm1827_vm2, %v3344_v3 }
 0x380   :  { %v3288_v12 = vmul.f32 %v3172_v49, %v2360_v43 }
 0x382   :  { %3404 = vst.msk [vmem:[%s6627_s4 + $0x1d8] sm:$0xff] %vm1827_vm2, %v3288_v12 }

// kernel: custom-call
= control target key start
LH: loop header
LB: loop body
LE: loop exit
PB: predicated region body
PF: predicated region fallthrough
CT: control target
= control target key end

     0   :  { %2 = vsyncpa [#allocation0], 0  ;;  %s55_s0 = inlined_call_operand.hbm [shape: c64[32,32,4,4], index: 0, kind: input, shape index: {}]   ;;  %s56_s1 = inlined_call_operand.vmem [shape: f32[32,32,4,4], index: 1, kind: output, shape index: {}]  }
   0x1   :  { %s4_s8 = sshll.u32 %s55_s0, 4  ;;  %s6_s11 = sshll.u32 %s56_s1, 4  ;;  %s5_s8 = int_to_ptr.hbm [resolvable:$true] %s4_s8  ;;  %s7_s11 = int_to_ptr.vmem [resolvable:$true] %s6_s11 }
   0x2   :  { %9 = dma.hbm_to_vmem [thread:$0]  %s5_s8, 8192, %s7_s11, [#allocation0] }
   0x3   :  { %37 = dma.done.wait [#allocation0], 8192  }
   0x4   :  { %38 = vsyncadd [#allocation0], 4294959104 }
   0x5   :  { %12 = vsyncpa [#allocation0], 1 }

// kernel: custom-call.1
= control target key start
LH: loop header
LB: loop body
LE: loop exit
PB: predicated region body
PF: predicated region fallthrough
CT: control target
= control target key end

     0   :  { %s56_s0 = inlined_call_operand.hbm [shape: c64[32,32,4,4], index: 0, kind: input, shape index: {}]   ;;  %s57_s1 = inlined_call_operand.vmem [shape: f32[32,32,4,4], index: 1, kind: output, shape index: {}]  }
   0x1   :  { %s2_s8 = scalar_lea.hbm %s56_s0, 512 }
   0x2   :  { %3 = vsyncpa [#allocation0], 0  ;;  %s5_s9 = sshll.u32 %s2_s8, 4  ;;  %s7_s12 = sshll.u32 %s57_s1, 4  ;;  %s6_s9 = int_to_ptr.hbm [resolvable:$true] %s5_s9  ;;  %s8_s12 = int_to_ptr.vmem [resolvable:$true] %s7_s12 }
   0x3   :  { %10 = dma.hbm_to_vmem [thread:$0]  %s6_s9, 8192, %s8_s12, [#allocation0] }
   0x4   :  { %38 = dma.done.wait [#allocation0], 8192  }
   0x5   :  { %39 = vsyncadd [#allocation0], 4294959104 }
   0x6   :  { %13 = vsyncpa [#allocation0], 1 }

// kernel: reverse.4
= control target key start
LH: loop header
LB: loop body
LE: loop exit
PB: predicated region body
PF: predicated region fallthrough
CT: control target
= control target key end

     0   :  { %s176_s0 = inlined_call_operand.vmem [shape: f32[32,2,8,7], index: 0, kind: input, shape index: {}]   ;;  %s177_s1 = inlined_call_operand.vmem [shape: f32[32,2,8,7], index: 1, kind: output, shape index: {}]  }
   0x1   :  { %v56_v0 = vld [vmem:[%s176_s0 + $0x30] sm:$0xff]  ;;  %v57_v1 = vld [vmem:[%s176_s0 + $0x68] sm:$0xff]  ;;  %v61_v3 = vld [vmem:[%s176_s0 + $0x60] sm:$0xff] }
   0x2   :  { %v59_v2 = vld [vmem:[%s176_s0 + $0x28] sm:$0xff]  ;;  %4 = vst [vmem:[%s177_s1] sm:$0xff] %v56_v0  ;;  %v63_v4 = vld [vmem:[%s176_s0 + $0x20] sm:$0xff]  ;;  %v65_v5 = vld [vmem:[%s176_s0 + $0x58] sm:$0xff] }
   0x3   :  { %58 = vst [vmem:[%s177_s1 + $0x38] sm:$0xff] %v57_v1  ;;  %v67_v6 = vld [vmem:[%s176_s0 + $0x18] sm:$0xff]  ;;  %v69_v7 = vld [vmem:[%s176_s0 + $0x50] sm:$0xff]  ;;  %v73_v9 = vld [vmem:[%s176_s0 + $0x48] sm:$0xff] }
   0x4   :  { %60 = vst [vmem:[%s177_s1 + $0x8] sm:$0xff] %v59_v2  ;;  %v71_v8 = vld [vmem:[%s176_s0 + $0x10] sm:$0xff]  ;;  %v75_v10 = vld [vmem:[%s176_s0 + $0x8] sm:$0xff]  ;;  %v77_v11 = vld [vmem:[%s176_s0 + $0x40] sm:$0xff] }
   0x5   :  { %62 = vst [vmem:[%s177_s1 + $0x40] sm:$0xff] %v61_v3  ;;  %v49_v12 = vld [vmem:[%s176_s0] sm:$0xff]  ;;  %v80_v13 = vld [vmem:[%s176_s0 + $0x38] sm:$0xff] }
   0x6   :  { %64 = vst [vmem:[%s177_s1 + $0x10] sm:$0xff] %v63_v4 }
   0x7   :  { %66 = vst [vmem:[%s177_s1 + $0x48] sm:$0xff] %v65_v5 }
   0x8   :  { %68 = vst [vmem:[%s177_s1 + $0x18] sm:$0xff] %v67_v6 }
   0x9   :  { %70 = vst [vmem:[%s177_s1 + $0x50] sm:$0xff] %v69_v7 }
   0xa   :  { %72 = vst [vmem:[%s177_s1 + $0x20] sm:$0xff] %v71_v8 }
   0xb   :  { %74 = vst [vmem:[%s177_s1 + $0x58] sm:$0xff] %v73_v9 }
   0xc   :  { %76 = vst [vmem:[%s177_s1 + $0x28] sm:$0xff] %v75_v10 }
   0xd   :  { %78 = vst [vmem:[%s177_s1 + $0x60] sm:$0xff] %v77_v11 }
   0xe   :  { %79 = vst [vmem:[%s177_s1 + $0x30] sm:$0xff] %v49_v12 }
   0xf   :  { %81 = vst [vmem:[%s177_s1 + $0x68] sm:$0xff] %v80_v13 }

// kernel: pino_graph_forward.13
= control target key start
LH: loop header
LB: loop body
LE: loop exit
PB: predicated region body
PF: predicated region fallthrough
CT: control target
= control target key end

     0   :  { %v250_v3 = vmov 0   ;;  %vm68_vm0 = vcmask 261120   ;;  %s401_s0 = inlined_call_operand.vmem [shape: f32[32,256], index: 0, kind: input, shape index: {}]   ;;  %s402_s3 = inlined_call_operand.vmem [shape: f32[32,1], index: 3, kind: input, shape index: {}]   ;;  %s403_s2 = inlined_call_operand.vmem [shape: bf16[32,32], index: 2, kind: input, shape index: {}]   ;;  %s404_s1 = inlined_call_operand.vmem [shape: f32[32,256], index: 1, kind: input, shape index: {}]   ;;  %s405_s4 = inlined_call_operand.vmem [shape: f32[32,256], index: 4, kind: output, shape index: {}]  }
   0x1   :  { %v22_v0 = vld [vmem:[%s401_s0 + $0x20] sm:$0xff]  ;;  %v24_v1 = vld [vmem:[%s401_s0 + $0x30] sm:$0xff]  ;;  %v23_v2 = vld [vmem:[%s401_s0 + $0x28] sm:$0xff]  ;;  %233 = vset.pattern.permute.xlu1 %v250_v3  ;;  %232 = vset.pattern.permute.xlu0 %v250_v3 }
   0x2   :  { %v28_v4 = vpack.c.bf16 %v24_v1, %v22_v0  ;;  %v25_v5 = vld [vmem:[%s401_s0 + $0x38] sm:$0xff]  ;;  %v18_v6 = vld [vmem:[%s401_s0] sm:$0xff]  ;;  %v20_v7 = vld [vmem:[%s401_s0 + $0x10] sm:$0xff] }
   0x3   :  { %v29_v8 = vpack.c.bf16 %v25_v5, %v23_v2  ;;  %v19_v9 = vld [vmem:[%s401_s0 + $0x8] sm:$0xff]  ;;  %v21_v10 = vld [vmem:[%s401_s0 + $0x18] sm:$0xff]  ;;  %v26_v11 = vpack.c.bf16 %v20_v7, %v18_v6  ;;  %v36_v12 = vld [vmem:[%s402_s3 + $0x10] sm:$0xff] }
   0x4   :  { %81 = vmatpush.bf16.msra.mxu0 %v28_v4  ;;  %227 = vmatpush.bf16.msra.mxu2 %v28_v4  ;;  %v34_v13 = vld [vmem:[%s402_s3] sm:$0xff]  ;;  %v27_v14 = vpack.c.bf16 %v21_v10, %v19_v9  ;;  %v226_v16 = vld [vmem:[%s403_s2 + $0x8] sm:$0xff]  ;;  %v37_v17 = vld [vmem:[%s402_s3 + $0x18] sm:$0xff] }
   0x5   :  { %100 = vmatpush.bf16.msra.mxu1 %v29_v8  ;;  %229 = vmatpush.bf16.msra.mxu3 %v29_v8  ;;  %v225_v15 = vld [vmem:[%s403_s2] sm:$0xff]  ;;  %v35_v18 = vld [vmem:[%s402_s3 + $0x8] sm:$0xff]  ;;  %v115_v41 = vld [vmem:[%s404_s1 + $0x10] sm:$0xff] }
   0x6   :  { %50 = vperm.xlu1 %233, %v36_v12   ;;  %40 = vperm.xlu0 %232, %v34_v13   ;;  %v113_v21 = vld [vmem:[%s404_s1] sm:$0xff]  ;;  %v114_v24 = vld [vmem:[%s404_s1 + $0x8] sm:$0xff]  ;;  %v116_v46 = vld [vmem:[%s404_s1 + $0x18] sm:$0xff] }
   0x7   :  { %v117_v32 = vld [vmem:[%s404_s1 + $0x20] sm:$0xff]  ;;  %v118_v36 = vld [vmem:[%s404_s1 + $0x28] sm:$0xff]  ;;  %v119_v0 = vld [vmem:[%s404_s1 + $0x30] sm:$0xff] }
   0x8   :  { %82 = vmatpush.bf16.msra.mxu0 %v26_v11  ;;  %228 = vmatpush.bf16.msra.mxu2 %v26_v11  ;;  %v120_v5 = vld [vmem:[%s404_s1 + $0x38] sm:$0xff] }
   0x9   :  { %101 = vmatpush.bf16.msra.mxu1 %v27_v14  ;;  %230 = vmatpush.bf16.msra.mxu3 %v27_v14 }
   0xb   :  { %221 = vmatmul.msk.bf16.vlgmr.msra.gmra.mxu0 %vm68_vm0, %v225_v15  ;;  %222 = vmatmul.msk.bf16.vlgmr.msra.gmra.mxu2 %vm68_vm0, %v226_v16 }
   0xc   :  { %223 = vmatmul.msk.bf16.vlgmr.msra.gmra.mxu1 %vm68_vm0, %v225_v15  ;;  %224 = vmatmul.msk.bf16.vlgmr.msra.gmra.mxu3 %vm68_vm0, %v226_v16 }
   0xe   :  { %55 = vperm.xlu1 %233, %v37_v17   ;;  %45 = vperm.xlu0 %232, %v35_v18  }
  0x78   :  { %v41_v19 = vpop.permute.xlu0 %40  ;;  %v51_v27 = vpop.permute.xlu1 %50 }
  0x80   :  { %v46_v38 = vpop.permute.xlu0 %45  ;;  %v56_v60 = vpop.permute.xlu1 %55 }
  0x88   :  { %v84_v20 = vpop.f32.mrf.mxu0 }
  0x89   :  { %v85_v22 = vadd.f32 %v84_v20, %v41_v19  ;;  %v103_v23 = vpop.f32.mrf.mxu1 }
  0x8a   :  { %v104_v25 = vadd.f32 %v103_v23, %v41_v19 }
  0x8b   :  { %v121_v26 = vadd.f32 %v113_v21, %v85_v22 }
  0x8c   :  { %v324_v28 = vadd.f32 %v114_v24, %v104_v25 }
  0x8d   :  { %v137_v29 = vmul.f32 0.044715, %v121_v26  ;;  %v129_v22 = vmul.f32 0.5, %v121_v26 }
  0x8e   :  { %v138_v30 = vmul.f32 0.044715, %v324_v28  ;;  %v89_v31 = vpop.f32.mrf.mxu2 }
  0x8f   :  { %v145_v33 = vmul.f32 %v137_v29, %v121_v26  ;;  %v90_v34 = vadd.f32 %v89_v31, %v51_v27  ;;  %v108_v35 = vpop.f32.mrf.mxu3  ;;  %v130_v31 = vmul.f32 0.5, %v324_v28 }
  0x90   :  { %v146_v37 = vmul.f32 %v138_v30, %v324_v28  ;;  %v109_v39 = vadd.f32 %v108_v35, %v51_v27  ;;  %v86_v40 = vpop.f32.mrf.mxu0 }
  0x91   :  { %v153_v42 = vmul.f32 %v145_v33, %v121_v26  ;;  %v337_v43 = vadd.f32 %v117_v32, %v90_v34  ;;  %v87_v44 = vadd.f32 %v86_v40, %v46_v38  ;;  %v105_v45 = vpop.f32.mrf.mxu1 }
  0x92   :  { %v154_v47 = vmul.f32 %v146_v37, %v324_v28  ;;  %v343_v48 = vadd.f32 %v118_v36, %v109_v39  ;;  %v106_v49 = vadd.f32 %v105_v45, %v46_v38 }
  0x93   :  { %v161_v50 = vadd.f32 %v153_v42, %v121_v26  ;;  %v141_v51 = vmul.f32 0.044715, %v337_v43  ;;  %v346_v52 = vadd.f32 %v115_v41, %v87_v44  ;;  %v133_v40 = vmul.f32 0.5, %v337_v43 }
  0x94   :  { %v162_v53 = vadd.f32 %v154_v47, %v324_v28  ;;  %v142_v54 = vmul.f32 0.044715, %v343_v48  ;;  %v350_v55 = vadd.f32 %v116_v46, %v106_v49  ;;  %v134_v45 = vmul.f32 0.5, %v343_v48 }
  0x95   :  { %v169_v56 = vmul.f32 0.7978846, %v161_v50  ;;  %v149_v57 = vmul.f32 %v141_v51, %v337_v43  ;;  %v139_v58 = vmul.f32 0.044715, %v346_v52  ;;  %v131_v50 = vmul.f32 0.5, %v346_v52 }
  0x96   :  { %v170_v59 = vmul.f32 0.7978846, %v162_v53  ;;  %v150_v61 = vmul.f32 %v142_v54, %v343_v48  ;;  %v140_v62 = vmul.f32 0.044715, %v350_v55  ;;  %v91_v63 = vpop.f32.mrf.mxu2  ;;  %v132_v54 = vmul.f32 0.5, %v350_v55 }
  0x97   :  { %234 = vtanh.f32 %v169_v56  ;;  %v157_v1 = vmul.f32 %v149_v57, %v337_v43  ;;  %v147_v2 = vmul.f32 %v139_v58, %v346_v52  ;;  %v92_v3 = vadd.f32 %v91_v63, %v56_v60  ;;  %v110_v4 = vpop.f32.mrf.mxu3 }
  0x98   :  { %236 = vtanh.f32 %v170_v59  ;;  %v158_v6 = vmul.f32 %v150_v61, %v343_v48  ;;  %v148_v7 = vmul.f32 %v140_v62, %v350_v55  ;;  %v111_v8 = vadd.f32 %v110_v4, %v56_v60 }
  0x99   :  { %v165_v9 = vadd.f32 %v157_v1, %v337_v43  ;;  %v155_v10 = vmul.f32 %v147_v2, %v346_v52  ;;  %v127_v11 = vadd.f32 %v119_v0, %v92_v3 }
  0x9a   :  { %v166_v12 = vadd.f32 %v158_v6, %v343_v48  ;;  %v156_v13 = vmul.f32 %v148_v7, %v350_v55  ;;  %v128_v14 = vadd.f32 %v120_v5, %v111_v8 }
  0x9b   :  { %v173_v15 = vmul.f32 0.7978846, %v165_v9  ;;  %v163_v16 = vadd.f32 %v155_v10, %v346_v52  ;;  %v143_v17 = vmul.f32 0.044715, %v127_v11  ;;  %v135_v57 = vmul.f32 0.5, %v127_v11 }
  0x9c   :  { %v174_v18 = vmul.f32 0.7978846, %v166_v12  ;;  %v164_v19 = vadd.f32 %v156_v13, %v350_v55  ;;  %v144_v20 = vmul.f32 0.044715, %v128_v14  ;;  %v136_v59 = vmul.f32 0.5, %v128_v14 }
  0x9d   :  { %v235_v21 = vpop.eup %234  ;;  %238 = vtanh.f32 %v173_v15  ;;  %v171_v23 = vmul.f32 0.7978846, %v163_v16  ;;  %v151_v24 = vmul.f32 %v143_v17, %v127_v11 }
  0x9e   :  { %v237_v25 = vpop.eup %236  ;;  %v185_v27 = vadd.f32 1.0, %v235_v21  ;;  %240 = vtanh.f32 %v174_v18  ;;  %v172_v29 = vmul.f32 0.7978846, %v164_v19  ;;  %v152_v30 = vmul.f32 %v144_v20, %v128_v14 }
  0x9f   :  { %v186_v32 = vadd.f32 1.0, %v237_v25  ;;  %242 = vtanh.f32 %v171_v23  ;;  %v159_v33 = vmul.f32 %v151_v24, %v127_v11 }
  0xa0   :  { %v193_v34 = vmul.f32 %v185_v27, %v129_v22  ;;  %244 = vtanh.f32 %v172_v29  ;;  %v160_v35 = vmul.f32 %v152_v30, %v128_v14 }
  0xa1   :  { %v194_v36 = vmul.f32 %v186_v32, %v130_v31  ;;  %v167_v37 = vadd.f32 %v159_v33, %v127_v11 }
  0xa2   :  { %201 = vst [vmem:[%s405_s4] sm:$0xff] %v193_v34  ;;  %v168_v26 = vadd.f32 %v160_v35, %v128_v14 }
  0xa3   :  { %v239_v38 = vpop.eup %238  ;;  %202 = vst [vmem:[%s405_s4 + $0x8] sm:$0xff] %v194_v36  ;;  %v175_v39 = vmul.f32 0.7978846, %v167_v37 }
  0xa4   :  { %v241_v28 = vpop.eup %240  ;;  %v189_v41 = vadd.f32 1.0, %v239_v38  ;;  %v176_v42 = vmul.f32 0.7978846, %v168_v26 }
  0xa5   :  { %v243_v44 = vpop.eup %242  ;;  %v190_v46 = vadd.f32 1.0, %v241_v28  ;;  %246 = vtanh.f32 %v175_v39 }
  0xa6   :  { %v245_v47 = vpop.eup %244  ;;  %v197_v49 = vmul.f32 %v189_v41, %v133_v40  ;;  %v187_v51 = vadd.f32 1.0, %v243_v44  ;;  %248 = vtanh.f32 %v176_v42 }
  0xa7   :  { %v198_v53 = vmul.f32 %v190_v46, %v134_v45  ;;  %v188_v56 = vadd.f32 1.0, %v245_v47 }
  0xa8   :  { %205 = vst [vmem:[%s405_s4 + $0x20] sm:$0xff] %v197_v49  ;;  %v195_v43 = vmul.f32 %v187_v51, %v131_v50 }
  0xa9   :  { %206 = vst [vmem:[%s405_s4 + $0x28] sm:$0xff] %v198_v53  ;;  %v196_v48 = vmul.f32 %v188_v56, %v132_v54 }
  0xaa   :  { %203 = vst [vmem:[%s405_s4 + $0x10] sm:$0xff] %v195_v43 }
  0xab   :  { %v247_v52 = vpop.eup %246  ;;  %204 = vst [vmem:[%s405_s4 + $0x18] sm:$0xff] %v196_v48 }
  0xac   :  { %v249_v55 = vpop.eup %248  ;;  %v191_v58 = vadd.f32 1.0, %v247_v52 }
  0xad   :  { %v192_v60 = vadd.f32 1.0, %v249_v55 }
  0xae   :  { %v199_v61 = vmul.f32 %v191_v58, %v135_v57 }
  0xaf   :  { %v200_v62 = vmul.f32 %v192_v60, %v136_v59 }
  0xb0   :  { %207 = vst [vmem:[%s405_s4 + $0x30] sm:$0xff] %v199_v61 }
  0xb1   :  { %208 = vst [vmem:[%s405_s4 + $0x38] sm:$0xff] %v200_v62 }

// kernel: pino_graph_forward.14
= control target key start
LH: loop header
LB: loop body
LE: loop exit
PB: predicated region body
PF: predicated region fallthrough
CT: control target
= control target key end

     0   :  { %v162_v3 = vmov 0   ;;  %vm68_vm0 = vcmask 261120   ;;  %s278_s0 = inlined_call_operand.vmem [shape: f32[32,256], index: 0, kind: input, shape index: {}]   ;;  %s279_s3 = inlined_call_operand.vmem [shape: f32[32,1], index: 3, kind: input, shape index: {}]   ;;  %s280_s2 = inlined_call_operand.vmem [shape: bf16[32,32], index: 2, kind: input, shape index: {}]   ;;  %s281_s1 = inlined_call_operand.vmem [shape: f32[32,256], index: 1, kind: input, shape index: {}]   ;;  %s282_s4 = inlined_call_operand.vmem [shape: f32[32,256], index: 4, kind: output, shape index: {}]  }
   0x1   :  { %v22_v0 = vld [vmem:[%s278_s0 + $0x20] sm:$0xff]  ;;  %v24_v1 = vld [vmem:[%s278_s0 + $0x30] sm:$0xff]  ;;  %v23_v2 = vld [vmem:[%s278_s0 + $0x28] sm:$0xff]  ;;  %161 = vset.pattern.permute.xlu1 %v162_v3  ;;  %160 = vset.pattern.permute.xlu0 %v162_v3 }
   0x2   :  { %v28_v4 = vpack.c.bf16 %v24_v1, %v22_v0  ;;  %v25_v5 = vld [vmem:[%s278_s0 + $0x38] sm:$0xff]  ;;  %v18_v6 = vld [vmem:[%s278_s0] sm:$0xff]  ;;  %v20_v7 = vld [vmem:[%s278_s0 + $0x10] sm:$0xff] }
   0x3   :  { %v29_v8 = vpack.c.bf16 %v25_v5, %v23_v2  ;;  %v19_v9 = vld [vmem:[%s278_s0 + $0x8] sm:$0xff]  ;;  %v21_v10 = vld [vmem:[%s278_s0 + $0x18] sm:$0xff]  ;;  %v26_v11 = vpack.c.bf16 %v20_v7, %v18_v6  ;;  %v36_v12 = vld [vmem:[%s279_s3 + $0x10] sm:$0xff] }
   0x4   :  { %81 = vmatpush.bf16.msra.mxu0 %v28_v4  ;;  %155 = vmatpush.bf16.msra.mxu2 %v28_v4  ;;  %v34_v13 = vld [vmem:[%s279_s3] sm:$0xff]  ;;  %v27_v14 = vpack.c.bf16 %v21_v10, %v19_v9  ;;  %v154_v16 = vld [vmem:[%s280_s2 + $0x8] sm:$0xff]  ;;  %v37_v17 = vld [vmem:[%s279_s3 + $0x18] sm:$0xff] }
   0x5   :  { %100 = vmatpush.bf16.msra.mxu1 %v29_v8  ;;  %157 = vmatpush.bf16.msra.mxu3 %v29_v8  ;;  %v153_v15 = vld [vmem:[%s280_s2] sm:$0xff]  ;;  %v35_v18 = vld [vmem:[%s279_s3 + $0x8] sm:$0xff]  ;;  %v115_v37 = vld [vmem:[%s281_s1 + $0x10] sm:$0xff] }
   0x6   :  { %50 = vperm.xlu1 %161, %v36_v12   ;;  %40 = vperm.xlu0 %160, %v34_v13   ;;  %v113_v21 = vld [vmem:[%s281_s1] sm:$0xff]  ;;  %v114_v24 = vld [vmem:[%s281_s1 + $0x8] sm:$0xff]  ;;  %v116_v41 = vld [vmem:[%s281_s1 + $0x18] sm:$0xff] }
   0x7   :  { %v117_v30 = vld [vmem:[%s281_s1 + $0x20] sm:$0xff]  ;;  %v118_v33 = vld [vmem:[%s281_s1 + $0x28] sm:$0xff]  ;;  %v119_v48 = vld [vmem:[%s281_s1 + $0x30] sm:$0xff] }
   0x8   :  { %82 = vmatpush.bf16.msra.mxu0 %v26_v11  ;;  %156 = vmatpush.bf16.msra.mxu2 %v26_v11  ;;  %v120_v51 = vld [vmem:[%s281_s1 + $0x38] sm:$0xff] }
   0x9   :  { %101 = vmatpush.bf16.msra.mxu1 %v27_v14  ;;  %158 = vmatpush.bf16.msra.mxu3 %v27_v14 }
   0xb   :  { %149 = vmatmul.msk.bf16.vlgmr.msra.gmra.mxu0 %vm68_vm0, %v153_v15  ;;  %150 = vmatmul.msk.bf16.vlgmr.msra.gmra.mxu2 %vm68_vm0, %v154_v16 }
   0xc   :  { %151 = vmatmul.msk.bf16.vlgmr.msra.gmra.mxu1 %vm68_vm0, %v153_v15  ;;  %152 = vmatmul.msk.bf16.vlgmr.msra.gmra.mxu3 %vm68_vm0, %v154_v16 }
   0xe   :  { %55 = vperm.xlu1 %161, %v37_v17   ;;  %45 = vperm.xlu0 %160, %v35_v18  }
  0x78   :  { %v41_v19 = vpop.permute.xlu0 %40  ;;  %v51_v27 = vpop.permute.xlu1 %50 }
  0x80   :  { %v46_v34 = vpop.permute.xlu0 %45  ;;  %v56_v46 = vpop.permute.xlu1 %55 }
  0x88   :  { %v84_v20 = vpop.f32.mrf.mxu0 }
  0x89   :  { %v85_v22 = vadd.f32 %v84_v20, %v41_v19  ;;  %v103_v23 = vpop.f32.mrf.mxu1 }
  0x8a   :  { %v104_v25 = vadd.f32 %v103_v23, %v41_v19 }
  0x8b   :  { %v121_v26 = vadd.f32 %v113_v21, %v85_v22 }
  0x8c   :  { %v122_v28 = vadd.f32 %v114_v24, %v104_v25 }
  0x8d   :  { %129 = vst [vmem:[%s282_s4] sm:$0xff] %v121_v26 }
  0x8e   :  { %130 = vst [vmem:[%s282_s4 + $0x8] sm:$0xff] %v122_v28  ;;  %v89_v29 = vpop.f32.mrf.mxu2 }
  0x8f   :  { %v90_v31 = vadd.f32 %v89_v29, %v51_v27  ;;  %v108_v32 = vpop.f32.mrf.mxu3 }
  0x90   :  { %v109_v35 = vadd.f32 %v108_v32, %v51_v27  ;;  %v86_v36 = vpop.f32.mrf.mxu0 }
  0x91   :  { %v125_v38 = vadd.f32 %v117_v30, %v90_v31  ;;  %v87_v39 = vadd.f32 %v86_v36, %v46_v34  ;;  %v105_v40 = vpop.f32.mrf.mxu1 }
  0x92   :  { %v126_v42 = vadd.f32 %v118_v33, %v109_v35  ;;  %v106_v43 = vadd.f32 %v105_v40, %v46_v34 }
  0x93   :  { %133 = vst [vmem:[%s282_s4 + $0x20] sm:$0xff] %v125_v38  ;;  %v123_v44 = vadd.f32 %v115_v37, %v87_v39 }
  0x94   :  { %134 = vst [vmem:[%s282_s4 + $0x28] sm:$0xff] %v126_v42  ;;  %v124_v45 = vadd.f32 %v116_v41, %v106_v43 }
  0x95   :  { %131 = vst [vmem:[%s282_s4 + $0x10] sm:$0xff] %v123_v44 }
  0x96   :  { %132 = vst [vmem:[%s282_s4 + $0x18] sm:$0xff] %v124_v45  ;;  %v91_v47 = vpop.f32.mrf.mxu2 }
  0x97   :  { %v92_v49 = vadd.f32 %v91_v47, %v56_v46  ;;  %v110_v50 = vpop.f32.mrf.mxu3 }
  0x98   :  { %v111_v52 = vadd.f32 %v110_v50, %v56_v46 }
  0x99   :  { %v127_v53 = vadd.f32 %v119_v48, %v92_v49 }
  0x9a   :  { %v128_v54 = vadd.f32 %v120_v51, %v111_v52 }
  0x9b   :  { %135 = vst [vmem:[%s282_s4 + $0x30] sm:$0xff] %v127_v53 }
  0x9c   :  { %136 = vst [vmem:[%s282_s4 + $0x38] sm:$0xff] %v128_v54 }

// kernel: pino_graph_forward.15
= control target key start
LH: loop header
LB: loop body
LE: loop exit
PB: predicated region body
PF: predicated region fallthrough
CT: control target
= control target key end

     0   :  { %s2094_s24 = smov 0   ;;  %s2370_s0 = inlined_call_operand.vmem [shape: bf16[2,128,288], index: 0, kind: input, shape index: {}]   ;;  %s2371_s1 = inlined_call_operand.vmem [shape: bf16[2,288,32], index: 1, kind: input, shape index: {}]   ;;  %s2372_s2 = inlined_call_operand.vmem [shape: f32[2,1,32], index: 2, kind: input, shape index: {}]   ;;  %s2373_s3 = inlined_call_operand.vmem [shape: bf16[32,128], index: 3, kind: input, shape index: {}]   ;;  %s2374_s4 = inlined_call_operand.vmem [shape: bf16[128,32], index: 4, kind: input, shape index: {}]   ;;  %s2375_s5 = inlined_call_operand.vmem [shape: bf16[32,128], index: 5, kind: input, shape index: {}]   ;;  %s2376_s6 = inlined_call_operand.vmem [shape: f32[3,128], index: 6, kind: input, shape index: {}]   ;;  %s2377_s7 = inlined_call_operand.vmem [shape: f32[2,128,128], index: 7, kind: output, shape index: {}]  }
   0x1 LB: > { %s1629_s25 = sadd.s32 4294967295, %s2052_s24   ;;  %p1633_p0 = scmp.ge.s32.totalorder %s2052_s24, 1  ;;  %s2052_s24 = sphi %s2094_s24, %s17_s24  }
   0x2   : > { %p255_p1 = scmp.lt.s32.totalorder %s2052_s24, 3 }
   0x4   : > { %p256_p2 = pnand %p1633_p0, %p255_p1 }
   0x5   : > { %p295_p3 = scmp.lt.s32.totalorder (!%p256_p2), %s1629_s25, 1 }
   0x6   : > { %259 = sbr.rel (%p256_p2) target bundleno = 913 (0x391), region = 48 }
   0xb   : > { %s2379_s25 = smov (!%p295_p3, %s1629_s25), 1  ;;  %vm615_vm0 = vcmask 261120  }
   0xc   : > { %s1940_s26 = smul.u32 144, %s2379_s25  ;;  %s307_s9 = scalar_lea.vmem %s2372_s2, %s2379_s25 }
   0xd   : > { %s1939_s10 = smul.u32 192, %s2379_s25  ;;  %s1880_s21 = sshll.u32 %s2379_s25, 7 }
   0xe   : > { %s2108_s29 = scalar_lea.vmem %s2371_s1, %s1940_s26  ;;  %s2349_s26 = scalar_lea.vmem %s2377_s7, %s1880_s21 }
   0xf   : > { %v1912_v0 = vld [vmem:[%s2108_s29 + $0x38] sm:$0xff]  ;;  %v1911_v2 = vld [vmem:[%s2108_s29 + $0x30] sm:$0xff]  ;;  %v1922_v4 = vld [vmem:[%s2108_s29 + $0x88] sm:$0xff]  ;;  %s2131_s13 = scalar_lea.vmem %s2370_s0, %s1939_s10 }
  0x10   : > { %v1920_v1 = vld [vmem:[%s2108_s29 + $0x78] sm:$0xff]  ;;  %640 = vmatpush.bf16.msra.mxu0 %v1912_v0  ;;  %v1919_v3 = vld [vmem:[%s2108_s29 + $0x70] sm:$0xff]  ;;  %v1910_v5 = vld [vmem:[%s2108_s29 + $0x28] sm:$0xff]  ;;  %1935 = vmatpush.bf16.msra.mxu2 %v1922_v4 }
  0x11   : > { %689 = vmatpush.bf16.msra.mxu1 %v1920_v1  ;;  %v1918_v6 = vld [vmem:[%s2108_s29 + $0x68] sm:$0xff]  ;;  %v1909_v7 = vld [vmem:[%s2108_s29 + $0x20] sm:$0xff]  ;;  %v1908_v9 = vld [vmem:[%s2108_s29 + $0x18] sm:$0xff] }
  0x12   : > { %v1917_v8 = vld [vmem:[%s2108_s29 + $0x60] sm:$0xff]  ;;  %v1916_v10 = vld [vmem:[%s2108_s29 + $0x58] sm:$0xff]  ;;  %v1907_v11 = vld [vmem:[%s2108_s29 + $0x10] sm:$0xff] }
  0x13   : > { %v1915_v12 = vld [vmem:[%s2108_s29 + $0x50] sm:$0xff]  ;;  %v1906_v13 = vld [vmem:[%s2108_s29 + $0x8] sm:$0xff]  ;;  %v1905_v15 = vld [vmem:[%s2108_s29] sm:$0xff] }
  0x14   : > { %641 = vmatpush.bf16.msra.mxu0 %v1911_v2  ;;  %v1914_v14 = vld [vmem:[%s2108_s29 + $0x48] sm:$0xff]  ;;  %v1640_v16 = vld [vmem:[%s2131_s13] sm:$0xf]  ;;  %v1881_v19 = vld [vmem:[%s2131_s13 + $0x4] sm:$0xf] }
  0x15   : > { %690 = vmatpush.bf16.msra.mxu1 %v1919_v3  ;;  %v1882_v17 = vld [vmem:[%s2131_s13 + $0x8] sm:$0xf0]  ;;  %v1913_v18 = vld [vmem:[%s2108_s29 + $0x40] sm:$0xff]  ;;  %v1642_v20 = vld [vmem:[%s2131_s13 + $0xc] sm:$0xf0] }
  0x16   : > { %v1641_v21 = vor.u32 %v1882_v17, %v1640_v16  ;;  %v1645_v22 = vor.u32 %v1881_v19, %v1642_v20  ;;  %v1921_v23 = vld [vmem:[%s2108_s29 + $0x80] sm:$0xff]  ;;  %v1684_v24 = vld [vmem:[%s2131_s13 + $0x50] sm:$0xf]  ;;  %v1892_v25 = vld [vmem:[%s2131_s13 + $0x58] sm:$0xf0] }
  0x17   : > { %v1685_v26 = vor.u32 %v1892_v25, %v1684_v24  ;;  %1936 = vmatpush.bf16.msra.mxu2 %v1921_v23  ;;  %v1652_v27 = vld [vmem:[%s2131_s13 + $0x18] sm:$0xf]  ;;  %v1885_v28 = vld [vmem:[%s2131_s13 + $0x20] sm:$0xf0]  ;;  %v1884_v29 = vld [vmem:[%s2131_s13 + $0x1c] sm:$0xf] }
  0x18   : > { %642 = vmatpush.bf16.msra.mxu0 %v1910_v5  ;;  %v1654_v30 = vld [vmem:[%s2131_s13 + $0x24] sm:$0xf0]  ;;  %v1653_v31 = vor.u32 %v1885_v28, %v1652_v27  ;;  %v1895_v34 = vld [vmem:[%s2131_s13 + $0x70] sm:$0xf0]  ;;  %v1664_v36 = vld [vmem:[%s2131_s13 + $0x30] sm:$0xf] }
  0x19   : > { %691 = vmatpush.bf16.msra.mxu1 %v1918_v6  ;;  %v1657_v32 = vor.u32 %v1884_v29, %v1654_v30  ;;  %v1696_v33 = vld [vmem:[%s2131_s13 + $0x68] sm:$0xf]  ;;  %v1888_v37 = vld [vmem:[%s2131_s13 + $0x38] sm:$0xf0]  ;;  %v1887_v38 = vld [vmem:[%s2131_s13 + $0x34] sm:$0xf] }
  0x1a   : > { %1809 = vmatmul.msk.bf16.vlgmr.msra.gmra.mxu2 %vm615_vm0, %v1685_v26  ;;  %v1697_v35 = vor.u32 %v1895_v34, %v1696_v33  ;;  %v1666_v39 = vld [vmem:[%s2131_s13 + $0x3c] sm:$0xf0]  ;;  %v1665_v40 = vor.u32 %v1888_v37, %v1664_v36  ;;  %v1898_v43 = vld [vmem:[%s2131_s13 + $0x88] sm:$0xf0]  ;;  %v1676_v45 = vld [vmem:[%s2131_s13 + $0x48] sm:$0xf] }
  0x1b   : > { %v1669_v41 = vor.u32 %v1887_v38, %v1666_v39  ;;  %v1708_v42 = vld [vmem:[%s2131_s13 + $0x80] sm:$0xf]  ;;  %v1891_v46 = vld [vmem:[%s2131_s13 + $0x50] sm:$0xf0]  ;;  %v1890_v47 = vld [vmem:[%s2131_s13 + $0x4c] sm:$0xf] }
  0x1c   : > { %643 = vmatpush.bf16.msra.mxu0 %v1909_v7  ;;  %v1709_v44 = vor.u32 %v1898_v43, %v1708_v42  ;;  %v1678_v48 = vld [vmem:[%s2131_s13 + $0x54] sm:$0xf0]  ;;  %v1677_v49 = vor.u32 %v1891_v46, %v1676_v45  ;;  %v1901_v52 = vld [vmem:[%s2131_s13 + $0xa0] sm:$0xf0]  ;;  %v1688_v54 = vld [vmem:[%s2131_s13 + $0x60] sm:$0xf] }
  0x1d   : > { %692 = vmatpush.bf16.msra.mxu1 %v1917_v8  ;;  %v1681_v50 = vor.u32 %v1890_v47, %v1678_v48  ;;  %v1720_v51 = vld [vmem:[%s2131_s13 + $0x98] sm:$0xf]  ;;  %v1894_v55 = vld [vmem:[%s2131_s13 + $0x68] sm:$0xf0]  ;;  %v1893_v56 = vld [vmem:[%s2131_s13 + $0x64] sm:$0xf] }
  0x1e   : > { %v1721_v53 = vor.u32 %v1901_v52, %v1720_v51  ;;  %v1690_v57 = vld [vmem:[%s2131_s13 + $0x6c] sm:$0xf0]  ;;  %v1689_v58 = vor.u32 %v1894_v55, %v1688_v54  ;;  %v1904_v61 = vld [vmem:[%s2131_s13 + $0xb8] sm:$0xf0]  ;;  %v1700_v63 = vld [vmem:[%s2131_s13 + $0x78] sm:$0xf] }
  0x1f   : > { %v1693_v59 = vor.u32 %v1893_v56, %v1690_v57  ;;  %v1732_v60 = vld [vmem:[%s2131_s13 + $0xb0] sm:$0xf]  ;;  %v1897_v0 = vld [vmem:[%s2131_s13 + $0x80] sm:$0xf0]  ;;  %v1896_v1 = vld [vmem:[%s2131_s13 + $0x7c] sm:$0xf] }
  0x20   : > { %644 = vmatpush.bf16.msra.mxu0 %v1908_v9  ;;  %v1733_v62 = vor.u32 %v1904_v61, %v1732_v60  ;;  %v1702_v2 = vld [vmem:[%s2131_s13 + $0x84] sm:$0xf0]  ;;  %v1701_v3 = vor.u32 %v1897_v0, %v1700_v63  ;;  %v1712_v5 = vld [vmem:[%s2131_s13 + $0x90] sm:$0xf]  ;;  %v1900_v6 = vld [vmem:[%s2131_s13 + $0x98] sm:$0xf0] }
  0x21   : > { %693 = vmatpush.bf16.msra.mxu1 %v1916_v10  ;;  %v1899_v7 = vld [vmem:[%s2131_s13 + $0x94] sm:$0xf]  ;;  %v1714_v8 = vld [vmem:[%s2131_s13 + $0x9c] sm:$0xf0]  ;;  %v1713_v9 = vor.u32 %v1900_v6, %v1712_v5  ;;  %v1648_v17 = vld [vmem:[%s2131_s13 + $0x8] sm:$0xf] }
  0x22   : > { %v1717_v10 = vor.u32 %v1899_v7, %v1714_v8  ;;  %v2192_v19 = vld [vmem:[%s307_s9] ss:$0 sm:$0xff]  ;;  %v1924_v25 = vld [vmem:[%s2373_s3 + $0x8] sm:$0xff]  ;;  %v1889_v42 = vld [vmem:[%s2131_s13 + $0x40] sm:$0xf0] }
  0x23   : > { %1937 = vmatpush.bf16.msra.mxu3 %v1924_v25  ;;  %v1660_v30 = vld [vmem:[%s2131_s13 + $0x20] sm:$0xf] }
  0x24   : > { %645 = vmatpush.bf16.msra.mxu0 %v1907_v11  ;;  %v1724_v11 = vld [vmem:[%s2131_s13 + $0xa8] sm:$0xf]  ;;  %v1923_v57 = vld [vmem:[%s2373_s3] sm:$0xff] }
  0x25   : > { %694 = vmatpush.bf16.msra.mxu1 %v1915_v12  ;;  %v1903_v12 = vld [vmem:[%s2131_s13 + $0xb0] sm:$0xf0] }
  0x27   : > { %1938 = vmatpush.bf16.msra.mxu3 %v1923_v57 }
  0x28   : > { %646 = vmatpush.bf16.msra.mxu0 %v1906_v13  ;;  %v1902_v13 = vld [vmem:[%s2131_s13 + $0xac] sm:$0xf] }
  0x29   : > { %695 = vmatpush.bf16.msra.mxu1 %v1914_v14  ;;  %v1726_v14 = vld [vmem:[%s2131_s13 + $0xb4] sm:$0xf0] }
  0x2a   : > { %1810 = vmatmul.msk.bf16.gmra.mxu2 %vm615_vm0, %v1697_v35  ;;  %v1729_v16 = vor.u32 %v1902_v13, %v1726_v14 }
  0x2c   : > { %647 = vmatpush.bf16.msra.mxu0 %v1905_v15  ;;  %v1725_v15 = vor.u32 %v1903_v12, %v1724_v11 }
  0x2d   : > { %696 = vmatpush.bf16.msra.mxu1 %v1913_v18  ;;  %v1883_v18 = vld [vmem:[%s2131_s13 + $0x10] sm:$0xf0] }
  0x2e   : > { %v1649_v20 = vor.u32 %v1883_v18, %v1648_v17 }
  0x2f   : > { %648 = vmatmul.bf16.vlgmr.msra.gmra.mxu0 %v1641_v21 }
  0x30   : > { %744 = vmatpush.bf16.msrb.mxu0 %v1922_v4  ;;  %697 = vmatmul.bf16.vlgmr.msra.gmra.mxu1 %v1645_v22  ;;  %v1705_v4 = vor.u32 %v1896_v1, %v1702_v2 }
  0x31   : > { %986 = vmatpush.bf16.msrb.mxu1 %v1924_v25 }
  0x34   : > { %745 = vmatpush.bf16.msrb.mxu0 %v1921_v23 }
  0x35   : > { %987 = vmatpush.bf16.msrb.mxu1 %v1923_v57 }
  0x3a   : > { %1811 = vmatmul.msk.bf16.gmra.mxu2 %vm615_vm0, %v1709_v44 }
  0x3f   : > { %653 = vmatmul.bf16.gmra.mxu0 %v1653_v31  ;;  %v1886_v31 = vld [vmem:[%s2131_s13 + $0x28] sm:$0xf0] }
  0x40   : > { %702 = vmatmul.bf16.gmra.mxu1 %v1657_v32  ;;  %v1661_v32 = vor.u32 %v1886_v31, %v1660_v30 }
  0x4a   : > { %1812 = vmatmul.msk.bf16.gmra.mxu2 %vm615_vm0, %v1721_v53 }
  0x4f   : > { %658 = vmatmul.bf16.gmra.mxu0 %v1665_v40 }
  0x50   : > { %707 = vmatmul.bf16.gmra.mxu1 %v1669_v41  ;;  %v1672_v41 = vld [vmem:[%s2131_s13 + $0x38] sm:$0xf] }
  0x51   : > { %v1673_v43 = vor.u32 %v1889_v42, %v1672_v41 }
  0x5a   : > { %1813 = vmatmul.msk.bf16.gmra.mxu2 %vm615_vm0, %v1733_v62 }
  0x5f   : > { %663 = vmatmul.bf16.gmra.mxu0 %v1677_v49 }
  0x60   : > { %712 = vmatmul.bf16.gmra.mxu1 %v1681_v50 }
  0x6f   : > { %668 = vmatmul.bf16.gmra.mxu0 %v1689_v58 }
  0x70   : > { %717 = vmatmul.bf16.gmra.mxu1 %v1693_v59 }
  0x7f   : > { %673 = vmatmul.bf16.gmra.mxu0 %v1701_v3 }
  0x80   : > { %722 = vmatmul.bf16.gmra.mxu1 %v1705_v4 }
  0x8f   : > { %678 = vmatmul.bf16.gmra.mxu0 %v1713_v9 }
  0x90   : > { %727 = vmatmul.bf16.gmra.mxu1 %v1717_v10 }
  0x9d   : > { %v762_v44 = vpop.f32.mrf.mxu2 }
  0x9f   : > { %683 = vmatmul.bf16.gmra.mxu0 %v1725_v15 }
  0xa0   : > { %732 = vmatmul.bf16.gmra.mxu1 %v1729_v16 }
  0xa5   : > { %v764_v52 = vpop.f32.mrf.mxu2 }
  0xac   : > { %v649_v21 = vpop.f32.mrf.mxu0 }
  0xad   : > { %v698_v22 = vpop.f32.mrf.mxu1  ;;  %v650_v23 = vadd.f32 %v2192_v19, %v649_v21  ;;  %v767_v59 = vpop.f32.mrf.mxu2 }
  0xaf   : > { %v2195_v24 = vadd.f32 %v698_v22, %v650_v23  ;;  %1806 = vmatmul.msk.bf16.vlgmr.msrb.gmra.mxu0 %vm615_vm0, %v1649_v20 }
  0xb4   : > { %v651_v26 = vpop.f32.mrf.mxu0 }
  0xb5   : > { %v700_v27 = vpop.f32.mrf.mxu1  ;;  %v652_v28 = vadd.f32 %v2192_v19, %v651_v26  ;;  %v769_v5 = vpop.f32.mrf.mxu2 }
  0xb7   : > { %v2202_v29 = vadd.f32 %v700_v27, %v652_v28 }
  0xbc   : > { %v654_v33 = vpop.f32.mrf.mxu0 }
  0xbd   : > { %v703_v34 = vpop.f32.mrf.mxu1  ;;  %v655_v35 = vadd.f32 %v2192_v19, %v654_v33  ;;  %v772_v18 = vpop.f32.mrf.mxu2 }
  0xbf   : > { %v2207_v36 = vadd.f32 %v703_v34, %v655_v35  ;;  %1807 = vmatmul.msk.bf16.gmra.mxu0 %vm615_vm0, %v1661_v32 }
  0xc4   : > { %v656_v37 = vpop.f32.mrf.mxu0 }
  0xc5   : > { %v705_v38 = vpop.f32.mrf.mxu1  ;;  %v657_v39 = vadd.f32 %v2192_v19, %v656_v37 }
  0xc7   : > { %v2211_v40 = vadd.f32 %v705_v38, %v657_v39 }
  0xcc   : > { %v659_v45 = vpop.f32.mrf.mxu0 }
  0xcd   : > { %v708_v46 = vpop.f32.mrf.mxu1  ;;  %v660_v47 = vadd.f32 %v2192_v19, %v659_v45 }
  0xcf   : > { %v2216_v48 = vadd.f32 %v708_v46, %v660_v47  ;;  %1808 = vmatmul.msk.bf16.gmra.mxu0 %vm615_vm0, %v1673_v43 }
  0xd4   : > { %v661_v49 = vpop.f32.mrf.mxu0 }
  0xd5   : > { %v710_v50 = vpop.f32.mrf.mxu1  ;;  %v662_v51 = vadd.f32 %v2192_v19, %v661_v49 }
  0xd7   : > { %v2220_v53 = vadd.f32 %v710_v50, %v662_v51 }
  0xdc   : > { %v664_v54 = vpop.f32.mrf.mxu0 }
  0xdd   : > { %v713_v55 = vpop.f32.mrf.mxu1  ;;  %v665_v56 = vadd.f32 %v2192_v19, %v664_v54 }
  0xdf   : > { %v714_v58 = vadd.f32 %v713_v55, %v665_v56 }
  0xe1   : > { %v763_v60 = vadd.f32 %v762_v44, %v714_v58  ;;  %v774_v44 = vpop.f32.mrf.mxu2 }
  0xe3   : > { %v809_v61 = vmul.f32 0.044715, %v763_v60  ;;  %v793_v38 = vmul.f32 0.5, %v763_v60 }
  0xe4   : > { %v666_v62 = vpop.f32.mrf.mxu0 }
  0xe5   : > { %v715_v63 = vpop.f32.mrf.mxu1  ;;  %v825_v0 = vmul.f32 %v809_v61, %v763_v60  ;;  %v667_v1 = vadd.f32 %v2192_v19, %v666_v62 }
  0xe7   : > { %v716_v2 = vadd.f32 %v715_v63, %v667_v1  ;;  %v841_v3 = vmul.f32 %v825_v0, %v763_v60 }
  0xe9   : > { %v765_v4 = vadd.f32 %v764_v52, %v716_v2  ;;  %v857_v6 = vadd.f32 %v841_v3, %v763_v60  ;;  %v777_v63 = vpop.f32.mrf.mxu2 }
  0xeb   : > { %v810_v7 = vmul.f32 0.044715, %v765_v4  ;;  %v873_v12 = vmul.f32 0.7978846, %v857_v6  ;;  %v794_v39 = vmul.f32 0.5, %v765_v4 }
  0xec   : > { %v669_v8 = vpop.f32.mrf.mxu0 }
  0xed   : > { %v718_v9 = vpop.f32.mrf.mxu1  ;;  %v826_v10 = vmul.f32 %v810_v7, %v765_v4  ;;  %v670_v11 = vadd.f32 %v2192_v19, %v669_v8  ;;  %1950 = vtanh.f32 %v873_v12 }
  0xef   : > { %v719_v13 = vadd.f32 %v718_v9, %v670_v11  ;;  %v842_v14 = vmul.f32 %v826_v10, %v765_v4 }
  0xf1   : > { %v768_v15 = vadd.f32 %v767_v59, %v719_v13  ;;  %v858_v16 = vadd.f32 %v842_v14, %v765_v4 }
  0xf3   : > { %v811_v17 = vmul.f32 0.044715, %v768_v15  ;;  %v874_v20 = vmul.f32 0.7978846, %v858_v16  ;;  %v1951_v26 = vpop.eup %1950  ;;  %v795_v8 = vmul.f32 0.5, %v768_v15 }
  0xf4   : > { %v671_v21 = vpop.f32.mrf.mxu0  ;;  %v905_v32 = vadd.f32 1.0, %v1951_v26 }
  0xf5   : > { %v720_v22 = vpop.f32.mrf.mxu1  ;;  %v827_v23 = vmul.f32 %v811_v17, %v768_v15  ;;  %v672_v25 = vadd.f32 %v2192_v19, %v671_v21  ;;  %1952 = vtanh.f32 %v874_v20 }
  0xf6   : > { %v921_v46 = vmul.f32 %v905_v32, %v793_v38 }
  0xf7   : > { %v721_v27 = vadd.f32 %v720_v22, %v672_v25  ;;  %v843_v28 = vmul.f32 %v827_v23, %v768_v15  ;;  %v779_v22 = vpop.f32.mrf.mxu2 }
  0xf9   : > { %v770_v30 = vadd.f32 %v769_v5, %v721_v27  ;;  %v859_v31 = vadd.f32 %v843_v28, %v768_v15 }
  0xfb   : > { %v1953_v33 = vpop.eup %1952  ;;  %v812_v34 = vmul.f32 0.044715, %v770_v30  ;;  %v875_v45 = vmul.f32 0.7978846, %v859_v31  ;;  %v796_v9 = vmul.f32 0.5, %v770_v30 }
  0xfc   : > { %v674_v35 = vpop.f32.mrf.mxu0  ;;  %v906_v41 = vadd.f32 1.0, %v1953_v33 }
  0xfd   : > { %v723_v37 = vpop.f32.mrf.mxu1  ;;  %v828_v42 = vmul.f32 %v812_v34, %v770_v30  ;;  %v675_v43 = vadd.f32 %v2192_v19, %v674_v35  ;;  %1954 = vtanh.f32 %v875_v45 }
  0xfe   : > { %v922_v47 = vmul.f32 %v906_v41, %v794_v39 }
  0xff   : > { %v724_v49 = vadd.f32 %v723_v37, %v675_v43  ;;  %v844_v50 = vmul.f32 %v828_v42, %v770_v30  ;;  %v782_v41 = vpop.f32.mrf.mxu2 }
 0x100   : > { %v934_v51 = vpack.c.bf16 %v922_v47, %v921_v46 }
 0x101   : > { %v773_v52 = vadd.f32 %v772_v18, %v724_v49  ;;  %v860_v54 = vadd.f32 %v844_v50, %v770_v30 }
 0x102   : > { %1825 = vmatmul.msk.bf16.vlgmr.msra.gmra.mxu3 %vm615_vm0, %v934_v51 }
 0x103   : > { %v813_v55 = vmul.f32 0.044715, %v773_v52  ;;  %v876_v56 = vmul.f32 0.7978846, %v860_v54  ;;  %v1955_v61 = vpop.eup %1954 }
 0x104   : > { %v676_v57 = vpop.f32.mrf.mxu0  ;;  %v907_v3 = vadd.f32 1.0, %v1955_v61 }
 0x105   : > { %v725_v58 = vpop.f32.mrf.mxu1  ;;  %v829_v59 = vmul.f32 %v813_v55, %v773_v52  ;;  %v677_v60 = vadd.f32 %v2192_v19, %v676_v57  ;;  %1956 = vtanh.f32 %v876_v56 }
 0x106   : > { %v923_v14 = vmul.f32 %v907_v3, %v795_v8 }
 0x107   : > { %v726_v62 = vadd.f32 %v725_v58, %v677_v60  ;;  %v845_v0 = vmul.f32 %v829_v59, %v773_v52 }
 0x109   : > { %v775_v1 = vadd.f32 %v774_v44, %v726_v62  ;;  %v861_v2 = vadd.f32 %v845_v0, %v773_v52  ;;  %v797_v44 = vmul.f32 0.5, %v773_v52 }
 0x10b   : > { %v1957_v4 = vpop.eup %1956  ;;  %v814_v5 = vmul.f32 0.044715, %v775_v1  ;;  %v877_v13 = vmul.f32 0.7978846, %v861_v2  ;;  %v798_v45 = vmul.f32 0.5, %v775_v1 }
 0x10c   : > { %v679_v6 = vpop.f32.mrf.mxu0  ;;  %v908_v10 = vadd.f32 1.0, %v1957_v4 }
 0x10d   : > { %v728_v7 = vpop.f32.mrf.mxu1  ;;  %v830_v11 = vmul.f32 %v814_v5, %v775_v1  ;;  %v680_v12 = vadd.f32 %v2192_v19, %v679_v6  ;;  %1958 = vtanh.f32 %v877_v13 }
 0x10e   : > { %v924_v16 = vmul.f32 %v908_v10, %v796_v9 }
 0x10f   : > { %v729_v17 = vadd.f32 %v728_v7, %v680_v12  ;;  %v846_v18 = vmul.f32 %v830_v11, %v775_v1 }
 0x110   : > { %v935_v20 = vpack.c.bf16 %v924_v16, %v923_v14 }
 0x111   : > { %v778_v21 = vadd.f32 %v777_v63, %v729_v17  ;;  %v862_v23 = vadd.f32 %v846_v18, %v775_v1  ;;  %v784_v1 = vpop.f32.mrf.mxu2 }
 0x112   : > { %1826 = vmatmul.msk.bf16.gmra.mxu3 %vm615_vm0, %v935_v20 }
 0x113   : > { %v815_v25 = vmul.f32 0.044715, %v778_v21  ;;  %v878_v26 = vmul.f32 0.7978846, %v862_v23  ;;  %v1959_v31 = vpop.eup %1958  ;;  %v799_v11 = vmul.f32 0.5, %v778_v21 }
 0x114   : > { %v681_v15 = vpop.f32.mrf.mxu0  ;;  %v909_v37 = vadd.f32 1.0, %v1959_v31 }
 0x115   : > { %v730_v27 = vpop.f32.mrf.mxu1  ;;  %v831_v28 = vmul.f32 %v815_v25, %v778_v21  ;;  %v682_v30 = vadd.f32 %v2192_v19, %v681_v15  ;;  %1960 = vtanh.f32 %v878_v26 }
 0x116   : > { %v925_v51 = vmul.f32 %v909_v37, %v797_v44 }
 0x117   : > { %v731_v32 = vadd.f32 %v730_v27, %v682_v30  ;;  %v847_v33 = vmul.f32 %v831_v28, %v778_v21 }
 0x119   : > { %v780_v34 = vadd.f32 %v779_v22, %v731_v32  ;;  %v863_v35 = vadd.f32 %v847_v33, %v778_v21 }
 0x11b   : > { %v1961_v38 = vpop.eup %1960  ;;  %v816_v39 = vmul.f32 0.044715, %v780_v34  ;;  %v879_v50 = vmul.f32 0.7978846, %v863_v35  ;;  %v800_v12 = vmul.f32 0.5, %v780_v34 }
 0x11c   : > { %v684_v42 = vpop.f32.mrf.mxu0  ;;  %v910_v46 = vadd.f32 1.0, %v1961_v38 }
 0x11d   : > { %v733_v43 = vpop.f32.mrf.mxu1  ;;  %v832_v47 = vmul.f32 %v816_v39, %v780_v34  ;;  %v685_v49 = vadd.f32 %v2192_v19, %v684_v42  ;;  %1962 = vtanh.f32 %v879_v50 }
 0x11e   : > { %v926_v54 = vmul.f32 %v910_v46, %v798_v45 }
 0x11f   : > { %v734_v55 = vadd.f32 %v733_v43, %v685_v49  ;;  %v848_v56 = vmul.f32 %v832_v47, %v780_v34 }
 0x120   : > { %v936_v57 = vpack.c.bf16 %v926_v54, %v925_v51 }
 0x121   : > { %v783_v58 = vadd.f32 %v782_v41, %v734_v55  ;;  %v864_v59 = vadd.f32 %v848_v56, %v780_v34 }
 0x122   : > { %1827 = vmatmul.msk.bf16.gmra.mxu3 %vm615_vm0, %v936_v57 }
 0x123   : > { %v817_v60 = vmul.f32 0.044715, %v783_v58  ;;  %v880_v61 = vmul.f32 0.7978846, %v864_v59  ;;  %v1963_v2 = vpop.eup %1962  ;;  %v801_v39 = vmul.f32 0.5, %v783_v58 }
 0x124   : > { %v686_v62 = vpop.f32.mrf.mxu0  ;;  %v911_v7 = vadd.f32 1.0, %v1963_v2 }
 0x125   : > { %v735_v52 = vpop.f32.mrf.mxu1  ;;  %v833_v63 = vmul.f32 %v817_v60, %v783_v58  ;;  %v687_v0 = vadd.f32 %v2192_v19, %v686_v62  ;;  %1964 = vtanh.f32 %v880_v61 }
 0x126   : > { %v927_v18 = vmul.f32 %v911_v7, %v799_v11 }
 0x127   : > { %v736_v3 = vadd.f32 %v735_v52, %v687_v0  ;;  %v849_v4 = vmul.f32 %v833_v63, %v783_v58 }
 0x129   : > { %v785_v5 = vadd.f32 %v784_v1, %v736_v3  ;;  %v865_v6 = vadd.f32 %v849_v4, %v783_v58 }
 0x12b   : > { %v1965_v8 = vpop.eup %1964  ;;  %v818_v9 = vmul.f32 0.044715, %v785_v5  ;;  %v881_v17 = vmul.f32 0.7978846, %v865_v6  ;;  %v802_v41 = vmul.f32 0.5, %v785_v5 }
 0x12c   : > { %v747_v10 = vpop.f32.mrf.mxu0  ;;  %v912_v13 = vadd.f32 1.0, %v1965_v8 }
 0x12d   : > { %v834_v14 = vmul.f32 %v818_v9, %v785_v5  ;;  %v748_v16 = vadd.f32 %v747_v10, %v2195_v24  ;;  %1966 = vtanh.f32 %v881_v17 }
 0x12e   : > { %v928_v19 = vmul.f32 %v912_v13, %v800_v12 }
 0x12f   : > { %v803_v20 = vmul.f32 0.044715, %v748_v16  ;;  %v850_v22 = vmul.f32 %v834_v14, %v785_v5 }
 0x130   : > { %v937_v23 = vpack.c.bf16 %v928_v19, %v927_v18 }
 0x131   : > { %v819_v25 = vmul.f32 %v803_v20, %v748_v16  ;;  %v866_v26 = vadd.f32 %v850_v22, %v785_v5 }
 0x132   : > { %1828 = vmatmul.msk.bf16.gmra.mxu3 %vm615_vm0, %v937_v23 }
 0x133   : > { %v835_v15 = vmul.f32 %v819_v25, %v748_v16  ;;  %v882_v27 = vmul.f32 0.7978846, %v866_v26  ;;  %v1967_v31 = vpop.eup %1966 }
 0x134   : > { %v749_v28 = vpop.f32.mrf.mxu0  ;;  %v913_v34 = vadd.f32 1.0, %v1967_v31 }
 0x135   : > { %v851_v21 = vadd.f32 %v835_v15, %v748_v16  ;;  %v750_v30 = vadd.f32 %v749_v28, %v2202_v29  ;;  %1968 = vtanh.f32 %v882_v27 }
 0x136   : > { %v929_v45 = vmul.f32 %v913_v34, %v801_v39  ;;  %v1930_v39 = vld [vmem:[%s2374_s4 + $0x28] sm:$0xff] }
 0x137   : > { %v804_v24 = vmul.f32 0.044715, %v750_v30  ;;  %v867_v32 = vmul.f32 0.7978846, %v851_v21  ;;  %v788_v61 = vmul.f32 0.5, %v750_v30 }
 0x139   : > { %v820_v33 = vmul.f32 %v804_v24, %v750_v30  ;;  %1970 = vtanh.f32 %v867_v32 }
 0x13b   : > { %v1969_v35 = vpop.eup %1968  ;;  %v836_v37 = vmul.f32 %v820_v33, %v750_v30 }
 0x13c   : > { %v752_v38 = vpop.f32.mrf.mxu0  ;;  %v914_v42 = vadd.f32 1.0, %v1969_v35 }
 0x13d   : > { %v852_v43 = vadd.f32 %v836_v37, %v750_v30  ;;  %v753_v44 = vadd.f32 %v752_v38, %v2207_v36  ;;  %v787_v36 = vmul.f32 0.5, %v748_v16  ;;  %v1932_v37 = vld [vmem:[%s2374_s4 + $0x38] sm:$0xff]  ;;  %v1931_v38 = vld [vmem:[%s2374_s4 + $0x30] sm:$0xff] }
 0x13e   : > { %v930_v46 = vmul.f32 %v914_v42, %v802_v41  ;;  %1246 = vmatpush.bf16.msrb.mxu2 %v1932_v37  ;;  %v1929_v41 = vld [vmem:[%s2374_s4 + $0x20] sm:$0xff]  ;;  %v1928_v42 = vld [vmem:[%s2374_s4 + $0x18] sm:$0xff] }
 0x13f   : > { %v868_v47 = vmul.f32 0.7978846, %v852_v43  ;;  %v805_v29 = vmul.f32 0.044715, %v753_v44  ;;  %v1971_v51 = vpop.eup %1970  ;;  %v789_v18 = vmul.f32 0.5, %v753_v44  ;;  %v1927_v43 = vld [vmem:[%s2374_s4 + $0x10] sm:$0xff] }
 0x140   : > { %v938_v49 = vpack.c.bf16 %v930_v46, %v929_v45  ;;  %v899_v58 = vadd.f32 1.0, %v1971_v51  ;;  %v1925_v45 = vld [vmem:[%s2374_s4] sm:$0xff] }
 0x141   : > { %v821_v50 = vmul.f32 %v805_v29, %v753_v44  ;;  %1972 = vtanh.f32 %v868_v47  ;;  %v2276_v46 = vld [vmem:[%s2376_s6] sm:$0x7] }
 0x142   : > { %1829 = vmatmul.msk.bf16.gmra.mxu3 %vm615_vm0, %v938_v49  ;;  %v915_v0 = vmul.f32 %v899_v58, %v787_v36  ;;  %1247 = vmatpush.bf16.msrb.mxu2 %v1931_v38  ;;  %v2279_v47 = vperm.slane %v2276_v46, 0 }
 0x143   : > { %v837_v54 = vmul.f32 %v821_v50, %v753_v44 }
 0x144   : > { %v754_v55 = vpop.f32.mrf.mxu0 }
 0x145   : > { %v755_v56 = vadd.f32 %v754_v55, %v2211_v40  ;;  %v853_v57 = vadd.f32 %v837_v54, %v753_v44  ;;  %v1926_v44 = vld [vmem:[%s2374_s4 + $0x8] sm:$0xff] }
 0x146   : > { %1248 = vmatpush.bf16.msrb.mxu2 %v1930_v39 }
 0x147   : > { %v1973_v59 = vpop.eup %1972  ;;  %v806_v60 = vmul.f32 0.044715, %v755_v56  ;;  %v869_v63 = vmul.f32 0.7978846, %v853_v57  ;;  %v790_v19 = vmul.f32 0.5, %v755_v56 }
 0x148   : > { %v900_v62 = vadd.f32 1.0, %v1973_v59 }
 0x149   : > { %v822_v52 = vmul.f32 %v806_v60, %v755_v56  ;;  %1974 = vtanh.f32 %v869_v63 }
 0x14a   : > { %v916_v1 = vmul.f32 %v900_v62, %v788_v61  ;;  %1249 = vmatpush.bf16.msrb.mxu2 %v1929_v41 }
 0x14b   : > { %v838_v2 = vmul.f32 %v822_v52, %v755_v56 }
 0x14c   : > { %v757_v3 = vpop.f32.mrf.mxu0  ;;  %v931_v4 = vpack.c.bf16 %v916_v1, %v915_v0 }
 0x14d   : > { %v758_v5 = vadd.f32 %v757_v3, %v2216_v48  ;;  %v854_v6 = vadd.f32 %v838_v2, %v755_v56 }
 0x14e   : > { %1822 = vmatmul.msk.bf16.vlgmr.msrb.gmra.mxu1 %vm615_vm0, %v931_v4  ;;  %1250 = vmatpush.bf16.msrb.mxu2 %v1928_v42 }
 0x14f   : > { %v807_v40 = vmul.f32 0.044715, %v758_v5  ;;  %v870_v7 = vmul.f32 0.7978846, %v854_v6  ;;  %v1975_v9 = vpop.eup %1974  ;;  %v791_v31 = vmul.f32 0.5, %v758_v5 }
 0x150   : > { %v901_v14 = vadd.f32 1.0, %v1975_v9 }
 0x151   : > { %v823_v8 = vmul.f32 %v807_v40, %v758_v5  ;;  %1976 = vtanh.f32 %v870_v7 }
 0x152   : > { %v917_v23 = vmul.f32 %v901_v14, %v789_v18  ;;  %1251 = vmatpush.bf16.msrb.mxu2 %v1927_v43 }
 0x153   : > { %v839_v10 = vmul.f32 %v823_v8, %v758_v5 }
 0x154   : > { %v759_v11 = vpop.f32.mrf.mxu0 }
 0x155   : > { %v760_v12 = vadd.f32 %v759_v11, %v2220_v53  ;;  %v855_v13 = vadd.f32 %v839_v10, %v758_v5 }
 0x156   : > { %1252 = vmatpush.bf16.msrb.mxu2 %v1926_v44 }
 0x157   : > { %v1977_v16 = vpop.eup %1976  ;;  %v808_v17 = vmul.f32 0.044715, %v760_v12  ;;  %v871_v22 = vmul.f32 0.7978846, %v855_v13  ;;  %v792_v24 = vmul.f32 0.5, %v760_v12 }
 0x158   : > { %v902_v48 = vadd.f32 1.0, %v1977_v16 }
 0x159   : > { %v824_v20 = vmul.f32 %v808_v17, %v760_v12  ;;  %1978 = vtanh.f32 %v871_v22 }
 0x15a   : > { %v918_v25 = vmul.f32 %v902_v48, %v790_v19  ;;  %1253 = vmatpush.bf16.msrb.mxu2 %v1925_v45 }
 0x15b   : > { %v840_v26 = vmul.f32 %v824_v20, %v760_v12 }
 0x15c   : > { %v932_v15 = vpack.c.bf16 %v918_v25, %v917_v23 }
 0x15d   : > { %v856_v27 = vadd.f32 %v840_v26, %v760_v12 }
 0x15e   : > { %1823 = vmatmul.msk.bf16.gmra.mxu1 %vm615_vm0, %v932_v15 }
 0x15f   : > { %v872_v28 = vmul.f32 0.7978846, %v856_v27  ;;  %v1979_v53 = vpop.eup %1978 }
 0x160   : > { %v903_v21 = vadd.f32 1.0, %v1979_v53 }
 0x161   : > { %1980 = vtanh.f32 %v872_v28 }
 0x162   : > { %v919_v33 = vmul.f32 %v903_v21, %v791_v31 }
 0x167   : > { %v1981_v30 = vpop.eup %1980 }
 0x168   : > { %v904_v32 = vadd.f32 1.0, %v1981_v30 }
 0x16a   : > { %v920_v34 = vmul.f32 %v904_v32, %v792_v24 }
 0x16c   : > { %v933_v35 = vpack.c.bf16 %v920_v34, %v919_v33 }
 0x16e   : > { %1824 = vmatmul.msk.bf16.gmra.mxu1 %vm615_vm0, %v933_v35 }
 0x185   : > { %v1004_v58 = vpop.f32.mrf.mxu3 }
 0x186   : > { %v2290_v24 = vadd.f32 %v1004_v58, %v2279_v47 }
 0x188   : > { %v1051_v43 = vmul.f32 0.044715, %v2290_v24 }
 0x18d   : > { %v1006_v2 = vpop.f32.mrf.mxu3 }
 0x18e   : > { %v2287_v53 = vadd.f32 %v1006_v2, %v2279_v47 }
 0x190   : > { %v1052_v38 = vmul.f32 0.044715, %v2287_v53 }
 0x195   : > { %v1009_v17 = vpop.f32.mrf.mxu3 }
 0x19d   : > { %v1011_v30 = vpop.f32.mrf.mxu3 }
 0x1cb   : > { %v989_v29 = vpop.f32.mrf.mxu1 }
 0x1cc   : > { %v990_v49 = vadd.f32 %v989_v29, %v2279_v47 }
 0x1ce   : > { %v1045_v50 = vmul.f32 0.044715, %v990_v49  ;;  %v1029_v11 = vmul.f32 0.5, %v990_v49 }
 0x1d0   : > { %v1061_v51 = vmul.f32 %v1045_v50, %v990_v49 }
 0x1d2   : > { %v1077_v54 = vmul.f32 %v1061_v51, %v990_v49  ;;  %v1068_v51 = vmul.f32 %v1052_v38, %v2287_v53 }
 0x1d3   : > { %v991_v55 = vpop.f32.mrf.mxu1 }
 0x1d4   : > { %v992_v56 = vadd.f32 %v991_v55, %v2279_v47  ;;  %v1093_v57 = vadd.f32 %v1077_v54, %v990_v49 }
 0x1d6   : > { %v1046_v59 = vmul.f32 0.044715, %v992_v56  ;;  %v1109_v36 = vmul.f32 0.7978846, %v1093_v57  ;;  %v1030_v12 = vmul.f32 0.5, %v992_v56  ;;  %v1014_v57 = vpop.f32.mrf.mxu3 }
 0x1d8   : > { %v1062_v60 = vmul.f32 %v1046_v59, %v992_v56  ;;  %1982 = vtanh.f32 %v1109_v36  ;;  %v1084_v59 = vmul.f32 %v1068_v51, %v2287_v53 }
 0x1da   : > { %v1078_v61 = vmul.f32 %v1062_v60, %v992_v56 }
 0x1db   : > { %v994_v62 = vpop.f32.mrf.mxu1 }
 0x1dc   : > { %v995_v52 = vadd.f32 %v994_v62, %v2279_v47  ;;  %v1094_v63 = vadd.f32 %v1078_v61, %v992_v56  ;;  %v1067_v56 = vmul.f32 %v1051_v43, %v2290_v24  ;;  %v1012_v61 = vadd.f32 %v1011_v30, %v2279_v47 }
 0x1dd   : > { %v1100_v62 = vadd.f32 %v1084_v59, %v2287_v53 }
 0x1de   : > { %v1047_v0 = vmul.f32 0.044715, %v995_v52  ;;  %v1110_v1 = vmul.f32 0.7978846, %v1094_v63  ;;  %v1983_v4 = vpop.eup %1982  ;;  %v1031_v39 = vmul.f32 0.5, %v995_v52  ;;  %v1083_v60 = vmul.f32 %v1067_v56, %v2290_v24 }
 0x1df   : > { %v1141_v8 = vadd.f32 1.0, %v1983_v4  ;;  %v1054_v2 = vmul.f32 0.044715, %v1012_v61  ;;  %v1016_v4 = vpop.f32.mrf.mxu3  ;;  %v1038_v51 = vmul.f32 0.5, %v1012_v61 }
 0x1e0   : > { %1984 = vtanh.f32 %v1110_v1  ;;  %v1063_v3 = vmul.f32 %v1047_v0, %v995_v52  ;;  %v1099_v63 = vadd.f32 %v1083_v60, %v2290_v24 }
 0x1e1   : > { %v1157_v18 = vmul.f32 %v1141_v8, %v1029_v11  ;;  %v1070_v11 = vmul.f32 %v1054_v2, %v1012_v61 }
 0x1e2   : > { %v1079_v5 = vmul.f32 %v1063_v3, %v995_v52  ;;  %v1116_v3 = vmul.f32 0.7978846, %v1100_v62  ;;  %v1115_v8 = vmul.f32 0.7978846, %v1099_v63 }
 0x1e3   : > { %v996_v6 = vpop.f32.mrf.mxu1 }
 0x1e4   : > { %v997_v40 = vadd.f32 %v996_v6, %v2279_v47  ;;  %v1095_v7 = vadd.f32 %v1079_v5, %v995_v52  ;;  %v1010_v52 = vadd.f32 %v1009_v17, %v2279_v47 }
 0x1e6   : > { %v1985_v9 = vpop.eup %1984  ;;  %v1048_v10 = vmul.f32 0.044715, %v997_v40  ;;  %v1111_v16 = vmul.f32 0.7978846, %v1095_v7  ;;  %v1032_v41 = vmul.f32 0.5, %v997_v40 }
 0x1e7   : > { %v1142_v13 = vadd.f32 1.0, %v1985_v9  ;;  %v1053_v7 = vmul.f32 0.044715, %v1010_v52 }
 0x1e8   : > { %v1064_v14 = vmul.f32 %v1048_v10, %v997_v40  ;;  %1986 = vtanh.f32 %v1111_v16 }
 0x1e9   : > { %v1158_v19 = vmul.f32 %v1142_v13, %v1030_v12  ;;  %v1069_v13 = vmul.f32 %v1053_v7, %v1010_v52 }
 0x1ea   : > { %v1080_v48 = vmul.f32 %v1064_v14, %v997_v40  ;;  %v1086_v14 = vmul.f32 %v1070_v11, %v1012_v61 }
 0x1eb   : > { %v999_v20 = vpop.f32.mrf.mxu1  ;;  %v1173_v22 = vpack.c.bf16 %v1158_v19, %v1157_v18  ;;  %v1085_v17 = vmul.f32 %v1069_v13, %v1010_v52  ;;  %v1019_v18 = vpop.f32.mrf.mxu3 }
 0x1ec   : > { %v1000_v23 = vadd.f32 %v999_v20, %v2279_v47  ;;  %v1096_v25 = vadd.f32 %v1080_v48, %v997_v40  ;;  %v1017_v48 = vadd.f32 %v1016_v4, %v2279_v47  ;;  %v1102_v20 = vadd.f32 %v1086_v14, %v1012_v61 }
 0x1ed   : > { %1254 = vmatmul.bf16.vlgmr.msrb.gmra.mxu2 %v1173_v22 }
 0x1ee   : > { %v1049_v26 = vmul.f32 0.044715, %v1000_v23  ;;  %v1112_v15 = vmul.f32 0.7978846, %v1096_v25  ;;  %v1987_v28 = vpop.eup %1986  ;;  %v1033_v5 = vmul.f32 0.5, %v1000_v23  ;;  %v1101_v25 = vadd.f32 %v1085_v17, %v1010_v52 }
 0x1ef   : > { %v1143_v34 = vadd.f32 1.0, %v1987_v28  ;;  %v1118_v28 = vmul.f32 0.7978846, %v1102_v20 }
 0x1f0   : > { %1988 = vtanh.f32 %v1112_v15  ;;  %v1065_v27 = vmul.f32 %v1049_v26, %v1000_v23  ;;  %v1036_v26 = vmul.f32 0.5, %v2287_v53  ;;  %v1934_v53 = vld [vmem:[%s2375_s5 + $0x8] sm:$0xff] }
 0x1f1   : > { %v1159_v29 = vmul.f32 %v1143_v34, %v1031_v39  ;;  %1494 = vmatpush.bf16.msrb.mxu3 %v1934_v53 }
 0x1f2   : > { %v1081_v21 = vmul.f32 %v1065_v27, %v1000_v23  ;;  %v1056_v27 = vmul.f32 0.044715, %v1017_v48 }
 0x1f3   : > { %v1001_v31 = vpop.f32.mrf.mxu1 }
 0x1f4   : > { %v1002_v32 = vadd.f32 %v1001_v31, %v2279_v47  ;;  %v1097_v33 = vadd.f32 %v1081_v21, %v1000_v23  ;;  %v1015_v23 = vadd.f32 %v1014_v57, %v2279_v47  ;;  %v1035_v21 = vmul.f32 0.5, %v2290_v24 }
 0x1f5   : > { %v1072_v34 = vmul.f32 %v1056_v27, %v1017_v48  ;;  %v1037_v57 = vmul.f32 0.5, %v1010_v52 }
 0x1f6   : > { %v1989_v35 = vpop.eup %1988  ;;  %v1050_v37 = vmul.f32 0.044715, %v1002_v32  ;;  %v1113_v45 = vmul.f32 0.7978846, %v1097_v33  ;;  %v1034_v6 = vmul.f32 0.5, %v1002_v32 }
 0x1f7   : > { %v1144_v42 = vadd.f32 1.0, %v1989_v35  ;;  %v1055_v31 = vmul.f32 0.044715, %v1015_v23  ;;  %v1021_v35 = vpop.f32.mrf.mxu3  ;;  %v1088_v39 = vmul.f32 %v1072_v34, %v1017_v48 }
 0x1f8   : > { %v1066_v44 = vmul.f32 %v1050_v37, %v1002_v32  ;;  %1990 = vtanh.f32 %v1113_v45  ;;  %v1022_v43 = vadd.f32 %v1021_v35, %v2279_v47 }
 0x1f9   : > { %v1160_v49 = vmul.f32 %v1144_v42, %v1032_v41  ;;  %v1071_v38 = vmul.f32 %v1055_v31, %v1015_v23 }
 0x1fa   : > { %v1082_v50 = vmul.f32 %v1066_v44, %v1002_v32  ;;  %v1104_v44 = vadd.f32 %v1088_v39, %v1017_v48 }
 0x1fb   : > { %v1174_v54 = vpack.c.bf16 %v1160_v49, %v1159_v29  ;;  %v1087_v42 = vmul.f32 %v1071_v38, %v1015_v23  ;;  %v1020_v29 = vadd.f32 %v1019_v18, %v2279_v47 }
 0x1fc   : > { %v1098_v55 = vadd.f32 %v1082_v50, %v1002_v32  ;;  %v1117_v32 = vmul.f32 0.7978846, %v1101_v25  ;;  %v1120_v56 = vmul.f32 0.7978846, %v1104_v44 }
 0x1fd   : > { %1259 = vmatmul.bf16.gmra.mxu2 %v1174_v54  ;;  %v1103_v49 = vadd.f32 %v1087_v42, %v1015_v23  ;;  %v1057_v59 = vmul.f32 0.044715, %v1020_v29  ;;  %v1041_v31 = vmul.f32 0.5, %v1020_v29 }
 0x1fe   : > { %v1114_v58 = vmul.f32 0.7978846, %v1098_v55  ;;  %v1991_v36 = vpop.eup %1990  ;;  %v1058_v55 = vmul.f32 0.044715, %v1022_v43 }
 0x1ff   : > { %v1145_v0 = vadd.f32 1.0, %v1991_v36  ;;  %v1024_v50 = vpop.f32.mrf.mxu3  ;;  %v1119_v60 = vmul.f32 0.7978846, %v1103_v49 }
 0x200   : > { %1992 = vtanh.f32 %v1114_v58  ;;  %v1074_v62 = vmul.f32 %v1058_v55, %v1022_v43  ;;  %v1025_v52 = vadd.f32 %v1024_v50, %v2279_v47 }
 0x201   : > { %v1161_v9 = vmul.f32 %v1145_v0, %v1033_v5  ;;  %1994 = vtanh.f32 %v1116_v3  ;;  %v1073_v0 = vmul.f32 %v1057_v59, %v1020_v29 }
 0x202   : > { %1996 = vtanh.f32 %v1115_v8  ;;  %v1040_v8 = vmul.f32 0.5, %v1017_v48  ;;  %v1059_v14 = vmul.f32 0.044715, %v1025_v52  ;;  %v1043_v42 = vmul.f32 0.5, %v1025_v52 }
 0x203   : > { %1998 = vtanh.f32 %v1118_v28  ;;  %v1089_v4 = vmul.f32 %v1073_v0, %v1020_v29  ;;  %v1042_v28 = vmul.f32 0.5, %v1022_v43 }
 0x204   : > { %2000 = vtanh.f32 %v1117_v32  ;;  %v1075_v20 = vmul.f32 %v1059_v14, %v1025_v52 }
 0x205   : > { %2002 = vtanh.f32 %v1120_v56  ;;  %v1105_v7 = vadd.f32 %v1089_v4, %v1020_v29 }
 0x206   : > { %v1993_v1 = vpop.eup %1992  ;;  %2004 = vtanh.f32 %v1119_v60  ;;  %v1091_v25 = vmul.f32 %v1075_v20, %v1025_v52 }
 0x207   : > { %v1146_v40 = vadd.f32 1.0, %v1993_v1  ;;  %v1995_v16 = vpop.eup %1994  ;;  %v1090_v1 = vmul.f32 %v1074_v62, %v1022_v43  ;;  %v1026_v2 = vpop.f32.mrf.mxu3 }
 0x208   : > { %v1997_v19 = vpop.eup %1996  ;;  %v1148_v22 = vadd.f32 1.0, %v1995_v16  ;;  %v1027_v61 = vadd.f32 %v1026_v2, %v2279_v47  ;;  %v1121_v16 = vmul.f32 0.7978846, %v1105_v7  ;;  %v1933_v47 = vld [vmem:[%s2375_s5] sm:$0xff]  ;;  %v1107_v27 = vadd.f32 %v1091_v25, %v1025_v52 }
 0x209   : > { %v1162_v10 = vmul.f32 %v1146_v40, %v1034_v6  ;;  %v1147_v15 = vadd.f32 1.0, %v1997_v19  ;;  %v1999_v41 = vpop.eup %1998  ;;  %v1106_v6 = vadd.f32 %v1090_v1, %v1022_v43  ;;  %1495 = vmatpush.bf16.msrb.mxu3 %v1933_v47  ;;  %v2318_v43 = vperm.slane %v2276_v46, 1 }
 0x20a   : > { %v1164_v30 = vmul.f32 %v1148_v22, %v1036_v26  ;;  %v2001_v24 = vpop.eup %2000  ;;  %v1150_v45 = vadd.f32 1.0, %v1999_v41  ;;  %v1044_v39 = vmul.f32 0.5, %v1027_v61 }
 0x20b   : > { %v1175_v12 = vpack.c.bf16 %v1162_v10, %v1161_v9  ;;  %v1163_v33 = vmul.f32 %v1147_v15, %v1035_v21  ;;  %v1149_v54 = vadd.f32 1.0, %v2001_v24  ;;  %v2003_v3 = vpop.eup %2002  ;;  %v1060_v10 = vmul.f32 0.044715, %v1027_v61 }
 0x20c   : > { %v1166_v58 = vmul.f32 %v1150_v45, %v1038_v51  ;;  %v2005_v5 = vpop.eup %2004  ;;  %v1152_v40 = vadd.f32 1.0, %v2003_v3  ;;  %v1122_v11 = vmul.f32 0.7978846, %v1106_v6 }
 0x20d   : > { %1264 = vmatmul.bf16.gmra.mxu2 %v1175_v12  ;;  %v1176_v37 = vpack.c.bf16 %v1164_v30, %v1163_v33  ;;  %v1165_v36 = vmul.f32 %v1149_v54, %v1037_v57  ;;  %v1151_v9 = vadd.f32 1.0, %v2005_v5  ;;  %v1039_v12 = vmul.f32 0.5, %v1015_v23 }
 0x20e   : > { %v1168_v13 = vmul.f32 %v1152_v40, %v1040_v8  ;;  %v1076_v18 = vmul.f32 %v1060_v10, %v1027_v61  ;;  %2006 = vtanh.f32 %v1122_v11  ;;  %v1123_v33 = vmul.f32 0.7978846, %v1107_v27 }
 0x20f   : > { %v1177_v63 = vpack.c.bf16 %v1166_v58, %v1165_v36  ;;  %v1167_v17 = vmul.f32 %v1151_v9, %v1039_v12  ;;  %2008 = vtanh.f32 %v1121_v16 }
 0x210   : > { %v1092_v22 = vmul.f32 %v1076_v18, %v1027_v61 }
 0x211   : > { %v1178_v19 = vpack.c.bf16 %v1168_v13, %v1167_v17 }
 0x212   : > { %v1108_v23 = vadd.f32 %v1092_v22, %v1027_v61 }
 0x214   : > { %v2007_v48 = vpop.eup %2006  ;;  %v1124_v30 = vmul.f32 0.7978846, %v1108_v23 }
 0x215   : > { %v2009_v26 = vpop.eup %2008  ;;  %v1154_v15 = vadd.f32 1.0, %v2007_v48 }
 0x216   : > { %v1153_v21 = vadd.f32 1.0, %v2009_v26  ;;  %2010 = vtanh.f32 %v1124_v30 }
 0x217   : > { %v1170_v32 = vmul.f32 %v1154_v15, %v1042_v28  ;;  %2012 = vtanh.f32 %v1123_v33 }
 0x218   : > { %v1169_v34 = vmul.f32 %v1153_v21, %v1041_v31 }
 0x21a   : > { %v1179_v35 = vpack.c.bf16 %v1170_v32, %v1169_v34 }
 0x21d   : > { %1269 = vmatmul.bf16.gmra.mxu2 %v1176_v37  ;;  %v2011_v37 = vpop.eup %2010 }
 0x21e   : > { %v2013_v38 = vpop.eup %2012  ;;  %v1156_v53 = vadd.f32 1.0, %v2011_v37 }
 0x21f   : > { %v1155_v41 = vadd.f32 1.0, %v2013_v38 }
 0x220   : > { %v1172_v24 = vmul.f32 %v1156_v53, %v1044_v39 }
 0x221   : > { %v1171_v44 = vmul.f32 %v1155_v41, %v1043_v42 }
 0x223   : > { %v1180_v45 = vpack.c.bf16 %v1172_v24, %v1171_v44 }
 0x22d   : > { %1274 = vmatmul.bf16.gmra.mxu2 %v1177_v63 }
 0x23d   : > { %1279 = vmatmul.bf16.gmra.mxu2 %v1178_v19 }
 0x24d   : > { %1284 = vmatmul.bf16.gmra.mxu2 %v1179_v35 }
 0x25d   : > { %1289 = vmatmul.bf16.gmra.mxu2 %v1180_v45 }
 0x270   : > { %v1255_v29 = vpop.f32.mrf.mxu2 }
 0x271   : > { %v1256_v49 = vadd.f32 %v1255_v29, %v2318_v43 }
 0x273   : > { %v1311_v50 = vmul.f32 0.044715, %v1256_v49  ;;  %v1295_v9 = vmul.f32 0.5, %v1256_v49 }
 0x275   : > { %v1327_v51 = vmul.f32 %v1311_v50, %v1256_v49 }
 0x277   : > { %v1343_v54 = vmul.f32 %v1327_v51, %v1256_v49 }
 0x278   : > { %v1257_v55 = vpop.f32.mrf.mxu2 }
 0x279   : > { %v1359_v56 = vadd.f32 %v1343_v54, %v1256_v49  ;;  %v1258_v57 = vadd.f32 %v1257_v55, %v2318_v43 }
 0x27b   : > { %v1312_v58 = vmul.f32 0.044715, %v1258_v57  ;;  %v1375_v59 = vmul.f32 0.7978846, %v1359_v56  ;;  %v1296_v10 = vmul.f32 0.5, %v1258_v57 }
 0x27d   : > { %v1328_v60 = vmul.f32 %v1312_v58, %v1258_v57  ;;  %2014 = vtanh.f32 %v1375_v59 }
 0x27f   : > { %v1344_v36 = vmul.f32 %v1328_v60, %v1258_v57 }
 0x280   : > { %v1260_v62 = vpop.f32.mrf.mxu2 }
 0x281   : > { %v1360_v63 = vadd.f32 %v1344_v36, %v1258_v57  ;;  %v1261_v0 = vadd.f32 %v1260_v62, %v2318_v43 }
 0x283   : > { %v1376_v1 = vmul.f32 0.7978846, %v1360_v63  ;;  %v1313_v2 = vmul.f32 0.044715, %v1261_v0  ;;  %v2015_v4 = vpop.eup %2014  ;;  %v1297_v32 = vmul.f32 0.5, %v1261_v0 }
 0x284   : > { %v1407_v52 = vadd.f32 1.0, %v2015_v4 }
 0x285   : > { %v1329_v3 = vmul.f32 %v1313_v2, %v1261_v0  ;;  %2016 = vtanh.f32 %v1376_v1 }
 0x286   : > { %v1423_v14 = vmul.f32 %v1407_v52, %v1295_v9 }
 0x287   : > { %v1345_v5 = vmul.f32 %v1329_v3, %v1261_v0 }
 0x288   : > { %v1262_v61 = vpop.f32.mrf.mxu2 }
 0x289   : > { %v1263_v6 = vadd.f32 %v1262_v61, %v2318_v43  ;;  %v1361_v40 = vadd.f32 %v1345_v5, %v1261_v0 }
 0x28b   : > { %v2017_v7 = vpop.eup %2016  ;;  %v1314_v8 = vmul.f32 0.044715, %v1263_v6  ;;  %v1377_v13 = vmul.f32 0.7978846, %v1361_v40  ;;  %v1298_v33 = vmul.f32 0.5, %v1263_v6 }
 0x28c   : > { %v1408_v11 = vadd.f32 1.0, %v2017_v7 }
 0x28d   : > { %v1330_v12 = vmul.f32 %v1314_v8, %v1263_v6  ;;  %2018 = vtanh.f32 %v1377_v13 }
 0x28e   : > { %v1424_v16 = vmul.f32 %v1408_v11, %v1296_v10 }
 0x28f   : > { %v1346_v17 = vmul.f32 %v1330_v12, %v1263_v6 }
 0x290   : > { %v1265_v18 = vpop.f32.mrf.mxu2  ;;  %v1439_v19 = vpack.c.bf16 %v1424_v16, %v1423_v14 }
 0x291   : > { %v1266_v20 = vadd.f32 %v1265_v18, %v2318_v43  ;;  %v1362_v47 = vadd.f32 %v1346_v17, %v1263_v6 }
 0x292   : > { %1870 = vmatmul.msk.bf16.vlgmr.msrb.gmra.mxu3 %vm615_vm0, %v1439_v19 }
 0x293   : > { %v1315_v22 = vmul.f32 0.044715, %v1266_v20  ;;  %v1378_v48 = vmul.f32 0.7978846, %v1362_v47  ;;  %v2019_v26 = vpop.eup %2018  ;;  %v1299_v60 = vmul.f32 0.5, %v1266_v20 }
 0x294   : > { %v1409_v21 = vadd.f32 1.0, %v2019_v26 }
 0x295   : > { %v1331_v25 = vmul.f32 %v1315_v22, %v1266_v20  ;;  %2020 = vtanh.f32 %v1378_v48 }
 0x296   : > { %v1425_v38 = vmul.f32 %v1409_v21, %v1297_v32 }
 0x297   : > { %v1347_v23 = vmul.f32 %v1331_v25, %v1266_v20 }
 0x298   : > { %v1267_v15 = vpop.f32.mrf.mxu2 }
 0x299   : > { %v1268_v27 = vadd.f32 %v1267_v15, %v2318_v43  ;;  %v1363_v28 = vadd.f32 %v1347_v23, %v1266_v20 }
 0x29b   : > { %v2021_v30 = vpop.eup %2020  ;;  %v1316_v31 = vmul.f32 0.044715, %v1268_v27  ;;  %v1379_v37 = vmul.f32 0.7978846, %v1363_v28  ;;  %v1300_v36 = vmul.f32 0.5, %v1268_v27 }
 0x29c   : > { %v1410_v34 = vadd.f32 1.0, %v2021_v30 }
 0x29d   : > { %v1332_v35 = vmul.f32 %v1316_v31, %v1268_v27  ;;  %2022 = vtanh.f32 %v1379_v37 }
 0x29e   : > { %v1426_v53 = vmul.f32 %v1410_v34, %v1298_v33 }
 0x29f   : > { %v1348_v39 = vmul.f32 %v1332_v35, %v1268_v27 }
 0x2a0   : > { %v1270_v41 = vpop.f32.mrf.mxu2  ;;  %v1440_v42 = vpack.c.bf16 %v1426_v53, %v1425_v38 }
 0x2a1   : > { %v1271_v24 = vadd.f32 %v1270_v41, %v2318_v43  ;;  %v1364_v44 = vadd.f32 %v1348_v39, %v1268_v27 }
 0x2a2   : > { %1871 = vmatmul.msk.bf16.gmra.mxu3 %vm615_vm0, %v1440_v42 }
 0x2a3   : > { %v1317_v45 = vmul.f32 0.044715, %v1271_v24  ;;  %v1380_v29 = vmul.f32 0.7978846, %v1364_v44  ;;  %v2023_v50 = vpop.eup %2022  ;;  %v1301_v17 = vmul.f32 0.5, %v1271_v24 }
 0x2a4   : > { %v1411_v57 = vadd.f32 1.0, %v2023_v50 }
 0x2a5   : > { %v1333_v49 = vmul.f32 %v1317_v45, %v1271_v24  ;;  %2024 = vtanh.f32 %v1380_v29 }
 0x2a6   : > { %v1427_v1 = vmul.f32 %v1411_v57, %v1299_v60 }
 0x2a7   : > { %v1349_v51 = vmul.f32 %v1333_v49, %v1271_v24 }
 0x2a8   : > { %v1272_v54 = vpop.f32.mrf.mxu2 }
 0x2a9   : > { %v1273_v55 = vadd.f32 %v1272_v54, %v2318_v43  ;;  %v1365_v56 = vadd.f32 %v1349_v51, %v1271_v24 }
 0x2ab   : > { %v2025_v58 = vpop.eup %2024  ;;  %v1318_v59 = vmul.f32 0.044715, %v1273_v55  ;;  %v1381_v0 = vmul.f32 0.7978846, %v1365_v56  ;;  %v1302_v18 = vmul.f32 0.5, %v1273_v55 }
 0x2ac   : > { %v1412_v62 = vadd.f32 1.0, %v2025_v58 }
 0x2ad   : > { %v1334_v63 = vmul.f32 %v1318_v59, %v1273_v55  ;;  %2026 = vtanh.f32 %v1381_v0 }
 0x2ae   : > { %v1428_v2 = vmul.f32 %v1412_v62, %v1300_v36 }
 0x2af   : > { %v1350_v3 = vmul.f32 %v1334_v63, %v1273_v55 }
 0x2b0   : > { %v1275_v4 = vpop.f32.mrf.mxu2  ;;  %v1441_v5 = vpack.c.bf16 %v1428_v2, %v1427_v1 }
 0x2b1   : > { %v1276_v61 = vadd.f32 %v1275_v4, %v2318_v43  ;;  %v1366_v6 = vadd.f32 %v1350_v3, %v1273_v55 }
 0x2b2   : > { %1872 = vmatmul.msk.bf16.gmra.mxu3 %vm615_vm0, %v1441_v5 }
 0x2b3   : > { %v1319_v40 = vmul.f32 0.044715, %v1276_v61  ;;  %v1382_v52 = vmul.f32 0.7978846, %v1366_v6  ;;  %v2027_v8 = vpop.eup %2026  ;;  %v1303_v39 = vmul.f32 0.5, %v1276_v61 }
 0x2b4   : > { %v1413_v13 = vadd.f32 1.0, %v2027_v8 }
 0x2b5   : > { %v1335_v7 = vmul.f32 %v1319_v40, %v1276_v61  ;;  %2028 = vtanh.f32 %v1382_v52 }
 0x2b6   : > { %v1429_v22 = vmul.f32 %v1413_v13, %v1301_v17 }
 0x2b7   : > { %v1351_v9 = vmul.f32 %v1335_v7, %v1276_v61 }
 0x2b8   : > { %v1277_v10 = vpop.f32.mrf.mxu2 }
 0x2b9   : > { %v1278_v11 = vadd.f32 %v1277_v10, %v2318_v43  ;;  %v1367_v12 = vadd.f32 %v1351_v9, %v1276_v61 }
 0x2bb   : > { %v2029_v14 = vpop.eup %2028  ;;  %v1320_v16 = vmul.f32 0.044715, %v1278_v11  ;;  %v1383_v47 = vmul.f32 0.7978846, %v1367_v12  ;;  %v1304_v41 = vmul.f32 0.5, %v1278_v11 }
 0x2bc   : > { %v1414_v19 = vadd.f32 1.0, %v2029_v14 }
 0x2bd   : > { %v1336_v20 = vmul.f32 %v1320_v16, %v1278_v11  ;;  %2030 = vtanh.f32 %v1383_v47 }
 0x2be   : > { %v1430_v48 = vmul.f32 %v1414_v19, %v1302_v18 }
 0x2bf   : > { %v1352_v25 = vmul.f32 %v1336_v20, %v1278_v11 }
 0x2c0   : > { %v1280_v26 = vpop.f32.mrf.mxu2  ;;  %v1442_v23 = vpack.c.bf16 %v1430_v48, %v1429_v22 }
 0x2c1   : > { %v1281_v15 = vadd.f32 %v1280_v26, %v2318_v43  ;;  %v1368_v27 = vadd.f32 %v1352_v25, %v1278_v11 }
 0x2c2   : > { %1873 = vmatmul.msk.bf16.gmra.mxu3 %vm615_vm0, %v1442_v23 }
 0x2c3   : > { %v1321_v28 = vmul.f32 0.044715, %v1281_v15  ;;  %v1384_v21 = vmul.f32 0.7978846, %v1368_v27  ;;  %v2031_v31 = vpop.eup %2030  ;;  %v1305_v3 = vmul.f32 0.5, %v1281_v15 }
 0x2c4   : > { %v1415_v37 = vadd.f32 1.0, %v2031_v31 }
 0x2c5   : > { %v1337_v30 = vmul.f32 %v1321_v28, %v1281_v15  ;;  %2032 = vtanh.f32 %v1384_v21 }
 0x2c6   : > { %v1431_v45 = vmul.f32 %v1415_v37, %v1303_v39 }
 0x2c7   : > { %v1353_v32 = vmul.f32 %v1337_v30, %v1281_v15 }
 0x2c8   : > { %v1282_v33 = vpop.f32.mrf.mxu2 }
 0x2c9   : > { %v1283_v34 = vadd.f32 %v1282_v33, %v2318_v43  ;;  %v1369_v35 = vadd.f32 %v1353_v32, %v1281_v15 }
 0x2cb   : > { %v2033_v38 = vpop.eup %2032  ;;  %v1322_v53 = vmul.f32 0.044715, %v1283_v34  ;;  %v1385_v44 = vmul.f32 0.7978846, %v1369_v35  ;;  %v1306_v4 = vmul.f32 0.5, %v1283_v34 }
 0x2cc   : > { %v1416_v42 = vadd.f32 1.0, %v2033_v38 }
 0x2cd   : > { %v1338_v24 = vmul.f32 %v1322_v53, %v1283_v34  ;;  %2034 = vtanh.f32 %v1385_v44 }
 0x2ce   : > { %v1432_v29 = vmul.f32 %v1416_v42, %v1304_v41 }
 0x2cf   : > { %v1354_v49 = vmul.f32 %v1338_v24, %v1283_v34  ;;  %v1451_v24 = vperm.slane %v2276_v46, 2 }
 0x2d0   : > { %v1285_v50 = vpop.f32.mrf.mxu2  ;;  %v1443_v51 = vpack.c.bf16 %v1432_v29, %v1431_v45 }
 0x2d1   : > { %v1286_v54 = vadd.f32 %v1285_v50, %v2318_v43  ;;  %v1370_v55 = vadd.f32 %v1354_v49, %v1283_v34 }
 0x2d2   : > { %1874 = vmatmul.msk.bf16.gmra.mxu3 %vm615_vm0, %v1443_v51 }
 0x2d3   : > { %v1323_v56 = vmul.f32 0.044715, %v1286_v54  ;;  %v1386_v57 = vmul.f32 0.7978846, %v1370_v55  ;;  %v2035_v59 = vpop.eup %2034  ;;  %v1307_v25 = vmul.f32 0.5, %v1286_v54 }
 0x2d4   : > { %v1417_v0 = vadd.f32 1.0, %v2035_v59 }
 0x2d5   : > { %v1339_v58 = vmul.f32 %v1323_v56, %v1286_v54  ;;  %2036 = vtanh.f32 %v1386_v57 }
 0x2d6   : > { %v1433_v40 = vmul.f32 %v1417_v0, %v1305_v3 }
 0x2d7   : > { %v1355_v60 = vmul.f32 %v1339_v58, %v1286_v54 }
 0x2d8   : > { %v1287_v36 = vpop.f32.mrf.mxu2 }
 0x2d9   : > { %v1288_v62 = vadd.f32 %v1287_v36, %v2318_v43  ;;  %v1371_v63 = vadd.f32 %v1355_v60, %v1286_v54 }
 0x2db   : > { %v2037_v1 = vpop.eup %2036  ;;  %v1324_v2 = vmul.f32 0.044715, %v1288_v62  ;;  %v1387_v6 = vmul.f32 0.7978846, %v1371_v63  ;;  %v1308_v26 = vmul.f32 0.5, %v1288_v62 }
 0x2dc   : > { %v1418_v5 = vadd.f32 1.0, %v2037_v1 }
 0x2dd   : > { %v1340_v61 = vmul.f32 %v1324_v2, %v1288_v62  ;;  %2038 = vtanh.f32 %v1387_v6 }
 0x2de   : > { %v1434_v52 = vmul.f32 %v1418_v5, %v1306_v4 }
 0x2df   : > { %v1356_v7 = vmul.f32 %v1340_v61, %v1288_v62 }
 0x2e0   : > { %v1290_v8 = vpop.f32.mrf.mxu2  ;;  %v1444_v9 = vpack.c.bf16 %v1434_v52, %v1433_v40 }
 0x2e1   : > { %v1291_v10 = vadd.f32 %v1290_v8, %v2318_v43  ;;  %v1372_v11 = vadd.f32 %v1356_v7, %v1288_v62 }
 0x2e2   : > { %1875 = vmatmul.msk.bf16.gmra.mxu3 %vm615_vm0, %v1444_v9 }
 0x2e3   : > { %v1325_v12 = vmul.f32 0.044715, %v1291_v10  ;;  %v1388_v13 = vmul.f32 0.7978846, %v1372_v11  ;;  %v2039_v16 = vpop.eup %2038  ;;  %v1309_v37 = vmul.f32 0.5, %v1291_v10 }
 0x2e4   : > { %v1419_v47 = vadd.f32 1.0, %v2039_v16 }
 0x2e5   : > { %v1341_v14 = vmul.f32 %v1325_v12, %v1291_v10  ;;  %2040 = vtanh.f32 %v1388_v13 }
 0x2e6   : > { %v1435_v28 = vmul.f32 %v1419_v47, %v1307_v25 }
 0x2e7   : > { %v1357_v17 = vmul.f32 %v1341_v14, %v1291_v10 }
 0x2e8   : > { %v1292_v18 = vpop.f32.mrf.mxu2 }
 0x2e9   : > { %v1373_v19 = vadd.f32 %v1357_v17, %v1291_v10  ;;  %v1293_v20 = vadd.f32 %v1292_v18, %v2318_v43 }
 0x2eb   : > { %v2041_v22 = vpop.eup %2040  ;;  %v1326_v48 = vmul.f32 0.044715, %v1293_v20  ;;  %v1389_v15 = vmul.f32 0.7978846, %v1373_v19  ;;  %v1310_v38 = vmul.f32 0.5, %v1293_v20 }
 0x2ec   : > { %v1420_v23 = vadd.f32 1.0, %v2041_v22 }
 0x2ed   : > { %v1342_v27 = vmul.f32 %v1326_v48, %v1293_v20  ;;  %2042 = vtanh.f32 %v1389_v15 }
 0x2ee   : > { %v1436_v21 = vmul.f32 %v1420_v23, %v1308_v26 }
 0x2ef   : > { %v1358_v30 = vmul.f32 %v1342_v27, %v1293_v20 }
 0x2f0   : > { %v1445_v31 = vpack.c.bf16 %v1436_v21, %v1435_v28 }
 0x2f1   : > { %v1374_v32 = vadd.f32 %v1358_v30, %v1293_v20 }
 0x2f2   : > { %1876 = vmatmul.msk.bf16.gmra.mxu3 %vm615_vm0, %v1445_v31 }
 0x2f3   : > { %v1390_v33 = vmul.f32 0.7978846, %v1374_v32  ;;  %v2043_v43 = vpop.eup %2042 }
 0x2f4   : > { %v1421_v34 = vadd.f32 1.0, %v2043_v43 }
 0x2f5   : > { %2044 = vtanh.f32 %v1390_v33 }
 0x2f6   : > { %v1437_v39 = vmul.f32 %v1421_v34, %v1309_v37 }
 0x2fb   : > { %v2045_v35 = vpop.eup %2044 }
 0x2fc   : > { %v1422_v53 = vadd.f32 1.0, %v2045_v35 }
 0x2fe   : > { %v1438_v41 = vmul.f32 %v1422_v53, %v1310_v38 }
 0x300   : > { %v1446_v42 = vpack.c.bf16 %v1438_v41, %v1437_v39 }
 0x302   : > { %1877 = vmatmul.msk.bf16.gmra.mxu3 %vm615_vm0, %v1446_v42 }
 0x315   : > { %v1497_v44 = vpop.f32.mrf.mxu3 }
 0x316   : > { %v1498_v45 = vadd.f32 %v1497_v44, %v1451_v24 }
 0x318   : > { %1537 = vst [vmem:[%s2349_s26] sm:$0xff] %v1498_v45 }
 0x31d   : > { %v1499_v29 = vpop.f32.mrf.mxu3 }
 0x31e   : > { %v1500_v49 = vadd.f32 %v1499_v29, %v1451_v24 }
 0x320   : > { %1538 = vst [vmem:[%s2349_s26 + $0x8] sm:$0xff] %v1500_v49 }
 0x325   : > { %v1502_v50 = vpop.f32.mrf.mxu3 }
 0x326   : > { %v1503_v46 = vadd.f32 %v1502_v50, %v1451_v24 }
 0x328   : > { %1539 = vst [vmem:[%s2349_s26 + $0x10] sm:$0xff] %v1503_v46 }
 0x32d   : > { %v1504_v51 = vpop.f32.mrf.mxu3 }
 0x32e   : > { %v1505_v54 = vadd.f32 %v1504_v51, %v1451_v24 }
 0x330   : > { %1540 = vst [vmem:[%s2349_s26 + $0x18] sm:$0xff] %v1505_v54 }
 0x335   : > { %v1507_v55 = vpop.f32.mrf.mxu3 }
 0x336   : > { %v1508_v56 = vadd.f32 %v1507_v55, %v1451_v24 }
 0x338   : > { %1541 = vst [vmem:[%s2349_s26 + $0x20] sm:$0xff] %v1508_v56 }
 0x33d   : > { %v1509_v57 = vpop.f32.mrf.mxu3 }
 0x33e   : > { %v1510_v58 = vadd.f32 %v1509_v57, %v1451_v24 }
 0x340   : > { %1542 = vst [vmem:[%s2349_s26 + $0x28] sm:$0xff] %v1510_v58 }
 0x345   : > { %v1512_v59 = vpop.f32.mrf.mxu3 }
 0x346   : > { %v1513_v60 = vadd.f32 %v1512_v59, %v1451_v24 }
 0x348   : > { %1543 = vst [vmem:[%s2349_s26 + $0x30] sm:$0xff] %v1513_v60 }
 0x34d   : > { %v1514_v36 = vpop.f32.mrf.mxu3 }
 0x34e   : > { %v1515_v62 = vadd.f32 %v1514_v36, %v1451_v24 }
 0x350   : > { %1544 = vst [vmem:[%s2349_s26 + $0x38] sm:$0xff] %v1515_v62 }
 0x355   : > { %v1517_v63 = vpop.f32.mrf.mxu3 }
 0x356   : > { %v1518_v0 = vadd.f32 %v1517_v63, %v1451_v24 }
 0x358   : > { %1545 = vst [vmem:[%s2349_s26 + $0x40] sm:$0xff] %v1518_v0 }
 0x35d   : > { %v1519_v1 = vpop.f32.mrf.mxu3 }
 0x35e   : > { %v1520_v2 = vadd.f32 %v1519_v1, %v1451_v24 }
 0x360   : > { %1546 = vst [vmem:[%s2349_s26 + $0x48] sm:$0xff] %v1520_v2 }
 0x365   : > { %v1522_v3 = vpop.f32.mrf.mxu3 }
 0x366   : > { %v1523_v4 = vadd.f32 %v1522_v3, %v1451_v24 }
 0x368   : > { %1547 = vst [vmem:[%s2349_s26 + $0x50] sm:$0xff] %v1523_v4 }
 0x36d   : > { %v1524_v5 = vpop.f32.mrf.mxu3 }
 0x36e   : > { %v1525_v61 = vadd.f32 %v1524_v5, %v1451_v24 }
 0x370   : > { %1548 = vst [vmem:[%s2349_s26 + $0x58] sm:$0xff] %v1525_v61 }
 0x375   : > { %v1527_v6 = vpop.f32.mrf.mxu3 }
 0x376   : > { %v1528_v40 = vadd.f32 %v1527_v6, %v1451_v24 }
 0x378   : > { %1549 = vst [vmem:[%s2349_s26 + $0x60] sm:$0xff] %v1528_v40 }
 0x37d   : > { %v1529_v52 = vpop.f32.mrf.mxu3 }
 0x37e   : > { %v1530_v7 = vadd.f32 %v1529_v52, %v1451_v24 }
 0x380   : > { %1550 = vst [vmem:[%s2349_s26 + $0x68] sm:$0xff] %v1530_v7 }
 0x385   : > { %v1532_v8 = vpop.f32.mrf.mxu3 }
 0x386   : > { %v1533_v9 = vadd.f32 %v1532_v8, %v1451_v24 }
 0x388   : > { %1551 = vst [vmem:[%s2349_s26 + $0x70] sm:$0xff] %v1533_v9 }
 0x38d   : > { %v1534_v10 = vpop.f32.mrf.mxu3 }
 0x38e   : > { %v1535_v11 = vadd.f32 %v1534_v10, %v1451_v24 }
 0x390   : > { %1552 = vst [vmem:[%s2349_s26 + $0x78] sm:$0xff] %v1535_v11 }
 0x391 PF: > { %s17_s24 = sadd.s32 1, %s2052_s24  }
 0x392   : > { %p14_p4 = scmp.ge.s32.totalorder %s17_s24, 4  }
 0x394   :  { %16 = sbr.rel (!%p14_p4) target bundleno = 1 (0x1), region = 84 }

</bundles_post_ra>
